<compile_context>
chip_gen: v6e
topology: v6e:2x2x1
jax: 0.10.0
libtpu: 0.0.40
codegen_flags: <defaults>
</compile_context>

<pallas_src>
import functools
import math

import jax
import jax.numpy as jnp
from jax.experimental import pallas as pl
from jax.experimental.pallas import tpu as pltpu

KSZ = 7          # kernel_size of every conv except the 1x1 output conv
STRIDE = 4       # down / up sampling stride
BN_EPS = 1e-3    # the module constructs every BatchNorm1d with eps=0.001


# ----------------------------------------------------------------------------
# Wrapper-side parameter transforms (tiny jnp ops on weights)
# ----------------------------------------------------------------------------
def _fold_bn(bn, conv_bias=None, eps=BN_EPS):
    gamma, beta, mean, var = bn
    scale = gamma / jnp.sqrt(var + eps)
    bias = beta - mean * scale
    if conv_bias is not None:
        bias = bias + conv_bias * scale
    return (scale.reshape(-1, 1).astype(jnp.float32),
            bias.reshape(-1, 1).astype(jnp.float32))


def _conv_wflat(w_ock):
    """PyTorch Conv1d weight (Cout, Cin, K) -> (Cout, K*Cin) bf16.
    Column index = k*Cin + ci, matching the in-kernel im2col row order."""
    co, ci, k = w_ock.shape
    return jnp.transpose(w_ock, (0, 2, 1)).reshape(co, k * ci).astype(jnp.bfloat16)


def _convT_wflat(w_iok):
    """PyTorch ConvTranspose1d weight (Cin, Cout, K) -> equivalent regular-conv
    flat taps on the zero-dilated input: W[co, k*Cin+ci] = w[ci, co, K-1-k]."""
    ci, co, k = w_iok.shape
    wc = jnp.transpose(w_iok[:, :, ::-1], (1, 2, 0))          # (co, k, ci)
    return wc.reshape(co, k * ci).astype(jnp.bfloat16)


def _sel_matrix(lfull, lout, stride):
    """0/1 matrix selecting every `stride`-th column (precomputed, bf16)."""
    r = jnp.arange(lfull)[:, None]
    c = jnp.arange(lout)[None, :]
    return (r == c * stride).astype(jnp.bfloat16)


def _dil_matrix(lin, stride):
    """0/1 matrix zero-stuffing columns (ConvTranspose input dilation)."""
    ldil = (lin - 1) * stride + 1
    r = jnp.arange(lin)[:, None]
    c = jnp.arange(ldil)[None, :]
    return (c == r * stride).astype(jnp.bfloat16)


# ----------------------------------------------------------------------------
# Full forward: one fused Pallas kernel for the whole network.
# Activations use a (channels, length) layout (length on the lane axis).
# ----------------------------------------------------------------------------
def phasenet_ema_forward(params, x_ncl, logits=False):
    """PhaseNetEMA forward.  x_ncl: (B, in_channels, L) -> (B, classes, L)."""
    B, Cin, L = x_ncl.shape
    K = KSZ
    classes = params["out_w"].shape[0]

    # -------- static plan + flat operand lists ------------------------------
    weights = []            # pallas inputs after x (flat taps / sel / dil / sb)
    ops = []                # static per-layer descriptors executed in-kernel
    sb_scales, sb_biases = [], []
    skip_shapes = []
    pad_max = [1, 1]        # (rows, cols) of the single shared pad scratch

    def w_idx(a):
        weights.append(a)
        return len(weights) - 1

    def sb_push(scale, bias):
        off = sum(int(a.shape[0]) for a in sb_scales)
        sb_scales.append(scale)
        sb_biases.append(bias)
        return off

    def skip_push(c, lout):
        skip_shapes.append((c, lout + 2 * (K // 2)))
        return len(skip_shapes)          # scratch index (0 is the shared pad)

    def need_pad(rows, cols):
        pad_max[0] = max(pad_max[0], rows)
        pad_max[1] = max(pad_max[1], cols)

    def plan_conv(w_ock, bn, conv_bias, lin, cin, pad_l, pad_r, stride=1,
                  skip_scr=None):
        cout = int(w_ock.shape[0])
        lp = lin + pad_l + pad_r
        lfull = lp - K + 1
        lout = (lp - K) // stride + 1
        assert lfull >= 1 and lout >= 1, "sequence too short"
        scale, bias = _fold_bn(bn, conv_bias)
        sel = None
        if stride > 1 and lout != lfull:
            sel = w_idx(_sel_matrix(lfull, lout, stride))
        need_pad(cin, lp)
        ops.append(dict(kind="conv", w=w_idx(_conv_wflat(w_ock)),
                        sb=sb_push(scale, bias), Cin=cin, Lin=lin, Cout=cout,
                        Lfull=lfull, Lout=lout, pad_l=pad_l, pad_r=pad_r,
                        sel=sel, skip=skip_scr))
        return lout, cout

    # inc -> BN -> ReLU   (EMA == identity, see TODO at the top)
    lcur, ccur = plan_conv(params["inc_w"], params["in_bn"], params["inc_b"],
                           L, Cin, K // 2, K // 2)

    # down branch. Padding before the stride-4 conv mirrors the module exactly:
    # stage 0 uses Conv1d(padding=3); stages 1..3 use F.pad((2,3)/(1,3)/(2,3))
    # followed by Conv1d(padding=0).
    down_pad = {0: (3, 3), 1: (2, 3), 2: (1, 3), 3: (2, 3)}
    skip_info = []
    for i, d in enumerate(params["down"]):
        has_down = "conv_down_w" in d
        f = int(d["conv_same_w"].shape[0])
        skip_scr = None
        if has_down:
            skip_scr = skip_push(f, lcur)            # conv_same keeps length
            skip_info.append((skip_scr, f, lcur))
        lcur, ccur = plan_conv(d["conv_same_w"], d["bn1"], None, lcur, ccur,
                               K // 2, K // 2, skip_scr=skip_scr)
        if has_down:
            pl_, pr_ = down_pad[i]
            lcur, ccur = plan_conv(d["conv_down_w"], d["bn2"], None, lcur,
                                   ccur, pl_, pr_, stride=STRIDE)

    # up branch
    for i, u in enumerate(params["up"]):
        skip_scr, cskip, lskip = skip_info[-(i + 1)]
        wt = u["conv_up_w"]                          # (Ccur, f, K)
        f = int(wt.shape[1])
        assert f == cskip
        ldil = (lcur - 1) * STRIDE + 1
        lup = ldil + K - 1                           # ConvTranspose1d out len
        off = (lup - lskip) // 2
        assert 0 <= off and off + lskip <= lup, "skip/upsample length mismatch"
        scale, bias = _fold_bn(u["bn1"])
        dil = w_idx(_dil_matrix(lcur, STRIDE)) if lcur > 1 else None
        need_pad(ccur, ldil + 2 * (K - 1))
        ops.append(dict(kind="up", w=w_idx(_convT_wflat(wt)),
                        sb=sb_push(scale, bias), dil=dil, Cin=ccur, Ldil=ldil,
                        off=off, Lskip=lskip, Cout=f))
        # conv_same over concat([skip, x_up]) folded into two accumulated dots
        ws = u["conv_same_w"]                        # (f, 2f, K)
        assert int(ws.shape[1]) == 2 * f
        scale, bias = _fold_bn(u["bn2"])
        need_pad(f, lskip + 2 * (K // 2))
        ops.append(dict(kind="merge", wa=w_idx(_conv_wflat(ws[:, :f, :])),
                        wb=w_idx(_conv_wflat(ws[:, f:, :])),
                        sb=sb_push(scale, bias), skip_scr=skip_scr, Cf=f,
                        Lskip=lskip))
        lcur, ccur = lskip, f

    # 1x1 output conv (+ softmax over classes); output stays lane-dense (cls,L)
    w_out = params["out_w"][:, :, 0].astype(jnp.bfloat16)        # (classes, Cf)
    b_out = params["out_b"].reshape(-1, 1).astype(jnp.float32)   # (classes, 1)
    assert lcur == L and ccur == int(w_out.shape[1])
    ops.append(dict(kind="out", w=w_idx(w_out), b=w_idx(b_out)))

    sc_idx = w_idx(jnp.concatenate(sb_scales, axis=0))           # (Ctot, 1) f32
    bi_idx = w_idx(jnp.concatenate(sb_biases, axis=0))
    n_w = len(weights)

    # ------------------------------- kernel ---------------------------------
    def kernel(x_ref, *refs):
        w = refs[:n_w]
        out_ref = refs[n_w]
        scr = refs[n_w + 1:]
        pad = scr[0]                                 # shared padded-input buf
        sc_all, bi_all = w[sc_idx], w[bi_idx]

        def fill(ref, val, pad_l, pad_r, rows, lin):
            # zero ONLY the border columns; the interior is fully overwritten
            if pad_l:
                ref[0:rows, 0:pad_l] = jnp.zeros((rows, pad_l), jnp.bfloat16)
            ref[0:rows, pad_l:pad_l + lin] = val
            if pad_r:
                ref[0:rows, pad_l + lin:pad_l + lin + pad_r] = jnp.zeros(
                    (rows, pad_r), jnp.bfloat16)

        def gather(ref, rows, lfull):
            # (K*rows, lfull) im2col block from static shifted slices
            return jnp.concatenate(
                [ref[0:rows, k:k + lfull] for k in range(K)], axis=0)

        def affine_relu(acc, off, c):
            s = sc_all[pl.ds(off, c), :]
            b = bi_all[pl.ds(off, c), :]
            return jnp.maximum(acc * s + b, 0.0)

        cur = x_ref[0]                               # (Cin, L) bf16, lane-dense
        for op in ops:                               # static Python unroll
            kind = op["kind"]
            if kind == "conv":
                fill(pad, cur, op["pad_l"], op["pad_r"], op["Cin"], op["Lin"])
                cols = gather(pad, op["Cin"], op["Lfull"])
                acc = jnp.dot(w[op["w"]][...], cols,
                              preferred_element_type=jnp.float32)
                if op["sel"] is not None:            # stride-4 column select
                    acc = jnp.dot(acc.astype(jnp.bfloat16), w[op["sel"]][...],
                                  preferred_element_type=jnp.float32)
                cur = affine_relu(acc, op["sb"], op["Cout"]).astype(jnp.bfloat16)
                if op["skip"] is not None:           # spill skip into its
                    fill(scr[op["skip"]], cur,       # merge-conv pad scratch
                         K // 2, K // 2, op["Cout"], op["Lout"])
            elif kind == "up":                       # ConvTranspose1d
                xd = cur
                if op["dil"] is not None:
                    xd = jnp.dot(cur, w[op["dil"]][...],
                                 preferred_element_type=jnp.float32
                                 ).astype(jnp.bfloat16)
                fill(pad, xd, K - 1, K - 1, op["Cin"], op["Ldil"])
                lup = op["Ldil"] + K - 1
                cols = gather(pad, op["Cin"], lup)
                acc = jnp.dot(w[op["w"]][...], cols,
                              preferred_element_type=jnp.float32)
                acc = acc[:, op["off"]:op["off"] + op["Lskip"]]   # center crop
                cur = affine_relu(acc, op["sb"], op["Cout"]).astype(jnp.bfloat16)
            elif kind == "merge":                    # conv over concat, split
                f, lskip = op["Cf"], op["Lskip"]
                fill(pad, cur, K // 2, K // 2, f, lskip)
                cols_up = gather(pad, f, lskip)
                cols_sk = gather(scr[op["skip_scr"]], f, lskip)
                acc = (jnp.dot(w[op["wa"]][...], cols_sk,
                               preferred_element_type=jnp.float32)
                       + jnp.dot(w[op["wb"]][...], cols_up,
                                 preferred_element_type=jnp.float32))
                cur = affine_relu(acc, op["sb"], f).astype(jnp.bfloat16)
            else:                                    # "out"
                y = (jnp.dot(w[op["w"]][...], cur,
                             preferred_element_type=jnp.float32)
                     + w[op["b"]][...])
                if not logits:                       # exact softmax (f32)
                    m = jnp.max(y, axis=0, keepdims=True)
                    e = jnp.exp(y - m)
                    y = e / jnp.sum(e, axis=0, keepdims=True)
                out_ref[0] = y.astype(out_ref.dtype)

    in_specs = [pl.BlockSpec((1, Cin, L), lambda b: (b, 0, 0))]
    in_specs += [pl.BlockSpec(a.shape, lambda b: (0, 0)) for a in weights]

    scratch = [pltpu.VMEM((pad_max[0], pad_max[1]), jnp.bfloat16)]
    scratch += [pltpu.VMEM(s, jnp.bfloat16) for s in skip_shapes]

    return pl.pallas_call(
        kernel,
        out_shape=jax.ShapeDtypeStruct((B, classes, L), jnp.float32),
        grid=(B,),
        in_specs=in_specs,
        out_specs=pl.BlockSpec((1, classes, L), lambda b: (b, 0, 0)),
        scratch_shapes=scratch,
        compiler_params=pltpu.CompilerParams(
            dimension_semantics=("parallel",)),
    )(x_ncl.astype(jnp.bfloat16), *weights)


# ----------------------------------------------------------------------------
# Deterministic parameter construction (mirrors the PyTorch module structure)
# ----------------------------------------------------------------------------
class _KeyGen:
    def __init__(self, key):
        self._key = key
        self._i = 0

    def __call__(self):
        self._i += 1
        return jax.random.fold_in(self._key, self._i)


def init_params(seed=0, in_channels=3, classes=3, filters_root=8, depth=5,
                kernel_size=7):
    kg = _KeyGen(jax.random.PRNGKey(seed))

    def conv_w(cout, cin, k):
        std = 1.0 / math.sqrt(cin * k)
        return jax.random.normal(kg(), (cout, cin, k), jnp.float32) * std

    def convT_w(cin, cout, k):          # PyTorch ConvTranspose1d layout
        std = 1.0 / math.sqrt(cout * k)
        return jax.random.normal(kg(), (cin, cout, k), jnp.float32) * std

    def bn(c):
        gamma = 1.0 + 0.05 * jax.random.normal(kg(), (c,), jnp.float32)
        beta = 0.05 * jax.random.normal(kg(), (c,), jnp.float32)
        mean = 0.05 * jax.random.normal(kg(), (c,), jnp.float32)
        var = 1.0 + 0.05 * jax.random.uniform(kg(), (c,), jnp.float32)
        return gamma, beta, mean, var

    params = {
        "inc_w": conv_w(filters_root, in_channels, kernel_size),
        "inc_b": 0.05 * jax.random.normal(kg(), (filters_root,), jnp.float32),
        "in_bn": bn(filters_root),
        "down": [],
        "up": [],
    }
    last = filters_root
    for i in range(depth):
        f = (2 ** i) * filters_root
        d = {"conv_same_w": conv_w(f, last, kernel_size), "bn1": bn(f)}
        last = f
        if i < depth - 1:
            d["conv_down_w"] = conv_w(f, f, kernel_size)
            d["bn2"] = bn(f)
        params["down"].append(d)
    for i in range(depth - 1):
        f = (2 ** (3 - i)) * filters_root
        u = {"conv_up_w": convT_w(last, f, kernel_size), "bn1": bn(f),
             "conv_same_w": conv_w(f, 2 * f, kernel_size), "bn2": bn(f)}
        last = f
        params["up"].append(u)
    params["out_w"] = conv_w(classes, last, 1)
    params["out_b"] = 0.05 * jax.random.normal(kg(), (classes,), jnp.float32)
    return params


if __name__ == "__main__":
    B, Cin, L = 2, 3, 128      # small, but deep enough for 4 stride-4 stages
    params = init_params(seed=0)
    x = jax.random.normal(jax.random.PRNGKey(0), (B, Cin, L), jnp.float32)

    fwd = jax.jit(functools.partial(phasenet_ema_forward, logits=False))
    out = jax.block_until_ready(fwd(params, x))

    assert out.shape == (B, 3, L), out.shape
    assert bool(jnp.all(jnp.isfinite(out)))
    # exact softmax over the class axis sums to 1
    assert bool(jnp.allclose(jnp.sum(out, axis=1), 1.0, atol=1e-4))
    print("KERNEL_OK")
</pallas_src>

<mosaic_0001>
module attributes {stable_mosaic.version = 11 : i64} {
  func.func @kernel(%arg0: i32, %arg1: memref<1x3x128xbf16, #tpu.memory_space<vmem>>, %arg2: memref<8x21xbf16, #tpu.memory_space<vmem>>, %arg3: memref<8x56xbf16, #tpu.memory_space<vmem>>, %arg4: memref<128x32xbf16, #tpu.memory_space<vmem>>, %arg5: memref<8x56xbf16, #tpu.memory_space<vmem>>, %arg6: memref<16x56xbf16, #tpu.memory_space<vmem>>, %arg7: memref<31x8xbf16, #tpu.memory_space<vmem>>, %arg8: memref<16x112xbf16, #tpu.memory_space<vmem>>, %arg9: memref<32x112xbf16, #tpu.memory_space<vmem>>, %arg10: memref<6x2xbf16, #tpu.memory_space<vmem>>, %arg11: memref<32x224xbf16, #tpu.memory_space<vmem>>, %arg12: memref<64x224xbf16, #tpu.memory_space<vmem>>, %arg13: memref<64x448xbf16, #tpu.memory_space<vmem>>, %arg14: memref<128x448xbf16, #tpu.memory_space<vmem>>, %arg15: memref<64x896xbf16, #tpu.memory_space<vmem>>, %arg16: memref<64x448xbf16, #tpu.memory_space<vmem>>, %arg17: memref<64x448xbf16, #tpu.memory_space<vmem>>, %arg18: memref<2x5xbf16, #tpu.memory_space<vmem>>, %arg19: memref<32x448xbf16, #tpu.memory_space<vmem>>, %arg20: memref<32x224xbf16, #tpu.memory_space<vmem>>, %arg21: memref<32x224xbf16, #tpu.memory_space<vmem>>, %arg22: memref<8x29xbf16, #tpu.memory_space<vmem>>, %arg23: memref<16x224xbf16, #tpu.memory_space<vmem>>, %arg24: memref<16x112xbf16, #tpu.memory_space<vmem>>, %arg25: memref<16x112xbf16, #tpu.memory_space<vmem>>, %arg26: memref<32x125xbf16, #tpu.memory_space<vmem>>, %arg27: memref<8x112xbf16, #tpu.memory_space<vmem>>, %arg28: memref<8x56xbf16, #tpu.memory_space<vmem>>, %arg29: memref<8x56xbf16, #tpu.memory_space<vmem>>, %arg30: memref<3x8xbf16, #tpu.memory_space<vmem>>, %arg31: memref<3x1xf32, #tpu.memory_space<vmem>>, %arg32: memref<616x1xf32, #tpu.memory_space<vmem>>, %arg33: memref<616x1xf32, #tpu.memory_space<vmem>>, %arg34: memref<1x3x128xf32, #tpu.memory_space<vmem>>, %arg35: memref<128x137xbf16, #tpu.memory_space<vmem>>, %arg36: memref<8x134xbf16, #tpu.memory_space<vmem>>, %arg37: memref<16x38xbf16, #tpu.memory_space<vmem>>, %arg38: memref<32x14xbf16, #tpu.memory_space<vmem>>, %arg39: memref<64x8xbf16, #tpu.memory_space<vmem>>) attributes {dimension_semantics = [#tpu.dimension_semantics<parallel>], iteration_bounds = array<i64: 2>, scalar_prefetch = 0 : i64, scratch_operands = 5 : i64, tpu.core_type = #tpu.core_type<tc>, window_params = [{transform_indices = @transform_0, window_bounds = array<i64: 1, 3, 128>}, {pipeline_mode = #tpu.pipeline_mode<synchronous>, transform_indices = @transform_1, window_bounds = array<i64: 8, 21>}, {pipeline_mode = #tpu.pipeline_mode<synchronous>, transform_indices = @transform_2, window_bounds = array<i64: 8, 56>}, {pipeline_mode = #tpu.pipeline_mode<synchronous>, transform_indices = @transform_3, window_bounds = array<i64: 128, 32>}, {pipeline_mode = #tpu.pipeline_mode<synchronous>, transform_indices = @transform_4, window_bounds = array<i64: 8, 56>}, {pipeline_mode = #tpu.pipeline_mode<synchronous>, transform_indices = @transform_5, window_bounds = array<i64: 16, 56>}, {pipeline_mode = #tpu.pipeline_mode<synchronous>, transform_indices = @transform_6, window_bounds = array<i64: 31, 8>}, {pipeline_mode = #tpu.pipeline_mode<synchronous>, transform_indices = @transform_7, window_bounds = array<i64: 16, 112>}, {pipeline_mode = #tpu.pipeline_mode<synchronous>, transform_indices = @transform_8, window_bounds = array<i64: 32, 112>}, {pipeline_mode = #tpu.pipeline_mode<synchronous>, transform_indices = @transform_9, window_bounds = array<i64: 6, 2>}, {pipeline_mode = #tpu.pipeline_mode<synchronous>, transform_indices = @transform_10, window_bounds = array<i64: 32, 224>}, {pipeline_mode = #tpu.pipeline_mode<synchronous>, transform_indices = @transform_11, window_bounds = array<i64: 64, 224>}, {pipeline_mode = #tpu.pipeline_mode<synchronous>, transform_indices = @transform_12, window_bounds = array<i64: 64, 448>}, {pipeline_mode = #tpu.pipeline_mode<synchronous>, transform_indices = @transform_13, window_bounds = array<i64: 128, 448>}, {pipeline_mode = #tpu.pipeline_mode<synchronous>, transform_indices = @transform_14, window_bounds = array<i64: 64, 896>}, {pipeline_mode = #tpu.pipeline_mode<synchronous>, transform_indices = @transform_15, window_bounds = array<i64: 64, 448>}, {pipeline_mode = #tpu.pipeline_mode<synchronous>, transform_indices = @transform_16, window_bounds = array<i64: 64, 448>}, {pipeline_mode = #tpu.pipeline_mode<synchronous>, transform_indices = @transform_17, window_bounds = array<i64: 2, 5>}, {pipeline_mode = #tpu.pipeline_mode<synchronous>, transform_indices = @transform_18, window_bounds = array<i64: 32, 448>}, {pipeline_mode = #tpu.pipeline_mode<synchronous>, transform_indices = @transform_19, window_bounds = array<i64: 32, 224>}, {pipeline_mode = #tpu.pipeline_mode<synchronous>, transform_indices = @transform_20, window_bounds = array<i64: 32, 224>}, {pipeline_mode = #tpu.pipeline_mode<synchronous>, transform_indices = @transform_21, window_bounds = array<i64: 8, 29>}, {pipeline_mode = #tpu.pipeline_mode<synchronous>, transform_indices = @transform_22, window_bounds = array<i64: 16, 224>}, {pipeline_mode = #tpu.pipeline_mode<synchronous>, transform_indices = @transform_23, window_bounds = array<i64: 16, 112>}, {pipeline_mode = #tpu.pipeline_mode<synchronous>, transform_indices = @transform_24, window_bounds = array<i64: 16, 112>}, {pipeline_mode = #tpu.pipeline_mode<synchronous>, transform_indices = @transform_25, window_bounds = array<i64: 32, 125>}, {pipeline_mode = #tpu.pipeline_mode<synchronous>, transform_indices = @transform_26, window_bounds = array<i64: 8, 112>}, {pipeline_mode = #tpu.pipeline_mode<synchronous>, transform_indices = @transform_27, window_bounds = array<i64: 8, 56>}, {pipeline_mode = #tpu.pipeline_mode<synchronous>, transform_indices = @transform_28, window_bounds = array<i64: 8, 56>}, {pipeline_mode = #tpu.pipeline_mode<synchronous>, transform_indices = @transform_29, window_bounds = array<i64: 3, 8>}, {pipeline_mode = #tpu.pipeline_mode<synchronous>, transform_indices = @transform_30, window_bounds = array<i64: 3, 1>}, {pipeline_mode = #tpu.pipeline_mode<synchronous>, transform_indices = @transform_31, window_bounds = array<i64: 616, 1>}, {pipeline_mode = #tpu.pipeline_mode<synchronous>, transform_indices = @transform_32, window_bounds = array<i64: 616, 1>}, {transform_indices = @transform_33, window_bounds = array<i64: 1, 3, 128>}]} {
    %c0 = arith.constant 0 : index
    %c0_0 = arith.constant 0 : index
    %c0_1 = arith.constant 0 : index
    %0 = vector.load %arg1[%c0, %c0_0, %c0_1] : memref<1x3x128xbf16, #tpu.memory_space<vmem>>, vector<1x3x128xbf16>
    %1 = vector.shape_cast %0 : vector<1x3x128xbf16> to vector<3x128xbf16>
    %cst = arith.constant 0.000000e+00 : bf16
    %2 = vector.broadcast %cst : bf16 to vector<3x3xbf16>
    %c0_2 = arith.constant 0 : index
    %c0_3 = arith.constant 0 : index
    %3 = vector.load %arg35[%c0_2, %c0_3] : memref<128x137xbf16, #tpu.memory_space<vmem>>, vector<3x3xbf16>
    tpu.vector_store %arg35[%c0_2, %c0_3], %2 {strides = array<i32>} : memref<128x137xbf16, #tpu.memory_space<vmem>>, vector<3x3xbf16>,
    %c0_4 = arith.constant 0 : index
    %c3 = arith.constant 3 : index
    %4 = vector.load %arg35[%c0_4, %c3] : memref<128x137xbf16, #tpu.memory_space<vmem>>, vector<3x128xbf16>
    tpu.vector_store %arg35[%c0_4, %c3], %1 {strides = array<i32>} : memref<128x137xbf16, #tpu.memory_space<vmem>>, vector<3x128xbf16>,
    %cst_5 = arith.constant 0.000000e+00 : bf16
    %5 = vector.broadcast %cst_5 : bf16 to vector<3x3xbf16>
    %c0_6 = arith.constant 0 : index
    %c131 = arith.constant 131 : index
    %6 = vector.load %arg35[%c0_6, %c131] : memref<128x137xbf16, #tpu.memory_space<vmem>>, vector<3x3xbf16>
    tpu.vector_store %arg35[%c0_6, %c131], %5 {strides = array<i32>} : memref<128x137xbf16, #tpu.memory_space<vmem>>, vector<3x3xbf16>,
    %c0_7 = arith.constant 0 : index
    %c0_8 = arith.constant 0 : index
    %7 = vector.load %arg35[%c0_7, %c0_8] : memref<128x137xbf16, #tpu.memory_space<vmem>>, vector<3x128xbf16>
    %c0_9 = arith.constant 0 : index
    %c1 = arith.constant 1 : index
    %8 = vector.load %arg35[%c0_9, %c1] : memref<128x137xbf16, #tpu.memory_space<vmem>>, vector<3x128xbf16>
    %c0_10 = arith.constant 0 : index
    %c2 = arith.constant 2 : index
    %9 = vector.load %arg35[%c0_10, %c2] : memref<128x137xbf16, #tpu.memory_space<vmem>>, vector<3x128xbf16>
    %c0_11 = arith.constant 0 : index
    %c3_12 = arith.constant 3 : index
    %10 = vector.load %arg35[%c0_11, %c3_12] : memref<128x137xbf16, #tpu.memory_space<vmem>>, vector<3x128xbf16>
    %c0_13 = arith.constant 0 : index
    %c4 = arith.constant 4 : index
    %11 = vector.load %arg35[%c0_13, %c4] : memref<128x137xbf16, #tpu.memory_space<vmem>>, vector<3x128xbf16>
    %c0_14 = arith.constant 0 : index
    %c5 = arith.constant 5 : index
    %12 = vector.load %arg35[%c0_14, %c5] : memref<128x137xbf16, #tpu.memory_space<vmem>>, vector<3x128xbf16>
    %c0_15 = arith.constant 0 : index
    %c6 = arith.constant 6 : index
    %13 = vector.load %arg35[%c0_15, %c6] : memref<128x137xbf16, #tpu.memory_space<vmem>>, vector<3x128xbf16>
    %14 = tpu.concatenate %7, %8, %9, %10, %11, %12, %13 in 0 : vector<3x128xbf16>, vector<3x128xbf16>, vector<3x128xbf16>, vector<3x128xbf16>, vector<3x128xbf16>, vector<3x128xbf16>, vector<3x128xbf16> -> vector<21x128xbf16>
    %c0_16 = arith.constant 0 : index
    %c0_17 = arith.constant 0 : index
    %15 = vector.load %arg2[%c0_16, %c0_17] : memref<8x21xbf16, #tpu.memory_space<vmem>>, vector<8x21xbf16>
    %cst_18 = arith.constant dense<0.000000e+00> : vector<8x128xf32>
    %16 = tpu.matmul %15, %14, %cst_18 {dimension_numbers = #tpu.dot_dimension_numbers<[1], [0], [0], [1], [0, 0, 1, 1], [], []>} : vector<8x21xbf16>, vector<21x128xbf16>, vector<8x128xf32> -> vector<8x128xf32>
    %c0_19 = arith.constant 0 : index
    %c0_20 = arith.constant 0 : index
    %17 = vector.load %arg32[%c0_19, %c0_20] : memref<616x1xf32, #tpu.memory_space<vmem>>, vector<8x1xf32>
    %c0_21 = arith.constant 0 : index
    %c0_22 = arith.constant 0 : index
    %18 = vector.load %arg33[%c0_21, %c0_22] : memref<616x1xf32, #tpu.memory_space<vmem>>, vector<8x1xf32>
    %19 = vector.broadcast %17 : vector<8x1xf32> to vector<8x128xf32>
    %20 = arith.mulf %16, %19 : vector<8x128xf32>
    %21 = vector.broadcast %18 : vector<8x1xf32> to vector<8x128xf32>
    %22 = arith.addf %20, %21 : vector<8x128xf32>
    %cst_23 = arith.constant 0.000000e+00 : f32
    %23 = vector.broadcast %cst_23 : f32 to vector<8x128xf32>
    %24 = arith.maximumf %22, %23 : vector<8x128xf32>
    %25 = arith.truncf %24 : vector<8x128xf32> to vector<8x128xbf16>
    %cst_24 = arith.constant 0.000000e+00 : bf16
    %26 = vector.broadcast %cst_24 : bf16 to vector<8x3xbf16>
    %c0_25 = arith.constant 0 : index
    %c0_26 = arith.constant 0 : index
    %27 = vector.load %arg35[%c0_25, %c0_26] : memref<128x137xbf16, #tpu.memory_space<vmem>>, vector<8x3xbf16>
    tpu.vector_store %arg35[%c0_25, %c0_26], %26 {strides = array<i32>} : memref<128x137xbf16, #tpu.memory_space<vmem>>, vector<8x3xbf16>,
    %c0_27 = arith.constant 0 : index
    %c3_28 = arith.constant 3 : index
    %28 = vector.load %arg35[%c0_27, %c3_28] : memref<128x137xbf16, #tpu.memory_space<vmem>>, vector<8x128xbf16>
    tpu.vector_store %arg35[%c0_27, %c3_28], %25 {strides = array<i32>} : memref<128x137xbf16, #tpu.memory_space<vmem>>, vector<8x128xbf16>,
    %cst_29 = arith.constant 0.000000e+00 : bf16
    %29 = vector.broadcast %cst_29 : bf16 to vector<8x3xbf16>
    %c0_30 = arith.constant 0 : index
    %c131_31 = arith.constant 131 : index
    %30 = vector.load %arg35[%c0_30, %c131_31] : memref<128x137xbf16, #tpu.memory_space<vmem>>, vector<8x3xbf16>
    tpu.vector_store %arg35[%c0_30, %c131_31], %29 {strides = array<i32>} : memref<128x137xbf16, #tpu.memory_space<vmem>>, vector<8x3xbf16>,
    %c0_32 = arith.constant 0 : index
    %c0_33 = arith.constant 0 : index
    %31 = vector.load %arg35[%c0_32, %c0_33] : memref<128x137xbf16, #tpu.memory_space<vmem>>, vector<8x128xbf16>
    %c0_34 = arith.constant 0 : index
    %c1_35 = arith.constant 1 : index
    %32 = vector.load %arg35[%c0_34, %c1_35] : memref<128x137xbf16, #tpu.memory_space<vmem>>, vector<8x128xbf16>
    %c0_36 = arith.constant 0 : index
    %c2_37 = arith.constant 2 : index
    %33 = vector.load %arg35[%c0_36, %c2_37] : memref<128x137xbf16, #tpu.memory_space<vmem>>, vector<8x128xbf16>
    %c0_38 = arith.constant 0 : index
    %c3_39 = arith.constant 3 : index
    %34 = vector.load %arg35[%c0_38, %c3_39] : memref<128x137xbf16, #tpu.memory_space<vmem>>, vector<8x128xbf16>
    %c0_40 = arith.constant 0 : index
    %c4_41 = arith.constant 4 : index
    %35 = vector.load %arg35[%c0_40, %c4_41] : memref<128x137xbf16, #tpu.memory_space<vmem>>, vector<8x128xbf16>
    %c0_42 = arith.constant 0 : index
    %c5_43 = arith.constant 5 : index
    %36 = vector.load %arg35[%c0_42, %c5_43] : memref<128x137xbf16, #tpu.memory_space<vmem>>, vector<8x128xbf16>
    %c0_44 = arith.constant 0 : index
    %c6_45 = arith.constant 6 : index
    %37 = vector.load %arg35[%c0_44, %c6_45] : memref<128x137xbf16, #tpu.memory_space<vmem>>, vector<8x128xbf16>
    %38 = tpu.concatenate %31, %32, %33, %34, %35, %36, %37 in 0 : vector<8x128xbf16>, vector<8x128xbf16>, vector<8x128xbf16>, vector<8x128xbf16>, vector<8x128xbf16>, vector<8x128xbf16>, vector<8x128xbf16> -> vector<56x128xbf16>
    %c0_46 = arith.constant 0 : index
    %c0_47 = arith.constant 0 : index
    %39 = vector.load %arg3[%c0_46, %c0_47] : memref<8x56xbf16, #tpu.memory_space<vmem>>, vector<8x56xbf16>
    %cst_48 = arith.constant dense<0.000000e+00> : vector<8x128xf32>
    %40 = tpu.matmul %39, %38, %cst_48 {dimension_numbers = #tpu.dot_dimension_numbers<[1], [0], [0], [1], [0, 0, 1, 1], [], []>} : vector<8x56xbf16>, vector<56x128xbf16>, vector<8x128xf32> -> vector<8x128xf32>
    %c8 = arith.constant 8 : index
    %c0_49 = arith.constant 0 : index
    %41 = vector.load %arg32[%c8, %c0_49] : memref<616x1xf32, #tpu.memory_space<vmem>>, vector<8x1xf32>
    %c8_50 = arith.constant 8 : index
    %c0_51 = arith.constant 0 : index
    %42 = vector.load %arg33[%c8_50, %c0_51] : memref<616x1xf32, #tpu.memory_space<vmem>>, vector<8x1xf32>
    %43 = vector.broadcast %41 : vector<8x1xf32> to vector<8x128xf32>
    %44 = arith.mulf %40, %43 : vector<8x128xf32>
    %45 = vector.broadcast %42 : vector<8x1xf32> to vector<8x128xf32>
    %46 = arith.addf %44, %45 : vector<8x128xf32>
    %cst_52 = arith.constant 0.000000e+00 : f32
    %47 = vector.broadcast %cst_52 : f32 to vector<8x128xf32>
    %48 = arith.maximumf %46, %47 : vector<8x128xf32>
    %49 = arith.truncf %48 : vector<8x128xf32> to vector<8x128xbf16>
    %cst_53 = arith.constant 0.000000e+00 : bf16
    %50 = vector.broadcast %cst_53 : bf16 to vector<8x3xbf16>
    %c0_54 = arith.constant 0 : index
    %c0_55 = arith.constant 0 : index
    %51 = vector.load %arg36[%c0_54, %c0_55] : memref<8x134xbf16, #tpu.memory_space<vmem>>, vector<8x3xbf16>
    tpu.vector_store %arg36[%c0_54, %c0_55], %50 {strides = array<i32>} : memref<8x134xbf16, #tpu.memory_space<vmem>>, vector<8x3xbf16>,
    %c0_56 = arith.constant 0 : index
    %c3_57 = arith.constant 3 : index
    %52 = vector.load %arg36[%c0_56, %c3_57] : memref<8x134xbf16, #tpu.memory_space<vmem>>, vector<8x128xbf16>
    tpu.vector_store %arg36[%c0_56, %c3_57], %49 {strides = array<i32>} : memref<8x134xbf16, #tpu.memory_space<vmem>>, vector<8x128xbf16>,
    %cst_58 = arith.constant 0.000000e+00 : bf16
    %53 = vector.broadcast %cst_58 : bf16 to vector<8x3xbf16>
    %c0_59 = arith.constant 0 : index
    %c131_60 = arith.constant 131 : index
    %54 = vector.load %arg36[%c0_59, %c131_60] : memref<8x134xbf16, #tpu.memory_space<vmem>>, vector<8x3xbf16>
    tpu.vector_store %arg36[%c0_59, %c131_60], %53 {strides = array<i32>} : memref<8x134xbf16, #tpu.memory_space<vmem>>, vector<8x3xbf16>,
    %cst_61 = arith.constant 0.000000e+00 : bf16
    %55 = vector.broadcast %cst_61 : bf16 to vector<8x3xbf16>
    %c0_62 = arith.constant 0 : index
    %c0_63 = arith.constant 0 : index
    %56 = vector.load %arg35[%c0_62, %c0_63] : memref<128x137xbf16, #tpu.memory_space<vmem>>, vector<8x3xbf16>
    tpu.vector_store %arg35[%c0_62, %c0_63], %55 {strides = array<i32>} : memref<128x137xbf16, #tpu.memory_space<vmem>>, vector<8x3xbf16>,
    %c0_64 = arith.constant 0 : index
    %c3_65 = arith.constant 3 : index
    %57 = vector.load %arg35[%c0_64, %c3_65] : memref<128x137xbf16, #tpu.memory_space<vmem>>, vector<8x128xbf16>
    tpu.vector_store %arg35[%c0_64, %c3_65], %49 {strides = array<i32>} : memref<128x137xbf16, #tpu.memory_space<vmem>>, vector<8x128xbf16>,
    %cst_66 = arith.constant 0.000000e+00 : bf16
    %58 = vector.broadcast %cst_66 : bf16 to vector<8x3xbf16>
    %c0_67 = arith.constant 0 : index
    %c131_68 = arith.constant 131 : index
    %59 = vector.load %arg35[%c0_67, %c131_68] : memref<128x137xbf16, #tpu.memory_space<vmem>>, vector<8x3xbf16>
    tpu.vector_store %arg35[%c0_67, %c131_68], %58 {strides = array<i32>} : memref<128x137xbf16, #tpu.memory_space<vmem>>, vector<8x3xbf16>,
    %c0_69 = arith.constant 0 : index
    %c0_70 = arith.constant 0 : index
    %60 = vector.load %arg35[%c0_69, %c0_70] : memref<128x137xbf16, #tpu.memory_space<vmem>>, vector<8x128xbf16>
    %c0_71 = arith.constant 0 : index
    %c1_72 = arith.constant 1 : index
    %61 = vector.load %arg35[%c0_71, %c1_72] : memref<128x137xbf16, #tpu.memory_space<vmem>>, vector<8x128xbf16>
    %c0_73 = arith.constant 0 : index
    %c2_74 = arith.constant 2 : index
    %62 = vector.load %arg35[%c0_73, %c2_74] : memref<128x137xbf16, #tpu.memory_space<vmem>>, vector<8x128xbf16>
    %c0_75 = arith.constant 0 : index
    %c3_76 = arith.constant 3 : index
    %63 = vector.load %arg35[%c0_75, %c3_76] : memref<128x137xbf16, #tpu.memory_space<vmem>>, vector<8x128xbf16>
    %c0_77 = arith.constant 0 : index
    %c4_78 = arith.constant 4 : index
    %64 = vector.load %arg35[%c0_77, %c4_78] : memref<128x137xbf16, #tpu.memory_space<vmem>>, vector<8x128xbf16>
    %c0_79 = arith.constant 0 : index
    %c5_80 = arith.constant 5 : index
    %65 = vector.load %arg35[%c0_79, %c5_80] : memref<128x137xbf16, #tpu.memory_space<vmem>>, vector<8x128xbf16>
    %c0_81 = arith.constant 0 : index
    %c6_82 = arith.constant 6 : index
    %66 = vector.load %arg35[%c0_81, %c6_82] : memref<128x137xbf16, #tpu.memory_space<vmem>>, vector<8x128xbf16>
    %67 = tpu.concatenate %60, %61, %62, %63, %64, %65, %66 in 0 : vector<8x128xbf16>, vector<8x128xbf16>, vector<8x128xbf16>, vector<8x128xbf16>, vector<8x128xbf16>, vector<8x128xbf16>, vector<8x128xbf16> -> vector<56x128xbf16>
    %c0_83 = arith.constant 0 : index
    %c0_84 = arith.constant 0 : index
    %68 = vector.load %arg5[%c0_83, %c0_84] : memref<8x56xbf16, #tpu.memory_space<vmem>>, vector<8x56xbf16>
    %cst_85 = arith.constant dense<0.000000e+00> : vector<8x128xf32>
    %69 = tpu.matmul %68, %67, %cst_85 {dimension_numbers = #tpu.dot_dimension_numbers<[1], [0], [0], [1], [0, 0, 1, 1], [], []>} : vector<8x56xbf16>, vector<56x128xbf16>, vector<8x128xf32> -> vector<8x128xf32>
    %70 = arith.truncf %69 : vector<8x128xf32> to vector<8x128xbf16>
    %c0_86 = arith.constant 0 : index
    %c0_87 = arith.constant 0 : index
    %71 = vector.load %arg4[%c0_86, %c0_87] : memref<128x32xbf16, #tpu.memory_space<vmem>>, vector<128x32xbf16>
    %cst_88 = arith.constant dense<0.000000e+00> : vector<8x32xf32>
    %72 = tpu.matmul %70, %71, %cst_88 {dimension_numbers = #tpu.dot_dimension_numbers<[1], [0], [0], [1], [0, 0, 1, 1], [], []>} : vector<8x128xbf16>, vector<128x32xbf16>, vector<8x32xf32> -> vector<8x32xf32>
    %c16 = arith.constant 16 : index
    %c0_89 = arith.constant 0 : index
    %73 = vector.load %arg32[%c16, %c0_89] : memref<616x1xf32, #tpu.memory_space<vmem>>, vector<8x1xf32>
    %c16_90 = arith.constant 16 : index
    %c0_91 = arith.constant 0 : index
    %74 = vector.load %arg33[%c16_90, %c0_91] : memref<616x1xf32, #tpu.memory_space<vmem>>, vector<8x1xf32>
    %75 = vector.broadcast %73 : vector<8x1xf32> to vector<8x32xf32>
    %76 = arith.mulf %72, %75 : vector<8x32xf32>
    %77 = vector.broadcast %74 : vector<8x1xf32> to vector<8x32xf32>
    %78 = arith.addf %76, %77 : vector<8x32xf32>
    %cst_92 = arith.constant 0.000000e+00 : f32
    %79 = vector.broadcast %cst_92 : f32 to vector<8x32xf32>
    %80 = arith.maximumf %78, %79 : vector<8x32xf32>
    %81 = arith.truncf %80 : vector<8x32xf32> to vector<8x32xbf16>
    %cst_93 = arith.constant 0.000000e+00 : bf16
    %82 = vector.broadcast %cst_93 : bf16 to vector<8x3xbf16>
    %c0_94 = arith.constant 0 : index
    %c0_95 = arith.constant 0 : index
    %83 = vector.load %arg35[%c0_94, %c0_95] : memref<128x137xbf16, #tpu.memory_space<vmem>>, vector<8x3xbf16>
    tpu.vector_store %arg35[%c0_94, %c0_95], %82 {strides = array<i32>} : memref<128x137xbf16, #tpu.memory_space<vmem>>, vector<8x3xbf16>,
    %c0_96 = arith.constant 0 : index
    %c3_97 = arith.constant 3 : index
    %84 = vector.load %arg35[%c0_96, %c3_97] : memref<128x137xbf16, #tpu.memory_space<vmem>>, vector<8x32xbf16>
    tpu.vector_store %arg35[%c0_96, %c3_97], %81 {strides = array<i32>} : memref<128x137xbf16, #tpu.memory_space<vmem>>, vector<8x32xbf16>,
    %cst_98 = arith.constant 0.000000e+00 : bf16
    %85 = vector.broadcast %cst_98 : bf16 to vector<8x3xbf16>
    %c0_99 = arith.constant 0 : index
    %c35 = arith.constant 35 : index
    %86 = vector.load %arg35[%c0_99, %c35] : memref<128x137xbf16, #tpu.memory_space<vmem>>, vector<8x3xbf16>
    tpu.vector_store %arg35[%c0_99, %c35], %85 {strides = array<i32>} : memref<128x137xbf16, #tpu.memory_space<vmem>>, vector<8x3xbf16>,
    %c0_100 = arith.constant 0 : index
    %c0_101 = arith.constant 0 : index
    %87 = vector.load %arg35[%c0_100, %c0_101] : memref<128x137xbf16, #tpu.memory_space<vmem>>, vector<8x32xbf16>
    %c0_102 = arith.constant 0 : index
    %c1_103 = arith.constant 1 : index
    %88 = vector.load %arg35[%c0_102, %c1_103] : memref<128x137xbf16, #tpu.memory_space<vmem>>, vector<8x32xbf16>
    %c0_104 = arith.constant 0 : index
    %c2_105 = arith.constant 2 : index
    %89 = vector.load %arg35[%c0_104, %c2_105] : memref<128x137xbf16, #tpu.memory_space<vmem>>, vector<8x32xbf16>
    %c0_106 = arith.constant 0 : index
    %c3_107 = arith.constant 3 : index
    %90 = vector.load %arg35[%c0_106, %c3_107] : memref<128x137xbf16, #tpu.memory_space<vmem>>, vector<8x32xbf16>
    %c0_108 = arith.constant 0 : index
    %c4_109 = arith.constant 4 : index
    %91 = vector.load %arg35[%c0_108, %c4_109] : memref<128x137xbf16, #tpu.memory_space<vmem>>, vector<8x32xbf16>
    %c0_110 = arith.constant 0 : index
    %c5_111 = arith.constant 5 : index
    %92 = vector.load %arg35[%c0_110, %c5_111] : memref<128x137xbf16, #tpu.memory_space<vmem>>, vector<8x32xbf16>
    %c0_112 = arith.constant 0 : index
    %c6_113 = arith.constant 6 : index
    %93 = vector.load %arg35[%c0_112, %c6_113] : memref<128x137xbf16, #tpu.memory_space<vmem>>, vector<8x32xbf16>
    %94 = tpu.concatenate %87, %88, %89, %90, %91, %92, %93 in 0 : vector<8x32xbf16>, vector<8x32xbf16>, vector<8x32xbf16>, vector<8x32xbf16>, vector<8x32xbf16>, vector<8x32xbf16>, vector<8x32xbf16> -> vector<56x32xbf16>
    %c0_114 = arith.constant 0 : index
    %c0_115 = arith.constant 0 : index
    %95 = vector.load %arg6[%c0_114, %c0_115] : memref<16x56xbf16, #tpu.memory_space<vmem>>, vector<16x56xbf16>
    %cst_116 = arith.constant dense<0.000000e+00> : vector<16x32xf32>
    %96 = tpu.matmul %95, %94, %cst_116 {dimension_numbers = #tpu.dot_dimension_numbers<[1], [0], [0], [1], [0, 0, 1, 1], [], []>} : vector<16x56xbf16>, vector<56x32xbf16>, vector<16x32xf32> -> vector<16x32xf32>
    %c24 = arith.constant 24 : index
    %c0_117 = arith.constant 0 : index
    %97 = vector.load %arg32[%c24, %c0_117] : memref<616x1xf32, #tpu.memory_space<vmem>>, vector<16x1xf32>
    %c24_118 = arith.constant 24 : index
    %c0_119 = arith.constant 0 : index
    %98 = vector.load %arg33[%c24_118, %c0_119] : memref<616x1xf32, #tpu.memory_space<vmem>>, vector<16x1xf32>
    %99 = vector.broadcast %97 : vector<16x1xf32> to vector<16x32xf32>
    %100 = arith.mulf %96, %99 : vector<16x32xf32>
    %101 = vector.broadcast %98 : vector<16x1xf32> to vector<16x32xf32>
    %102 = arith.addf %100, %101 : vector<16x32xf32>
    %cst_120 = arith.constant 0.000000e+00 : f32
    %103 = vector.broadcast %cst_120 : f32 to vector<16x32xf32>
    %104 = arith.maximumf %102, %103 : vector<16x32xf32>
    %105 = arith.truncf %104 : vector<16x32xf32> to vector<16x32xbf16>
    %cst_121 = arith.constant 0.000000e+00 : bf16
    %106 = vector.broadcast %cst_121 : bf16 to vector<16x3xbf16>
    %c0_122 = arith.constant 0 : index
    %c0_123 = arith.constant 0 : index
    %107 = vector.load %arg37[%c0_122, %c0_123] : memref<16x38xbf16, #tpu.memory_space<vmem>>, vector<16x3xbf16>
    tpu.vector_store %arg37[%c0_122, %c0_123], %106 {strides = array<i32>} : memref<16x38xbf16, #tpu.memory_space<vmem>>, vector<16x3xbf16>,
    %c0_124 = arith.constant 0 : index
    %c3_125 = arith.constant 3 : index
    %108 = vector.load %arg37[%c0_124, %c3_125] : memref<16x38xbf16, #tpu.memory_space<vmem>>, vector<16x32xbf16>
    tpu.vector_store %arg37[%c0_124, %c3_125], %105 {strides = array<i32>} : memref<16x38xbf16, #tpu.memory_space<vmem>>, vector<16x32xbf16>,
    %cst_126 = arith.constant 0.000000e+00 : bf16
    %109 = vector.broadcast %cst_126 : bf16 to vector<16x3xbf16>
    %c0_127 = arith.constant 0 : index
    %c35_128 = arith.constant 35 : index
    %110 = vector.load %arg37[%c0_127, %c35_128] : memref<16x38xbf16, #tpu.memory_space<vmem>>, vector<16x3xbf16>
    tpu.vector_store %arg37[%c0_127, %c35_128], %109 {strides = array<i32>} : memref<16x38xbf16, #tpu.memory_space<vmem>>, vector<16x3xbf16>,
    %cst_129 = arith.constant 0.000000e+00 : bf16
    %111 = vector.broadcast %cst_129 : bf16 to vector<16x2xbf16>
    %c0_130 = arith.constant 0 : index
    %c0_131 = arith.constant 0 : index
    %112 = vector.load %arg35[%c0_130, %c0_131] : memref<128x137xbf16, #tpu.memory_space<vmem>>, vector<16x2xbf16>
    tpu.vector_store %arg35[%c0_130, %c0_131], %111 {strides = array<i32>} : memref<128x137xbf16, #tpu.memory_space<vmem>>, vector<16x2xbf16>,
    %c0_132 = arith.constant 0 : index
    %c2_133 = arith.constant 2 : index
    %113 = vector.load %arg35[%c0_132, %c2_133] : memref<128x137xbf16, #tpu.memory_space<vmem>>, vector<16x32xbf16>
    tpu.vector_store %arg35[%c0_132, %c2_133], %105 {strides = array<i32>} : memref<128x137xbf16, #tpu.memory_space<vmem>>, vector<16x32xbf16>,
    %cst_134 = arith.constant 0.000000e+00 : bf16
    %114 = vector.broadcast %cst_134 : bf16 to vector<16x3xbf16>
    %c0_135 = arith.constant 0 : index
    %c34 = arith.constant 34 : index
    %115 = vector.load %arg35[%c0_135, %c34] : memref<128x137xbf16, #tpu.memory_space<vmem>>, vector<16x3xbf16>
    tpu.vector_store %arg35[%c0_135, %c34], %114 {strides = array<i32>} : memref<128x137xbf16, #tpu.memory_space<vmem>>, vector<16x3xbf16>,
    %c0_136 = arith.constant 0 : index
    %c0_137 = arith.constant 0 : index
    %116 = vector.load %arg35[%c0_136, %c0_137] : memref<128x137xbf16, #tpu.memory_space<vmem>>, vector<16x31xbf16>
    %c0_138 = arith.constant 0 : index
    %c1_139 = arith.constant 1 : index
    %117 = vector.load %arg35[%c0_138, %c1_139] : memref<128x137xbf16, #tpu.memory_space<vmem>>, vector<16x31xbf16>
    %c0_140 = arith.constant 0 : index
    %c2_141 = arith.constant 2 : index
    %118 = vector.load %arg35[%c0_140, %c2_141] : memref<128x137xbf16, #tpu.memory_space<vmem>>, vector<16x31xbf16>
    %c0_142 = arith.constant 0 : index
    %c3_143 = arith.constant 3 : index
    %119 = vector.load %arg35[%c0_142, %c3_143] : memref<128x137xbf16, #tpu.memory_space<vmem>>, vector<16x31xbf16>
    %c0_144 = arith.constant 0 : index
    %c4_145 = arith.constant 4 : index
    %120 = vector.load %arg35[%c0_144, %c4_145] : memref<128x137xbf16, #tpu.memory_space<vmem>>, vector<16x31xbf16>
    %c0_146 = arith.constant 0 : index
    %c5_147 = arith.constant 5 : index
    %121 = vector.load %arg35[%c0_146, %c5_147] : memref<128x137xbf16, #tpu.memory_space<vmem>>, vector<16x31xbf16>
    %c0_148 = arith.constant 0 : index
    %c6_149 = arith.constant 6 : index
    %122 = vector.load %arg35[%c0_148, %c6_149] : memref<128x137xbf16, #tpu.memory_space<vmem>>, vector<16x31xbf16>
    %123 = tpu.concatenate %116, %117, %118, %119, %120, %121, %122 in 0 : vector<16x31xbf16>, vector<16x31xbf16>, vector<16x31xbf16>, vector<16x31xbf16>, vector<16x31xbf16>, vector<16x31xbf16>, vector<16x31xbf16> -> vector<112x31xbf16>
    %c0_150 = arith.constant 0 : index
    %c0_151 = arith.constant 0 : index
    %124 = vector.load %arg8[%c0_150, %c0_151] : memref<16x112xbf16, #tpu.memory_space<vmem>>, vector<16x112xbf16>
    %cst_152 = arith.constant dense<0.000000e+00> : vector<16x31xf32>
    %125 = tpu.matmul %124, %123, %cst_152 {dimension_numbers = #tpu.dot_dimension_numbers<[1], [0], [0], [1], [0, 0, 1, 1], [], []>} : vector<16x112xbf16>, vector<112x31xbf16>, vector<16x31xf32> -> vector<16x31xf32>
    %126 = arith.truncf %125 : vector<16x31xf32> to vector<16x31xbf16>
    %c0_153 = arith.constant 0 : index
    %c0_154 = arith.constant 0 : index
    %127 = vector.load %arg7[%c0_153, %c0_154] : memref<31x8xbf16, #tpu.memory_space<vmem>>, vector<31x8xbf16>
    %cst_155 = arith.constant dense<0.000000e+00> : vector<16x8xf32>
    %128 = tpu.matmul %126, %127, %cst_155 {dimension_numbers = #tpu.dot_dimension_numbers<[1], [0], [0], [1], [0, 0, 1, 1], [], []>} : vector<16x31xbf16>, vector<31x8xbf16>, vector<16x8xf32> -> vector<16x8xf32>
    %c40 = arith.constant 40 : index
    %c0_156 = arith.constant 0 : index
    %129 = vector.load %arg32[%c40, %c0_156] : memref<616x1xf32, #tpu.memory_space<vmem>>, vector<16x1xf32>
    %c40_157 = arith.constant 40 : index
    %c0_158 = arith.constant 0 : index
    %130 = vector.load %arg33[%c40_157, %c0_158] : memref<616x1xf32, #tpu.memory_space<vmem>>, vector<16x1xf32>
    %131 = vector.broadcast %129 : vector<16x1xf32> to vector<16x8xf32>
    %132 = arith.mulf %128, %131 : vector<16x8xf32>
    %133 = vector.broadcast %130 : vector<16x1xf32> to vector<16x8xf32>
    %134 = arith.addf %132, %133 : vector<16x8xf32>
    %cst_159 = arith.constant 0.000000e+00 : f32
    %135 = vector.broadcast %cst_159 : f32 to vector<16x8xf32>
    %136 = arith.maximumf %134, %135 : vector<16x8xf32>
    %137 = arith.truncf %136 : vector<16x8xf32> to vector<16x8xbf16>
    %cst_160 = arith.constant 0.000000e+00 : bf16
    %138 = vector.broadcast %cst_160 : bf16 to vector<16x3xbf16>
    %c0_161 = arith.constant 0 : index
    %c0_162 = arith.constant 0 : index
    %139 = vector.load %arg35[%c0_161, %c0_162] : memref<128x137xbf16, #tpu.memory_space<vmem>>, vector<16x3xbf16>
    tpu.vector_store %arg35[%c0_161, %c0_162], %138 {strides = array<i32>} : memref<128x137xbf16, #tpu.memory_space<vmem>>, vector<16x3xbf16>,
    %c0_163 = arith.constant 0 : index
    %c3_164 = arith.constant 3 : index
    %140 = vector.load %arg35[%c0_163, %c3_164] : memref<128x137xbf16, #tpu.memory_space<vmem>>, vector<16x8xbf16>
    tpu.vector_store %arg35[%c0_163, %c3_164], %137 {strides = array<i32>} : memref<128x137xbf16, #tpu.memory_space<vmem>>, vector<16x8xbf16>,
    %cst_165 = arith.constant 0.000000e+00 : bf16
    %141 = vector.broadcast %cst_165 : bf16 to vector<16x3xbf16>
    %c0_166 = arith.constant 0 : index
    %c11 = arith.constant 11 : index
    %142 = vector.load %arg35[%c0_166, %c11] : memref<128x137xbf16, #tpu.memory_space<vmem>>, vector<16x3xbf16>
    tpu.vector_store %arg35[%c0_166, %c11], %141 {strides = array<i32>} : memref<128x137xbf16, #tpu.memory_space<vmem>>, vector<16x3xbf16>,
    %c0_167 = arith.constant 0 : index
    %c0_168 = arith.constant 0 : index
    %143 = vector.load %arg35[%c0_167, %c0_168] : memref<128x137xbf16, #tpu.memory_space<vmem>>, vector<16x8xbf16>
    %c0_169 = arith.constant 0 : index
    %c1_170 = arith.constant 1 : index
    %144 = vector.load %arg35[%c0_169, %c1_170] : memref<128x137xbf16, #tpu.memory_space<vmem>>, vector<16x8xbf16>
    %c0_171 = arith.constant 0 : index
    %c2_172 = arith.constant 2 : index
    %145 = vector.load %arg35[%c0_171, %c2_172] : memref<128x137xbf16, #tpu.memory_space<vmem>>, vector<16x8xbf16>
    %c0_173 = arith.constant 0 : index
    %c3_174 = arith.constant 3 : index
    %146 = vector.load %arg35[%c0_173, %c3_174] : memref<128x137xbf16, #tpu.memory_space<vmem>>, vector<16x8xbf16>
    %c0_175 = arith.constant 0 : index
    %c4_176 = arith.constant 4 : index
    %147 = vector.load %arg35[%c0_175, %c4_176] : memref<128x137xbf16, #tpu.memory_space<vmem>>, vector<16x8xbf16>
    %c0_177 = arith.constant 0 : index
    %c5_178 = arith.constant 5 : index
    %148 = vector.load %arg35[%c0_177, %c5_178] : memref<128x137xbf16, #tpu.memory_space<vmem>>, vector<16x8xbf16>
    %c0_179 = arith.constant 0 : index
    %c6_180 = arith.constant 6 : index
    %149 = vector.load %arg35[%c0_179, %c6_180] : memref<128x137xbf16, #tpu.memory_space<vmem>>, vector<16x8xbf16>
    %150 = tpu.concatenate %143, %144, %145, %146, %147, %148, %149 in 0 : vector<16x8xbf16>, vector<16x8xbf16>, vector<16x8xbf16>, vector<16x8xbf16>, vector<16x8xbf16>, vector<16x8xbf16>, vector<16x8xbf16> -> vector<112x8xbf16>
    %c0_181 = arith.constant 0 : index
    %c0_182 = arith.constant 0 : index
    %151 = vector.load %arg9[%c0_181, %c0_182] : memref<32x112xbf16, #tpu.memory_space<vmem>>, vector<32x112xbf16>
    %cst_183 = arith.constant dense<0.000000e+00> : vector<32x8xf32>
    %152 = tpu.matmul %151, %150, %cst_183 {dimension_numbers = #tpu.dot_dimension_numbers<[1], [0], [0], [1], [0, 0, 1, 1], [], []>} : vector<32x112xbf16>, vector<112x8xbf16>, vector<32x8xf32> -> vector<32x8xf32>
    %c56 = arith.constant 56 : index
    %c0_184 = arith.constant 0 : index
    %153 = vector.load %arg32[%c56, %c0_184] : memref<616x1xf32, #tpu.memory_space<vmem>>, vector<32x1xf32>
    %c56_185 = arith.constant 56 : index
    %c0_186 = arith.constant 0 : index
    %154 = vector.load %arg33[%c56_185, %c0_186] : memref<616x1xf32, #tpu.memory_space<vmem>>, vector<32x1xf32>
    %155 = vector.broadcast %153 : vector<32x1xf32> to vector<32x8xf32>
    %156 = arith.mulf %152, %155 : vector<32x8xf32>
    %157 = vector.broadcast %154 : vector<32x1xf32> to vector<32x8xf32>
    %158 = arith.addf %156, %157 : vector<32x8xf32>
    %cst_187 = arith.constant 0.000000e+00 : f32
    %159 = vector.broadcast %cst_187 : f32 to vector<32x8xf32>
    %160 = arith.maximumf %158, %159 : vector<32x8xf32>
    %161 = arith.truncf %160 : vector<32x8xf32> to vector<32x8xbf16>
    %cst_188 = arith.constant 0.000000e+00 : bf16
    %162 = vector.broadcast %cst_188 : bf16 to vector<32x3xbf16>
    %c0_189 = arith.constant 0 : index
    %c0_190 = arith.constant 0 : index
    %163 = vector.load %arg38[%c0_189, %c0_190] : memref<32x14xbf16, #tpu.memory_space<vmem>>, vector<32x3xbf16>
    tpu.vector_store %arg38[%c0_189, %c0_190], %162 {strides = array<i32>} : memref<32x14xbf16, #tpu.memory_space<vmem>>, vector<32x3xbf16>,
    %c0_191 = arith.constant 0 : index
    %c3_192 = arith.constant 3 : index
    %164 = vector.load %arg38[%c0_191, %c3_192] : memref<32x14xbf16, #tpu.memory_space<vmem>>, vector<32x8xbf16>
    tpu.vector_store %arg38[%c0_191, %c3_192], %161 {strides = array<i32>} : memref<32x14xbf16, #tpu.memory_space<vmem>>, vector<32x8xbf16>,
    %cst_193 = arith.constant 0.000000e+00 : bf16
    %165 = vector.broadcast %cst_193 : bf16 to vector<32x3xbf16>
    %c0_194 = arith.constant 0 : index
    %c11_195 = arith.constant 11 : index
    %166 = vector.load %arg38[%c0_194, %c11_195] : memref<32x14xbf16, #tpu.memory_space<vmem>>, vector<32x3xbf16>
    tpu.vector_store %arg38[%c0_194, %c11_195], %165 {strides = array<i32>} : memref<32x14xbf16, #tpu.memory_space<vmem>>, vector<32x3xbf16>,
    %cst_196 = arith.constant 0.000000e+00 : bf16
    %167 = vector.broadcast %cst_196 : bf16 to vector<32x1xbf16>
    %c0_197 = arith.constant 0 : index
    %c0_198 = arith.constant 0 : index
    %168 = vector.load %arg35[%c0_197, %c0_198] : memref<128x137xbf16, #tpu.memory_space<vmem>>, vector<32x1xbf16>
    tpu.vector_store %arg35[%c0_197, %c0_198], %167 {strides = array<i32>} : memref<128x137xbf16, #tpu.memory_space<vmem>>, vector<32x1xbf16>,
    %c0_199 = arith.constant 0 : index
    %c1_200 = arith.constant 1 : index
    %169 = vector.load %arg35[%c0_199, %c1_200] : memref<128x137xbf16, #tpu.memory_space<vmem>>, vector<32x8xbf16>
    tpu.vector_store %arg35[%c0_199, %c1_200], %161 {strides = array<i32>} : memref<128x137xbf16, #tpu.memory_space<vmem>>, vector<32x8xbf16>,
    %cst_201 = arith.constant 0.000000e+00 : bf16
    %170 = vector.broadcast %cst_201 : bf16 to vector<32x3xbf16>
    %c0_202 = arith.constant 0 : index
    %c9 = arith.constant 9 : index
    %171 = vector.load %arg35[%c0_202, %c9] : memref<128x137xbf16, #tpu.memory_space<vmem>>, vector<32x3xbf16>
    tpu.vector_store %arg35[%c0_202, %c9], %170 {strides = array<i32>} : memref<128x137xbf16, #tpu.memory_space<vmem>>, vector<32x3xbf16>,
    %c0_203 = arith.constant 0 : index
    %c0_204 = arith.constant 0 : index
    %172 = vector.load %arg35[%c0_203, %c0_204] : memref<128x137xbf16, #tpu.memory_space<vmem>>, vector<32x6xbf16>
    %c0_205 = arith.constant 0 : index
    %c1_206 = arith.constant 1 : index
    %173 = vector.load %arg35[%c0_205, %c1_206] : memref<128x137xbf16, #tpu.memory_space<vmem>>, vector<32x6xbf16>
    %c0_207 = arith.constant 0 : index
    %c2_208 = arith.constant 2 : index
    %174 = vector.load %arg35[%c0_207, %c2_208] : memref<128x137xbf16, #tpu.memory_space<vmem>>, vector<32x6xbf16>
    %c0_209 = arith.constant 0 : index
    %c3_210 = arith.constant 3 : index
    %175 = vector.load %arg35[%c0_209, %c3_210] : memref<128x137xbf16, #tpu.memory_space<vmem>>, vector<32x6xbf16>
    %c0_211 = arith.constant 0 : index
    %c4_212 = arith.constant 4 : index
    %176 = vector.load %arg35[%c0_211, %c4_212] : memref<128x137xbf16, #tpu.memory_space<vmem>>, vector<32x6xbf16>
    %c0_213 = arith.constant 0 : index
    %c5_214 = arith.constant 5 : index
    %177 = vector.load %arg35[%c0_213, %c5_214] : memref<128x137xbf16, #tpu.memory_space<vmem>>, vector<32x6xbf16>
    %c0_215 = arith.constant 0 : index
    %c6_216 = arith.constant 6 : index
    %178 = vector.load %arg35[%c0_215, %c6_216] : memref<128x137xbf16, #tpu.memory_space<vmem>>, vector<32x6xbf16>
    %179 = tpu.concatenate %172, %173, %174, %175, %176, %177, %178 in 0 : vector<32x6xbf16>, vector<32x6xbf16>, vector<32x6xbf16>, vector<32x6xbf16>, vector<32x6xbf16>, vector<32x6xbf16>, vector<32x6xbf16> -> vector<224x6xbf16>
    %c0_217 = arith.constant 0 : index
    %c0_218 = arith.constant 0 : index
    %180 = vector.load %arg11[%c0_217, %c0_218] : memref<32x224xbf16, #tpu.memory_space<vmem>>, vector<32x224xbf16>
    %cst_219 = arith.constant dense<0.000000e+00> : vector<32x6xf32>
    %181 = tpu.matmul %180, %179, %cst_219 {dimension_numbers = #tpu.dot_dimension_numbers<[1], [0], [0], [1], [0, 0, 1, 1], [], []>} : vector<32x224xbf16>, vector<224x6xbf16>, vector<32x6xf32> -> vector<32x6xf32>
    %182 = arith.truncf %181 : vector<32x6xf32> to vector<32x6xbf16>
    %c0_220 = arith.constant 0 : index
    %c0_221 = arith.constant 0 : index
    %183 = vector.load %arg10[%c0_220, %c0_221] : memref<6x2xbf16, #tpu.memory_space<vmem>>, vector<6x2xbf16>
    %cst_222 = arith.constant dense<0.000000e+00> : vector<32x2xf32>
    %184 = tpu.matmul %182, %183, %cst_222 {dimension_numbers = #tpu.dot_dimension_numbers<[1], [0], [0], [1], [0, 0, 1, 1], [], []>} : vector<32x6xbf16>, vector<6x2xbf16>, vector<32x2xf32> -> vector<32x2xf32>
    %c88 = arith.constant 88 : index
    %c0_223 = arith.constant 0 : index
    %185 = vector.load %arg32[%c88, %c0_223] : memref<616x1xf32, #tpu.memory_space<vmem>>, vector<32x1xf32>
    %c88_224 = arith.constant 88 : index
    %c0_225 = arith.constant 0 : index
    %186 = vector.load %arg33[%c88_224, %c0_225] : memref<616x1xf32, #tpu.memory_space<vmem>>, vector<32x1xf32>
    %187 = vector.broadcast %185 : vector<32x1xf32> to vector<32x2xf32>
    %188 = arith.mulf %184, %187 : vector<32x2xf32>
    %189 = vector.broadcast %186 : vector<32x1xf32> to vector<32x2xf32>
    %190 = arith.addf %188, %189 : vector<32x2xf32>
    %cst_226 = arith.constant 0.000000e+00 : f32
    %191 = vector.broadcast %cst_226 : f32 to vector<32x2xf32>
    %192 = arith.maximumf %190, %191 : vector<32x2xf32>
    %193 = arith.truncf %192 : vector<32x2xf32> to vector<32x2xbf16>
    %cst_227 = arith.constant 0.000000e+00 : bf16
    %194 = vector.broadcast %cst_227 : bf16 to vector<32x3xbf16>
    %c0_228 = arith.constant 0 : index
    %c0_229 = arith.constant 0 : index
    %195 = vector.load %arg35[%c0_228, %c0_229] : memref<128x137xbf16, #tpu.memory_space<vmem>>, vector<32x3xbf16>
    tpu.vector_store %arg35[%c0_228, %c0_229], %194 {strides = array<i32>} : memref<128x137xbf16, #tpu.memory_space<vmem>>, vector<32x3xbf16>,
    %c0_230 = arith.constant 0 : index
    %c3_231 = arith.constant 3 : index
    %196 = vector.load %arg35[%c0_230, %c3_231] : memref<128x137xbf16, #tpu.memory_space<vmem>>, vector<32x2xbf16>
    tpu.vector_store %arg35[%c0_230, %c3_231], %193 {strides = array<i32>} : memref<128x137xbf16, #tpu.memory_space<vmem>>, vector<32x2xbf16>,
    %cst_232 = arith.constant 0.000000e+00 : bf16
    %197 = vector.broadcast %cst_232 : bf16 to vector<32x3xbf16>
    %c0_233 = arith.constant 0 : index
    %c5_234 = arith.constant 5 : index
    %198 = vector.load %arg35[%c0_233, %c5_234] : memref<128x137xbf16, #tpu.memory_space<vmem>>, vector<32x3xbf16>
    tpu.vector_store %arg35[%c0_233, %c5_234], %197 {strides = array<i32>} : memref<128x137xbf16, #tpu.memory_space<vmem>>, vector<32x3xbf16>,
    %c0_235 = arith.constant 0 : index
    %c0_236 = arith.constant 0 : index
    %199 = vector.load %arg35[%c0_235, %c0_236] : memref<128x137xbf16, #tpu.memory_space<vmem>>, vector<32x2xbf16>
    %c0_237 = arith.constant 0 : index
    %c1_238 = arith.constant 1 : index
    %200 = vector.load %arg35[%c0_237, %c1_238] : memref<128x137xbf16, #tpu.memory_space<vmem>>, vector<32x2xbf16>
    %c0_239 = arith.constant 0 : index
    %c2_240 = arith.constant 2 : index
    %201 = vector.load %arg35[%c0_239, %c2_240] : memref<128x137xbf16, #tpu.memory_space<vmem>>, vector<32x2xbf16>
    %c0_241 = arith.constant 0 : index
    %c3_242 = arith.constant 3 : index
    %202 = vector.load %arg35[%c0_241, %c3_242] : memref<128x137xbf16, #tpu.memory_space<vmem>>, vector<32x2xbf16>
    %c0_243 = arith.constant 0 : index
    %c4_244 = arith.constant 4 : index
    %203 = vector.load %arg35[%c0_243, %c4_244] : memref<128x137xbf16, #tpu.memory_space<vmem>>, vector<32x2xbf16>
    %c0_245 = arith.constant 0 : index
    %c5_246 = arith.constant 5 : index
    %204 = vector.load %arg35[%c0_245, %c5_246] : memref<128x137xbf16, #tpu.memory_space<vmem>>, vector<32x2xbf16>
    %c0_247 = arith.constant 0 : index
    %c6_248 = arith.constant 6 : index
    %205 = vector.load %arg35[%c0_247, %c6_248] : memref<128x137xbf16, #tpu.memory_space<vmem>>, vector<32x2xbf16>
    %206 = tpu.concatenate %199, %200, %201, %202, %203, %204, %205 in 0 : vector<32x2xbf16>, vector<32x2xbf16>, vector<32x2xbf16>, vector<32x2xbf16>, vector<32x2xbf16>, vector<32x2xbf16>, vector<32x2xbf16> -> vector<224x2xbf16>
    %c0_249 = arith.constant 0 : index
    %c0_250 = arith.constant 0 : index
    %207 = vector.load %arg12[%c0_249, %c0_250] : memref<64x224xbf16, #tpu.memory_space<vmem>>, vector<64x224xbf16>
    %cst_251 = arith.constant dense<0.000000e+00> : vector<64x2xf32>
    %208 = tpu.matmul %207, %206, %cst_251 {dimension_numbers = #tpu.dot_dimension_numbers<[1], [0], [0], [1], [0, 0, 1, 1], [], []>} : vector<64x224xbf16>, vector<224x2xbf16>, vector<64x2xf32> -> vector<64x2xf32>
    %c120 = arith.constant 120 : index
    %c0_252 = arith.constant 0 : index
    %209 = vector.load %arg32[%c120, %c0_252] : memref<616x1xf32, #tpu.memory_space<vmem>>, vector<64x1xf32>
    %c120_253 = arith.constant 120 : index
    %c0_254 = arith.constant 0 : index
    %210 = vector.load %arg33[%c120_253, %c0_254] : memref<616x1xf32, #tpu.memory_space<vmem>>, vector<64x1xf32>
    %211 = vector.broadcast %209 : vector<64x1xf32> to vector<64x2xf32>
    %212 = arith.mulf %208, %211 : vector<64x2xf32>
    %213 = vector.broadcast %210 : vector<64x1xf32> to vector<64x2xf32>
    %214 = arith.addf %212, %213 : vector<64x2xf32>
    %cst_255 = arith.constant 0.000000e+00 : f32
    %215 = vector.broadcast %cst_255 : f32 to vector<64x2xf32>
    %216 = arith.maximumf %214, %215 : vector<64x2xf32>
    %217 = arith.truncf %216 : vector<64x2xf32> to vector<64x2xbf16>
    %cst_256 = arith.constant 0.000000e+00 : bf16
    %218 = vector.broadcast %cst_256 : bf16 to vector<64x3xbf16>
    %c0_257 = arith.constant 0 : index
    %c0_258 = arith.constant 0 : index
    %219 = vector.load %arg39[%c0_257, %c0_258] : memref<64x8xbf16, #tpu.memory_space<vmem>>, vector<64x3xbf16>
    tpu.vector_store %arg39[%c0_257, %c0_258], %218 {strides = array<i32>} : memref<64x8xbf16, #tpu.memory_space<vmem>>, vector<64x3xbf16>,
    %c0_259 = arith.constant 0 : index
    %c3_260 = arith.constant 3 : index
    %220 = vector.load %arg39[%c0_259, %c3_260] : memref<64x8xbf16, #tpu.memory_space<vmem>>, vector<64x2xbf16>
    tpu.vector_store %arg39[%c0_259, %c3_260], %217 {strides = array<i32>} : memref<64x8xbf16, #tpu.memory_space<vmem>>, vector<64x2xbf16>,
    %cst_261 = arith.constant 0.000000e+00 : bf16
    %221 = vector.broadcast %cst_261 : bf16 to vector<64x3xbf16>
    %c0_262 = arith.constant 0 : index
    %c5_263 = arith.constant 5 : index
    %222 = vector.load %arg39[%c0_262, %c5_263] : memref<64x8xbf16, #tpu.memory_space<vmem>>, vector<64x3xbf16>
    tpu.vector_store %arg39[%c0_262, %c5_263], %221 {strides = array<i32>} : memref<64x8xbf16, #tpu.memory_space<vmem>>, vector<64x3xbf16>,
    %cst_264 = arith.constant 0.000000e+00 : bf16
    %223 = vector.broadcast %cst_264 : bf16 to vector<64x2xbf16>
    %c0_265 = arith.constant 0 : index
    %c0_266 = arith.constant 0 : index
    %224 = vector.load %arg35[%c0_265, %c0_266] : memref<128x137xbf16, #tpu.memory_space<vmem>>, vector<64x2xbf16>
    tpu.vector_store %arg35[%c0_265, %c0_266], %223 {strides = array<i32>} : memref<128x137xbf16, #tpu.memory_space<vmem>>, vector<64x2xbf16>,
    %c0_267 = arith.constant 0 : index
    %c2_268 = arith.constant 2 : index
    %225 = vector.load %arg35[%c0_267, %c2_268] : memref<128x137xbf16, #tpu.memory_space<vmem>>, vector<64x2xbf16>
    tpu.vector_store %arg35[%c0_267, %c2_268], %217 {strides = array<i32>} : memref<128x137xbf16, #tpu.memory_space<vmem>>, vector<64x2xbf16>,
    %cst_269 = arith.constant 0.000000e+00 : bf16
    %226 = vector.broadcast %cst_269 : bf16 to vector<64x3xbf16>
    %c0_270 = arith.constant 0 : index
    %c4_271 = arith.constant 4 : index
    %227 = vector.load %arg35[%c0_270, %c4_271] : memref<128x137xbf16, #tpu.memory_space<vmem>>, vector<64x3xbf16>
    tpu.vector_store %arg35[%c0_270, %c4_271], %226 {strides = array<i32>} : memref<128x137xbf16, #tpu.memory_space<vmem>>, vector<64x3xbf16>,
    %c0_272 = arith.constant 0 : index
    %c0_273 = arith.constant 0 : index
    %228 = vector.load %arg35[%c0_272, %c0_273] : memref<128x137xbf16, #tpu.memory_space<vmem>>, vector<64x1xbf16>
    %c0_274 = arith.constant 0 : index
    %c1_275 = arith.constant 1 : index
    %229 = vector.load %arg35[%c0_274, %c1_275] : memref<128x137xbf16, #tpu.memory_space<vmem>>, vector<64x1xbf16>
    %c0_276 = arith.constant 0 : index
    %c2_277 = arith.constant 2 : index
    %230 = vector.load %arg35[%c0_276, %c2_277] : memref<128x137xbf16, #tpu.memory_space<vmem>>, vector<64x1xbf16>
    %c0_278 = arith.constant 0 : index
    %c3_279 = arith.constant 3 : index
    %231 = vector.load %arg35[%c0_278, %c3_279] : memref<128x137xbf16, #tpu.memory_space<vmem>>, vector<64x1xbf16>
    %c0_280 = arith.constant 0 : index
    %c4_281 = arith.constant 4 : index
    %232 = vector.load %arg35[%c0_280, %c4_281] : memref<128x137xbf16, #tpu.memory_space<vmem>>, vector<64x1xbf16>
    %c0_282 = arith.constant 0 : index
    %c5_283 = arith.constant 5 : index
    %233 = vector.load %arg35[%c0_282, %c5_283] : memref<128x137xbf16, #tpu.memory_space<vmem>>, vector<64x1xbf16>
    %c0_284 = arith.constant 0 : index
    %c6_285 = arith.constant 6 : index
    %234 = vector.load %arg35[%c0_284, %c6_285] : memref<128x137xbf16, #tpu.memory_space<vmem>>, vector<64x1xbf16>
    %235 = tpu.concatenate %228, %229, %230, %231, %232, %233, %234 in 0 : vector<64x1xbf16>, vector<64x1xbf16>, vector<64x1xbf16>, vector<64x1xbf16>, vector<64x1xbf16>, vector<64x1xbf16>, vector<64x1xbf16> -> vector<448x1xbf16>
    %c0_286 = arith.constant 0 : index
    %c0_287 = arith.constant 0 : index
    %236 = vector.load %arg13[%c0_286, %c0_287] : memref<64x448xbf16, #tpu.memory_space<vmem>>, vector<64x448xbf16>
    %cst_288 = arith.constant dense<0.000000e+00> : vector<64x1xf32>
    %237 = tpu.matmul %236, %235, %cst_288 {dimension_numbers = #tpu.dot_dimension_numbers<[1], [0], [0], [1], [0, 0, 1, 1], [], []>} : vector<64x448xbf16>, vector<448x1xbf16>, vector<64x1xf32> -> vector<64x1xf32>
    %c184 = arith.constant 184 : index
    %c0_289 = arith.constant 0 : index
    %238 = vector.load %arg32[%c184, %c0_289] : memref<616x1xf32, #tpu.memory_space<vmem>>, vector<64x1xf32>
    %c184_290 = arith.constant 184 : index
    %c0_291 = arith.constant 0 : index
    %239 = vector.load %arg33[%c184_290, %c0_291] : memref<616x1xf32, #tpu.memory_space<vmem>>, vector<64x1xf32>
    %240 = arith.mulf %237, %238 : vector<64x1xf32>
    %241 = arith.addf %240, %239 : vector<64x1xf32>
    %cst_292 = arith.constant 0.000000e+00 : f32
    %242 = vector.broadcast %cst_292 : f32 to vector<64x1xf32>
    %243 = arith.maximumf %241, %242 : vector<64x1xf32>
    %244 = arith.truncf %243 : vector<64x1xf32> to vector<64x1xbf16>
    %cst_293 = arith.constant 0.000000e+00 : bf16
    %245 = vector.broadcast %cst_293 : bf16 to vector<64x3xbf16>
    %c0_294 = arith.constant 0 : index
    %c0_295 = arith.constant 0 : index
    %246 = vector.load %arg35[%c0_294, %c0_295] : memref<128x137xbf16, #tpu.memory_space<vmem>>, vector<64x3xbf16>
    tpu.vector_store %arg35[%c0_294, %c0_295], %245 {strides = array<i32>} : memref<128x137xbf16, #tpu.memory_space<vmem>>, vector<64x3xbf16>,
    %c0_296 = arith.constant 0 : index
    %c3_297 = arith.constant 3 : index
    %247 = vector.load %arg35[%c0_296, %c3_297] : memref<128x137xbf16, #tpu.memory_space<vmem>>, vector<64x1xbf16>
    tpu.vector_store %arg35[%c0_296, %c3_297], %244 {strides = array<i32>} : memref<128x137xbf16, #tpu.memory_space<vmem>>, vector<64x1xbf16>,
    %cst_298 = arith.constant 0.000000e+00 : bf16
    %248 = vector.broadcast %cst_298 : bf16 to vector<64x3xbf16>
    %c0_299 = arith.constant 0 : index
    %c4_300 = arith.constant 4 : index
    %249 = vector.load %arg35[%c0_299, %c4_300] : memref<128x137xbf16, #tpu.memory_space<vmem>>, vector<64x3xbf16>
    tpu.vector_store %arg35[%c0_299, %c4_300], %248 {strides = array<i32>} : memref<128x137xbf16, #tpu.memory_space<vmem>>, vector<64x3xbf16>,
    %c0_301 = arith.constant 0 : index
    %c0_302 = arith.constant 0 : index
    %250 = vector.load %arg35[%c0_301, %c0_302] : memref<128x137xbf16, #tpu.memory_space<vmem>>, vector<64x1xbf16>
    %c0_303 = arith.constant 0 : index
    %c1_304 = arith.constant 1 : index
    %251 = vector.load %arg35[%c0_303, %c1_304] : memref<128x137xbf16, #tpu.memory_space<vmem>>, vector<64x1xbf16>
    %c0_305 = arith.constant 0 : index
    %c2_306 = arith.constant 2 : index
    %252 = vector.load %arg35[%c0_305, %c2_306] : memref<128x137xbf16, #tpu.memory_space<vmem>>, vector<64x1xbf16>
    %c0_307 = arith.constant 0 : index
    %c3_308 = arith.constant 3 : index
    %253 = vector.load %arg35[%c0_307, %c3_308] : memref<128x137xbf16, #tpu.memory_space<vmem>>, vector<64x1xbf16>
    %c0_309 = arith.constant 0 : index
    %c4_310 = arith.constant 4 : index
    %254 = vector.load %arg35[%c0_309, %c4_310] : memref<128x137xbf16, #tpu.memory_space<vmem>>, vector<64x1xbf16>
    %c0_311 = arith.constant 0 : index
    %c5_312 = arith.constant 5 : index
    %255 = vector.load %arg35[%c0_311, %c5_312] : memref<128x137xbf16, #tpu.memory_space<vmem>>, vector<64x1xbf16>
    %c0_313 = arith.constant 0 : index
    %c6_314 = arith.constant 6 : index
    %256 = vector.load %arg35[%c0_313, %c6_314] : memref<128x137xbf16, #tpu.memory_space<vmem>>, vector<64x1xbf16>
    %257 = tpu.concatenate %250, %251, %252, %253, %254, %255, %256 in 0 : vector<64x1xbf16>, vector<64x1xbf16>, vector<64x1xbf16>, vector<64x1xbf16>, vector<64x1xbf16>, vector<64x1xbf16>, vector<64x1xbf16> -> vector<448x1xbf16>
    %c0_315 = arith.constant 0 : index
    %c0_316 = arith.constant 0 : index
    %258 = vector.load %arg14[%c0_315, %c0_316] : memref<128x448xbf16, #tpu.memory_space<vmem>>, vector<128x448xbf16>
    %cst_317 = arith.constant dense<0.000000e+00> : vector<128x1xf32>
    %259 = tpu.matmul %258, %257, %cst_317 {dimension_numbers = #tpu.dot_dimension_numbers<[1], [0], [0], [1], [0, 0, 1, 1], [], []>} : vector<128x448xbf16>, vector<448x1xbf16>, vector<128x1xf32> -> vector<128x1xf32>
    %c248 = arith.constant 248 : index
    %c0_318 = arith.constant 0 : index
    %260 = vector.load %arg32[%c248, %c0_318] : memref<616x1xf32, #tpu.memory_space<vmem>>, vector<128x1xf32>
    %c248_319 = arith.constant 248 : index
    %c0_320 = arith.constant 0 : index
    %261 = vector.load %arg33[%c248_319, %c0_320] : memref<616x1xf32, #tpu.memory_space<vmem>>, vector<128x1xf32>
    %262 = arith.mulf %259, %260 : vector<128x1xf32>
    %263 = arith.addf %262, %261 : vector<128x1xf32>
    %cst_321 = arith.constant 0.000000e+00 : f32
    %264 = vector.broadcast %cst_321 : f32 to vector<128x1xf32>
    %265 = arith.maximumf %263, %264 : vector<128x1xf32>
    %266 = arith.truncf %265 : vector<128x1xf32> to vector<128x1xbf16>
    %cst_322 = arith.constant 0.000000e+00 : bf16
    %267 = vector.broadcast %cst_322 : bf16 to vector<128x6xbf16>
    %c0_323 = arith.constant 0 : index
    %c0_324 = arith.constant 0 : index
    %268 = vector.load %arg35[%c0_323, %c0_324] : memref<128x137xbf16, #tpu.memory_space<vmem>>, vector<128x6xbf16>
    tpu.vector_store %arg35[%c0_323, %c0_324], %267 {strides = array<i32>} : memref<128x137xbf16, #tpu.memory_space<vmem>>, vector<128x6xbf16>,
    %c0_325 = arith.constant 0 : index
    %c6_326 = arith.constant 6 : index
    %269 = vector.load %arg35[%c0_325, %c6_326] : memref<128x137xbf16, #tpu.memory_space<vmem>>, vector<128x1xbf16>
    tpu.vector_store %arg35[%c0_325, %c6_326], %266 {strides = array<i32>} : memref<128x137xbf16, #tpu.memory_space<vmem>>, vector<128x1xbf16>,
    %cst_327 = arith.constant 0.000000e+00 : bf16
    %270 = vector.broadcast %cst_327 : bf16 to vector<128x6xbf16>
    %c0_328 = arith.constant 0 : index
    %c7 = arith.constant 7 : index
    %271 = vector.load %arg35[%c0_328, %c7] : memref<128x137xbf16, #tpu.memory_space<vmem>>, vector<128x6xbf16>
    tpu.vector_store %arg35[%c0_328, %c7], %270 {strides = array<i32>} : memref<128x137xbf16, #tpu.memory_space<vmem>>, vector<128x6xbf16>,
    %c0_329 = arith.constant 0 : index
    %c0_330 = arith.constant 0 : index
    %272 = vector.load %arg35[%c0_329, %c0_330] : memref<128x137xbf16, #tpu.memory_space<vmem>>, vector<128x7xbf16>
    %c0_331 = arith.constant 0 : index
    %c1_332 = arith.constant 1 : index
    %273 = vector.load %arg35[%c0_331, %c1_332] : memref<128x137xbf16, #tpu.memory_space<vmem>>, vector<128x7xbf16>
    %c0_333 = arith.constant 0 : index
    %c2_334 = arith.constant 2 : index
    %274 = vector.load %arg35[%c0_333, %c2_334] : memref<128x137xbf16, #tpu.memory_space<vmem>>, vector<128x7xbf16>
    %c0_335 = arith.constant 0 : index
    %c3_336 = arith.constant 3 : index
    %275 = vector.load %arg35[%c0_335, %c3_336] : memref<128x137xbf16, #tpu.memory_space<vmem>>, vector<128x7xbf16>
    %c0_337 = arith.constant 0 : index
    %c4_338 = arith.constant 4 : index
    %276 = vector.load %arg35[%c0_337, %c4_338] : memref<128x137xbf16, #tpu.memory_space<vmem>>, vector<128x7xbf16>
    %c0_339 = arith.constant 0 : index
    %c5_340 = arith.constant 5 : index
    %277 = vector.load %arg35[%c0_339, %c5_340] : memref<128x137xbf16, #tpu.memory_space<vmem>>, vector<128x7xbf16>
    %c0_341 = arith.constant 0 : index
    %c6_342 = arith.constant 6 : index
    %278 = vector.load %arg35[%c0_341, %c6_342] : memref<128x137xbf16, #tpu.memory_space<vmem>>, vector<128x7xbf16>
    %279 = tpu.concatenate %272, %273, %274, %275, %276, %277, %278 in 0 : vector<128x7xbf16>, vector<128x7xbf16>, vector<128x7xbf16>, vector<128x7xbf16>, vector<128x7xbf16>, vector<128x7xbf16>, vector<128x7xbf16> -> vector<896x7xbf16>
    %c0_343 = arith.constant 0 : index
    %c0_344 = arith.constant 0 : index
    %280 = vector.load %arg15[%c0_343, %c0_344] : memref<64x896xbf16, #tpu.memory_space<vmem>>, vector<64x896xbf16>
    %cst_345 = arith.constant dense<0.000000e+00> : vector<64x7xf32>
    %281 = tpu.matmul %280, %279, %cst_345 {dimension_numbers = #tpu.dot_dimension_numbers<[1], [0], [0], [1], [0, 0, 1, 1], [], []>} : vector<64x896xbf16>, vector<896x7xbf16>, vector<64x7xf32> -> vector<64x7xf32>
    %282 = vector.extract_strided_slice %281 {offsets = [0, 2], sizes = [64, 2], strides = [1, 1]} : vector<64x7xf32> to vector<64x2xf32>
    %c376 = arith.constant 376 : index
    %c0_346 = arith.constant 0 : index
    %283 = vector.load %arg32[%c376, %c0_346] : memref<616x1xf32, #tpu.memory_space<vmem>>, vector<64x1xf32>
    %c376_347 = arith.constant 376 : index
    %c0_348 = arith.constant 0 : index
    %284 = vector.load %arg33[%c376_347, %c0_348] : memref<616x1xf32, #tpu.memory_space<vmem>>, vector<64x1xf32>
    %285 = vector.broadcast %283 : vector<64x1xf32> to vector<64x2xf32>
    %286 = arith.mulf %282, %285 : vector<64x2xf32>
    %287 = vector.broadcast %284 : vector<64x1xf32> to vector<64x2xf32>
    %288 = arith.addf %286, %287 : vector<64x2xf32>
    %cst_349 = arith.constant 0.000000e+00 : f32
    %289 = vector.broadcast %cst_349 : f32 to vector<64x2xf32>
    %290 = arith.maximumf %288, %289 : vector<64x2xf32>
    %291 = arith.truncf %290 : vector<64x2xf32> to vector<64x2xbf16>
    %cst_350 = arith.constant 0.000000e+00 : bf16
    %292 = vector.broadcast %cst_350 : bf16 to vector<64x3xbf16>
    %c0_351 = arith.constant 0 : index
    %c0_352 = arith.constant 0 : index
    %293 = vector.load %arg35[%c0_351, %c0_352] : memref<128x137xbf16, #tpu.memory_space<vmem>>, vector<64x3xbf16>
    tpu.vector_store %arg35[%c0_351, %c0_352], %292 {strides = array<i32>} : memref<128x137xbf16, #tpu.memory_space<vmem>>, vector<64x3xbf16>,
    %c0_353 = arith.constant 0 : index
    %c3_354 = arith.constant 3 : index
    %294 = vector.load %arg35[%c0_353, %c3_354] : memref<128x137xbf16, #tpu.memory_space<vmem>>, vector<64x2xbf16>
    tpu.vector_store %arg35[%c0_353, %c3_354], %291 {strides = array<i32>} : memref<128x137xbf16, #tpu.memory_space<vmem>>, vector<64x2xbf16>,
    %cst_355 = arith.constant 0.000000e+00 : bf16
    %295 = vector.broadcast %cst_355 : bf16 to vector<64x3xbf16>
    %c0_356 = arith.constant 0 : index
    %c5_357 = arith.constant 5 : index
    %296 = vector.load %arg35[%c0_356, %c5_357] : memref<128x137xbf16, #tpu.memory_space<vmem>>, vector<64x3xbf16>
    tpu.vector_store %arg35[%c0_356, %c5_357], %295 {strides = array<i32>} : memref<128x137xbf16, #tpu.memory_space<vmem>>, vector<64x3xbf16>,
    %c0_358 = arith.constant 0 : index
    %c0_359 = arith.constant 0 : index
    %297 = vector.load %arg35[%c0_358, %c0_359] : memref<128x137xbf16, #tpu.memory_space<vmem>>, vector<64x2xbf16>
    %c0_360 = arith.constant 0 : index
    %c1_361 = arith.constant 1 : index
    %298 = vector.load %arg35[%c0_360, %c1_361] : memref<128x137xbf16, #tpu.memory_space<vmem>>, vector<64x2xbf16>
    %c0_362 = arith.constant 0 : index
    %c2_363 = arith.constant 2 : index
    %299 = vector.load %arg35[%c0_362, %c2_363] : memref<128x137xbf16, #tpu.memory_space<vmem>>, vector<64x2xbf16>
    %c0_364 = arith.constant 0 : index
    %c3_365 = arith.constant 3 : index
    %300 = vector.load %arg35[%c0_364, %c3_365] : memref<128x137xbf16, #tpu.memory_space<vmem>>, vector<64x2xbf16>
    %c0_366 = arith.constant 0 : index
    %c4_367 = arith.constant 4 : index
    %301 = vector.load %arg35[%c0_366, %c4_367] : memref<128x137xbf16, #tpu.memory_space<vmem>>, vector<64x2xbf16>
    %c0_368 = arith.constant 0 : index
    %c5_369 = arith.constant 5 : index
    %302 = vector.load %arg35[%c0_368, %c5_369] : memref<128x137xbf16, #tpu.memory_space<vmem>>, vector<64x2xbf16>
    %c0_370 = arith.constant 0 : index
    %c6_371 = arith.constant 6 : index
    %303 = vector.load %arg35[%c0_370, %c6_371] : memref<128x137xbf16, #tpu.memory_space<vmem>>, vector<64x2xbf16>
    %304 = tpu.concatenate %297, %298, %299, %300, %301, %302, %303 in 0 : vector<64x2xbf16>, vector<64x2xbf16>, vector<64x2xbf16>, vector<64x2xbf16>, vector<64x2xbf16>, vector<64x2xbf16>, vector<64x2xbf16> -> vector<448x2xbf16>
    %c0_372 = arith.constant 0 : index
    %c0_373 = arith.constant 0 : index
    %305 = vector.load %arg39[%c0_372, %c0_373] : memref<64x8xbf16, #tpu.memory_space<vmem>>, vector<64x2xbf16>
    %c0_374 = arith.constant 0 : index
    %c1_375 = arith.constant 1 : index
    %306 = vector.load %arg39[%c0_374, %c1_375] : memref<64x8xbf16, #tpu.memory_space<vmem>>, vector<64x2xbf16>
    %c0_376 = arith.constant 0 : index
    %c2_377 = arith.constant 2 : index
    %307 = vector.load %arg39[%c0_376, %c2_377] : memref<64x8xbf16, #tpu.memory_space<vmem>>, vector<64x2xbf16>
    %c0_378 = arith.constant 0 : index
    %c3_379 = arith.constant 3 : index
    %308 = vector.load %arg39[%c0_378, %c3_379] : memref<64x8xbf16, #tpu.memory_space<vmem>>, vector<64x2xbf16>
    %c0_380 = arith.constant 0 : index
    %c4_381 = arith.constant 4 : index
    %309 = vector.load %arg39[%c0_380, %c4_381] : memref<64x8xbf16, #tpu.memory_space<vmem>>, vector<64x2xbf16>
    %c0_382 = arith.constant 0 : index
    %c5_383 = arith.constant 5 : index
    %310 = vector.load %arg39[%c0_382, %c5_383] : memref<64x8xbf16, #tpu.memory_space<vmem>>, vector<64x2xbf16>
    %c0_384 = arith.constant 0 : index
    %c6_385 = arith.constant 6 : index
    %311 = vector.load %arg39[%c0_384, %c6_385] : memref<64x8xbf16, #tpu.memory_space<vmem>>, vector<64x2xbf16>
    %312 = tpu.concatenate %305, %306, %307, %308, %309, %310, %311 in 0 : vector<64x2xbf16>, vector<64x2xbf16>, vector<64x2xbf16>, vector<64x2xbf16>, vector<64x2xbf16>, vector<64x2xbf16>, vector<64x2xbf16> -> vector<448x2xbf16>
    %c0_386 = arith.constant 0 : index
    %c0_387 = arith.constant 0 : index
    %313 = vector.load %arg16[%c0_386, %c0_387] : memref<64x448xbf16, #tpu.memory_space<vmem>>, vector<64x448xbf16>
    %cst_388 = arith.constant dense<0.000000e+00> : vector<64x2xf32>
    %314 = tpu.matmul %313, %312, %cst_388 {dimension_numbers = #tpu.dot_dimension_numbers<[1], [0], [0], [1], [0, 0, 1, 1], [], []>} : vector<64x448xbf16>, vector<448x2xbf16>, vector<64x2xf32> -> vector<64x2xf32>
    %c0_389 = arith.constant 0 : index
    %c0_390 = arith.constant 0 : index
    %315 = vector.load %arg17[%c0_389, %c0_390] : memref<64x448xbf16, #tpu.memory_space<vmem>>, vector<64x448xbf16>
    %cst_391 = arith.constant dense<0.000000e+00> : vector<64x2xf32>
    %316 = tpu.matmul %315, %304, %cst_391 {dimension_numbers = #tpu.dot_dimension_numbers<[1], [0], [0], [1], [0, 0, 1, 1], [], []>} : vector<64x448xbf16>, vector<448x2xbf16>, vector<64x2xf32> -> vector<64x2xf32>
    %317 = arith.addf %314, %316 : vector<64x2xf32>
    %c440 = arith.constant 440 : index
    %c0_392 = arith.constant 0 : index
    %318 = vector.load %arg32[%c440, %c0_392] : memref<616x1xf32, #tpu.memory_space<vmem>>, vector<64x1xf32>
    %c440_393 = arith.constant 440 : index
    %c0_394 = arith.constant 0 : index
    %319 = vector.load %arg33[%c440_393, %c0_394] : memref<616x1xf32, #tpu.memory_space<vmem>>, vector<64x1xf32>
    %320 = vector.broadcast %318 : vector<64x1xf32> to vector<64x2xf32>
    %321 = arith.mulf %317, %320 : vector<64x2xf32>
    %322 = vector.broadcast %319 : vector<64x1xf32> to vector<64x2xf32>
    %323 = arith.addf %321, %322 : vector<64x2xf32>
    %cst_395 = arith.constant 0.000000e+00 : f32
    %324 = vector.broadcast %cst_395 : f32 to vector<64x2xf32>
    %325 = arith.maximumf %323, %324 : vector<64x2xf32>
    %326 = arith.truncf %325 : vector<64x2xf32> to vector<64x2xbf16>
    %c0_396 = arith.constant 0 : index
    %c0_397 = arith.constant 0 : index
    %327 = vector.load %arg18[%c0_396, %c0_397] : memref<2x5xbf16, #tpu.memory_space<vmem>>, vector<2x5xbf16>
    %cst_398 = arith.constant dense<0.000000e+00> : vector<64x5xf32>
    %328 = tpu.matmul %326, %327, %cst_398 {dimension_numbers = #tpu.dot_dimension_numbers<[1], [0], [0], [1], [0, 0, 1, 1], [], []>} : vector<64x2xbf16>, vector<2x5xbf16>, vector<64x5xf32> -> vector<64x5xf32>
    %329 = arith.truncf %328 : vector<64x5xf32> to vector<64x5xbf16>
    %cst_399 = arith.constant 0.000000e+00 : bf16
    %330 = vector.broadcast %cst_399 : bf16 to vector<64x6xbf16>
    %c0_400 = arith.constant 0 : index
    %c0_401 = arith.constant 0 : index
    %331 = vector.load %arg35[%c0_400, %c0_401] : memref<128x137xbf16, #tpu.memory_space<vmem>>, vector<64x6xbf16>
    tpu.vector_store %arg35[%c0_400, %c0_401], %330 {strides = array<i32>} : memref<128x137xbf16, #tpu.memory_space<vmem>>, vector<64x6xbf16>,
    %c0_402 = arith.constant 0 : index
    %c6_403 = arith.constant 6 : index
    %332 = vector.load %arg35[%c0_402, %c6_403] : memref<128x137xbf16, #tpu.memory_space<vmem>>, vector<64x5xbf16>
    tpu.vector_store %arg35[%c0_402, %c6_403], %329 {strides = array<i32>} : memref<128x137xbf16, #tpu.memory_space<vmem>>, vector<64x5xbf16>,
    %cst_404 = arith.constant 0.000000e+00 : bf16
    %333 = vector.broadcast %cst_404 : bf16 to vector<64x6xbf16>
    %c0_405 = arith.constant 0 : index
    %c11_406 = arith.constant 11 : index
    %334 = vector.load %arg35[%c0_405, %c11_406] : memref<128x137xbf16, #tpu.memory_space<vmem>>, vector<64x6xbf16>
    tpu.vector_store %arg35[%c0_405, %c11_406], %333 {strides = array<i32>} : memref<128x137xbf16, #tpu.memory_space<vmem>>, vector<64x6xbf16>,
    %c0_407 = arith.constant 0 : index
    %c0_408 = arith.constant 0 : index
    %335 = vector.load %arg35[%c0_407, %c0_408] : memref<128x137xbf16, #tpu.memory_space<vmem>>, vector<64x11xbf16>
    %c0_409 = arith.constant 0 : index
    %c1_410 = arith.constant 1 : index
    %336 = vector.load %arg35[%c0_409, %c1_410] : memref<128x137xbf16, #tpu.memory_space<vmem>>, vector<64x11xbf16>
    %c0_411 = arith.constant 0 : index
    %c2_412 = arith.constant 2 : index
    %337 = vector.load %arg35[%c0_411, %c2_412] : memref<128x137xbf16, #tpu.memory_space<vmem>>, vector<64x11xbf16>
    %c0_413 = arith.constant 0 : index
    %c3_414 = arith.constant 3 : index
    %338 = vector.load %arg35[%c0_413, %c3_414] : memref<128x137xbf16, #tpu.memory_space<vmem>>, vector<64x11xbf16>
    %c0_415 = arith.constant 0 : index
    %c4_416 = arith.constant 4 : index
    %339 = vector.load %arg35[%c0_415, %c4_416] : memref<128x137xbf16, #tpu.memory_space<vmem>>, vector<64x11xbf16>
    %c0_417 = arith.constant 0 : index
    %c5_418 = arith.constant 5 : index
    %340 = vector.load %arg35[%c0_417, %c5_418] : memref<128x137xbf16, #tpu.memory_space<vmem>>, vector<64x11xbf16>
    %c0_419 = arith.constant 0 : index
    %c6_420 = arith.constant 6 : index
    %341 = vector.load %arg35[%c0_419, %c6_420] : memref<128x137xbf16, #tpu.memory_space<vmem>>, vector<64x11xbf16>
    %342 = tpu.concatenate %335, %336, %337, %338, %339, %340, %341 in 0 : vector<64x11xbf16>, vector<64x11xbf16>, vector<64x11xbf16>, vector<64x11xbf16>, vector<64x11xbf16>, vector<64x11xbf16>, vector<64x11xbf16> -> vector<448x11xbf16>
    %c0_421 = arith.constant 0 : index
    %c0_422 = arith.constant 0 : index
    %343 = vector.load %arg19[%c0_421, %c0_422] : memref<32x448xbf16, #tpu.memory_space<vmem>>, vector<32x448xbf16>
    %cst_423 = arith.constant dense<0.000000e+00> : vector<32x11xf32>
    %344 = tpu.matmul %343, %342, %cst_423 {dimension_numbers = #tpu.dot_dimension_numbers<[1], [0], [0], [1], [0, 0, 1, 1], [], []>} : vector<32x448xbf16>, vector<448x11xbf16>, vector<32x11xf32> -> vector<32x11xf32>
    %345 = vector.extract_strided_slice %344 {offsets = [0, 1], sizes = [32, 8], strides = [1, 1]} : vector<32x11xf32> to vector<32x8xf32>
    %c504 = arith.constant 504 : index
    %c0_424 = arith.constant 0 : index
    %346 = vector.load %arg32[%c504, %c0_424] : memref<616x1xf32, #tpu.memory_space<vmem>>, vector<32x1xf32>
    %c504_425 = arith.constant 504 : index
    %c0_426 = arith.constant 0 : index
    %347 = vector.load %arg33[%c504_425, %c0_426] : memref<616x1xf32, #tpu.memory_space<vmem>>, vector<32x1xf32>
    %348 = vector.broadcast %346 : vector<32x1xf32> to vector<32x8xf32>
    %349 = arith.mulf %345, %348 : vector<32x8xf32>
    %350 = vector.broadcast %347 : vector<32x1xf32> to vector<32x8xf32>
    %351 = arith.addf %349, %350 : vector<32x8xf32>
    %cst_427 = arith.constant 0.000000e+00 : f32
    %352 = vector.broadcast %cst_427 : f32 to vector<32x8xf32>
    %353 = arith.maximumf %351, %352 : vector<32x8xf32>
    %354 = arith.truncf %353 : vector<32x8xf32> to vector<32x8xbf16>
    %cst_428 = arith.constant 0.000000e+00 : bf16
    %355 = vector.broadcast %cst_428 : bf16 to vector<32x3xbf16>
    %c0_429 = arith.constant 0 : index
    %c0_430 = arith.constant 0 : index
    %356 = vector.load %arg35[%c0_429, %c0_430] : memref<128x137xbf16, #tpu.memory_space<vmem>>, vector<32x3xbf16>
    tpu.vector_store %arg35[%c0_429, %c0_430], %355 {strides = array<i32>} : memref<128x137xbf16, #tpu.memory_space<vmem>>, vector<32x3xbf16>,
    %c0_431 = arith.constant 0 : index
    %c3_432 = arith.constant 3 : index
    %357 = vector.load %arg35[%c0_431, %c3_432] : memref<128x137xbf16, #tpu.memory_space<vmem>>, vector<32x8xbf16>
    tpu.vector_store %arg35[%c0_431, %c3_432], %354 {strides = array<i32>} : memref<128x137xbf16, #tpu.memory_space<vmem>>, vector<32x8xbf16>,
    %cst_433 = arith.constant 0.000000e+00 : bf16
    %358 = vector.broadcast %cst_433 : bf16 to vector<32x3xbf16>
    %c0_434 = arith.constant 0 : index
    %c11_435 = arith.constant 11 : index
    %359 = vector.load %arg35[%c0_434, %c11_435] : memref<128x137xbf16, #tpu.memory_space<vmem>>, vector<32x3xbf16>
    tpu.vector_store %arg35[%c0_434, %c11_435], %358 {strides = array<i32>} : memref<128x137xbf16, #tpu.memory_space<vmem>>, vector<32x3xbf16>,
    %c0_436 = arith.constant 0 : index
    %c0_437 = arith.constant 0 : index
    %360 = vector.load %arg35[%c0_436, %c0_437] : memref<128x137xbf16, #tpu.memory_space<vmem>>, vector<32x8xbf16>
    %c0_438 = arith.constant 0 : index
    %c1_439 = arith.constant 1 : index
    %361 = vector.load %arg35[%c0_438, %c1_439] : memref<128x137xbf16, #tpu.memory_space<vmem>>, vector<32x8xbf16>
    %c0_440 = arith.constant 0 : index
    %c2_441 = arith.constant 2 : index
    %362 = vector.load %arg35[%c0_440, %c2_441] : memref<128x137xbf16, #tpu.memory_space<vmem>>, vector<32x8xbf16>
    %c0_442 = arith.constant 0 : index
    %c3_443 = arith.constant 3 : index
    %363 = vector.load %arg35[%c0_442, %c3_443] : memref<128x137xbf16, #tpu.memory_space<vmem>>, vector<32x8xbf16>
    %c0_444 = arith.constant 0 : index
    %c4_445 = arith.constant 4 : index
    %364 = vector.load %arg35[%c0_444, %c4_445] : memref<128x137xbf16, #tpu.memory_space<vmem>>, vector<32x8xbf16>
    %c0_446 = arith.constant 0 : index
    %c5_447 = arith.constant 5 : index
    %365 = vector.load %arg35[%c0_446, %c5_447] : memref<128x137xbf16, #tpu.memory_space<vmem>>, vector<32x8xbf16>
    %c0_448 = arith.constant 0 : index
    %c6_449 = arith.constant 6 : index
    %366 = vector.load %arg35[%c0_448, %c6_449] : memref<128x137xbf16, #tpu.memory_space<vmem>>, vector<32x8xbf16>
    %367 = tpu.concatenate %360, %361, %362, %363, %364, %365, %366 in 0 : vector<32x8xbf16>, vector<32x8xbf16>, vector<32x8xbf16>, vector<32x8xbf16>, vector<32x8xbf16>, vector<32x8xbf16>, vector<32x8xbf16> -> vector<224x8xbf16>
    %c0_450 = arith.constant 0 : index
    %c0_451 = arith.constant 0 : index
    %368 = vector.load %arg38[%c0_450, %c0_451] : memref<32x14xbf16, #tpu.memory_space<vmem>>, vector<32x8xbf16>
    %c0_452 = arith.constant 0 : index
    %c1_453 = arith.constant 1 : index
    %369 = vector.load %arg38[%c0_452, %c1_453] : memref<32x14xbf16, #tpu.memory_space<vmem>>, vector<32x8xbf16>
    %c0_454 = arith.constant 0 : index
    %c2_455 = arith.constant 2 : index
    %370 = vector.load %arg38[%c0_454, %c2_455] : memref<32x14xbf16, #tpu.memory_space<vmem>>, vector<32x8xbf16>
    %c0_456 = arith.constant 0 : index
    %c3_457 = arith.constant 3 : index
    %371 = vector.load %arg38[%c0_456, %c3_457] : memref<32x14xbf16, #tpu.memory_space<vmem>>, vector<32x8xbf16>
    %c0_458 = arith.constant 0 : index
    %c4_459 = arith.constant 4 : index
    %372 = vector.load %arg38[%c0_458, %c4_459] : memref<32x14xbf16, #tpu.memory_space<vmem>>, vector<32x8xbf16>
    %c0_460 = arith.constant 0 : index
    %c5_461 = arith.constant 5 : index
    %373 = vector.load %arg38[%c0_460, %c5_461] : memref<32x14xbf16, #tpu.memory_space<vmem>>, vector<32x8xbf16>
    %c0_462 = arith.constant 0 : index
    %c6_463 = arith.constant 6 : index
    %374 = vector.load %arg38[%c0_462, %c6_463] : memref<32x14xbf16, #tpu.memory_space<vmem>>, vector<32x8xbf16>
    %375 = tpu.concatenate %368, %369, %370, %371, %372, %373, %374 in 0 : vector<32x8xbf16>, vector<32x8xbf16>, vector<32x8xbf16>, vector<32x8xbf16>, vector<32x8xbf16>, vector<32x8xbf16>, vector<32x8xbf16> -> vector<224x8xbf16>
    %c0_464 = arith.constant 0 : index
    %c0_465 = arith.constant 0 : index
    %376 = vector.load %arg20[%c0_464, %c0_465] : memref<32x224xbf16, #tpu.memory_space<vmem>>, vector<32x224xbf16>
    %cst_466 = arith.constant dense<0.000000e+00> : vector<32x8xf32>
    %377 = tpu.matmul %376, %375, %cst_466 {dimension_numbers = #tpu.dot_dimension_numbers<[1], [0], [0], [1], [0, 0, 1, 1], [], []>} : vector<32x224xbf16>, vector<224x8xbf16>, vector<32x8xf32> -> vector<32x8xf32>
    %c0_467 = arith.constant 0 : index
    %c0_468 = arith.constant 0 : index
    %378 = vector.load %arg21[%c0_467, %c0_468] : memref<32x224xbf16, #tpu.memory_space<vmem>>, vector<32x224xbf16>
    %cst_469 = arith.constant dense<0.000000e+00> : vector<32x8xf32>
    %379 = tpu.matmul %378, %367, %cst_469 {dimension_numbers = #tpu.dot_dimension_numbers<[1], [0], [0], [1], [0, 0, 1, 1], [], []>} : vector<32x224xbf16>, vector<224x8xbf16>, vector<32x8xf32> -> vector<32x8xf32>
    %380 = arith.addf %377, %379 : vector<32x8xf32>
    %c536 = arith.constant 536 : index
    %c0_470 = arith.constant 0 : index
    %381 = vector.load %arg32[%c536, %c0_470] : memref<616x1xf32, #tpu.memory_space<vmem>>, vector<32x1xf32>
    %c536_471 = arith.constant 536 : index
    %c0_472 = arith.constant 0 : index
    %382 = vector.load %arg33[%c536_471, %c0_472] : memref<616x1xf32, #tpu.memory_space<vmem>>, vector<32x1xf32>
    %383 = vector.broadcast %381 : vector<32x1xf32> to vector<32x8xf32>
    %384 = arith.mulf %380, %383 : vector<32x8xf32>
    %385 = vector.broadcast %382 : vector<32x1xf32> to vector<32x8xf32>
    %386 = arith.addf %384, %385 : vector<32x8xf32>
    %cst_473 = arith.constant 0.000000e+00 : f32
    %387 = vector.broadcast %cst_473 : f32 to vector<32x8xf32>
    %388 = arith.maximumf %386, %387 : vector<32x8xf32>
    %389 = arith.truncf %388 : vector<32x8xf32> to vector<32x8xbf16>
    %c0_474 = arith.constant 0 : index
    %c0_475 = arith.constant 0 : index
    %390 = vector.load %arg22[%c0_474, %c0_475] : memref<8x29xbf16, #tpu.memory_space<vmem>>, vector<8x29xbf16>
    %cst_476 = arith.constant dense<0.000000e+00> : vector<32x29xf32>
    %391 = tpu.matmul %389, %390, %cst_476 {dimension_numbers = #tpu.dot_dimension_numbers<[1], [0], [0], [1], [0, 0, 1, 1], [], []>} : vector<32x8xbf16>, vector<8x29xbf16>, vector<32x29xf32> -> vector<32x29xf32>
    %392 = arith.truncf %391 : vector<32x29xf32> to vector<32x29xbf16>
    %cst_477 = arith.constant 0.000000e+00 : bf16
    %393 = vector.broadcast %cst_477 : bf16 to vector<32x6xbf16>
    %c0_478 = arith.constant 0 : index
    %c0_479 = arith.constant 0 : index
    %394 = vector.load %arg35[%c0_478, %c0_479] : memref<128x137xbf16, #tpu.memory_space<vmem>>, vector<32x6xbf16>
    tpu.vector_store %arg35[%c0_478, %c0_479], %393 {strides = array<i32>} : memref<128x137xbf16, #tpu.memory_space<vmem>>, vector<32x6xbf16>,
    %c0_480 = arith.constant 0 : index
    %c6_481 = arith.constant 6 : index
    %395 = vector.load %arg35[%c0_480, %c6_481] : memref<128x137xbf16, #tpu.memory_space<vmem>>, vector<32x29xbf16>
    tpu.vector_store %arg35[%c0_480, %c6_481], %392 {strides = array<i32>} : memref<128x137xbf16, #tpu.memory_space<vmem>>, vector<32x29xbf16>,
    %cst_482 = arith.constant 0.000000e+00 : bf16
    %396 = vector.broadcast %cst_482 : bf16 to vector<32x6xbf16>
    %c0_483 = arith.constant 0 : index
    %c35_484 = arith.constant 35 : index
    %397 = vector.load %arg35[%c0_483, %c35_484] : memref<128x137xbf16, #tpu.memory_space<vmem>>, vector<32x6xbf16>
    tpu.vector_store %arg35[%c0_483, %c35_484], %396 {strides = array<i32>} : memref<128x137xbf16, #tpu.memory_space<vmem>>, vector<32x6xbf16>,
    %c0_485 = arith.constant 0 : index
    %c0_486 = arith.constant 0 : index
    %398 = vector.load %arg35[%c0_485, %c0_486] : memref<128x137xbf16, #tpu.memory_space<vmem>>, vector<32x35xbf16>
    %c0_487 = arith.constant 0 : index
    %c1_488 = arith.constant 1 : index
    %399 = vector.load %arg35[%c0_487, %c1_488] : memref<128x137xbf16, #tpu.memory_space<vmem>>, vector<32x35xbf16>
    %c0_489 = arith.constant 0 : index
    %c2_490 = arith.constant 2 : index
    %400 = vector.load %arg35[%c0_489, %c2_490] : memref<128x137xbf16, #tpu.memory_space<vmem>>, vector<32x35xbf16>
    %c0_491 = arith.constant 0 : index
    %c3_492 = arith.constant 3 : index
    %401 = vector.load %arg35[%c0_491, %c3_492] : memref<128x137xbf16, #tpu.memory_space<vmem>>, vector<32x35xbf16>
    %c0_493 = arith.constant 0 : index
    %c4_494 = arith.constant 4 : index
    %402 = vector.load %arg35[%c0_493, %c4_494] : memref<128x137xbf16, #tpu.memory_space<vmem>>, vector<32x35xbf16>
    %c0_495 = arith.constant 0 : index
    %c5_496 = arith.constant 5 : index
    %403 = vector.load %arg35[%c0_495, %c5_496] : memref<128x137xbf16, #tpu.memory_space<vmem>>, vector<32x35xbf16>
    %c0_497 = arith.constant 0 : index
    %c6_498 = arith.constant 6 : index
    %404 = vector.load %arg35[%c0_497, %c6_498] : memref<128x137xbf16, #tpu.memory_space<vmem>>, vector<32x35xbf16>
    %405 = tpu.concatenate %398, %399, %400, %401, %402, %403, %404 in 0 : vector<32x35xbf16>, vector<32x35xbf16>, vector<32x35xbf16>, vector<32x35xbf16>, vector<32x35xbf16>, vector<32x35xbf16>, vector<32x35xbf16> -> vector<224x35xbf16>
    %c0_499 = arith.constant 0 : index
    %c0_500 = arith.constant 0 : index
    %406 = vector.load %arg23[%c0_499, %c0_500] : memref<16x224xbf16, #tpu.memory_space<vmem>>, vector<16x224xbf16>
    %cst_501 = arith.constant dense<0.000000e+00> : vector<16x35xf32>
    %407 = tpu.matmul %406, %405, %cst_501 {dimension_numbers = #tpu.dot_dimension_numbers<[1], [0], [0], [1], [0, 0, 1, 1], [], []>} : vector<16x224xbf16>, vector<224x35xbf16>, vector<16x35xf32> -> vector<16x35xf32>
    %408 = vector.extract_strided_slice %407 {offsets = [0, 1], sizes = [16, 32], strides = [1, 1]} : vector<16x35xf32> to vector<16x32xf32>
    %c568 = arith.constant 568 : index
    %c0_502 = arith.constant 0 : index
    %409 = vector.load %arg32[%c568, %c0_502] : memref<616x1xf32, #tpu.memory_space<vmem>>, vector<16x1xf32>
    %c568_503 = arith.constant 568 : index
    %c0_504 = arith.constant 0 : index
    %410 = vector.load %arg33[%c568_503, %c0_504] : memref<616x1xf32, #tpu.memory_space<vmem>>, vector<16x1xf32>
    %411 = vector.broadcast %409 : vector<16x1xf32> to vector<16x32xf32>
    %412 = arith.mulf %408, %411 : vector<16x32xf32>
    %413 = vector.broadcast %410 : vector<16x1xf32> to vector<16x32xf32>
    %414 = arith.addf %412, %413 : vector<16x32xf32>
    %cst_505 = arith.constant 0.000000e+00 : f32
    %415 = vector.broadcast %cst_505 : f32 to vector<16x32xf32>
    %416 = arith.maximumf %414, %415 : vector<16x32xf32>
    %417 = arith.truncf %416 : vector<16x32xf32> to vector<16x32xbf16>
    %cst_506 = arith.constant 0.000000e+00 : bf16
    %418 = vector.broadcast %cst_506 : bf16 to vector<16x3xbf16>
    %c0_507 = arith.constant 0 : index
    %c0_508 = arith.constant 0 : index
    %419 = vector.load %arg35[%c0_507, %c0_508] : memref<128x137xbf16, #tpu.memory_space<vmem>>, vector<16x3xbf16>
    tpu.vector_store %arg35[%c0_507, %c0_508], %418 {strides = array<i32>} : memref<128x137xbf16, #tpu.memory_space<vmem>>, vector<16x3xbf16>,
    %c0_509 = arith.constant 0 : index
    %c3_510 = arith.constant 3 : index
    %420 = vector.load %arg35[%c0_509, %c3_510] : memref<128x137xbf16, #tpu.memory_space<vmem>>, vector<16x32xbf16>
    tpu.vector_store %arg35[%c0_509, %c3_510], %417 {strides = array<i32>} : memref<128x137xbf16, #tpu.memory_space<vmem>>, vector<16x32xbf16>,
    %cst_511 = arith.constant 0.000000e+00 : bf16
    %421 = vector.broadcast %cst_511 : bf16 to vector<16x3xbf16>
    %c0_512 = arith.constant 0 : index
    %c35_513 = arith.constant 35 : index
    %422 = vector.load %arg35[%c0_512, %c35_513] : memref<128x137xbf16, #tpu.memory_space<vmem>>, vector<16x3xbf16>
    tpu.vector_store %arg35[%c0_512, %c35_513], %421 {strides = array<i32>} : memref<128x137xbf16, #tpu.memory_space<vmem>>, vector<16x3xbf16>,
    %c0_514 = arith.constant 0 : index
    %c0_515 = arith.constant 0 : index
    %423 = vector.load %arg35[%c0_514, %c0_515] : memref<128x137xbf16, #tpu.memory_space<vmem>>, vector<16x32xbf16>
    %c0_516 = arith.constant 0 : index
    %c1_517 = arith.constant 1 : index
    %424 = vector.load %arg35[%c0_516, %c1_517] : memref<128x137xbf16, #tpu.memory_space<vmem>>, vector<16x32xbf16>
    %c0_518 = arith.constant 0 : index
    %c2_519 = arith.constant 2 : index
    %425 = vector.load %arg35[%c0_518, %c2_519] : memref<128x137xbf16, #tpu.memory_space<vmem>>, vector<16x32xbf16>
    %c0_520 = arith.constant 0 : index
    %c3_521 = arith.constant 3 : index
    %426 = vector.load %arg35[%c0_520, %c3_521] : memref<128x137xbf16, #tpu.memory_space<vmem>>, vector<16x32xbf16>
    %c0_522 = arith.constant 0 : index
    %c4_523 = arith.constant 4 : index
    %427 = vector.load %arg35[%c0_522, %c4_523] : memref<128x137xbf16, #tpu.memory_space<vmem>>, vector<16x32xbf16>
    %c0_524 = arith.constant 0 : index
    %c5_525 = arith.constant 5 : index
    %428 = vector.load %arg35[%c0_524, %c5_525] : memref<128x137xbf16, #tpu.memory_space<vmem>>, vector<16x32xbf16>
    %c0_526 = arith.constant 0 : index
    %c6_527 = arith.constant 6 : index
    %429 = vector.load %arg35[%c0_526, %c6_527] : memref<128x137xbf16, #tpu.memory_space<vmem>>, vector<16x32xbf16>
    %430 = tpu.concatenate %423, %424, %425, %426, %427, %428, %429 in 0 : vector<16x32xbf16>, vector<16x32xbf16>, vector<16x32xbf16>, vector<16x32xbf16>, vector<16x32xbf16>, vector<16x32xbf16>, vector<16x32xbf16> -> vector<112x32xbf16>
    %c0_528 = arith.constant 0 : index
    %c0_529 = arith.constant 0 : index
    %431 = vector.load %arg37[%c0_528, %c0_529] : memref<16x38xbf16, #tpu.memory_space<vmem>>, vector<16x32xbf16>
    %c0_530 = arith.constant 0 : index
    %c1_531 = arith.constant 1 : index
    %432 = vector.load %arg37[%c0_530, %c1_531] : memref<16x38xbf16, #tpu.memory_space<vmem>>, vector<16x32xbf16>
    %c0_532 = arith.constant 0 : index
    %c2_533 = arith.constant 2 : index
    %433 = vector.load %arg37[%c0_532, %c2_533] : memref<16x38xbf16, #tpu.memory_space<vmem>>, vector<16x32xbf16>
    %c0_534 = arith.constant 0 : index
    %c3_535 = arith.constant 3 : index
    %434 = vector.load %arg37[%c0_534, %c3_535] : memref<16x38xbf16, #tpu.memory_space<vmem>>, vector<16x32xbf16>
    %c0_536 = arith.constant 0 : index
    %c4_537 = arith.constant 4 : index
    %435 = vector.load %arg37[%c0_536, %c4_537] : memref<16x38xbf16, #tpu.memory_space<vmem>>, vector<16x32xbf16>
    %c0_538 = arith.constant 0 : index
    %c5_539 = arith.constant 5 : index
    %436 = vector.load %arg37[%c0_538, %c5_539] : memref<16x38xbf16, #tpu.memory_space<vmem>>, vector<16x32xbf16>
    %c0_540 = arith.constant 0 : index
    %c6_541 = arith.constant 6 : index
    %437 = vector.load %arg37[%c0_540, %c6_541] : memref<16x38xbf16, #tpu.memory_space<vmem>>, vector<16x32xbf16>
    %438 = tpu.concatenate %431, %432, %433, %434, %435, %436, %437 in 0 : vector<16x32xbf16>, vector<16x32xbf16>, vector<16x32xbf16>, vector<16x32xbf16>, vector<16x32xbf16>, vector<16x32xbf16>, vector<16x32xbf16> -> vector<112x32xbf16>
    %c0_542 = arith.constant 0 : index
    %c0_543 = arith.constant 0 : index
    %439 = vector.load %arg24[%c0_542, %c0_543] : memref<16x112xbf16, #tpu.memory_space<vmem>>, vector<16x112xbf16>
    %cst_544 = arith.constant dense<0.000000e+00> : vector<16x32xf32>
    %440 = tpu.matmul %439, %438, %cst_544 {dimension_numbers = #tpu.dot_dimension_numbers<[1], [0], [0], [1], [0, 0, 1, 1], [], []>} : vector<16x112xbf16>, vector<112x32xbf16>, vector<16x32xf32> -> vector<16x32xf32>
    %c0_545 = arith.constant 0 : index
    %c0_546 = arith.constant 0 : index
    %441 = vector.load %arg25[%c0_545, %c0_546] : memref<16x112xbf16, #tpu.memory_space<vmem>>, vector<16x112xbf16>
    %cst_547 = arith.constant dense<0.000000e+00> : vector<16x32xf32>
    %442 = tpu.matmul %441, %430, %cst_547 {dimension_numbers = #tpu.dot_dimension_numbers<[1], [0], [0], [1], [0, 0, 1, 1], [], []>} : vector<16x112xbf16>, vector<112x32xbf16>, vector<16x32xf32> -> vector<16x32xf32>
    %443 = arith.addf %440, %442 : vector<16x32xf32>
    %c584 = arith.constant 584 : index
    %c0_548 = arith.constant 0 : index
    %444 = vector.load %arg32[%c584, %c0_548] : memref<616x1xf32, #tpu.memory_space<vmem>>, vector<16x1xf32>
    %c584_549 = arith.constant 584 : index
    %c0_550 = arith.constant 0 : index
    %445 = vector.load %arg33[%c584_549, %c0_550] : memref<616x1xf32, #tpu.memory_space<vmem>>, vector<16x1xf32>
    %446 = vector.broadcast %444 : vector<16x1xf32> to vector<16x32xf32>
    %447 = arith.mulf %443, %446 : vector<16x32xf32>
    %448 = vector.broadcast %445 : vector<16x1xf32> to vector<16x32xf32>
    %449 = arith.addf %447, %448 : vector<16x32xf32>
    %cst_551 = arith.constant 0.000000e+00 : f32
    %450 = vector.broadcast %cst_551 : f32 to vector<16x32xf32>
    %451 = arith.maximumf %449, %450 : vector<16x32xf32>
    %452 = arith.truncf %451 : vector<16x32xf32> to vector<16x32xbf16>
    %c0_552 = arith.constant 0 : index
    %c0_553 = arith.constant 0 : index
    %453 = vector.load %arg26[%c0_552, %c0_553] : memref<32x125xbf16, #tpu.memory_space<vmem>>, vector<32x125xbf16>
    %cst_554 = arith.constant dense<0.000000e+00> : vector<16x125xf32>
    %454 = tpu.matmul %452, %453, %cst_554 {dimension_numbers = #tpu.dot_dimension_numbers<[1], [0], [0], [1], [0, 0, 1, 1], [], []>} : vector<16x32xbf16>, vector<32x125xbf16>, vector<16x125xf32> -> vector<16x125xf32>
    %455 = arith.truncf %454 : vector<16x125xf32> to vector<16x125xbf16>
    %cst_555 = arith.constant 0.000000e+00 : bf16
    %456 = vector.broadcast %cst_555 : bf16 to vector<16x6xbf16>
    %c0_556 = arith.constant 0 : index
    %c0_557 = arith.constant 0 : index
    %457 = vector.load %arg35[%c0_556, %c0_557] : memref<128x137xbf16, #tpu.memory_space<vmem>>, vector<16x6xbf16>
    tpu.vector_store %arg35[%c0_556, %c0_557], %456 {strides = array<i32>} : memref<128x137xbf16, #tpu.memory_space<vmem>>, vector<16x6xbf16>,
    %c0_558 = arith.constant 0 : index
    %c6_559 = arith.constant 6 : index
    %458 = vector.load %arg35[%c0_558, %c6_559] : memref<128x137xbf16, #tpu.memory_space<vmem>>, vector<16x125xbf16>
    tpu.vector_store %arg35[%c0_558, %c6_559], %455 {strides = array<i32>} : memref<128x137xbf16, #tpu.memory_space<vmem>>, vector<16x125xbf16>,
    %cst_560 = arith.constant 0.000000e+00 : bf16
    %459 = vector.broadcast %cst_560 : bf16 to vector<16x6xbf16>
    %c0_561 = arith.constant 0 : index
    %c131_562 = arith.constant 131 : index
    %460 = vector.load %arg35[%c0_561, %c131_562] : memref<128x137xbf16, #tpu.memory_space<vmem>>, vector<16x6xbf16>
    tpu.vector_store %arg35[%c0_561, %c131_562], %459 {strides = array<i32>} : memref<128x137xbf16, #tpu.memory_space<vmem>>, vector<16x6xbf16>,
    %c0_563 = arith.constant 0 : index
    %c0_564 = arith.constant 0 : index
    %461 = vector.load %arg35[%c0_563, %c0_564] : memref<128x137xbf16, #tpu.memory_space<vmem>>, vector<16x131xbf16>
    %c0_565 = arith.constant 0 : index
    %c1_566 = arith.constant 1 : index
    %462 = vector.load %arg35[%c0_565, %c1_566] : memref<128x137xbf16, #tpu.memory_space<vmem>>, vector<16x131xbf16>
    %c0_567 = arith.constant 0 : index
    %c2_568 = arith.constant 2 : index
    %463 = vector.load %arg35[%c0_567, %c2_568] : memref<128x137xbf16, #tpu.memory_space<vmem>>, vector<16x131xbf16>
    %c0_569 = arith.constant 0 : index
    %c3_570 = arith.constant 3 : index
    %464 = vector.load %arg35[%c0_569, %c3_570] : memref<128x137xbf16, #tpu.memory_space<vmem>>, vector<16x131xbf16>
    %c0_571 = arith.constant 0 : index
    %c4_572 = arith.constant 4 : index
    %465 = vector.load %arg35[%c0_571, %c4_572] : memref<128x137xbf16, #tpu.memory_space<vmem>>, vector<16x131xbf16>
    %c0_573 = arith.constant 0 : index
    %c5_574 = arith.constant 5 : index
    %466 = vector.load %arg35[%c0_573, %c5_574] : memref<128x137xbf16, #tpu.memory_space<vmem>>, vector<16x131xbf16>
    %c0_575 = arith.constant 0 : index
    %c6_576 = arith.constant 6 : index
    %467 = vector.load %arg35[%c0_575, %c6_576] : memref<128x137xbf16, #tpu.memory_space<vmem>>, vector<16x131xbf16>
    %468 = tpu.concatenate %461, %462, %463, %464, %465, %466, %467 in 0 : vector<16x131xbf16>, vector<16x131xbf16>, vector<16x131xbf16>, vector<16x131xbf16>, vector<16x131xbf16>, vector<16x131xbf16>, vector<16x131xbf16> -> vector<112x131xbf16>
    %c0_577 = arith.constant 0 : index
    %c0_578 = arith.constant 0 : index
    %469 = vector.load %arg27[%c0_577, %c0_578] : memref<8x112xbf16, #tpu.memory_space<vmem>>, vector<8x112xbf16>
    %cst_579 = arith.constant dense<0.000000e+00> : vector<8x131xf32>
    %470 = tpu.matmul %469, %468, %cst_579 {dimension_numbers = #tpu.dot_dimension_numbers<[1], [0], [0], [1], [0, 0, 1, 1], [], []>} : vector<8x112xbf16>, vector<112x131xbf16>, vector<8x131xf32> -> vector<8x131xf32>
    %471 = vector.extract_strided_slice %470 {offsets = [0, 1], sizes = [8, 128], strides = [1, 1]} : vector<8x131xf32> to vector<8x128xf32>
    %c600 = arith.constant 600 : index
    %c0_580 = arith.constant 0 : index
    %472 = vector.load %arg32[%c600, %c0_580] : memref<616x1xf32, #tpu.memory_space<vmem>>, vector<8x1xf32>
    %c600_581 = arith.constant 600 : index
    %c0_582 = arith.constant 0 : index
    %473 = vector.load %arg33[%c600_581, %c0_582] : memref<616x1xf32, #tpu.memory_space<vmem>>, vector<8x1xf32>
    %474 = vector.broadcast %472 : vector<8x1xf32> to vector<8x128xf32>
    %475 = arith.mulf %471, %474 : vector<8x128xf32>
    %476 = vector.broadcast %473 : vector<8x1xf32> to vector<8x128xf32>
    %477 = arith.addf %475, %476 : vector<8x128xf32>
    %cst_583 = arith.constant 0.000000e+00 : f32
    %478 = vector.broadcast %cst_583 : f32 to vector<8x128xf32>
    %479 = arith.maximumf %477, %478 : vector<8x128xf32>
    %480 = arith.truncf %479 : vector<8x128xf32> to vector<8x128xbf16>
    %cst_584 = arith.constant 0.000000e+00 : bf16
    %481 = vector.broadcast %cst_584 : bf16 to vector<8x3xbf16>
    %c0_585 = arith.constant 0 : index
    %c0_586 = arith.constant 0 : index
    %482 = vector.load %arg35[%c0_585, %c0_586] : memref<128x137xbf16, #tpu.memory_space<vmem>>, vector<8x3xbf16>
    tpu.vector_store %arg35[%c0_585, %c0_586], %481 {strides = array<i32>} : memref<128x137xbf16, #tpu.memory_space<vmem>>, vector<8x3xbf16>,
    %c0_587 = arith.constant 0 : index
    %c3_588 = arith.constant 3 : index
    %483 = vector.load %arg35[%c0_587, %c3_588] : memref<128x137xbf16, #tpu.memory_space<vmem>>, vector<8x128xbf16>
    tpu.vector_store %arg35[%c0_587, %c3_588], %480 {strides = array<i32>} : memref<128x137xbf16, #tpu.memory_space<vmem>>, vector<8x128xbf16>,
    %cst_589 = arith.constant 0.000000e+00 : bf16
    %484 = vector.broadcast %cst_589 : bf16 to vector<8x3xbf16>
    %c0_590 = arith.constant 0 : index
    %c131_591 = arith.constant 131 : index
    %485 = vector.load %arg35[%c0_590, %c131_591] : memref<128x137xbf16, #tpu.memory_space<vmem>>, vector<8x3xbf16>
    tpu.vector_store %arg35[%c0_590, %c131_591], %484 {strides = array<i32>} : memref<128x137xbf16, #tpu.memory_space<vmem>>, vector<8x3xbf16>,
    %c0_592 = arith.constant 0 : index
    %c0_593 = arith.constant 0 : index
    %486 = vector.load %arg35[%c0_592, %c0_593] : memref<128x137xbf16, #tpu.memory_space<vmem>>, vector<8x128xbf16>
    %c0_594 = arith.constant 0 : index
    %c1_595 = arith.constant 1 : index
    %487 = vector.load %arg35[%c0_594, %c1_595] : memref<128x137xbf16, #tpu.memory_space<vmem>>, vector<8x128xbf16>
    %c0_596 = arith.constant 0 : index
    %c2_597 = arith.constant 2 : index
    %488 = vector.load %arg35[%c0_596, %c2_597] : memref<128x137xbf16, #tpu.memory_space<vmem>>, vector<8x128xbf16>
    %c0_598 = arith.constant 0 : index
    %c3_599 = arith.constant 3 : index
    %489 = vector.load %arg35[%c0_598, %c3_599] : memref<128x137xbf16, #tpu.memory_space<vmem>>, vector<8x128xbf16>
    %c0_600 = arith.constant 0 : index
    %c4_601 = arith.constant 4 : index
    %490 = vector.load %arg35[%c0_600, %c4_601] : memref<128x137xbf16, #tpu.memory_space<vmem>>, vector<8x128xbf16>
    %c0_602 = arith.constant 0 : index
    %c5_603 = arith.constant 5 : index
    %491 = vector.load %arg35[%c0_602, %c5_603] : memref<128x137xbf16, #tpu.memory_space<vmem>>, vector<8x128xbf16>
    %c0_604 = arith.constant 0 : index
    %c6_605 = arith.constant 6 : index
    %492 = vector.load %arg35[%c0_604, %c6_605] : memref<128x137xbf16, #tpu.memory_space<vmem>>, vector<8x128xbf16>
    %493 = tpu.concatenate %486, %487, %488, %489, %490, %491, %492 in 0 : vector<8x128xbf16>, vector<8x128xbf16>, vector<8x128xbf16>, vector<8x128xbf16>, vector<8x128xbf16>, vector<8x128xbf16>, vector<8x128xbf16> -> vector<56x128xbf16>
    %c0_606 = arith.constant 0 : index
    %c0_607 = arith.constant 0 : index
    %494 = vector.load %arg36[%c0_606, %c0_607] : memref<8x134xbf16, #tpu.memory_space<vmem>>, vector<8x128xbf16>
    %c0_608 = arith.constant 0 : index
    %c1_609 = arith.constant 1 : index
    %495 = vector.load %arg36[%c0_608, %c1_609] : memref<8x134xbf16, #tpu.memory_space<vmem>>, vector<8x128xbf16>
    %c0_610 = arith.constant 0 : index
    %c2_611 = arith.constant 2 : index
    %496 = vector.load %arg36[%c0_610, %c2_611] : memref<8x134xbf16, #tpu.memory_space<vmem>>, vector<8x128xbf16>
    %c0_612 = arith.constant 0 : index
    %c3_613 = arith.constant 3 : index
    %497 = vector.load %arg36[%c0_612, %c3_613] : memref<8x134xbf16, #tpu.memory_space<vmem>>, vector<8x128xbf16>
    %c0_614 = arith.constant 0 : index
    %c4_615 = arith.constant 4 : index
    %498 = vector.load %arg36[%c0_614, %c4_615] : memref<8x134xbf16, #tpu.memory_space<vmem>>, vector<8x128xbf16>
    %c0_616 = arith.constant 0 : index
    %c5_617 = arith.constant 5 : index
    %499 = vector.load %arg36[%c0_616, %c5_617] : memref<8x134xbf16, #tpu.memory_space<vmem>>, vector<8x128xbf16>
    %c0_618 = arith.constant 0 : index
    %c6_619 = arith.constant 6 : index
    %500 = vector.load %arg36[%c0_618, %c6_619] : memref<8x134xbf16, #tpu.memory_space<vmem>>, vector<8x128xbf16>
    %501 = tpu.concatenate %494, %495, %496, %497, %498, %499, %500 in 0 : vector<8x128xbf16>, vector<8x128xbf16>, vector<8x128xbf16>, vector<8x128xbf16>, vector<8x128xbf16>, vector<8x128xbf16>, vector<8x128xbf16> -> vector<56x128xbf16>
    %c0_620 = arith.constant 0 : index
    %c0_621 = arith.constant 0 : index
    %502 = vector.load %arg28[%c0_620, %c0_621] : memref<8x56xbf16, #tpu.memory_space<vmem>>, vector<8x56xbf16>
    %cst_622 = arith.constant dense<0.000000e+00> : vector<8x128xf32>
    %503 = tpu.matmul %502, %501, %cst_622 {dimension_numbers = #tpu.dot_dimension_numbers<[1], [0], [0], [1], [0, 0, 1, 1], [], []>} : vector<8x56xbf16>, vector<56x128xbf16>, vector<8x128xf32> -> vector<8x128xf32>
    %c0_623 = arith.constant 0 : index
    %c0_624 = arith.constant 0 : index
    %504 = vector.load %arg29[%c0_623, %c0_624] : memref<8x56xbf16, #tpu.memory_space<vmem>>, vector<8x56xbf16>
    %cst_625 = arith.constant dense<0.000000e+00> : vector<8x128xf32>
    %505 = tpu.matmul %504, %493, %cst_625 {dimension_numbers = #tpu.dot_dimension_numbers<[1], [0], [0], [1], [0, 0, 1, 1], [], []>} : vector<8x56xbf16>, vector<56x128xbf16>, vector<8x128xf32> -> vector<8x128xf32>
    %506 = arith.addf %503, %505 : vector<8x128xf32>
    %c608 = arith.constant 608 : index
    %c0_626 = arith.constant 0 : index
    %507 = vector.load %arg32[%c608, %c0_626] : memref<616x1xf32, #tpu.memory_space<vmem>>, vector<8x1xf32>
    %c608_627 = arith.constant 608 : index
    %c0_628 = arith.constant 0 : index
    %508 = vector.load %arg33[%c608_627, %c0_628] : memref<616x1xf32, #tpu.memory_space<vmem>>, vector<8x1xf32>
    %509 = vector.broadcast %507 : vector<8x1xf32> to vector<8x128xf32>
    %510 = arith.mulf %506, %509 : vector<8x128xf32>
    %511 = vector.broadcast %508 : vector<8x1xf32> to vector<8x128xf32>
    %512 = arith.addf %510, %511 : vector<8x128xf32>
    %cst_629 = arith.constant 0.000000e+00 : f32
    %513 = vector.broadcast %cst_629 : f32 to vector<8x128xf32>
    %514 = arith.maximumf %512, %513 : vector<8x128xf32>
    %515 = arith.truncf %514 : vector<8x128xf32> to vector<8x128xbf16>
    %c0_630 = arith.constant 0 : index
    %c0_631 = arith.constant 0 : index
    %516 = vector.load %arg30[%c0_630, %c0_631] : memref<3x8xbf16, #tpu.memory_space<vmem>>, vector<3x8xbf16>
    %cst_632 = arith.constant dense<0.000000e+00> : vector<3x128xf32>
    %517 = tpu.matmul %516, %515, %cst_632 {dimension_numbers = #tpu.dot_dimension_numbers<[1], [0], [0], [1], [0, 0, 1, 1], [], []>} : vector<3x8xbf16>, vector<8x128xbf16>, vector<3x128xf32> -> vector<3x128xf32>
    %c0_633 = arith.constant 0 : index
    %c0_634 = arith.constant 0 : index
    %518 = vector.load %arg31[%c0_633, %c0_634] : memref<3x1xf32, #tpu.memory_space<vmem>>, vector<3x1xf32>
    %519 = vector.broadcast %518 : vector<3x1xf32> to vector<3x128xf32>
    %520 = arith.addf %517, %519 : vector<3x128xf32>
    %cst_635 = arith.constant dense<0xFF800000> : vector<128xf32>
    %521 = vector.multi_reduction <maximumf>, %520, %cst_635 [0] : vector<3x128xf32> to vector<128xf32>
    %522 = vector.shape_cast %521 : vector<128xf32> to vector<1x128xf32>
    %523 = vector.broadcast %522 : vector<1x128xf32> to vector<3x128xf32>
    %524 = arith.subf %520, %523 : vector<3x128xf32>
    %525 = math.exp %524 : vector<3x128xf32>
    %cst_636 = arith.constant dense<0.000000e+00> : vector<128xf32>
    %526 = vector.multi_reduction <add>, %525, %cst_636 [0] : vector<3x128xf32> to vector<128xf32>
    %527 = vector.shape_cast %526 : vector<128xf32> to vector<1x128xf32>
    %528 = vector.broadcast %527 : vector<1x128xf32> to vector<3x128xf32>
    %529 = arith.divf %525, %528 : vector<3x128xf32>
    %c0_637 = arith.constant 0 : index
    %c0_638 = arith.constant 0 : index
    %c0_639 = arith.constant 0 : index
    %530 = vector.load %arg34[%c0_637, %c0_638, %c0_639] : memref<1x3x128xf32, #tpu.memory_space<vmem>>, vector<1x3x128xf32>
    %531 = vector.shape_cast %530 : vector<1x3x128xf32> to vector<3x128xf32>
    %532 = vector.shape_cast %529 : vector<3x128xf32> to vector<1x3x128xf32>
    tpu.vector_store %arg34[%c0_637, %c0_638, %c0_639], %532 {strides = array<i32>} : memref<1x3x128xf32, #tpu.memory_space<vmem>>, vector<1x3x128xf32>,
    return
  }
  func.func @transform_0(%arg0: i32) -> (i32, i32, i32) {
    %c0_i32 = arith.constant 0 : i32
    %c0_i32_0 = arith.constant 0 : i32
    %c0_i32_1 = arith.constant 0 : i32
    return %arg0, %c0_i32, %c0_i32_0 : i32, i32, i32
  }
  func.func @transform_1(%arg0: i32) -> (i32, i32) {
    %c0_i32 = arith.constant 0 : i32
    %c0_i32_0 = arith.constant 0 : i32
    %c0_i32_1 = arith.constant 0 : i32
    return %c0_i32, %c0_i32_0 : i32, i32
  }
  func.func @transform_2(%arg0: i32) -> (i32, i32) {
    %c0_i32 = arith.constant 0 : i32
    %c0_i32_0 = arith.constant 0 : i32
    %c0_i32_1 = arith.constant 0 : i32
    return %c0_i32, %c0_i32_0 : i32, i32
  }
  func.func @transform_3(%arg0: i32) -> (i32, i32) {
    %c0_i32 = arith.constant 0 : i32
    %c0_i32_0 = arith.constant 0 : i32
    %c0_i32_1 = arith.constant 0 : i32
    return %c0_i32, %c0_i32_0 : i32, i32
  }
  func.func @transform_4(%arg0: i32) -> (i32, i32) {
    %c0_i32 = arith.constant 0 : i32
    %c0_i32_0 = arith.constant 0 : i32
    %c0_i32_1 = arith.constant 0 : i32
    return %c0_i32, %c0_i32_0 : i32, i32
  }
  func.func @transform_5(%arg0: i32) -> (i32, i32) {
    %c0_i32 = arith.constant 0 : i32
    %c0_i32_0 = arith.constant 0 : i32
    %c0_i32_1 = arith.constant 0 : i32
    return %c0_i32, %c0_i32_0 : i32, i32
  }
  func.func @transform_6(%arg0: i32) -> (i32, i32) {
    %c0_i32 = arith.constant 0 : i32
    %c0_i32_0 = arith.constant 0 : i32
    %c0_i32_1 = arith.constant 0 : i32
    return %c0_i32, %c0_i32_0 : i32, i32
  }
  func.func @transform_7(%arg0: i32) -> (i32, i32) {
    %c0_i32 = arith.constant 0 : i32
    %c0_i32_0 = arith.constant 0 : i32
    %c0_i32_1 = arith.constant 0 : i32
    return %c0_i32, %c0_i32_0 : i32, i32
  }
  func.func @transform_8(%arg0: i32) -> (i32, i32) {
    %c0_i32 = arith.constant 0 : i32
    %c0_i32_0 = arith.constant 0 : i32
    %c0_i32_1 = arith.constant 0 : i32
    return %c0_i32, %c0_i32_0 : i32, i32
  }
  func.func @transform_9(%arg0: i32) -> (i32, i32) {
    %c0_i32 = arith.constant 0 : i32
    %c0_i32_0 = arith.constant 0 : i32
    %c0_i32_1 = arith.constant 0 : i32
    return %c0_i32, %c0_i32_0 : i32, i32
  }
  func.func @transform_10(%arg0: i32) -> (i32, i32) {
    %c0_i32 = arith.constant 0 : i32
    %c0_i32_0 = arith.constant 0 : i32
    %c0_i32_1 = arith.constant 0 : i32
    return %c0_i32, %c0_i32_0 : i32, i32
  }
  func.func @transform_11(%arg0: i32) -> (i32, i32) {
    %c0_i32 = arith.constant 0 : i32
    %c0_i32_0 = arith.constant 0 : i32
    %c0_i32_1 = arith.constant 0 : i32
    return %c0_i32, %c0_i32_0 : i32, i32
  }
  func.func @transform_12(%arg0: i32) -> (i32, i32) {
    %c0_i32 = arith.constant 0 : i32
    %c0_i32_0 = arith.constant 0 : i32
    %c0_i32_1 = arith.constant 0 : i32
    return %c0_i32, %c0_i32_0 : i32, i32
  }
  func.func @transform_13(%arg0: i32) -> (i32, i32) {
    %c0_i32 = arith.constant 0 : i32
    %c0_i32_0 = arith.constant 0 : i32
    %c0_i32_1 = arith.constant 0 : i32
    return %c0_i32, %c0_i32_0 : i32, i32
  }
  func.func @transform_14(%arg0: i32) -> (i32, i32) {
    %c0_i32 = arith.constant 0 : i32
    %c0_i32_0 = arith.constant 0 : i32
    %c0_i32_1 = arith.constant 0 : i32
    return %c0_i32, %c0_i32_0 : i32, i32
  }
  func.func @transform_15(%arg0: i32) -> (i32, i32) {
    %c0_i32 = arith.constant 0 : i32
    %c0_i32_0 = arith.constant 0 : i32
    %c0_i32_1 = arith.constant 0 : i32
    return %c0_i32, %c0_i32_0 : i32, i32
  }
  func.func @transform_16(%arg0: i32) -> (i32, i32) {
    %c0_i32 = arith.constant 0 : i32
    %c0_i32_0 = arith.constant 0 : i32
    %c0_i32_1 = arith.constant 0 : i32
    return %c0_i32, %c0_i32_0 : i32, i32
  }
  func.func @transform_17(%arg0: i32) -> (i32, i32) {
    %c0_i32 = arith.constant 0 : i32
    %c0_i32_0 = arith.constant 0 : i32
    %c0_i32_1 = arith.constant 0 : i32
    return %c0_i32, %c0_i32_0 : i32, i32
  }
  func.func @transform_18(%arg0: i32) -> (i32, i32) {
    %c0_i32 = arith.constant 0 : i32
    %c0_i32_0 = arith.constant 0 : i32
    %c0_i32_1 = arith.constant 0 : i32
    return %c0_i32, %c0_i32_0 : i32, i32
  }
  func.func @transform_19(%arg0: i32) -> (i32, i32) {
    %c0_i32 = arith.constant 0 : i32
    %c0_i32_0 = arith.constant 0 : i32
    %c0_i32_1 = arith.constant 0 : i32
    return %c0_i32, %c0_i32_0 : i32, i32
  }
  func.func @transform_20(%arg0: i32) -> (i32, i32) {
    %c0_i32 = arith.constant 0 : i32
    %c0_i32_0 = arith.constant 0 : i32
    %c0_i32_1 = arith.constant 0 : i32
    return %c0_i32, %c0_i32_0 : i32, i32
  }
  func.func @transform_21(%arg0: i32) -> (i32, i32) {
    %c0_i32 = arith.constant 0 : i32
    %c0_i32_0 = arith.constant 0 : i32
    %c0_i32_1 = arith.constant 0 : i32
    return %c0_i32, %c0_i32_0 : i32, i32
  }
  func.func @transform_22(%arg0: i32) -> (i32, i32) {
    %c0_i32 = arith.constant 0 : i32
    %c0_i32_0 = arith.constant 0 : i32
    %c0_i32_1 = arith.constant 0 : i32
    return %c0_i32, %c0_i32_0 : i32, i32
  }
  func.func @transform_23(%arg0: i32) -> (i32, i32) {
    %c0_i32 = arith.constant 0 : i32
    %c0_i32_0 = arith.constant 0 : i32
    %c0_i32_1 = arith.constant 0 : i32
    return %c0_i32, %c0_i32_0 : i32, i32
  }
  func.func @transform_24(%arg0: i32) -> (i32, i32) {
    %c0_i32 = arith.constant 0 : i32
    %c0_i32_0 = arith.constant 0 : i32
    %c0_i32_1 = arith.constant 0 : i32
    return %c0_i32, %c0_i32_0 : i32, i32
  }
  func.func @transform_25(%arg0: i32) -> (i32, i32) {
    %c0_i32 = arith.constant 0 : i32
    %c0_i32_0 = arith.constant 0 : i32
    %c0_i32_1 = arith.constant 0 : i32
    return %c0_i32, %c0_i32_0 : i32, i32
  }
  func.func @transform_26(%arg0: i32) -> (i32, i32) {
    %c0_i32 = arith.constant 0 : i32
    %c0_i32_0 = arith.constant 0 : i32
    %c0_i32_1 = arith.constant 0 : i32
    return %c0_i32, %c0_i32_0 : i32, i32
  }
  func.func @transform_27(%arg0: i32) -> (i32, i32) {
    %c0_i32 = arith.constant 0 : i32
    %c0_i32_0 = arith.constant 0 : i32
    %c0_i32_1 = arith.constant 0 : i32
    return %c0_i32, %c0_i32_0 : i32, i32
  }
  func.func @transform_28(%arg0: i32) -> (i32, i32) {
    %c0_i32 = arith.constant 0 : i32
    %c0_i32_0 = arith.constant 0 : i32
    %c0_i32_1 = arith.constant 0 : i32
    return %c0_i32, %c0_i32_0 : i32, i32
  }
  func.func @transform_29(%arg0: i32) -> (i32, i32) {
    %c0_i32 = arith.constant 0 : i32
    %c0_i32_0 = arith.constant 0 : i32
    %c0_i32_1 = arith.constant 0 : i32
    return %c0_i32, %c0_i32_0 : i32, i32
  }
  func.func @transform_30(%arg0: i32) -> (i32, i32) {
    %c0_i32 = arith.constant 0 : i32
    %c0_i32_0 = arith.constant 0 : i32
    %c0_i32_1 = arith.constant 0 : i32
    return %c0_i32, %c0_i32_0 : i32, i32
  }
  func.func @transform_31(%arg0: i32) -> (i32, i32) {
    %c0_i32 = arith.constant 0 : i32
    %c0_i32_0 = arith.constant 0 : i32
    %c0_i32_1 = arith.constant 0 : i32
    return %c0_i32, %c0_i32_0 : i32, i32
  }
  func.func @transform_32(%arg0: i32) -> (i32, i32) {
    %c0_i32 = arith.constant 0 : i32
    %c0_i32_0 = arith.constant 0 : i32
    %c0_i32_1 = arith.constant 0 : i32
    return %c0_i32, %c0_i32_0 : i32, i32
  }
  func.func @transform_33(%arg0: i32) -> (i32, i32, i32) {
    %c0_i32 = arith.constant 0 : i32
    %c0_i32_0 = arith.constant 0 : i32
    %c0_i32_1 = arith.constant 0 : i32
    return %arg0, %c0_i32, %c0_i32_0 : i32, i32, i32
  }
}

</mosaic_0001>

<bundles_post_ra>
// kernel: phasenet_ema_forward.1
= control target key start
LH: loop header
LB: loop body
LE: loop exit
PB: predicated region body
PF: predicated region fallthrough
CT: control target
= control target key end

     0   :  { %s8955_s6 = smov 1   ;;  %s8956_s10 = smov 2   ;;  %s11263_s0 = inlined_call_operand.smem [shape: u32[34], index: -1, kind: input, shape index: {}] }
   0x1   :  { %s9010_s5 = sld [smem:[%s11263_s0]]   ;;  %s8957_s14 = smov 3  }
   0x2   :  { %s9015_s9 = sld [smem:[%s11263_s0 + %s8955_s6]]   ;;  %s8958_s18 = smov 4  }
   0x3   :  { %s9020_s13 = sld [smem:[%s11263_s0 + %s8956_s10]]   ;;  %s8959_s22 = smov 5  }
   0x4   :  { %s9025_s17 = sld [smem:[%s11263_s0 + %s8957_s14]]   ;;  %s8960_s26 = smov 6  }
   0x5   :  { %s9030_s21 = sld [smem:[%s11263_s0 + %s8958_s18]]   ;;  %s8961_s30 = smov 7  }
   0x6   :  { %s9035_s25 = sld [smem:[%s11263_s0 + %s8959_s22]]   ;;  %s8962_s4 = smov 8  }
   0x7   :  { %11327 = sst [smem:[#allocation7_spill]] %s9010_s5  ;;  %s8963_s10 = smov 9  }
   0x8   :  { %s9040_s29 = sld [smem:[%s11263_s0 + %s8960_s26]]   ;;  %s8964_s15 = smov 10  }
   0x9   :  { %s9045_s3 = sld [smem:[%s11263_s0 + %s8961_s30]]   ;;  %s8965_s20 = smov 11  }
   0xa   :  { %s9050_s8 = sld [smem:[%s11263_s0 + %s8962_s4]]   ;;  %s8966_s26 = smov 12  }
   0xb   :  { %s9055_s14 = sld [smem:[%s11263_s0 + %s8963_s10]]   ;;  %s8967_s1 = smov 13  }
   0xc   :  { %s9060_s19 = sld [smem:[%s11263_s0 + %s8964_s15]]   ;;  %s8968_s7 = smov 14  }
   0xd   :  { %s9065_s24 = sld [smem:[%s11263_s0 + %s8965_s20]]   ;;  %s8969_s15 = smov 15  }
   0xe   :  { %s9070_s30 = sld [smem:[%s11263_s0 + %s8966_s26]]   ;;  %s8970_s22 = smov 16  }
   0xf   :  { %11328 = sst [smem:[#allocation8_spill]] %s9045_s3  ;;  %s8971_s28 = smov 17  }
  0x10   :  { %s9075_s6 = sld [smem:[%s11263_s0 + %s8967_s1]]  }
  0x11   :  { %s9080_s12 = sld [smem:[%s11263_s0 + %s8968_s7]]   ;;  %s8972_s7 = smov 18  }
  0x12   :  { %s9085_s20 = sld [smem:[%s11263_s0 + %s8969_s15]]   ;;  %s8973_s15 = smov 19  }
  0x13   :  { %s9090_s27 = sld [smem:[%s11263_s0 + %s8970_s22]]   ;;  %s8974_s22 = smov 20  }
  0x14   :  { %s9095_s4 = sld [smem:[%s11263_s0 + %s8971_s28]]   ;;  %s8975_s28 = smov 21  }
  0x16   :  { %11329 = sst [smem:[#allocation9_spill]] %s9075_s6 }
  0x17   :  { %11330 = sst [smem:[#allocation10_spill]] %s9080_s12 }
  0x18   :  { %11331 = sst [smem:[#allocation11_spill]] %s9085_s20 }
  0x19   :  { %11332 = sst [smem:[#allocation12_spill]] %s9090_s27 }
  0x1a   :  { %11333 = sst [smem:[#allocation13_spill]] %s9095_s4 }
  0x1b   :  { %s9100_s12 = sld [smem:[%s11263_s0 + %s8972_s7]]   ;;  %s8976_s7 = smov 22  }
  0x1c   :  { %s9105_s20 = sld [smem:[%s11263_s0 + %s8973_s15]]   ;;  %s8977_s15 = smov 23  }
  0x1d   :  { %s9110_s27 = sld [smem:[%s11263_s0 + %s8974_s22]]   ;;  %s8978_s22 = smov 24  }
  0x1e   :  { %s9115_s4 = sld [smem:[%s11263_s0 + %s8975_s28]]   ;;  %s8979_s28 = smov 25  }
  0x21   :  { %11334 = sst [smem:[#allocation14_spill]] %s9100_s12 }
  0x22   :  { %11335 = sst [smem:[#allocation15_spill]] %s9105_s20 }
  0x23   :  { %11336 = sst [smem:[#allocation16_spill]] %s9110_s27 }
  0x24   :  { %11337 = sst [smem:[#allocation17_spill]] %s9115_s4 }
  0x25   :  { %s9120_s12 = sld [smem:[%s11263_s0 + %s8976_s7]]   ;;  %s8980_s7 = smov 26  }
  0x26   :  { %s9125_s20 = sld [smem:[%s11263_s0 + %s8977_s15]]   ;;  %s8981_s15 = smov 27  }
  0x27   :  { %s9130_s27 = sld [smem:[%s11263_s0 + %s8978_s22]]   ;;  %s8982_s22 = smov 28  }
  0x28   :  { %s9135_s4 = sld [smem:[%s11263_s0 + %s8979_s28]]   ;;  %s8983_s28 = smov 29  }
  0x2b   :  { %11338 = sst [smem:[#allocation18_spill]] %s9120_s12 }
  0x2c   :  { %11339 = sst [smem:[#allocation19_spill]] %s9125_s20 }
  0x2d   :  { %11340 = sst [smem:[#allocation20_spill]] %s9130_s27 }
  0x2e   :  { %11341 = sst [smem:[#allocation21_spill]] %s9135_s4 }
  0x2f   :  { %s9140_s12 = sld [smem:[%s11263_s0 + %s8980_s7]]   ;;  %s8984_s7 = smov 30  }
  0x30   :  { %s9145_s20 = sld [smem:[%s11263_s0 + %s8981_s15]]   ;;  %s8985_s15 = smov 31  }
  0x31   :  { %s9150_s27 = sld [smem:[%s11263_s0 + %s8982_s22]]   ;;  %s8986_s22 = smov 32  }
  0x32   :  { %s9155_s4 = sld [smem:[%s11263_s0 + %s8983_s28]]   ;;  %s8987_s28 = smov 33  }
  0x35   :  { %11342 = sst [smem:[#allocation22_spill]] %s9140_s12 }
  0x36   :  { %11343 = sst [smem:[#allocation23_spill]] %s9145_s20 }
  0x37   :  { %11344 = sst [smem:[#allocation24_spill]] %s9150_s27 }
  0x38   :  { %11345 = sst [smem:[#allocation25_spill]] %s9155_s4 }
  0x39   :  { %s9160_s12 = sld [smem:[%s11263_s0 + %s8984_s7]]   ;;  %s9177_s7 = smov 0  }
  0x3a   :  { %s9165_s20 = sld [smem:[%s11263_s0 + %s8985_s15]]  }
  0x3b   :  { %s9170_s27 = sld [smem:[%s11263_s0 + %s8986_s22]]  }
  0x3c   :  { %s9175_s4 = sld [smem:[%s11263_s0 + %s8987_s28]]  }
  0x3d LB: > { %s11346_s6 = sld [smem:[#allocation9_spill]]  ;;  %s7528_s10 = sadd.s32 4294967295, %s8953_s7   ;;  %s8953_s7 = sphi %s9177_s7, %s77_s7  }
  0x3e   : > { %p7532_p0 = scmp.ge.s32.totalorder %s8953_s7, 1  ;;  %p920_p1 = scmp.lt.s32.totalorder %s8953_s7, 3 }
  0x40   : > { %p921_p2 = pnand %p7532_p0, %p920_p1 }
  0x42   : > { %924 = sbr.rel (%p921_p2) target bundleno = 10653 (0x299d), region = 152 }
  0x47   : > { %p1002_p3 = scmp.lt.s32.totalorder %s7528_s10, 1  ;;  %s11347_s5 = sld [smem:[#allocation7_spill]]  ;;  %vm1012_vm0 = vcmask 17408   ;;  %vm1013_vm1 = vsmask.f32 1280  ;;  %vm1032_vm3 = vcmask 1041432  }
  0x48   : > { %vm1014_vm2 = vmand %vm1012_vm0, %vm1013_vm1  ;;  %v1015_v0 = vld [vmem:[#allocation2] sm:$0x3]  ;;  %s11306_s15 = smov 3   ;;  %vm1034_vm4 = vcmask 21508   ;;  %vm1035_vm5 = vsmask.f32 5376 }
  0x49   : > { %s11452_s10 = smov (!%p1002_p3, %s7528_s10), 1  ;;  %v1016_v1 = vsel %vm1014_vm2, 0, %v1015_v0  ;;  %vm1033_vm6 = vmand %vm1032_vm3, %vm1013_vm1  ;;  %vm1029_vm8 = vcmask 23552   ;;  %vm1041_vm10 = vcmask 42008   ;;  %s11316_s16 = smov 122   ;;  %v11283_v17 = vmov 0.0  }
  0x4a   : > { %1017 = vst [vmem:[#allocation2] sm:$0x3] %v1016_v1  ;;  %s7533_s0 = sshll.u32 %s11452_s10, 1  ;;  %vm1036_vm7 = vmand %vm1034_vm4, %vm1035_vm5  ;;  %8390 = vmatprep.subr.bf16.mxu0 %v11283_v17  ;;  %8398 = vmatprep.subr.bf16.mxu1 %v11283_v17  ;;  %s11318_s18 = smov 126   ;;  %vm1220_vm12 = vcmask 19456   ;;  %v11285_v29 = vmov 0  }
  0x4b   : > { %vm1037_vm9 = vmor %vm1036_vm7, %vm1033_vm6  ;;  %8681 = vset.pattern.permute.xlu0 %v11285_v29  ;;  %8682 = vset.pattern.permute.xlu1 %v11285_v29  ;;  %1350 = vst.msk [vmem:[#allocation3] sm:$0xf] %vm1220_vm12, %v11285_v29  ;;  %s11310_s22 = smov 124   ;;  %s11314_s23 = smov 123   ;;  %vm1835_vm13 = vcmask 1046528   ;;  %v8996_v36 = vmov 65535  }
  0x4c   : > { %vm1042_vm11 = vmand %vm1041_vm10, %vm1013_vm1  ;;  %1705 = vst.msk [vmem:[#allocation4] sm:$0xf] %vm1220_vm12, %v11285_v29  ;;  %s11321_s26 = smov 127   ;;  %v1837_v37 = vsel %vm1835_vm13, 4294967295, %v8996_v36  ;;  %vm1146_vm14 = vcmask 1047552   ;;  %s11312_s28 = smov 125  }
  0x4d   : > { %s1005_s11 = scalar_lea.vmem %s11347_s5, %s7533_s0  ;;  %1706 = vst.msk [vmem:[#allocation4 + $0x4] sm:$0xf] %vm1220_vm12, %v11285_v29  ;;  %2090 = vst.msk [vmem:[#allocation5] sm:$0xf] %vm1220_vm12, %v11285_v29  ;;  %v9259_v42 = vsel %vm1146_vm14, %v1837_v37, 0  ;;  %vm8998_vm15 = vmmov 0  }
  0x4e   : > { %v7535_v2 = vld.sshfl [vmem:[%s1005_s11] sm:$0x3 pattern:$0x76325410]  ;;  %2091 = vst.msk [vmem:[#allocation5 + $0x4] sm:$0xf] %vm1220_vm12, %v11285_v29  ;;  %8394 = vmatprep.mubr.msk.bf16.mxu0 %vm8998_vm15, %v11283_v17  ;;  %8406 = vmatprep.mubr.msk.bf16.mxu1 %vm8998_vm15, %v11283_v17 }
  0x4f   : > { %1026 = vrot.lane.b32.xlu0 %v7535_v2, %s11306_s15  ;;  %2092 = vst.msk [vmem:[#allocation5 + $0x8] sm:$0xf] %vm1220_vm12, %v11285_v29  ;;  %2093 = vst.msk [vmem:[#allocation5 + $0xc] sm:$0xf] %vm1220_vm12, %v11285_v29  ;;  %v1204_v45 = vld [vmem:[%s9165_s20] sm:$0xff]  ;;  %vm1129_vm0 = vcmask 1041408  }
  0x50   : > { %2738 = vst.msk [vmem:[#allocation6] sm:$0xf] %vm1220_vm12, %v11285_v29  ;;  %2739 = vst.msk [vmem:[#allocation6 + $0x4] sm:$0xf] %vm1220_vm12, %v11285_v29  ;;  %v1205_v47 = vld [vmem:[%s9170_s27] sm:$0xff]  ;;  %vm11279_vm2 = vcmask 1042432  }
  0x51   : > { %v1038_v4 = vld [vmem:[#allocation2] sm:$0x33]  ;;  %2740 = vst.msk [vmem:[#allocation6 + $0x8] sm:$0xf] %vm1220_vm12, %v11285_v29  ;;  %2741 = vst.msk [vmem:[#allocation6 + $0xc] sm:$0xf] %vm1220_vm12, %v11285_v29 }
  0x52   : > { %2742 = vst.msk [vmem:[#allocation6 + $0x10] sm:$0xf] %vm1220_vm12, %v11285_v29  ;;  %2743 = vst.msk [vmem:[#allocation6 + $0x14] sm:$0xf] %vm1220_vm12, %v11285_v29  ;;  %v1160_v54 = vsel %vm1129_vm0, 4294967295, %v8996_v36  ;;  %vm11281_vm3 = vcmask 998400  }
  0x53   : > { %2744 = vst.msk [vmem:[#allocation6 + $0x18] sm:$0xf] %vm1220_vm12, %v11285_v29  ;;  %2745 = vst.msk [vmem:[#allocation6 + $0x1c] sm:$0xf] %vm1220_vm12, %v11285_v29  ;;  %vm11280_vm4 = vcmask 1006592   ;;  %vm11272_vm5 = vcmask 1040384  }
  0x54   : > { %v1161_v57 = vsel %vm11279_vm2, %v1160_v54, 0  ;;  %vm11273_vm6 = vcmask 1039360   ;;  %vm9282_vm7 = vmand %vm1129_vm0, %vm1013_vm1  ;;  %vm1137_vm10 = vcmask 1044480   ;;  %vm11276_vm13 = vcmask 1031168   ;;  %v1335_v37 = vld [vmem:[%s9170_s27 + $0x8] sm:$0xff]  ;;  %s11304_s1 = smov 2  }
  0x55   : > { %vm1147_vm0 = vsmask.f32 7424  ;;  %s11357_s3 = sld [smem:[#allocation8_spill]]  ;;  %s9000_s2 = smov 1  }
  0x56   : > { %s11308_s0 = smov 6   ;;  %s11371_s11 = sld [smem:[#allocation10_spill]] }
  0x57   : > { %s11414_s5 = sld [smem:[#allocation18_spill]] }
  0xc1   : > { %v1027_v3 = vpop.permute.xlu0 %1026 }
  0xc2   : > { %v1028_v5 = vrot.slane %v1027_v3, 4 }
  0xc4   : > { %v1030_v6 = vsel %vm1029_vm8, %v1028_v5, %v1027_v3 }
  0xc5   : > { %v1039_v7 = vsel %vm1037_vm9, %v1030_v6, %v1038_v4  ;;  %vm11277_vm9 = vcmask 1022976  }
  0xc6   : > { %1040 = vst [vmem:[#allocation2] sm:$0x33] %v1039_v7 }
  0xcd   : > { %v1043_v8 = vld [vmem:[#allocation2 + $0x4] sm:$0x3]  ;;  %v9215_v28 = vld [vmem:[#allocation2] sm:$0x3] }
  0xce   : > { %v1044_v9 = vsel %vm1042_vm11, 0, %v1043_v8  ;;  %vm1138_vm11 = vsmask.f32 4352 }
  0xcf   : > { %1045 = vst [vmem:[#allocation2 + $0x4] sm:$0x3] %v1044_v9  ;;  %vm1139_vm1 = vmand %vm1137_vm10, %vm1138_vm11  ;;  %vm1155_vm10 = vcmask 171008  }
  0xd6   : > { %v1047_v10 = vld [vmem:[#allocation2] sm:$0x33] }
  0xd7   : > { %v9194_v11 = vcombine.high %v1047_v10, %v1047_v10  ;;  %v7536_v12 = vcombine.low %v1047_v10, %v1047_v10  ;;  %1221 = vst.msk [vmem:[#allocation2] sm:$0xf] %vm1220_vm12, %v11285_v29 }
  0xd9   : > { %v1122_v13 = vrot.slane %v9194_v11, 7  ;;  %v1121_v14 = vrot.slane %v7536_v12, 7  ;;  %v9197_v15 = vshll.u32 %v7536_v12, 16  ;;  %v1062_v16 = vshrl.u32 %v9194_v11, 16 }
  0xda   : > { %v1077_v18 = vrot.slane %v9194_v11, 5  ;;  %v1076_v19 = vrot.slane %v7536_v12, 5  ;;  %v9207_v21 = vshll.u32 %v9194_v11, 16  ;;  %v1054_v22 = vshrl.u32 %v7536_v12, 16 }
  0xdb   : > { %1125 = vrot.lane.b32.xlu0 %v1122_v13, %s11316_s16  ;;  %1123 = vrot.lane.b32.xlu1 %v1121_v14, %s11316_s16  ;;  %v1105_v20 = vrot.slane %v9197_v15, 1  ;;  %v1097_v23 = vrot.slane %v7536_v12, 2  ;;  %v1064_v24 = vrot.slane %v1062_v16, 6  ;;  %v1087_v30 = vrot.slane %v1062_v16, 3 }
  0xdc   : > { %v1106_v26 = vrot.slane %v9207_v21, 1  ;;  %v1067_v27 = vrot.slane %v9207_v21, 7  ;;  %v1056_v31 = vrot.slane %v1054_v22, 6  ;;  %v1088_v34 = vrot.slane %v9207_v21, 4 }
  0xdd   : > { %v1107_v25 = vor.u32 %v1105_v20, %v1054_v22  ;;  %v1059_v35 = vrot.slane %v9197_v15, 7  ;;  %v1084_v38 = vrot.slane %v1054_v22, 3  ;;  %v1085_v41 = vrot.slane %v9197_v15, 4 }
  0xde   : > { %v1108_v32 = vor.u32 %v1106_v26, %v1062_v16  ;;  %v1068_v33 = vor.u32 %v1067_v27, %v1064_v24  ;;  %v1089_v39 = vor.u32 %v1088_v34, %v1087_v30  ;;  %v1098_v43 = vrot.slane %v9194_v11, 2  ;;  %v1154_v16 = vld [vmem:[%s9015_s9] sm:$0xf] }
  0xdf   : > { %1080 = vrot.lane.b32.xlu0 %v1077_v18, %s11318_s18  ;;  %1078 = vrot.lane.b32.xlu1 %v1076_v19, %s11318_s18  ;;  %v1060_v40 = vor.u32 %v1059_v35, %v1056_v31  ;;  %v1086_v44 = vor.u32 %v1085_v41, %v1084_v38  ;;  %v8676_v46 = vpack.i.bf16 %v1106_v26, %v1105_v20  ;;  %v11350_v30 = vmov 0  ;;  %v1334_v38 = vld [vmem:[%s9165_s20 + $0x8] sm:$0xff] }
  0xe3   : > { %1099 = vrot.lane.b32.xlu1 %v1097_v23, %s11310_s22  ;;  %1113 = vrot.lane.b32.xlu0 %v1107_v25, %s11314_s23 }
  0xe7   : > { %1115 = vrot.lane.b32.xlu1 %v1108_v32, %s11314_s23  ;;  %1071 = vrot.lane.b32.xlu0 %v1068_v33, %s11321_s26 }
  0xeb   : > { %1092 = vrot.lane.b32.xlu0 %v1089_v39, %s11312_s28  ;;  %1069 = vrot.lane.b32.xlu1 %v1060_v40, %s11321_s26 }
  0xef   : > { %1101 = vrot.lane.b32.xlu0 %v1098_v43, %s11310_s22  ;;  %1090 = vrot.lane.b32.xlu1 %v1086_v44, %s11312_s28 }
  0xf3   : > { %8677 = vrot.lane.b32.xlu1 %v8676_v46, %s11314_s23  ;;  %1208 = vperm.xlu0 %8681, %v1204_v45  }
  0xf7   : > { %1214 = vperm.xlu1 %8682, %v1205_v47  }
 0x14d   : > { %v1126_v48 = vpop.permute.xlu0 %1125  ;;  %v1124_v49 = vpop.permute.xlu1 %1123 }
 0x14e   : > { %v1128_v58 = vsel %vm11281_vm3, %v1124_v49, %v1126_v48 }
 0x151   : > { %v1081_v50 = vpop.permute.xlu0 %1080  ;;  %v1079_v51 = vpop.permute.xlu1 %1078 }
 0x152   : > { %v1083_v6 = vsel %vm11276_vm13, %v1079_v51, %v1081_v50 }
 0x155   : > { %v1100_v52 = vpop.permute.xlu1 %1099  ;;  %v1114_v53 = vpop.permute.xlu0 %1113 }
 0x159   : > { %v1116_v55 = vpop.permute.xlu1 %1115  ;;  %v1072_v56 = vpop.permute.xlu0 %1071 }
 0x15a   : > { %v1119_v59 = vsel %vm11280_vm4, %v1114_v53, %v1116_v55 }
 0x15b   : > { %v1153_v60 = vsel %vm11272_vm5, %v1119_v59, %v1128_v58  ;;  %vm11278_vm5 = vcmask 1014784  }
 0x15c   : > { %v1162_v61 = vand.u32 %v1161_v57, %v1153_v60 }
 0x15d   : > { %v1093_v62 = vpop.permute.xlu0 %1092  ;;  %v1070_v63 = vpop.permute.xlu1 %1069 }
 0x15e   : > { %v1074_v1 = vsel %vm11273_vm6, %v1070_v63, %v1072_v56  ;;  %8391 = vmatpush3.bf16.msra.mxu0 %v1162_v61  ;;  %vm1141_vm6 = vcmask 1045504  }
 0x15f   : > { %8392 = vmatprep.subr.bf16.mxu0 %v11283_v17  ;;  %v1131_v2 = vsel %vm9282_vm7, %v9215_v28, %v1074_v1  ;;  %vm1148_vm7 = vmand %vm1146_vm14, %vm1147_vm0  ;;  %vm1230_vm14 = vcmask 1043480   ;;  %vm1273_vm0 = vcmask 1043456  }
 0x160   : > { %v1135_v7 = vsel %vm11279_vm2, %v1131_v2, %v1083_v6 }
 0x161   : > { %v1091_v3 = vpop.permute.xlu1 %1090  ;;  %v1102_v4 = vpop.permute.xlu0 %1101 }
 0x162   : > { %v1095_v5 = vsel %vm11277_vm9, %v1091_v3, %v1093_v62  ;;  %v1104_v8 = vsel %vm11278_vm5, %v1100_v52, %v1102_v4  ;;  %v1286_v62 = vld [vmem:[%s9020_s13] sm:$0xf] }
 0x163   : > { %v1140_v9 = vsel %vm1139_vm1, %v1135_v7, %v1095_v5  ;;  %vm11275_vm1 = vcmask 44056  }
 0x164   : > { %v1144_v14 = vsel %vm1141_vm6, %v1140_v9, %v1104_v8  ;;  %vm11287_vm6 = vcmask 23556  }
 0x165   : > { %v8678_v10 = vpop.permute.xlu1 %8677  ;;  %vm9303_vm11 = vmor %vm11287_vm6, %vm1230_vm14  ;;  %vm1588_vm14 = vcmask 281624   ;;  %vm4024_vm6 = vcmask 101432  }
 0x166   : > { %v8680_v11 = vunpack.i.h.bf16 %v8678_v10  ;;  %v8679_v12 = vunpack.i.l.bf16 %v8678_v10  ;;  %v11351_v30 = vsel %vm9303_vm11, 4294967295, %v11350_v30 }
 0x167   : > { %11352 = vst [vmem:[#allocation26_spill] sm:$0xff] %v11351_v30 }
 0x168   : > { %v1118_v13 = vsel %vm11280_vm4, %v8679_v12, %v8680_v11 }
 0x169   : > { %v1149_v15 = vsel %vm1148_vm7, %v1144_v14, %v1118_v13  ;;  %vm11353_vm7 = vcmask 1039360  }
 0x16a   : > { %8393 = vmatpush3.bf16.msra.mxu0 %v1149_v15 }
 0x16b   : > { %8410 = vmatprep.subr.bf16.mxu0 %v11283_v17 }
 0x16d   : > { %8395 = vmatmul.mubr.msk.bf16.vlgmr.msra.gmra.mxu0 %vm1155_vm10, %v1154_v16  ;;  %vm11274_vm10 = vcmask 457728   ;;  %v8688_v16 = vld [vmem:[%s9025_s17 + $0x38] sm:$0xff]  }
 0x16e   : > { %8418 = vmatprep.mubr.msk.bf16.mxu0 %vm8998_vm15, %v11283_v17  ;;  %v1209_v18 = vpop.permute.xlu0 %1208 }
 0x172   : > { %v1215_v20 = vpop.permute.xlu1 %1214 }
 0x22d   : > { %v1198_v19 = vpop.f32.mrf.mxu0 }
 0x22e   : > { %v1211_v21 = vmul.f32 %v1209_v18, %v1198_v19  ;;  %v1566_v18 = vld [vmem:[%s9170_s27 + $0x10] sm:$0xff] }
 0x22f   : > { %v8396_v22 = vpop.f32.mrf.mxu0  ;;  %v1565_v19 = vld [vmem:[%s9165_s20 + $0x10] sm:$0xff] }
 0x230   : > { %v1217_v23 = vadd.f32 %v1215_v20, %v1211_v21  ;;  %v8689_v20 = vld [vmem:[%s9025_s17 + $0x30] sm:$0xff]   ;;  %v8690_v21 = vld [vmem:[%s9025_s17 + $0x28] sm:$0xff]   ;;  %v8691_v22 = vld [vmem:[%s9025_s17 + $0x20] sm:$0xff]  }
 0x231   : > { %v1201_v24 = vpop.f32.mrf.mxu0 }
 0x232   : > { %v1218_v25 = vmax.f32 %v1217_v23, 0.0  ;;  %v8692_v23 = vld [vmem:[%s9025_s17 + $0x18] sm:$0xff]   ;;  %v8693_v24 = vld [vmem:[%s9025_s17 + $0x10] sm:$0xff]  }
 0x233   : > { %v8397_v26 = vpop.f32.mrf.mxu0 }
 0x234   : > { %v7881_v27 = vpack.c.bf16 %v1218_v25, %v1218_v25  ;;  %v8694_v25 = vld [vmem:[%s9025_s17 + $0x8] sm:$0xff]  }
 0x236   : > { %1225 = vrot.lane.b32.xlu1 %v7881_v27, %s11306_s15 }
 0x2a8   : > { %v1226_v28 = vpop.permute.xlu1 %1225 }
 0x2a9   : > { %v1227_v31 = vrot.slane %v1226_v28, 4 }
 0x2ab   : > { %v1228_v32 = vsel %vm1029_vm8, %v1227_v31, %v1226_v28 }
 0x2ac   : > { %1233 = vst.msk [vmem:[#allocation2] sm:$0xff] %vm9303_vm11, %v1228_v32 }
 0x2ad   : > { %1235 = vst.msk [vmem:[#allocation2 + $0x4] sm:$0xf] %vm11275_vm1, %v11285_v29 }
 0x2b3   : > { %v1236_v34 = vld [vmem:[#allocation2] sm:$0xf] }
 0x2b4   : > { %v1237_v33 = vld [vmem:[#allocation2] sm:$0xff] }
 0x2b5   : > { %v7541_v35 = vcombine.high %v1237_v33, %v1237_v33  ;;  %v7540_v36 = vcombine.low %v1237_v33, %v1237_v33  ;;  %1361 = vst.msk [vmem:[#allocation2] sm:$0xf] %vm1220_vm12, %v11285_v29 }
 0x2b7   : > { %1270 = vrot.lane.b32.xlu1 %v7541_v35, %s11316_s16  ;;  %1268 = vrot.lane.b32.xlu0 %v7540_v36, %s11316_s16 }
 0x2bb   : > { %1260 = vrot.lane.b32.xlu1 %v7541_v35, %s11310_s22  ;;  %1258 = vrot.lane.b32.xlu0 %v7540_v36, %s11310_s22 }
 0x2bf   : > { %1265 = vrot.lane.b32.xlu1 %v7541_v35, %s11314_s23  ;;  %1263 = vrot.lane.b32.xlu0 %v7540_v36, %s11314_s23 }
 0x2c3   : > { %1250 = vrot.lane.b32.xlu1 %v7541_v35, %s11318_s18  ;;  %1248 = vrot.lane.b32.xlu0 %v7540_v36, %s11318_s18 }
 0x2c7   : > { %1255 = vrot.lane.b32.xlu1 %v7541_v35, %s11312_s28  ;;  %1253 = vrot.lane.b32.xlu0 %v7540_v36, %s11312_s28 }
 0x2cb   : > { %1245 = vrot.lane.b32.xlu1 %v7541_v35, %s11321_s26  ;;  %1243 = vrot.lane.b32.xlu0 %v7540_v36, %s11321_s26 }
 0x2cf   : > { %1344 = vperm.xlu1 %8682, %v1335_v37   ;;  %1338 = vperm.xlu0 %8681, %v1334_v38  }
 0x329   : > { %v1271_v39 = vpop.permute.xlu1 %1270  ;;  %v1269_v40 = vpop.permute.xlu0 %1268 }
 0x32a   : > { %v1272_v41 = vsel %vm11281_vm3, %v1269_v40, %v1271_v39 }
 0x32b   : > { %v1292_v43 = vsel %vm1273_vm0, %v1272_v41, 0 }
 0x32c   : > { %8399 = vmatpush3.bf16.msra.mxu1 %v1292_v43 }
 0x32d   : > { %v1261_v44 = vpop.permute.xlu1 %1260  ;;  %v1259_v45 = vpop.permute.xlu0 %1258  ;;  %8400 = vmatprep.subr.bf16.mxu1 %v11283_v17 }
 0x32e   : > { %v1262_v48 = vsel %vm11278_vm5, %v1259_v45, %v1261_v44 }
 0x331   : > { %v1266_v46 = vpop.permute.xlu1 %1265  ;;  %v1264_v47 = vpop.permute.xlu0 %1263 }
 0x332   : > { %v1267_v49 = vsel %vm11280_vm4, %v1264_v47, %v1266_v46 }
 0x333   : > { %v1284_v50 = vsel %vm1273_vm0, %v1262_v48, %v1267_v49 }
 0x334   : > { %8401 = vmatpush3.bf16.msra.mxu1 %v1284_v50 }
 0x335   : > { %v1251_v51 = vpop.permute.xlu1 %1250  ;;  %v1249_v52 = vpop.permute.xlu0 %1248  ;;  %8402 = vmatprep.subr.bf16.mxu1 %v11283_v17 }
 0x336   : > { %v1252_v55 = vsel %vm11276_vm13, %v1249_v52, %v1251_v51  ;;  %v1413_v51 = vld [vmem:[%s9030_s21] sm:$0xf] }
 0x337   : > { %v8695_v52 = vld [vmem:[%s9025_s17] sm:$0xff]  }
 0x339   : > { %v1256_v53 = vpop.permute.xlu1 %1255  ;;  %v1254_v54 = vpop.permute.xlu0 %1253 }
 0x33a   : > { %v1257_v56 = vsel %vm11277_vm9, %v1254_v54, %v1256_v53  ;;  %v8685_v53 = vld [vmem:[%s9040_s29 + $0x8] sm:$0xff]  }
 0x33b   : > { %v1280_v57 = vsel %vm1273_vm0, %v1252_v55, %v1257_v56  ;;  %v1840_v54 = vand.u32 %v8685_v53, %v9259_v42 }
 0x33c   : > { %8403 = vmatpush3.bf16.msra.mxu1 %v1280_v57 }
 0x33d   : > { %v1246_v58 = vpop.permute.xlu1 %1245  ;;  %v1244_v59 = vpop.permute.xlu0 %1243  ;;  %8404 = vmatprep.subr.bf16.mxu1 %v11283_v17 }
 0x33e   : > { %v1247_v60 = vsel %vm11353_vm7, %v1244_v59, %v1246_v58 }
 0x33f   : > { %v1276_v61 = vsel %vm1273_vm0, %v1236_v34, %v1247_v60 }
 0x340   : > { %8405 = vmatpush3.bf16.msra.mxu1 %v1276_v61 }
 0x341   : > { %8422 = vmatprep.subr.bf16.mxu1 %v11283_v17 }
 0x343   : > { %8407 = vmatmul.mubr.msk.bf16.vlgmr.msra.gmra.mxu1 %vm11274_vm10, %v1286_v62 }
 0x344   : > { %8438 = vmatprep.mubr.msk.bf16.mxu1 %vm8998_vm15, %v11283_v17  ;;  %8423 = vmatpush3.bf16.msra.mxu1 %v8688_v16 }
 0x345   : > { %8424 = vmatprep.subr.bf16.mxu1 %v11283_v17 }
 0x348   : > { %8425 = vmatpush3.bf16.msra.mxu1 %v8689_v20 }
 0x349   : > { %8426 = vmatprep.subr.bf16.mxu1 %v11283_v17 }
 0x34a   : > { %v1339_v63 = vpop.permute.xlu0 %1338  ;;  %v1345_v2 = vpop.permute.xlu1 %1344 }
 0x34c   : > { %8427 = vmatpush3.bf16.msra.mxu1 %v8690_v21 }
 0x34d   : > { %8428 = vmatprep.subr.bf16.mxu1 %v11283_v17 }
 0x350   : > { %8429 = vmatpush3.bf16.msra.mxu1 %v8691_v22 }
 0x351   : > { %8430 = vmatprep.subr.bf16.mxu1 %v11283_v17 }
 0x354   : > { %8431 = vmatpush3.bf16.msra.mxu1 %v8692_v23  ;;  %v8697_v23 = vld [vmem:[%s9035_s25] sm:$0xff]  }
 0x355   : > { %8432 = vmatprep.subr.bf16.mxu1 %v11283_v17 }
 0x358   : > { %8433 = vmatpush3.bf16.msra.mxu1 %v8693_v24 }
 0x359   : > { %8434 = vmatprep.subr.bf16.mxu1 %v11283_v17 }
 0x35c   : > { %8435 = vmatpush3.bf16.msra.mxu1 %v8694_v25 }
 0x35d   : > { %8436 = vmatprep.subr.bf16.mxu1 %v11283_v17 }
 0x360   : > { %8437 = vmatpush3.bf16.msra.mxu1 %v8695_v52 }
 0x361   : > { %8472 = vmatprep.subr.bf16.mxu1 %v11283_v17 }
 0x403   : > { %v1328_v0 = vpop.f32.mrf.mxu1 }
 0x404   : > { %v1341_v1 = vmul.f32 %v1339_v63, %v1328_v0 }
 0x405   : > { %v8408_v3 = vpop.f32.mrf.mxu1 }
 0x406   : > { %v1347_v4 = vadd.f32 %v1345_v2, %v1341_v1 }
 0x407   : > { %v1331_v5 = vpop.f32.mrf.mxu1 }
 0x408   : > { %v1348_v6 = vmax.f32 %v1347_v4, 0.0 }
 0x409   : > { %v8409_v7 = vpop.f32.mrf.mxu1 }
 0x40a   : > { %v7882_v8 = vpack.c.bf16 %v1348_v6, %v1348_v6 }
 0x40c   : > { %1354 = vrot.lane.b32.xlu0 %v7882_v8, %s11306_s15  ;;  %v1675_v8 = vld [vmem:[%s9165_s20 + $0x20] sm:$0xff] }
 0x47e   : > { %v1355_v9 = vpop.permute.xlu0 %1354 }
 0x47f   : > { %v1356_v10 = vrot.slane %v1355_v9, 4 }
 0x481   : > { %v1357_v11 = vsel %vm1029_vm8, %v1356_v10, %v1355_v9  ;;  %vm11354_vm8 = vmmov %vm11353_vm7  ;;  %vm1590_vm7 = vcmask 306456   ;;  %v1674_v9 = vld [vmem:[%s9165_s20 + $0x18] sm:$0xff]  ;;  %v1677_v10 = vld [vmem:[%s9170_s27 + $0x20] sm:$0xff] }
 0x482   : > { %1359 = vst.msk [vmem:[#allocation3] sm:$0xff] %vm9303_vm11, %v1357_v11  ;;  %1362 = vst.msk [vmem:[#allocation2] sm:$0xff] %vm9303_vm11, %v1357_v11  ;;  %v1676_v11 = vld [vmem:[%s9170_s27 + $0x18] sm:$0xff] }
 0x483   : > { %1360 = vst.msk [vmem:[#allocation3 + $0x4] sm:$0xf] %vm11275_vm1, %v11285_v29  ;;  %1363 = vst.msk [vmem:[#allocation2 + $0x4] sm:$0xf] %vm11275_vm1, %v11285_v29  ;;  %vm1734_vm1 = vcmask 298256  }
 0x489   : > { %v9356_v12 = vld [vmem:[#allocation2] sm:$0xf] }
 0x48a   : > { %v1365_v13 = vld [vmem:[#allocation2] sm:$0xff] }
 0x48b   : > { %1581 = vst.msk [vmem:[#allocation2] sm:$0xf] %vm1220_vm12, %v11285_v29  ;;  %v7545_v14 = vcombine.high %v1365_v13, %v1365_v13  ;;  %v7544_v15 = vcombine.low %v1365_v13, %v1365_v13 }
 0x48d   : > { %1398 = vrot.lane.b32.xlu0 %v7545_v14, %s11316_s16  ;;  %1396 = vrot.lane.b32.xlu1 %v7544_v15, %s11316_s16 }
 0x491   : > { %1388 = vrot.lane.b32.xlu0 %v7545_v14, %s11310_s22  ;;  %1386 = vrot.lane.b32.xlu1 %v7544_v15, %s11310_s22 }
 0x495   : > { %1393 = vrot.lane.b32.xlu0 %v7545_v14, %s11314_s23  ;;  %1391 = vrot.lane.b32.xlu1 %v7544_v15, %s11314_s23 }
 0x499   : > { %1378 = vrot.lane.b32.xlu0 %v7545_v14, %s11318_s18  ;;  %1376 = vrot.lane.b32.xlu1 %v7544_v15, %s11318_s18 }
 0x49d   : > { %1383 = vrot.lane.b32.xlu0 %v7545_v14, %s11312_s28  ;;  %1381 = vrot.lane.b32.xlu1 %v7544_v15, %s11312_s28 }
 0x4a1   : > { %1373 = vrot.lane.b32.xlu0 %v7545_v14, %s11321_s26  ;;  %1371 = vrot.lane.b32.xlu1 %v7544_v15, %s11321_s26 }
 0x4a5   : > { %1575 = vperm.xlu0 %8681, %v1566_v18   ;;  %1569 = vperm.xlu1 %8682, %v1565_v19  }
 0x4ff   : > { %v1399_v26 = vpop.permute.xlu0 %1398  ;;  %v1397_v27 = vpop.permute.xlu1 %1396 }
 0x500   : > { %v1400_v28 = vsel %vm11281_vm3, %v1397_v27, %v1399_v26  ;;  %vm2847_vm3 = vcmask 52256  }
 0x501   : > { %v1418_v31 = vsel %vm1273_vm0, %v1400_v28, 0 }
 0x502   : > { %8411 = vmatpush3.bf16.msra.mxu0 %v1418_v31 }
 0x503   : > { %v1389_v32 = vpop.permute.xlu0 %1388  ;;  %v1387_v33 = vpop.permute.xlu1 %1386  ;;  %8412 = vmatprep.subr.bf16.mxu0 %v11283_v17 }
 0x504   : > { %v1390_v36 = vsel %vm11278_vm5, %v1387_v33, %v1389_v32  ;;  %vm2146_vm5 = vcmask 93256  }
 0x507   : > { %v1394_v34 = vpop.permute.xlu0 %1393  ;;  %v1392_v35 = vpop.permute.xlu1 %1391 }
 0x508   : > { %v1395_v37 = vsel %vm11280_vm4, %v1392_v35, %v1394_v34  ;;  %vm2436_vm4 = vcmask 60456  }
 0x509   : > { %v1411_v38 = vsel %vm1273_vm0, %v1390_v36, %v1395_v37 }
 0x50a   : > { %8413 = vmatpush3.bf16.msra.mxu0 %v1411_v38 }
 0x50b   : > { %v1379_v39 = vpop.permute.xlu0 %1378  ;;  %v1377_v40 = vpop.permute.xlu1 %1376  ;;  %8414 = vmatprep.subr.bf16.mxu0 %v11283_v17 }
 0x50c   : > { %v1380_v44 = vsel %vm11276_vm13, %v1377_v40, %v1379_v39  ;;  %vm1930_vm13 = vcmask 109656  }
 0x50f   : > { %v1384_v41 = vpop.permute.xlu0 %1383  ;;  %v1382_v43 = vpop.permute.xlu1 %1381 }
 0x510   : > { %v1385_v45 = vsel %vm11277_vm9, %v1382_v43, %v1384_v41  ;;  %vm2124_vm9 = vcmask 3072  }
 0x511   : > { %v1407_v46 = vsel %vm1273_vm0, %v1380_v44, %v1385_v45  ;;  %2127 = vst.msk [vmem:[#allocation2 + $0x10] sm:$0xf] %vm2124_vm9, %v11285_v29  ;;  %2128 = vst.msk [vmem:[#allocation2 + $0x18] sm:$0xf] %vm2124_vm9, %v11285_v29 }
 0x512   : > { %8415 = vmatpush3.bf16.msra.mxu0 %v1407_v46 }
 0x513   : > { %v1374_v47 = vpop.permute.xlu0 %1373  ;;  %v1372_v48 = vpop.permute.xlu1 %1371  ;;  %8416 = vmatprep.subr.bf16.mxu0 %v11283_v17 }
 0x514   : > { %v1375_v49 = vsel %vm11354_vm8, %v1372_v48, %v1374_v47  ;;  %vm1722_vm8 = vcmask 11264   ;;  %v1884_v48 = vld [vmem:[%s9165_s20 + $0x30] sm:$0xff] }
 0x515   : > { %v1403_v50 = vsel %vm1273_vm0, %v9356_v12, %v1375_v49  ;;  %1724 = vst.msk [vmem:[#allocation2 + $0x8] sm:$0xf] %vm1722_vm8, %v11285_v29  ;;  %2810 = vst.msk [vmem:[#allocation2 + $0x20] sm:$0xf] %vm1722_vm8, %v11285_v29  ;;  %v1883_v49 = vld [vmem:[%s9165_s20 + $0x28] sm:$0xff] }
 0x516   : > { %8417 = vmatpush3.bf16.msra.mxu0 %v1403_v50  ;;  %2811 = vst.msk [vmem:[#allocation2 + $0x28] sm:$0xf] %vm1722_vm8, %v11285_v29  ;;  %2812 = vst.msk [vmem:[#allocation2 + $0x30] sm:$0xf] %vm1722_vm8, %v11285_v29  ;;  %v1886_v50 = vld [vmem:[%s9170_s27 + $0x30] sm:$0xff] }
 0x517   : > { %8442 = vmatprep.subr.bf16.mxu0 %v11283_v17  ;;  %2813 = vst.msk [vmem:[#allocation2 + $0x38] sm:$0xf] %vm1722_vm8, %v11285_v29 }
 0x519   : > { %8419 = vmatmul.mubr.msk.bf16.vlgmr.msra.gmra.mxu0 %vm11274_vm10, %v1413_v51  ;;  %v1885_v51 = vld [vmem:[%s9170_s27 + $0x28] sm:$0xff] }
 0x51a   : > { %8450 = vmatprep.mubr.msk.bf16.mxu0 %vm8998_vm15, %v11283_v17 }
 0x520   : > { %v1570_v60 = vpop.permute.xlu1 %1569  ;;  %v1576_v63 = vpop.permute.xlu0 %1575 }
 0x5d9   : > { %v1454_v55 = vpop.f32.mrf.mxu0 }
 0x5da   : > { %v1460_v56 = vpack.c.bf16 %v1454_v55, %v1454_v55 }
 0x5db   : > { %v8420_v57 = vpop.f32.mrf.mxu0 }
 0x5dc   : > { %8439 = vmatmul.mubr.bf16.vlgmr.msra.gmra.mxu1 %v1460_v56 }
 0x5dd   : > { %v1457_v58 = vpop.f32.mrf.mxu0  ;;  %8473 = vmatpush3.bf16.msra.mxu1 %v1840_v54  ;;  %8476 = vmatprep.mubr.msk.bf16.mxu1 %vm8998_vm15, %v11283_v17 }
 0x5de   : > { %8474 = vmatprep.subr.bf16.mxu1 %v11283_v17  ;;  %v8698_v58 = vld [vmem:[%s11357_s3] sm:$0xff]   ;;  %s11413_s3 = smov 127  }
 0x5df   : > { %v8421_v59 = vpop.f32.mrf.mxu0 }
 0x5e0   : > { %v8699_v59 = vld [vmem:[%s9040_s29] sm:$0xff]  }
 0x5e1   : > { %8475 = vmatpush3.bf16.msra.mxu1 %v8699_v59 }
 0x69c   : > { %v1559_v61 = vpop.f32.mrf.mxu1 }
 0x69d   : > { %v1572_v62 = vmul.f32 %v1570_v60, %v1559_v61 }
 0x69e   : > { %v8440_v0 = vpop.f32.mrf.mxu1 }
 0x69f   : > { %v1578_v1 = vadd.f32 %v1576_v63, %v1572_v62 }
 0x6a0   : > { %v1562_v2 = vpop.f32.mrf.mxu1 }
 0x6a1   : > { %v1579_v42 = vmax.f32 %v1578_v1, 0.0 }
 0x6a2   : > { %v8441_v3 = vpop.f32.mrf.mxu1 }
 0x6a3   : > { %v7883_v4 = vpack.c.bf16 %v1579_v42, %v1579_v42 }
 0x6a5   : > { %1585 = vrot.lane.b32.xlu1 %v7883_v4, %s11306_s15 }
 0x717   : > { %v1586_v5 = vpop.permute.xlu1 %1585 }
 0x718   : > { %1589 = vst.msk [vmem:[#allocation2] sm:$0xf] %vm1588_vm14, %v1586_v5 }
 0x719   : > { %1591 = vst.msk [vmem:[#allocation2] sm:$0xf] %vm1590_vm7, %v11285_v29 }
 0x720   : > { %v1592_v6 = vld [vmem:[#allocation2] sm:$0xf] }
 0x721   : > { %v7556_v7 = vcombine.low %v1592_v6, %v1592_v6  ;;  %1723 = vst.msk [vmem:[#allocation2] sm:$0xf] %vm1722_vm8, %v11285_v29 }
 0x723   : > { %1602 = vrot.lane.b32.xlu1 %v7556_v7, %s11310_s22  ;;  %1606 = vrot.lane.b32.xlu0 %v7556_v7, %s11316_s16 }
 0x727   : > { %1598 = vrot.lane.b32.xlu1 %v7556_v7, %s11318_s18  ;;  %1604 = vrot.lane.b32.xlu0 %v7556_v7, %s11314_s23 }
 0x72b   : > { %1596 = vrot.lane.b32.xlu1 %v7556_v7, %s11321_s26  ;;  %1600 = vrot.lane.b32.xlu0 %v7556_v7, %s11312_s28 }
 0x72f   : > { %1685 = vperm.xlu1 %8682, %v1675_v8   ;;  %1680 = vperm.xlu0 %8681, %v1674_v9  }
 0x733   : > { %1697 = vperm.xlu1 %8682, %v1677_v10   ;;  %1692 = vperm.xlu0 %8681, %v1676_v11  }
 0x795   : > { %v1607_v12 = vpop.permute.xlu0 %1606  ;;  %v1603_v13 = vpop.permute.xlu1 %1602 }
 0x796   : > { %v1631_v14 = vsel %vm1273_vm0, %v1607_v12, 0 }
 0x797   : > { %8443 = vmatpush3.bf16.msra.mxu0 %v1631_v14 }
 0x798   : > { %8444 = vmatprep.subr.bf16.mxu0 %v11283_v17 }
 0x799   : > { %v1605_v15 = vpop.permute.xlu0 %1604  ;;  %v1599_v16 = vpop.permute.xlu1 %1598 }
 0x79a   : > { %v1618_v18 = vsel %vm1273_vm0, %v1603_v13, %v1605_v15 }
 0x79b   : > { %8445 = vmatpush3.bf16.msra.mxu0 %v1618_v18 }
 0x79c   : > { %8446 = vmatprep.subr.bf16.mxu0 %v11283_v17 }
 0x79d   : > { %v1601_v19 = vpop.permute.xlu0 %1600  ;;  %v1597_v20 = vpop.permute.xlu1 %1596 }
 0x79e   : > { %v1614_v21 = vsel %vm1273_vm0, %v1599_v16, %v1601_v19  ;;  %v1610_v22 = vsel %vm1273_vm0, %v1592_v6, %v1597_v20 }
 0x79f   : > { %8447 = vmatpush3.bf16.msra.mxu0 %v1614_v21 }
 0x7a0   : > { %8448 = vmatprep.subr.bf16.mxu0 %v11283_v17 }
 0x7a3   : > { %8449 = vmatpush3.bf16.msra.mxu0 %v1610_v22  ;;  %v2031_v22 = vld [vmem:[%s9165_s20 + $0x50] sm:$0xff] }
 0x7a4   : > { %8454 = vmatprep.subr.bf16.mxu0 %v11283_v17 }
 0x7a6   : > { %8451 = vmatmul.mubr.msk.bf16.vlgmr.msra.gmra.mxu0 %vm11274_vm10, %v8697_v23  ;;  %vm1731_vm10 = vcmask 273424   ;;  %v2030_v23 = vld [vmem:[%s9165_s20 + $0x48] sm:$0xff] }
 0x7a7   : > { %8468 = vmatprep.mubr.msk.bf16.mxu0 %vm8998_vm15, %v11283_v17 }
 0x7aa   : > { %v1681_v24 = vpop.permute.xlu0 %1680  ;;  %v1686_v25 = vpop.permute.xlu1 %1685 }
 0x7ae   : > { %v1693_v28 = vpop.permute.xlu0 %1692  ;;  %v1698_v36 = vpop.permute.xlu1 %1697 }
 0x866   : > { %v1667_v26 = vpop.f32.mrf.mxu0 }
 0x867   : > { %v1688_v27 = vmul.f32 %v1681_v24, %v1667_v26  ;;  %v8700_v24 = vld [vmem:[%s9050_s8] sm:$0xff]   ;;  %v2034_v26 = vld [vmem:[%s9170_s27 + $0x48] sm:$0xff] }
 0x868   : > { %v8452_v31 = vpop.f32.mrf.mxu0 }
 0x869   : > { %v1700_v32 = vadd.f32 %v1693_v28, %v1688_v27  ;;  %v2029_v27 = vld [vmem:[%s9165_s20 + $0x40] sm:$0xff]  ;;  %v2028_v28 = vld [vmem:[%s9165_s20 + $0x38] sm:$0xff] }
 0x86a   : > { %v1670_v33 = vpop.f32.mrf.mxu0  ;;  %v2033_v31 = vld [vmem:[%s9170_s27 + $0x40] sm:$0xff] }
 0x86b   : > { %v1702_v34 = vmax.f32 %v1700_v32, 0.0  ;;  %v1689_v35 = vmul.f32 %v1686_v25, %v1670_v33  ;;  %v2035_v25 = vld [vmem:[%s9170_s27 + $0x50] sm:$0xff]  ;;  %v2032_v32 = vld [vmem:[%s9170_s27 + $0x38] sm:$0xff] }
 0x86c   : > { %v8453_v37 = vpop.f32.mrf.mxu0 }
 0x86d   : > { %v9452_v38 = vpack.c.bf16 %v1702_v34, %v1702_v34  ;;  %v1701_v39 = vadd.f32 %v1698_v36, %v1689_v35 }
 0x86f   : > { %11355 = vst [vmem:[#allocation27_spill] sm:$0xff] %v9452_v38  ;;  %v1703_v40 = vmax.f32 %v1701_v39, 0.0  ;;  %1725 = vrot.lane.b32.xlu0 %v9452_v38, %s11304_s1 }
 0x871   : > { %v9456_v41 = vpack.c.bf16 %v1703_v40, %v1703_v40  ;;  %v8701_v40 = vld [vmem:[%s9050_s8 + $0x8] sm:$0xff]  }
 0x873   : > { %11356 = vst [vmem:[#allocation28_spill] sm:$0xff] %v9456_v41  ;;  %1727 = vrot.lane.b32.xlu1 %v9456_v41, %s11304_s1 }
 0x8e1   : > { %v1726_v43 = vpop.permute.xlu0 %1725 }
 0x8e2   : > { %1732 = vst.msk [vmem:[#allocation2] sm:$0xf] %vm1731_vm10, %v1726_v43 }
 0x8e3   : > { %1735 = vst.msk [vmem:[#allocation2] sm:$0xf] %vm1734_vm1, %v11285_v29 }
 0x8e5   : > { %v1728_v44 = vpop.permute.xlu1 %1727 }
 0x8e6   : > { %1733 = vst.msk [vmem:[#allocation2 + $0x8] sm:$0xf] %vm1731_vm10, %v1728_v44  ;;  %vm1831_vm10 = vcmask 252928  }
 0x8e7   : > { %1736 = vst.msk [vmem:[#allocation2 + $0x8] sm:$0xf] %vm1734_vm1, %v11285_v29  ;;  %vm1770_vm1 = vcmask 916480  }
 0x8ea   : > { %v1737_v45 = vld [vmem:[#allocation2] sm:$0xf] }
 0x8eb   : > { %1914 = vst.msk [vmem:[#allocation2] sm:$0xf] %vm1220_vm12, %v11285_v29 }
 0x8ee   : > { %v1738_v46 = vld [vmem:[#allocation2 + $0x8] sm:$0xf] }
 0x8ef   : > { %1915 = vst.msk [vmem:[#allocation2 + $0x8] sm:$0xf] %vm1220_vm12, %v11285_v29  ;;  %v7561_v47 = vcombine.low %v1737_v45, %v1738_v46 }
 0x8f1   : > { %1757 = vrot.lane.b32.xlu1 %v7561_v47, %s11314_s23  ;;  %1760 = vrot.lane.b32.xlu0 %v7561_v47, %s11316_s16 }
 0x8f5   : > { %1751 = vrot.lane.b32.xlu1 %v7561_v47, %s11312_s28  ;;  %1754 = vrot.lane.b32.xlu0 %v7561_v47, %s11310_s22 }
 0x8f9   : > { %1745 = vrot.lane.b32.xlu1 %v7561_v47, %s11321_s26  ;;  %1748 = vrot.lane.b32.xlu0 %v7561_v47, %s11318_s18 }
 0x8fd   : > { %1894 = vperm.xlu1 %8682, %v1884_v48   ;;  %1889 = vperm.xlu0 %8681, %v1883_v49  }
 0x901   : > { %1906 = vperm.xlu1 %8682, %v1886_v50   ;;  %1901 = vperm.xlu0 %8681, %v1885_v51  }
 0x963   : > { %v1761_v52 = vpop.permute.xlu0 %1760  ;;  %v1758_v53 = vpop.permute.xlu1 %1757 }
 0x964   : > { %8455 = vmatpush3.bf16.msra.mxu0 %v1761_v52 }
 0x965   : > { %8456 = vmatprep.subr.bf16.mxu0 %v11283_v17 }
 0x967   : > { %v1755_v54 = vpop.permute.xlu0 %1754  ;;  %v1752_v55 = vpop.permute.xlu1 %1751 }
 0x968   : > { %8457 = vmatpush3.bf16.msra.mxu0 %v1758_v53 }
 0x969   : > { %8458 = vmatprep.subr.bf16.mxu0 %v11283_v17 }
 0x96b   : > { %v1749_v56 = vpop.permute.xlu0 %1748  ;;  %v1746_v57 = vpop.permute.xlu1 %1745 }
 0x96c   : > { %8459 = vmatpush3.bf16.msra.mxu0 %v1755_v54 }
 0x96d   : > { %8460 = vmatprep.subr.bf16.mxu0 %v11283_v17 }
 0x970   : > { %8461 = vmatpush3.bf16.msra.mxu0 %v1752_v55 }
 0x971   : > { %8462 = vmatprep.subr.bf16.mxu0 %v11283_v17 }
 0x974   : > { %8463 = vmatpush3.bf16.msra.mxu0 %v1749_v56 }
 0x975   : > { %8464 = vmatprep.subr.bf16.mxu0 %v11283_v17 }
 0x978   : > { %8465 = vmatpush3.bf16.msra.mxu0 %v1746_v57  ;;  %v1890_v1 = vpop.permute.xlu0 %1889  ;;  %v1895_v2 = vpop.permute.xlu1 %1894 }
 0x979   : > { %8466 = vmatprep.subr.bf16.mxu0 %v11283_v17  ;;  %v3824_v17 = vld [vmem:[%s9165_s20 + $0x148] sm:$0xff] }
 0x97c   : > { %8467 = vmatpush3.bf16.msra.mxu0 %v7561_v47  ;;  %v1902_v4 = vpop.permute.xlu0 %1901  ;;  %v1907_v10 = vpop.permute.xlu1 %1906 }
 0x97d   : > { %2232 = vmatprep.subr.bf16.mxu0 %v11285_v29 }
 0x97f   : > { %8469 = vmatmul.mubr.msk.bf16.vlgmr.msra.gmra.mxu0 %vm1770_vm1, %v8698_v58 }
 0xa3f   : > { %v1808_v60 = vpop.f32.mrf.mxu0 }
 0xa41   : > { %v8470_v61 = vpop.f32.mrf.mxu0 }
 0xa43   : > { %v1811_v62 = vpop.f32.mrf.mxu0 }
 0xa44   : > { %v1815_v63 = vpack.c.bf16 %v1811_v62, %v1808_v60 }
 0xa45   : > { %v8471_v0 = vpop.f32.mrf.mxu0 }
 0xa46   : > { %8477 = vmatmul.mubr.msk.bf16.vlgmr.msra.gmra.mxu1 %vm1831_vm10, %v1815_v63  ;;  %vm1927_vm10 = vcmask 85016  }
 0xa47   : > { %8494 = vmatprep.mubr.msk.bf16.mxu1 %vm1770_vm1, %v8700_v24  ;;  %v2348_v24 = vld [vmem:[%s9170_s27 + $0x60] sm:$0xff] }
 0xb06   : > { %v1876_v42 = vpop.f32.mrf.mxu1 }
 0xb07   : > { %v1897_v3 = vmul.f32 %v1890_v1, %v1876_v42 }
 0xb08   : > { %v8478_v5 = vpop.f32.mrf.mxu1 }
 0xb09   : > { %v1909_v6 = vadd.f32 %v1902_v4, %v1897_v3 }
 0xb0a   : > { %v1879_v7 = vpop.f32.mrf.mxu1 }
 0xb0b   : > { %v1911_v8 = vmax.f32 %v1909_v6, 0.0  ;;  %v1898_v9 = vmul.f32 %v1895_v2, %v1879_v7 }
 0xb0c   : > { %v8479_v11 = vpop.f32.mrf.mxu1 }
 0xb0d   : > { %v7886_v12 = vpack.c.bf16 %v1911_v8, %v1911_v8  ;;  %v1910_v13 = vadd.f32 %v1907_v10, %v1898_v9 }
 0xb0f   : > { %v1912_v14 = vmax.f32 %v1910_v13, 0.0  ;;  %1921 = vrot.lane.b32.xlu0 %v7886_v12, %s11306_s15 }
 0xb11   : > { %v7887_v15 = vpack.c.bf16 %v1912_v14, %v1912_v14 }
 0xb13   : > { %1923 = vrot.lane.b32.xlu1 %v7887_v15, %s11306_s15 }
 0xb81   : > { %v1922_v16 = vpop.permute.xlu0 %1921 }
 0xb82   : > { %1928 = vst.msk [vmem:[#allocation2] sm:$0xf] %vm1927_vm10, %v1922_v16  ;;  %v2345_v16 = vld [vmem:[%s9165_s20 + $0x68] sm:$0xff] }
 0xb83   : > { %1931 = vst.msk [vmem:[#allocation2] sm:$0xf] %vm1930_vm13, %v11285_v29 }
 0xb85   : > { %v1924_v18 = vpop.permute.xlu1 %1923 }
 0xb86   : > { %1929 = vst.msk [vmem:[#allocation2 + $0x8] sm:$0xf] %vm1927_vm10, %v1924_v18  ;;  %v2349_v18 = vld [vmem:[%s9170_s27 + $0x68] sm:$0xff] }
 0xb87   : > { %1932 = vst.msk [vmem:[#allocation2 + $0x8] sm:$0xf] %vm1930_vm13, %v11285_v29 }
 0xb8a   : > { %v1933_v19 = vld [vmem:[#allocation2] sm:$0xf] }
 0xb8b   : > { %2125 = vst.msk [vmem:[#allocation2] sm:$0xf] %vm2124_vm9, %v11285_v29 }
 0xb8e   : > { %v1934_v20 = vld [vmem:[#allocation2 + $0x8] sm:$0xf] }
 0xb8f   : > { %v7569_v21 = vcombine.low %v1933_v19, %v1934_v20  ;;  %2126 = vst.msk [vmem:[#allocation2 + $0x8] sm:$0xf] %vm2124_vm9, %v11285_v29  ;;  %vm2141_vm9 = vcmask 68616   ;;  %v2346_v19 = vld [vmem:[%s9165_s20 + $0x70] sm:$0xff]  ;;  %v2343_v20 = vld [vmem:[%s9165_s20 + $0x58] sm:$0xff] }
 0xb91   : > { %1953 = vrot.lane.b32.xlu1 %v7569_v21, %s11314_s23  ;;  %1956 = vrot.lane.b32.xlu0 %v7569_v21, %s11316_s16 }
 0xb95   : > { %1947 = vrot.lane.b32.xlu1 %v7569_v21, %s11312_s28  ;;  %1950 = vrot.lane.b32.xlu0 %v7569_v21, %s11310_s22 }
 0xb99   : > { %1941 = vrot.lane.b32.xlu1 %v7569_v21, %s11321_s26  ;;  %1944 = vrot.lane.b32.xlu0 %v7569_v21, %s11318_s18 }
 0xb9d   : > { %2053 = vperm.xlu1 %8682, %v2031_v22   ;;  %2048 = vperm.xlu0 %8681, %v2030_v23   ;;  %v2347_v22 = vld [vmem:[%s9170_s27 + $0x58] sm:$0xff]  ;;  %v2344_v23 = vld [vmem:[%s9165_s20 + $0x60] sm:$0xff] }
 0xba1   : > { %2077 = vperm.xlu1 %8682, %v2035_v25   ;;  %2072 = vperm.xlu0 %8681, %v2034_v26   ;;  %v8702_v25 = vld [vmem:[%s9060_s19 + $0x4] ss:$8 sps:$4 sm:$0xff]  }
 0xba5   : > { %2043 = vperm.xlu1 %8682, %v2029_v27   ;;  %2038 = vperm.xlu0 %8681, %v2028_v28  }
 0xba9   : > { %2067 = vperm.xlu1 %8682, %v2033_v31   ;;  %2062 = vperm.xlu0 %8681, %v2032_v32  }
 0xc03   : > { %v1957_v33 = vpop.permute.xlu0 %1956  ;;  %v1954_v34 = vpop.permute.xlu1 %1953 }
 0xc04   : > { %8480 = vmatprep.subr.bf16.mxu1 %v1957_v33 }
 0xc05   : > { %8481 = vmatpush3.bf16.msra.mxu1 %v1957_v33 }
 0xc06   : > { %8482 = vmatprep.subr.bf16.mxu1 %v1954_v34 }
 0xc07   : > { %v1951_v35 = vpop.permute.xlu0 %1950  ;;  %v1948_v36 = vpop.permute.xlu1 %1947 }
 0xc09   : > { %8483 = vmatpush3.bf16.msra.mxu1 %v1954_v34 }
 0xc0a   : > { %8484 = vmatprep.subr.bf16.mxu1 %v1951_v35 }
 0xc0b   : > { %v1945_v37 = vpop.permute.xlu0 %1944  ;;  %v1942_v39 = vpop.permute.xlu1 %1941 }
 0xc0d   : > { %8485 = vmatpush3.bf16.msra.mxu1 %v1951_v35 }
 0xc0e   : > { %8486 = vmatprep.subr.bf16.mxu1 %v1948_v36 }
 0xc11   : > { %8487 = vmatpush3.bf16.msra.mxu1 %v1948_v36 }
 0xc12   : > { %8488 = vmatprep.subr.bf16.mxu1 %v1945_v37 }
 0xc15   : > { %8489 = vmatpush3.bf16.msra.mxu1 %v1945_v37 }
 0xc16   : > { %8490 = vmatprep.subr.bf16.mxu1 %v1942_v39 }
 0xc18   : > { %v2049_v43 = vpop.permute.xlu0 %2048  ;;  %v2054_v44 = vpop.permute.xlu1 %2053 }
 0xc19   : > { %8491 = vmatpush3.bf16.msra.mxu1 %v1942_v39 }
 0xc1a   : > { %8492 = vmatprep.subr.bf16.mxu1 %v7569_v21 }
 0xc1c   : > { %v2073_v45 = vpop.permute.xlu0 %2072  ;;  %v2078_v46 = vpop.permute.xlu1 %2077 }
 0xc1d   : > { %8493 = vmatpush3.bf16.msra.mxu1 %v7569_v21  ;;  %v2350_v21 = vld [vmem:[%s9170_s27 + $0x70] sm:$0xff] }
 0xc20   : > { %8495 = vmatmul.mubr.msk.bf16.vlgmr.msra.gmra.mxu1 %vm1770_vm1, %v8701_v40  ;;  %v2039_v47 = vpop.permute.xlu0 %2038  ;;  %v2044_v50 = vpop.permute.xlu1 %2043 }
 0xc24   : > { %v2063_v54 = vpop.permute.xlu0 %2062  ;;  %v2068_v0 = vpop.permute.xlu1 %2067 }
 0xce0   : > { %v8496_v48 = vpop.f32.mrf.mxu1 }
 0xce1   : > { %v2058_v49 = vmul.f32 %v8496_v48, %v2049_v43  ;;  %v8704_v43 = vld [vmem:[%s9060_s19] ss:$8 sps:$4 sm:$0xff]  }
 0xce2   : > { %v2013_v51 = vpop.f32.mrf.mxu1 }
 0xce3   : > { %v2082_v52 = vadd.f32 %v2073_v45, %v2058_v49  ;;  %v2056_v53 = vmul.f32 %v2039_v47, %v2013_v51  ;;  %v8707_v45 = vld [vmem:[%s9060_s19 + $0x10] ss:$8 sps:$4 sm:$0xff]  }
 0xce4   : > { %v8497_v55 = vpop.f32.mrf.mxu1 }
 0xce5   : > { %v2086_v56 = vmax.f32 %v2082_v52, 0.0  ;;  %v2080_v57 = vadd.f32 %v2063_v54, %v2056_v53  ;;  %v2059_v58 = vmul.f32 %v8497_v55, %v2054_v44  ;;  %v8705_v44 = vld [vmem:[%s9060_s19 + $0x14] ss:$8 sps:$4 sm:$0xff]  }
 0xce6   : > { %v2016_v59 = vpop.f32.mrf.mxu1 }
 0xce7   : > { %v9516_v60 = vpack.c.bf16 %v2086_v56, %v2086_v56  ;;  %v2084_v61 = vmax.f32 %v2080_v57, 0.0  ;;  %v2083_v62 = vadd.f32 %v2078_v46, %v2059_v58  ;;  %v2057_v63 = vmul.f32 %v2044_v50, %v2016_v59  ;;  %v2283_v46 = vld [vmem:[%s9055_s14] sm:$0x7] }
 0xce8   : > { %8618 = vmatprep.subr.msk.bf16.mxu1 %vm11279_vm2, %v2283_v46  ;;  %v2292_v47 = vsel %vm11279_vm2, %v2283_v46, 0  ;;  %vm2431_vm2 = vcmask 35864   ;;  %v2626_v46 = vld [vmem:[%s9170_s27 + $0x98] sm:$0xff] }
 0xce9   : > { %11358 = vst [vmem:[#allocation29_spill] sm:$0xff] %v9516_v60  ;;  %v2087_v1 = vmax.f32 %v2083_v62, 0.0  ;;  %v2081_v2 = vadd.f32 %v2068_v0, %v2057_v63  ;;  %2133 = vrot.lane.b32.xlu0 %v9516_v60, %s9000_s2  ;;  %v9520_v42 = vpack.c.bf16 %v2084_v61, %v2084_v61  ;;  %8499 = vmatpush3.bf16.msra.mxu1 %v2292_v47  ;;  %v2619_v47 = vld [vmem:[%s9165_s20 + $0xa0] sm:$0xff] }
 0xcea   : > { %2549 = vmatprep.subr.bf16.mxu1 %v11285_v29 }
 0xceb   : > { %11359 = vst [vmem:[#allocation30_spill] sm:$0xff] %v9520_v42  ;;  %v9522_v3 = vpack.c.bf16 %v2087_v1, %v2087_v1  ;;  %v2085_v4 = vmax.f32 %v2081_v2, 0.0 }
 0xced   : > { %11360 = vst [vmem:[#allocation31_spill] sm:$0xff] %v9522_v3  ;;  %2129 = vrot.lane.b32.xlu0 %v9520_v42, %s9000_s2  ;;  %2135 = vrot.lane.b32.xlu1 %v9522_v3, %s9000_s2  ;;  %v9528_v5 = vpack.c.bf16 %v2085_v4, %v2085_v4 }
 0xcef   : > { %11361 = vst [vmem:[#allocation32_spill] sm:$0xff] %v9528_v5 }
 0xcf1   : > { %2131 = vrot.lane.b32.xlu1 %v9528_v5, %s9000_s2 }
 0xd5b   : > { %v2134_v6 = vpop.permute.xlu0 %2133 }
 0xd5c   : > { %2144 = vst.msk [vmem:[#allocation2 + $0x10] sm:$0xf] %vm2141_vm9, %v2134_v6 }
 0xd5d   : > { %2149 = vst.msk [vmem:[#allocation2 + $0x10] sm:$0xf] %vm2146_vm5, %v11285_v29 }
 0xd5f   : > { %v2130_v7 = vpop.permute.xlu0 %2129  ;;  %v2136_v8 = vpop.permute.xlu1 %2135 }
 0xd60   : > { %2142 = vst.msk [vmem:[#allocation2] sm:$0xf] %vm2141_vm9, %v2130_v7  ;;  %2145 = vst.msk [vmem:[#allocation2 + $0x18] sm:$0xf] %vm2141_vm9, %v2136_v8 }
 0xd61   : > { %2147 = vst.msk [vmem:[#allocation2] sm:$0xf] %vm2146_vm5, %v11285_v29  ;;  %2150 = vst.msk [vmem:[#allocation2 + $0x18] sm:$0xf] %vm2146_vm5, %v11285_v29 }
 0xd63   : > { %v2132_v9 = vpop.permute.xlu1 %2131 }
 0xd64   : > { %v2153_v10 = vld [vmem:[#allocation2 + $0x10] sm:$0xf]  ;;  %2143 = vst.msk [vmem:[#allocation2 + $0x8] sm:$0xf] %vm2141_vm9, %v2132_v9  ;;  %vm11282_vm9 = vcmask 48128  }
 0xd65   : > { %2407 = vst.msk [vmem:[#allocation2 + $0x10] sm:$0xf] %vm1220_vm12, %v11285_v29 }
 0xd66   : > { %2148 = vst.msk [vmem:[#allocation2 + $0x8] sm:$0xf] %vm2146_vm5, %v11285_v29  ;;  %vm2225_vm5 = vcmask 785408  }
 0xd67   : > { %7584 = vmatprep.mubr.msk.bf16.mxu0 %vm2225_vm5, %v8702_v25 }
 0xd68   : > { %v2151_v11 = vld [vmem:[#allocation2] sm:$0xf]  ;;  %v2154_v12 = vld [vmem:[#allocation2 + $0x18] sm:$0xf] }
 0xd69   : > { %2405 = vst.msk [vmem:[#allocation2] sm:$0xf] %vm1220_vm12, %v11285_v29  ;;  %2408 = vst.msk [vmem:[#allocation2 + $0x18] sm:$0xf] %vm1220_vm12, %v11285_v29  ;;  %v7579_v13 = vcombine.low %v2153_v10, %v2154_v12 }
 0xd6b   : > { %2181 = vrot.lane.b32.xlu0 %v7579_v13, %s11312_s28 }
 0xd6d   : > { %v2152_v14 = vld [vmem:[#allocation2 + $0x8] sm:$0xf] }
 0xd6e   : > { %2406 = vst.msk [vmem:[#allocation2 + $0x8] sm:$0xf] %vm1220_vm12, %v11285_v29  ;;  %v7578_v15 = vcombine.low %v2151_v11, %v2152_v14 }
 0xd6f   : > { %2175 = vrot.lane.b32.xlu0 %v7579_v13, %s11318_s18 }
 0xd70   : > { %2179 = vrot.lane.b32.xlu1 %v7578_v15, %s11312_s28 }
 0xd73   : > { %2169 = vrot.lane.b32.xlu0 %v7579_v13, %s11321_s26 }
 0xd74   : > { %2173 = vrot.lane.b32.xlu1 %v7578_v15, %s11318_s18 }
 0xd77   : > { %2199 = vrot.lane.b32.xlu0 %v7579_v13, %s11316_s16 }
 0xd78   : > { %2167 = vrot.lane.b32.xlu1 %v7578_v15, %s11321_s26 }
 0xd7b   : > { %2193 = vrot.lane.b32.xlu0 %v7579_v13, %s11314_s23 }
 0xd7c   : > { %2197 = vrot.lane.b32.xlu1 %v7578_v15, %s11316_s16 }
 0xd7f   : > { %2187 = vrot.lane.b32.xlu0 %v7579_v13, %s11310_s22 }
 0xd80   : > { %2191 = vrot.lane.b32.xlu1 %v7578_v15, %s11314_s23 }
 0xd83   : > { %2363 = vperm.xlu0 %8681, %v2345_v16  }
 0xd84   : > { %2185 = vrot.lane.b32.xlu1 %v7578_v15, %s11310_s22 }
 0xd87   : > { %2387 = vperm.xlu0 %8681, %v2349_v18  }
 0xd88   : > { %2368 = vperm.xlu1 %8682, %v2346_v19  }
 0xd8b   : > { %2353 = vperm.xlu0 %8681, %v2343_v20  }
 0xd8c   : > { %2392 = vperm.xlu1 %8682, %v2350_v21  }
 0xd8f   : > { %2377 = vperm.xlu0 %8681, %v2347_v22  }
 0xd90   : > { %2358 = vperm.xlu1 %8682, %v2344_v23  }
 0xd94   : > { %2382 = vperm.xlu1 %8682, %v2348_v24  }
 0xddd   : > { %v2182_v26 = vpop.permute.xlu0 %2181 }
 0xdde   : > { %2233 = vmatpush1.bf16.msra.mxu0 %v2182_v26 }
 0xddf   : > { %2234 = vmatprep.subr.bf16.mxu0 %v11285_v29 }
 0xde1   : > { %v2176_v28 = vpop.permute.xlu0 %2175 }
 0xde2   : > { %v2180_v27 = vpop.permute.xlu1 %2179 }
 0xde3   : > { %2235 = vmatpush1.bf16.msra.mxu0 %v2180_v27 }
 0xde4   : > { %2236 = vmatprep.subr.bf16.mxu0 %v11285_v29 }
 0xde5   : > { %v2170_v32 = vpop.permute.xlu0 %2169 }
 0xde6   : > { %v2174_v31 = vpop.permute.xlu1 %2173 }
 0xde7   : > { %2237 = vmatpush1.bf16.msra.mxu0 %v2176_v28 }
 0xde8   : > { %2238 = vmatprep.subr.bf16.mxu0 %v11285_v29 }
 0xde9   : > { %v2200_v34 = vpop.permute.xlu0 %2199 }
 0xdea   : > { %v2168_v33 = vpop.permute.xlu1 %2167 }
 0xdeb   : > { %2239 = vmatpush1.bf16.msra.mxu0 %v2174_v31 }
 0xdec   : > { %2240 = vmatprep.subr.bf16.mxu0 %v11285_v29 }
 0xded   : > { %v2194_v36 = vpop.permute.xlu0 %2193 }
 0xdee   : > { %v2198_v35 = vpop.permute.xlu1 %2197 }
 0xdef   : > { %2241 = vmatpush1.bf16.msra.mxu0 %v2170_v32 }
 0xdf0   : > { %2242 = vmatprep.subr.bf16.mxu0 %v11285_v29 }
 0xdf1   : > { %v2188_v39 = vpop.permute.xlu0 %2187 }
 0xdf2   : > { %v2192_v37 = vpop.permute.xlu1 %2191 }
 0xdf3   : > { %2243 = vmatpush1.bf16.msra.mxu0 %v2168_v33 }
 0xdf4   : > { %2244 = vmatprep.subr.bf16.mxu0 %v11285_v29 }
 0xdf6   : > { %v2186_v40 = vpop.permute.xlu1 %2185 }
 0xdf7   : > { %2245 = vmatpush1.bf16.msra.mxu0 %v7579_v13 }
 0xdf8   : > { %2246 = vmatprep.subr.bf16.mxu0 %v11285_v29 }
 0xdfb   : > { %2247 = vmatpush1.bf16.msra.mxu0 %v7578_v15 }
 0xdfc   : > { %2252 = vmatprep.subr.bf16.mxu0 %v11285_v29 }
 0xdfe   : > { %v2364_v58 = vpop.permute.xlu0 %2363 }
 0xdff   : > { %2253 = vmatpush2.bf16.msra.mxu0 %v2200_v34 }
 0xe00   : > { %2254 = vmatprep.subr.bf16.mxu0 %v11285_v29 }
 0xe02   : > { %v2388_v61 = vpop.permute.xlu0 %2387 }
 0xe03   : > { %2255 = vmatpush2.bf16.msra.mxu0 %v2198_v35  ;;  %v2369_v59 = vpop.permute.xlu1 %2368 }
 0xe04   : > { %2256 = vmatprep.subr.bf16.mxu0 %v11285_v29 }
 0xe06   : > { %v2354_v63 = vpop.permute.xlu0 %2353 }
 0xe07   : > { %2257 = vmatpush2.bf16.msra.mxu0 %v2194_v36  ;;  %v2393_v62 = vpop.permute.xlu1 %2392 }
 0xe08   : > { %2258 = vmatprep.subr.bf16.mxu0 %v11285_v29 }
 0xe0a   : > { %v2378_v8 = vpop.permute.xlu0 %2377 }
 0xe0b   : > { %2259 = vmatpush2.bf16.msra.mxu0 %v2192_v37  ;;  %v2359_v2 = vpop.permute.xlu1 %2358 }
 0xe0c   : > { %2260 = vmatprep.subr.bf16.mxu0 %v11285_v29 }
 0xe0f   : > { %2261 = vmatpush2.bf16.msra.mxu0 %v2188_v39  ;;  %v2383_v19 = vpop.permute.xlu1 %2382  ;;  %v2620_v39 = vld [vmem:[%s9165_s20 + $0xa8] sm:$0xff] }
 0xe10   : > { %2262 = vmatprep.subr.bf16.mxu0 %v11285_v29 }
 0xe13   : > { %2263 = vmatpush2.bf16.msra.mxu0 %v2186_v40  ;;  %v2628_v40 = vld [vmem:[%s9170_s27 + $0xa8] sm:$0xff] }
 0xe16   : > { %2265 = vmatmul.mubr.bf16.vlgmr.msra.gmra.mxu0 %v8704_v43  ;;  %v2621_v43 = vld [vmem:[%s9165_s20 + $0xb0] sm:$0xff] }
 0xe17   : > { %7585 = vmatprep.mubr.msk.bf16.mxu0 %vm2225_vm5, %v8705_v44  ;;  %v2618_v44 = vld [vmem:[%s9165_s20 + $0x98] sm:$0xff] }
 0xe1e   : > { %2273 = vmatmul.mubr.bf16.gmra.mxu0 %v8707_v45  ;;  %v2629_v45 = vld [vmem:[%s9170_s27 + $0xb0] sm:$0xff] }
 0xed6   : > { %v2266_v48 = vpop.f32.mrf.mxu0 }
 0xed8   : > { %v2268_v49 = vpop.f32.mrf.mxu0 }
 0xed9   : > { %v2627_v49 = vld [vmem:[%s9170_s27 + $0xa0] sm:$0xff] }
 0xeda   : > { %v2269_v50 = vpop.f32.mrf.mxu0 }
 0xedb   : > { %v2281_v51 = vpack.c.bf16 %v2269_v50, %v2266_v48  ;;  %v2616_v48 = vld [vmem:[%s9165_s20 + $0x88] sm:$0xff] }
 0xedc   : > { %v2271_v52 = vpop.f32.mrf.mxu0  ;;  %v8708_v50 = vld [vmem:[%s9065_s24 + $0x4] ss:$8 sps:$4 sm:$0xff]  }
 0xedd   : > { %8500 = vmatprep.mubr.msk.bf16.mxu1 %vm11282_vm9, %v2281_v51  ;;  %v2624_v51 = vld [vmem:[%s9170_s27 + $0x88] sm:$0xff]  ;;  %v2617_v52 = vld [vmem:[%s9165_s20 + $0x90] sm:$0xff] }
 0xede   : > { %v2274_v53 = vpop.f32.mrf.mxu0 }
 0xee0   : > { %v2276_v54 = vpop.f32.mrf.mxu0 }
 0xee1   : > { %v2625_v54 = vld [vmem:[%s9170_s27 + $0x90] sm:$0xff] }
 0xee2   : > { %v2277_v55 = vpop.f32.mrf.mxu0 }
 0xee3   : > { %v2282_v56 = vpack.c.bf16 %v2277_v55, %v2274_v53  ;;  %v2614_v53 = vld [vmem:[%s9165_s20 + $0x78] sm:$0xff] }
 0xee4   : > { %v2279_v57 = vpop.f32.mrf.mxu0  ;;  %v2622_v55 = vld [vmem:[%s9170_s27 + $0x78] sm:$0xff] }
 0xee5   : > { %8501 = vmatmul.mubr.msk.bf16.vlgmr.msra.gmra.mxu1 %vm11282_vm9, %v2282_v56  ;;  %v2615_v56 = vld [vmem:[%s9165_s20 + $0x80] sm:$0xff]  ;;  %vm3291_vm9 = vcmask 27672  }
 0xee6   : > { %7602 = vmatprep.mubr.msk.bf16.mxu1 %vm2225_vm5, %v8708_v50  ;;  %v2623_v57 = vld [vmem:[%s9170_s27 + $0x80] sm:$0xff] }
 0xfa5   : > { %v8502_v0 = vpop.f32.mrf.mxu1 }
 0xfa6   : > { %v2373_v1 = vmul.f32 %v8502_v0, %v2364_v58 }
 0xfa7   : > { %v2328_v4 = vpop.f32.mrf.mxu1 }
 0xfa8   : > { %v2397_v6 = vadd.f32 %v2388_v61, %v2373_v1  ;;  %v2371_v7 = vmul.f32 %v2354_v63, %v2328_v4 }
 0xfa9   : > { %v8503_v9 = vpop.f32.mrf.mxu1 }
 0xfaa   : > { %v2401_v10 = vmax.f32 %v2397_v6, 0.0  ;;  %v2395_v11 = vadd.f32 %v2378_v8, %v2371_v7  ;;  %v2374_v12 = vmul.f32 %v8503_v9, %v2369_v59  ;;  %v8710_v9 = vld [vmem:[%s9065_s24] ss:$8 sps:$4 sm:$0xff]  }
 0xfab   : > { %v2331_v13 = vpop.f32.mrf.mxu1 }
 0xfac   : > { %v7894_v14 = vpack.c.bf16 %v2401_v10, %v2401_v10  ;;  %v2399_v15 = vmax.f32 %v2395_v11, 0.0  ;;  %v2398_v16 = vadd.f32 %v2393_v62, %v2374_v12  ;;  %v2372_v18 = vmul.f32 %v2359_v2, %v2331_v13  ;;  %v8711_v10 = vld [vmem:[%s9065_s24 + $0x14] ss:$8 sps:$4 sm:$0xff]   ;;  %v8713_v11 = vld [vmem:[%s9065_s24 + $0x10] ss:$8 sps:$4 sm:$0xff]  }
 0xfad   : > { %v8714_v12 = vld [vmem:[%s9065_s24 + $0x24] ss:$8 sps:$4 sm:$0xff]   ;;  %v8716_v13 = vld [vmem:[%s9065_s24 + $0x20] ss:$8 sps:$4 sm:$0xff]  }
 0xfae   : > { %v2402_v20 = vmax.f32 %v2398_v16, 0.0  ;;  %v2396_v21 = vadd.f32 %v2383_v19, %v2372_v18  ;;  %2423 = vrot.lane.b32.xlu0 %v7894_v14, %s11306_s15  ;;  %v7892_v22 = vpack.c.bf16 %v2399_v15, %v2399_v15  ;;  %v8717_v14 = vld [vmem:[%s9065_s24 + $0x34] ss:$8 sps:$4 sm:$0xff]   ;;  %v8719_v15 = vld [vmem:[%s9065_s24 + $0x30] ss:$8 sps:$4 sm:$0xff]  }
 0xfb0   : > { %v7895_v23 = vpack.c.bf16 %v2402_v20, %v2402_v20  ;;  %v2400_v24 = vmax.f32 %v2396_v21, 0.0 }
 0xfb2   : > { %2419 = vrot.lane.b32.xlu0 %v7892_v22, %s11306_s15  ;;  %2425 = vrot.lane.b32.xlu1 %v7895_v23, %s11306_s15  ;;  %v7893_v25 = vpack.c.bf16 %v2400_v24, %v2400_v24 }
 0xfb6   : > { %2421 = vrot.lane.b32.xlu1 %v7893_v25, %s11306_s15 }
0x1020   : > { %v2424_v26 = vpop.permute.xlu0 %2423 }
0x1021   : > { %2434 = vst.msk [vmem:[#allocation2 + $0x10] sm:$0xf] %vm2431_vm2, %v2424_v26 }
0x1022   : > { %2439 = vst.msk [vmem:[#allocation2 + $0x10] sm:$0xf] %vm2436_vm4, %v11285_v29 }
0x1024   : > { %v2420_v27 = vpop.permute.xlu0 %2419  ;;  %v2426_v28 = vpop.permute.xlu1 %2425 }
0x1025   : > { %2432 = vst.msk [vmem:[#allocation2] sm:$0xf] %vm2431_vm2, %v2420_v27  ;;  %2435 = vst.msk [vmem:[#allocation2 + $0x18] sm:$0xf] %vm2431_vm2, %v2426_v28 }
0x1026   : > { %2437 = vst.msk [vmem:[#allocation2] sm:$0xf] %vm2436_vm4, %v11285_v29  ;;  %2440 = vst.msk [vmem:[#allocation2 + $0x18] sm:$0xf] %vm2436_vm4, %v11285_v29 }
0x1028   : > { %v2422_v31 = vpop.permute.xlu1 %2421 }
0x1029   : > { %v2443_v32 = vld [vmem:[#allocation2 + $0x10] sm:$0xf]  ;;  %2433 = vst.msk [vmem:[#allocation2 + $0x8] sm:$0xf] %vm2431_vm2, %v2422_v31 }
0x102a   : > { %2808 = vst.msk [vmem:[#allocation2 + $0x10] sm:$0xf] %vm1722_vm8, %v11285_v29 }
0x102b   : > { %2438 = vst.msk [vmem:[#allocation2 + $0x8] sm:$0xf] %vm2436_vm4, %v11285_v29 }
0x102d   : > { %v2441_v33 = vld [vmem:[#allocation2] sm:$0xf]  ;;  %v2444_v34 = vld [vmem:[#allocation2 + $0x18] sm:$0xf] }
0x102e   : > { %2806 = vst.msk [vmem:[#allocation2] sm:$0xf] %vm1722_vm8, %v11285_v29  ;;  %2809 = vst.msk [vmem:[#allocation2 + $0x18] sm:$0xf] %vm1722_vm8, %v11285_v29  ;;  %v9611_v35 = vcombine.low %v2443_v32, %v2444_v34 }
0x1030   : > { %2471 = vrot.lane.b32.xlu0 %v9611_v35, %s11312_s28 }
0x1032   : > { %v2442_v36 = vld [vmem:[#allocation2 + $0x8] sm:$0xf] }
0x1033   : > { %2807 = vst.msk [vmem:[#allocation2 + $0x8] sm:$0xf] %vm1722_vm8, %v11285_v29  ;;  %v9617_v37 = vcombine.low %v2441_v33, %v2442_v36  ;;  %vm2838_vm8 = vcmask 27664  }
0x1034   : > { %2465 = vrot.lane.b32.xlu0 %v9611_v35, %s11318_s18 }
0x1035   : > { %2469 = vrot.lane.b32.xlu1 %v9617_v37, %s11312_s28 }
0x1038   : > { %2459 = vrot.lane.b32.xlu0 %v9611_v35, %s11321_s26 }
0x1039   : > { %2463 = vrot.lane.b32.xlu1 %v9617_v37, %s11318_s18 }
0x103c   : > { %2489 = vrot.lane.b32.xlu0 %v9611_v35, %s11316_s16 }
0x103d   : > { %2457 = vrot.lane.b32.xlu1 %v9617_v37, %s11321_s26 }
0x1040   : > { %2483 = vrot.lane.b32.xlu0 %v9611_v35, %s11314_s23 }
0x1041   : > { %2487 = vrot.lane.b32.xlu1 %v9617_v37, %s11316_s16 }
0x1044   : > { %2477 = vrot.lane.b32.xlu0 %v9611_v35, %s11310_s22 }
0x1045   : > { %2481 = vrot.lane.b32.xlu1 %v9617_v37, %s11314_s23 }
0x1048   : > { %2662 = vperm.xlu0 %8681, %v2620_v39  }
0x1049   : > { %2475 = vrot.lane.b32.xlu1 %v9617_v37, %s11310_s22 }
0x104c   : > { %2710 = vperm.xlu0 %8681, %v2628_v40  }
0x104d   : > { %2667 = vperm.xlu1 %8682, %v2621_v43  }
0x1050   : > { %2652 = vperm.xlu0 %8681, %v2618_v44  }
0x1051   : > { %2715 = vperm.xlu1 %8682, %v2629_v45  }
0x1054   : > { %2700 = vperm.xlu0 %8681, %v2626_v46  }
0x1055   : > { %2657 = vperm.xlu1 %8682, %v2619_v47  }
0x1058   : > { %2642 = vperm.xlu0 %8681, %v2616_v48  }
0x1059   : > { %2705 = vperm.xlu1 %8682, %v2627_v49  }
0x105c   : > { %2690 = vperm.xlu0 %8681, %v2624_v51  }
0x105d   : > { %2647 = vperm.xlu1 %8682, %v2617_v52  }
0x1060   : > { %2632 = vperm.xlu0 %8681, %v2614_v53  }
0x1061   : > { %2695 = vperm.xlu1 %8682, %v2625_v54  }
0x1064   : > { %2680 = vperm.xlu0 %8681, %v2622_v55  }
0x1065   : > { %2637 = vperm.xlu1 %8682, %v2615_v56  }
0x1069   : > { %2685 = vperm.xlu1 %8682, %v2623_v57  }
0x10a2   : > { %v2472_v58 = vpop.permute.xlu0 %2471 }
0x10a3   : > { %2550 = vmatpush1.bf16.msra.mxu1 %v2472_v58 }
0x10a4   : > { %2551 = vmatprep.subr.bf16.mxu1 %v11285_v29 }
0x10a6   : > { %v2466_v61 = vpop.permute.xlu0 %2465 }
0x10a7   : > { %v2470_v59 = vpop.permute.xlu1 %2469 }
0x10a8   : > { %2552 = vmatpush1.bf16.msra.mxu1 %v2470_v59 }
0x10a9   : > { %2553 = vmatprep.subr.bf16.mxu1 %v11285_v29 }
0x10aa   : > { %v2460_v63 = vpop.permute.xlu0 %2459 }
0x10ab   : > { %v2464_v62 = vpop.permute.xlu1 %2463 }
0x10ac   : > { %2554 = vmatpush1.bf16.msra.mxu1 %v2466_v61 }
0x10ad   : > { %2555 = vmatprep.subr.bf16.mxu1 %v11285_v29 }
0x10ae   : > { %v2490_v1 = vpop.permute.xlu0 %2489 }
0x10af   : > { %v2458_v0 = vpop.permute.xlu1 %2457 }
0x10b0   : > { %2556 = vmatpush1.bf16.msra.mxu1 %v2464_v62 }
0x10b1   : > { %2557 = vmatprep.subr.bf16.mxu1 %v11285_v29 }
0x10b2   : > { %v2484_v4 = vpop.permute.xlu0 %2483 }
0x10b3   : > { %v2488_v2 = vpop.permute.xlu1 %2487 }
0x10b4   : > { %2558 = vmatpush1.bf16.msra.mxu1 %v2460_v63 }
0x10b5   : > { %2559 = vmatprep.subr.bf16.mxu1 %v11285_v29 }
0x10b6   : > { %v2478_v7 = vpop.permute.xlu0 %2477 }
0x10b7   : > { %v2482_v6 = vpop.permute.xlu1 %2481 }
0x10b8   : > { %2560 = vmatpush1.bf16.msra.mxu1 %v2458_v0 }
0x10b9   : > { %2561 = vmatprep.subr.bf16.mxu1 %v11285_v29 }
0x10bb   : > { %v2476_v8 = vpop.permute.xlu1 %2475 }
0x10bc   : > { %2562 = vmatpush1.bf16.msra.mxu1 %v9611_v35 }
0x10bd   : > { %2563 = vmatprep.subr.bf16.mxu1 %v11285_v29 }
0x10c0   : > { %2564 = vmatpush1.bf16.msra.mxu1 %v9617_v37 }
0x10c1   : > { %2569 = vmatprep.subr.bf16.mxu1 %v11285_v29 }
0x10c3   : > { %v2663_v16 = vpop.permute.xlu0 %2662 }
0x10c4   : > { %2570 = vmatpush2.bf16.msra.mxu1 %v2490_v1 }
0x10c5   : > { %2571 = vmatprep.subr.bf16.mxu1 %v11285_v29 }
0x10c7   : > { %v2711_v19 = vpop.permute.xlu0 %2710 }
0x10c8   : > { %2572 = vmatpush2.bf16.msra.mxu1 %v2488_v2  ;;  %v2668_v18 = vpop.permute.xlu1 %2667 }
0x10c9   : > { %2573 = vmatprep.subr.bf16.mxu1 %v11285_v29 }
0x10cb   : > { %v2653_v23 = vpop.permute.xlu0 %2652 }
0x10cc   : > { %2574 = vmatpush2.bf16.msra.mxu1 %v2484_v4  ;;  %v2716_v21 = vpop.permute.xlu1 %2715 }
0x10cd   : > { %2575 = vmatprep.subr.bf16.mxu1 %v11285_v29 }
0x10cf   : > { %v2701_v28 = vpop.permute.xlu0 %2700 }
0x10d0   : > { %2576 = vmatpush2.bf16.msra.mxu1 %v2482_v6  ;;  %v2658_v26 = vpop.permute.xlu1 %2657 }
0x10d1   : > { %2577 = vmatprep.subr.bf16.mxu1 %v11285_v29 }
0x10d3   : > { %v2643_v35 = vpop.permute.xlu0 %2642 }
0x10d4   : > { %2578 = vmatpush2.bf16.msra.mxu1 %v2478_v7  ;;  %v2706_v33 = vpop.permute.xlu1 %2705 }
0x10d5   : > { %2579 = vmatprep.subr.bf16.mxu1 %v11285_v29 }
0x10d7   : > { %v2691_v43 = vpop.permute.xlu0 %2690 }
0x10d8   : > { %2580 = vmatpush2.bf16.msra.mxu1 %v2476_v8  ;;  %v2648_v39 = vpop.permute.xlu1 %2647 }
0x10d9   : > { %3130 = vmatprep.subr.bf16.mxu1 %v11285_v29 }
0x10db   : > { %2582 = vmatmul.mubr.bf16.vlgmr.msra.gmra.mxu1 %v8710_v9  ;;  %v2633_v51 = vpop.permute.xlu0 %2632 }
0x10dc   : > { %7603 = vmatprep.mubr.msk.bf16.mxu1 %vm2225_vm5, %v8711_v10  ;;  %v2696_v48 = vpop.permute.xlu1 %2695 }
0x10df   : > { %v2681_v6 = vpop.permute.xlu0 %2680 }
0x10e0   : > { %v2638_v4 = vpop.permute.xlu1 %2637 }
0x10e3   : > { %2590 = vmatmul.mubr.bf16.gmra.mxu1 %v8713_v11 }
0x10e4   : > { %7604 = vmatprep.mubr.msk.bf16.mxu1 %vm2225_vm5, %v8714_v12 }
0x10eb   : > { %2598 = vmatmul.mubr.bf16.gmra.mxu1 %v8716_v13 }
0x10ec   : > { %7605 = vmatprep.mubr.msk.bf16.mxu1 %vm2225_vm5, %v8717_v14 }
0x10f3   : > { %2606 = vmatmul.mubr.bf16.gmra.mxu1 %v8719_v15  ;;  %v2686_v15 = vpop.permute.xlu1 %2685 }
0x119b   : > { %v2583_v20 = vpop.f32.mrf.mxu1 }
0x119c   : > { %v2670_v58 = vmul.f32 %v2633_v51, %v2583_v20  ;;  %v8722_v51 = vld [vmem:[%s9070_s30 + $0x4] ss:$16 sps:$4 sm:$0xff]  }
0x119d   : > { %v2585_v22 = vpop.f32.mrf.mxu1  ;;  %3097 = vmatprep.mubr.bf16.mxu0 %v8722_v51 }
0x119e   : > { %v2718_v8 = vadd.f32 %v2681_v6, %v2670_v58 }
0x119f   : > { %v2586_v24 = vpop.f32.mrf.mxu1 }
0x11a0   : > { %v2671_v9 = vmul.f32 %v2638_v4, %v2586_v24 }
0x11a1   : > { %v2588_v25 = vpop.f32.mrf.mxu1 }
0x11a3   : > { %v2591_v27 = vpop.f32.mrf.mxu1 }
0x11a4   : > { %v2672_v49 = vmul.f32 %v2643_v35, %v2591_v27 }
0x11a5   : > { %v2593_v31 = vpop.f32.mrf.mxu1 }
0x11a6   : > { %v2720_v59 = vadd.f32 %v2691_v43, %v2672_v49 }
0x11a7   : > { %v2594_v32 = vpop.f32.mrf.mxu1 }
0x11a8   : > { %v2673_v61 = vmul.f32 %v2648_v39, %v2594_v32  ;;  %v2728_v10 = vmax.f32 %v2720_v59, 0.0 }
0x11a9   : > { %v2596_v34 = vpop.f32.mrf.mxu1 }
0x11aa   : > { %v2721_v11 = vadd.f32 %v2696_v48, %v2673_v61 }
0x11ab   : > { %v2599_v36 = vpop.f32.mrf.mxu1 }
0x11ac   : > { %v2674_v45 = vmul.f32 %v2653_v23, %v2599_v36  ;;  %v2729_v20 = vmax.f32 %v2721_v11, 0.0 }
0x11ad   : > { %v2601_v37 = vpop.f32.mrf.mxu1 }
0x11ae   : > { %v2722_v52 = vadd.f32 %v2701_v28, %v2674_v45  ;;  %v9707_v24 = vpack.c.bf16 %v2729_v20, %v2729_v20  ;;  %v8720_v20 = vld [vmem:[%s9070_s30] ss:$16 sps:$4 sm:$0xff]  }
0x11af   : > { %v2602_v40 = vpop.f32.mrf.mxu1 }
0x11b0   : > { %v2675_v53 = vmul.f32 %v2658_v26, %v2602_v40  ;;  %v2730_v63 = vmax.f32 %v2722_v52, 0.0  ;;  %11368 = vst [vmem:[#allocation39_spill] sm:$0xff] %v9707_v24  ;;  %v8725_v52 = vld [vmem:[%s9070_s30 + $0xc] ss:$16 sps:$4 sm:$0xff]  }
0x11b1   : > { %v2604_v44 = vpop.f32.mrf.mxu1 }
0x11b2   : > { %v2723_v0 = vadd.f32 %v2706_v33, %v2675_v53  ;;  %v9689_v12 = vpack.c.bf16 %v2730_v63, %v2730_v63 }
0x11b3   : > { %v2607_v46 = vpop.f32.mrf.mxu1 }
0x11b4   : > { %v2676_v47 = vmul.f32 %v2663_v16, %v2607_v46  ;;  %11363 = vst [vmem:[#allocation34_spill] sm:$0xff] %v9689_v12  ;;  %v2731_v13 = vmax.f32 %v2723_v0, 0.0  ;;  %v2726_v16 = vmax.f32 %v2718_v8, 0.0 }
0x11b5   : > { %v2609_v50 = vpop.f32.mrf.mxu1 }
0x11b6   : > { %v2724_v54 = vadd.f32 %v2711_v19, %v2676_v47  ;;  %v9697_v19 = vpack.c.bf16 %v2728_v10, %v2728_v10  ;;  %v9705_v22 = vpack.c.bf16 %v2726_v16, %v2726_v16 }
0x11b7   : > { %v2610_v55 = vpop.f32.mrf.mxu1 }
0x11b8   : > { %v2732_v56 = vmax.f32 %v2724_v54, 0.0  ;;  %v2677_v57 = vmul.f32 %v2668_v18, %v2610_v55  ;;  %v2719_v18 = vadd.f32 %v2686_v15, %v2671_v9  ;;  %11365 = vst [vmem:[#allocation36_spill] sm:$0xff] %v9697_v19  ;;  %11367 = vst [vmem:[#allocation38_spill] sm:$0xff] %v9705_v22 }
0x11b9   : > { %v2612_v62 = vpop.f32.mrf.mxu1 }
0x11ba   : > { %v9685_v1 = vpack.c.bf16 %v2732_v56, %v2732_v56  ;;  %v2725_v2 = vadd.f32 %v2716_v21, %v2677_v57  ;;  %v9699_v21 = vpack.c.bf16 %v2731_v13, %v2731_v13  ;;  %v2727_v23 = vmax.f32 %v2719_v18, 0.0 }
0x11bc   : > { %11362 = vst [vmem:[#allocation33_spill] sm:$0xff] %v9685_v1  ;;  %v2733_v7 = vmax.f32 %v2725_v2, 0.0  ;;  %2826 = vrot.lane.b32.xlu0 %v9685_v1, %s11304_s1  ;;  %11366 = vst [vmem:[#allocation37_spill] sm:$0xff] %v9699_v21  ;;  %v9713_v25 = vpack.c.bf16 %v2727_v23, %v2727_v23  ;;  %v8726_v23 = vld [vmem:[%s9070_s30 + $0x24] ss:$16 sps:$4 sm:$0xff]  }
0x11be   : > { %v9691_v14 = vpack.c.bf16 %v2733_v7, %v2733_v7  ;;  %11369 = vst [vmem:[#allocation40_spill] sm:$0xff] %v9713_v25 }
0x11c0   : > { %11364 = vst [vmem:[#allocation35_spill] sm:$0xff] %v9691_v14  ;;  %2822 = vrot.lane.b32.xlu0 %v9689_v12, %s11304_s1  ;;  %2828 = vrot.lane.b32.xlu1 %v9691_v14, %s11304_s1 }
0x11c4   : > { %2818 = vrot.lane.b32.xlu0 %v9697_v19, %s11304_s1  ;;  %2824 = vrot.lane.b32.xlu1 %v9699_v21, %s11304_s1 }
0x11c8   : > { %2814 = vrot.lane.b32.xlu0 %v9705_v22, %s11304_s1  ;;  %2820 = vrot.lane.b32.xlu1 %v9707_v24, %s11304_s1 }
0x11cc   : > { %2816 = vrot.lane.b32.xlu1 %v9713_v25, %s11304_s1  ;;  %s11392_s1 = sld [smem:[#allocation11_spill]] }
0x122e   : > { %v2827_v26 = vpop.permute.xlu0 %2826 }
0x122f   : > { %2845 = vst.msk [vmem:[#allocation2 + $0x30] sm:$0xf] %vm2838_vm8, %v2827_v26 }
0x1230   : > { %2854 = vst.msk [vmem:[#allocation2 + $0x30] sm:$0xf] %vm2847_vm3, %v11285_v29 }
0x1232   : > { %v2823_v27 = vpop.permute.xlu0 %2822  ;;  %v2829_v28 = vpop.permute.xlu1 %2828 }
0x1233   : > { %2843 = vst.msk [vmem:[#allocation2 + $0x20] sm:$0xf] %vm2838_vm8, %v2823_v27  ;;  %2846 = vst.msk [vmem:[#allocation2 + $0x38] sm:$0xf] %vm2838_vm8, %v2829_v28  ;;  %v8723_v27 = vld [vmem:[%s9070_s30 + $0x8] ss:$16 sps:$4 sm:$0xff]  }
0x1234   : > { %2852 = vst.msk [vmem:[#allocation2 + $0x20] sm:$0xf] %vm2847_vm3, %v11285_v29  ;;  %2855 = vst.msk [vmem:[#allocation2 + $0x38] sm:$0xf] %vm2847_vm3, %v11285_v29  ;;  %v8729_v28 = vld [vmem:[%s9070_s30 + $0x2c] ss:$16 sps:$4 sm:$0xff]  }
0x1236   : > { %v2819_v31 = vpop.permute.xlu0 %2818  ;;  %v2825_v32 = vpop.permute.xlu1 %2824 }
0x1237   : > { %v2862_v33 = vld [vmem:[#allocation2 + $0x30] sm:$0xf]  ;;  %2841 = vst.msk [vmem:[#allocation2 + $0x10] sm:$0xf] %vm2838_vm8, %v2819_v31  ;;  %2844 = vst.msk [vmem:[#allocation2 + $0x28] sm:$0xf] %vm2838_vm8, %v2825_v32 }
0x1238   : > { %3245 = vst.msk [vmem:[#allocation2 + $0x30] sm:$0xf] %vm1220_vm12, %v11285_v29  ;;  %v8728_v31 = vld [vmem:[%s9070_s30 + $0x20] ss:$16 sps:$4 sm:$0xff]   ;;  %v8732_v32 = vld [vmem:[%s9070_s30 + $0x44] ss:$16 sps:$4 sm:$0xff]  }
0x1239   : > { %2850 = vst.msk [vmem:[#allocation2 + $0x10] sm:$0xf] %vm2847_vm3, %v11285_v29  ;;  %2853 = vst.msk [vmem:[#allocation2 + $0x28] sm:$0xf] %vm2847_vm3, %v11285_v29 }
0x123a   : > { %v2815_v34 = vpop.permute.xlu0 %2814  ;;  %v2821_v35 = vpop.permute.xlu1 %2820 }
0x123b   : > { %v2860_v36 = vld [vmem:[#allocation2 + $0x20] sm:$0xf]  ;;  %v2863_v37 = vld [vmem:[#allocation2 + $0x38] sm:$0xf]  ;;  %2839 = vst.msk [vmem:[#allocation2] sm:$0xf] %vm2838_vm8, %v2815_v34 }
0x123c   : > { %2842 = vst.msk [vmem:[#allocation2 + $0x18] sm:$0xf] %vm2838_vm8, %v2821_v35  ;;  %v9759_v47 = vcombine.low %v2862_v33, %v2863_v37  ;;  %v8731_v33 = vld [vmem:[%s9070_s30 + $0x28] ss:$16 sps:$4 sm:$0xff]   ;;  %v8735_v34 = vld [vmem:[%s9070_s30 + $0x4c] ss:$16 sps:$4 sm:$0xff]  }
0x123d   : > { %3243 = vst.msk [vmem:[#allocation2 + $0x20] sm:$0xf] %vm1220_vm12, %v11285_v29  ;;  %3246 = vst.msk [vmem:[#allocation2 + $0x38] sm:$0xf] %vm1220_vm12, %v11285_v29  ;;  %v8734_v35 = vld [vmem:[%s9070_s30 + $0x40] ss:$16 sps:$4 sm:$0xff]  }
0x123e   : > { %2848 = vst.msk [vmem:[#allocation2] sm:$0xf] %vm2847_vm3, %v11285_v29  ;;  %2851 = vst.msk [vmem:[#allocation2 + $0x18] sm:$0xf] %vm2847_vm3, %v11285_v29  ;;  %v2817_v39 = vpop.permute.xlu1 %2816  ;;  %v8737_v37 = vld [vmem:[%s9070_s30 + $0x48] ss:$16 sps:$4 sm:$0xff]  }
0x123f   : > { %2840 = vst.msk [vmem:[#allocation2 + $0x8] sm:$0xf] %vm2838_vm8, %v2817_v39  ;;  %vm3052_vm8 = vcmask 523264   ;;  %v8741_v39 = vld [vmem:[%s9070_s30 + $0x6c] ss:$16 sps:$4 sm:$0xff]  }
0x1240   : > { %v2858_v40 = vld [vmem:[#allocation2 + $0x10] sm:$0xf]  ;;  %v2861_v43 = vld [vmem:[#allocation2 + $0x28] sm:$0xf]  ;;  %2849 = vst.msk [vmem:[#allocation2 + $0x8] sm:$0xf] %vm2847_vm3, %v11285_v29  ;;  %7634 = vmatprep.mubr.msk.bf16.mxu1 %vm3052_vm8, %v8725_v52 }
0x1241   : > { %3241 = vst.msk [vmem:[#allocation2 + $0x10] sm:$0xf] %vm1220_vm12, %v11285_v29  ;;  %3244 = vst.msk [vmem:[#allocation2 + $0x28] sm:$0xf] %vm1220_vm12, %v11285_v29  ;;  %v9769_v50 = vcombine.low %v2860_v36, %v2861_v43  ;;  %v8738_v36 = vld [vmem:[%s9070_s30 + $0x64] ss:$16 sps:$4 sm:$0xff]  }
0x1242   : > { %v8743_v43 = vld [vmem:[%s9070_s30 + $0x68] ss:$16 sps:$4 sm:$0xff]  }
0x1245   : > { %v2856_v44 = vld [vmem:[#allocation2] sm:$0xf]  ;;  %v2859_v45 = vld [vmem:[#allocation2 + $0x18] sm:$0xf] }
0x1246   : > { %3239 = vst.msk [vmem:[#allocation2] sm:$0xf] %vm1220_vm12, %v11285_v29  ;;  %3242 = vst.msk [vmem:[#allocation2 + $0x18] sm:$0xf] %vm1220_vm12, %v11285_v29  ;;  %v9755_v46 = vcombine.low %v2858_v40, %v2859_v45  ;;  %v8740_v40 = vld [vmem:[%s9070_s30 + $0x60] ss:$16 sps:$4 sm:$0xff]  }
0x1247   : > { %v2857_v48 = vld [vmem:[#allocation2 + $0x8] sm:$0xf] }
0x1248   : > { %2938 = vrot.lane.b32.xlu0 %v9755_v46, %s11314_s23  ;;  %3240 = vst.msk [vmem:[#allocation2 + $0x8] sm:$0xf] %vm1220_vm12, %v11285_v29  ;;  %v9763_v49 = vcombine.low %v2856_v44, %v2857_v48 }
0x124a   : > { %2936 = vrot.lane.b32.xlu1 %v9763_v49, %s11314_s23 }
0x124c   : > { %2942 = vrot.lane.b32.xlu0 %v9759_v47, %s11314_s23 }
0x124e   : > { %2940 = vrot.lane.b32.xlu1 %v9769_v50, %s11314_s23 }
0x1250   : > { %2916 = vrot.lane.b32.xlu0 %v9769_v50, %s11312_s28 }
0x1252   : > { %2892 = vrot.lane.b32.xlu1 %v9769_v50, %s11321_s26 }
0x1254   : > { %2890 = vrot.lane.b32.xlu0 %v9755_v46, %s11321_s26 }
0x1256   : > { %2918 = vrot.lane.b32.xlu1 %v9759_v47, %s11312_s28 }
0x1258   : > { %2894 = vrot.lane.b32.xlu0 %v9759_v47, %s11321_s26 }
0x125a   : > { %2914 = vrot.lane.b32.xlu1 %v9755_v46, %s11312_s28 }
0x125c   : > { %2930 = vrot.lane.b32.xlu0 %v9759_v47, %s11310_s22 }
0x125e   : > { %2928 = vrot.lane.b32.xlu1 %v9769_v50, %s11310_s22 }
0x1260   : > { %2912 = vrot.lane.b32.xlu0 %v9763_v49, %s11312_s28 }
0x1262   : > { %2888 = vrot.lane.b32.xlu1 %v9763_v49, %s11321_s26 }
0x1264   : > { %2926 = vrot.lane.b32.xlu0 %v9755_v46, %s11310_s22 }
0x1266   : > { %2906 = vrot.lane.b32.xlu1 %v9759_v47, %s11318_s18 }
0x1268   : > { %2924 = vrot.lane.b32.xlu0 %v9763_v49, %s11310_s22 }
0x126a   : > { %2904 = vrot.lane.b32.xlu1 %v9769_v50, %s11318_s18 }
0x126c   : > { %2954 = vrot.lane.b32.xlu0 %v9759_v47, %s11316_s16 }
0x126e   : > { %2902 = vrot.lane.b32.xlu1 %v9755_v46, %s11318_s18 }
0x1270   : > { %2952 = vrot.lane.b32.xlu0 %v9769_v50, %s11316_s16 }
0x1272   : > { %2900 = vrot.lane.b32.xlu1 %v9763_v49, %s11318_s18 }
0x1274   : > { %2950 = vrot.lane.b32.xlu0 %v9755_v46, %s11316_s16 }
0x1276   : > { %2948 = vrot.lane.b32.xlu1 %v9763_v49, %s11316_s16 }
0x12ba   : > { %v2939_v53 = vpop.permute.xlu0 %2938 }
0x12bc   : > { %v2937_v55 = vpop.permute.xlu1 %2936 }
0x12be   : > { %v2943_v54 = vpop.permute.xlu0 %2942 }
0x12bf   : > { %3131 = vmatpush1.bf16.msra.mxu1 %v2943_v54 }
0x12c0   : > { %3132 = vmatprep.subr.bf16.mxu1 %v11285_v29  ;;  %v2941_v57 = vpop.permute.xlu1 %2940 }
0x12c2   : > { %v2917_v56 = vpop.permute.xlu0 %2916 }
0x12c3   : > { %3133 = vmatpush1.bf16.msra.mxu1 %v2941_v57 }
0x12c4   : > { %3134 = vmatprep.subr.bf16.mxu1 %v11285_v29  ;;  %v2893_v59 = vpop.permute.xlu1 %2892 }
0x12c6   : > { %v2891_v58 = vpop.permute.xlu0 %2890 }
0x12c7   : > { %3135 = vmatpush1.bf16.msra.mxu1 %v2939_v53 }
0x12c8   : > { %3136 = vmatprep.subr.bf16.mxu1 %v11285_v29  ;;  %v2919_v62 = vpop.permute.xlu1 %2918 }
0x12c9   : > { %8007 = vmatprep.subr.bf16.mxu0 %v2919_v62 }
0x12ca   : > { %v2895_v61 = vpop.permute.xlu0 %2894 }
0x12cb   : > { %3137 = vmatpush1.bf16.msra.mxu1 %v2937_v55  ;;  %8008 = vmatpush3.bf16.msra.mxu0 %v2895_v61 }
0x12cc   : > { %3138 = vmatprep.subr.bf16.mxu1 %v11285_v29  ;;  %8009 = vmatprep.subr.bf16.mxu0 %v2917_v56  ;;  %v2915_v0 = vpop.permute.xlu1 %2914 }
0x12ce   : > { %v2931_v63 = vpop.permute.xlu0 %2930 }
0x12cf   : > { %3139 = vmatpush1.bf16.msra.mxu1 %v2931_v63  ;;  %8010 = vmatpush3.bf16.msra.mxu0 %v2893_v59 }
0x12d0   : > { %3140 = vmatprep.subr.bf16.mxu1 %v11285_v29  ;;  %8011 = vmatprep.subr.bf16.mxu0 %v2915_v0  ;;  %v2929_v4 = vpop.permute.xlu1 %2928 }
0x12d2   : > { %v2913_v2 = vpop.permute.xlu0 %2912 }
0x12d3   : > { %3141 = vmatpush1.bf16.msra.mxu1 %v2929_v4  ;;  %8012 = vmatpush3.bf16.msra.mxu0 %v2891_v58 }
0x12d4   : > { %3142 = vmatprep.subr.bf16.mxu1 %v11285_v29  ;;  %8013 = vmatprep.subr.bf16.mxu0 %v2913_v2  ;;  %v2889_v7 = vpop.permute.xlu1 %2888 }
0x12d6   : > { %v2927_v6 = vpop.permute.xlu0 %2926 }
0x12d7   : > { %3143 = vmatpush1.bf16.msra.mxu1 %v2927_v6  ;;  %8014 = vmatpush3.bf16.msra.mxu0 %v2889_v7 }
0x12d8   : > { %3144 = vmatprep.subr.bf16.mxu1 %v11285_v29  ;;  %v2907_v9 = vpop.permute.xlu1 %2906 }
0x12d9   : > { %8015 = vmatprep.subr.bf16.mxu0 %v2907_v9 }
0x12da   : > { %v2925_v8 = vpop.permute.xlu0 %2924 }
0x12db   : > { %3145 = vmatpush1.bf16.msra.mxu1 %v2925_v8  ;;  %8016 = vmatpush3.bf16.msra.mxu0 %v9759_v47 }
0x12dc   : > { %3154 = vmatprep.subr.bf16.mxu1 %v11285_v29  ;;  %v2905_v11 = vpop.permute.xlu1 %2904 }
0x12dd   : > { %8017 = vmatprep.subr.bf16.mxu0 %v2905_v11 }
0x12de   : > { %v2955_v10 = vpop.permute.xlu0 %2954 }
0x12df   : > { %3155 = vmatpush2.bf16.msra.mxu1 %v2955_v10  ;;  %8018 = vmatpush3.bf16.msra.mxu0 %v9769_v50 }
0x12e0   : > { %3156 = vmatprep.subr.bf16.mxu1 %v11285_v29  ;;  %v2903_v15 = vpop.permute.xlu1 %2902 }
0x12e1   : > { %8019 = vmatprep.subr.bf16.mxu0 %v2903_v15  ;;  %v3199_v15 = vld [vmem:[%s9165_s20 + $0xd8] sm:$0xff] }
0x12e2   : > { %v2953_v13 = vpop.permute.xlu0 %2952 }
0x12e3   : > { %3157 = vmatpush2.bf16.msra.mxu1 %v2953_v13  ;;  %8020 = vmatpush3.bf16.msra.mxu0 %v9755_v46 }
0x12e4   : > { %3158 = vmatprep.subr.bf16.mxu1 %v11285_v29  ;;  %v2901_v18 = vpop.permute.xlu1 %2900 }
0x12e5   : > { %8021 = vmatprep.subr.bf16.mxu0 %v2901_v18 }
0x12e6   : > { %v2951_v16 = vpop.permute.xlu0 %2950 }
0x12e7   : > { %3159 = vmatpush2.bf16.msra.mxu1 %v2951_v16  ;;  %8022 = vmatpush3.bf16.msra.mxu0 %v9763_v49 }
0x12e8   : > { %3160 = vmatprep.subr.bf16.mxu1 %v11285_v29  ;;  %v2949_v26 = vpop.permute.xlu1 %2948 }
0x12ea   : > { %3098 = vmatmul.mubr.bf16.vlgmr.msra.gmra.mxu0 %v8720_v20 }
0x12eb   : > { %3161 = vmatpush2.bf16.msra.mxu1 %v2949_v26  ;;  %3105 = vmatprep.mubr.bf16.mxu0 %v8726_v23 }
0x12ec   : > { %3717 = vmatprep.subr.bf16.mxu1 %v11285_v29 }
0x12ee   : > { %3163 = vmatmul.mubr.bf16.vlgmr.msra.gmra.mxu1 %v8723_v27 }
0x12ef   : > { %7635 = vmatprep.mubr.msk.bf16.mxu1 %vm3052_vm8, %v8729_v28  ;;  %v3201_v28 = vld [vmem:[%s9165_s20 + $0xe8] sm:$0xff] }
0x12f2   : > { %3106 = vmatmul.mubr.bf16.gmra.mxu0 %v8728_v31 }
0x12f3   : > { %3113 = vmatprep.mubr.bf16.mxu0 %v8732_v32  ;;  %v3197_v32 = vld [vmem:[%s9165_s20 + $0xc8] sm:$0xff] }
0x12f6   : > { %3171 = vmatmul.mubr.bf16.gmra.mxu1 %v8731_v33 }
0x12f7   : > { %7636 = vmatprep.mubr.msk.bf16.mxu1 %vm3052_vm8, %v8735_v34 }
0x12fa   : > { %3114 = vmatmul.mubr.bf16.gmra.mxu0 %v8734_v35 }
0x12fb   : > { %3121 = vmatprep.mubr.bf16.mxu0 %v8738_v36 }
0x12fe   : > { %3179 = vmatmul.mubr.bf16.gmra.mxu1 %v8737_v37  ;;  %v3207_v37 = vld [vmem:[%s9170_s27 + $0xd8] sm:$0xff] }
0x12ff   : > { %7637 = vmatprep.mubr.msk.bf16.mxu1 %vm3052_vm8, %v8741_v39  ;;  %v3200_v39 = vld [vmem:[%s9165_s20 + $0xe0] sm:$0xff] }
0x1302   : > { %3122 = vmatmul.mubr.bf16.gmra.mxu0 %v8740_v40  ;;  %v3209_v40 = vld [vmem:[%s9170_s27 + $0xe8] sm:$0xff] }
0x1306   : > { %3187 = vmatmul.mubr.bf16.gmra.mxu1 %v8743_v43 }
0x13aa   : > { %v8023_v44 = vpop.f32.mrf.mxu0 }
0x13ac   : > { %v8024_v45 = vpop.f32.mrf.mxu0 }
0x13ad   : > { %v8025_v23 = vadd.f32 %v8024_v45, %v8023_v44 }
0x13ae   : > { %v3164_v46 = vpop.f32.mrf.mxu1  ;;  %v8026_v47 = vpop.f32.mrf.mxu0 }
0x13b0   : > { %v3166_v48 = vpop.f32.mrf.mxu1  ;;  %v8027_v49 = vpop.f32.mrf.mxu0 }
0x13b2   : > { %v3167_v50 = vpop.f32.mrf.mxu1  ;;  %v8029_v51 = vpop.f32.mrf.mxu0 }
0x13b4   : > { %v3169_v52 = vpop.f32.mrf.mxu1  ;;  %v8030_v53 = vpop.f32.mrf.mxu0 }
0x13b5   : > { %v8031_v8 = vadd.f32 %v8030_v53, %v8029_v51  ;;  %v3165_v51 = vadd.f32 %v8025_v23, %v3164_v46  ;;  %v8028_v52 = vadd.f32 %v8027_v49, %v8026_v47 }
0x13b6   : > { %v3172_v54 = vpop.f32.mrf.mxu1  ;;  %v8032_v55 = vpop.f32.mrf.mxu0 }
0x13b7   : > { %v3173_v26 = vadd.f32 %v8031_v8, %v3172_v54  ;;  %v3168_v47 = vadd.f32 %v8028_v52, %v3167_v50 }
0x13b8   : > { %v3174_v56 = vpop.f32.mrf.mxu1  ;;  %v8033_v57 = vpop.f32.mrf.mxu0 }
0x13b9   : > { %v8034_v27 = vadd.f32 %v8033_v57, %v8032_v55  ;;  %v3213_v53 = vmul.f32 %v3197_v32, %v3173_v26  ;;  %v3202_v55 = vld [vmem:[%s9165_s20 + $0xf0] sm:$0xff]  ;;  %v3195_v56 = vld [vmem:[%s9165_s20 + $0xb8] sm:$0xff]  ;;  %v3205_v57 = vld [vmem:[%s9170_s27 + $0xc8] sm:$0xff] }
0x13ba   : > { %v3175_v58 = vpop.f32.mrf.mxu1  ;;  %v8035_v59 = vpop.f32.mrf.mxu0  ;;  %v3211_v46 = vmul.f32 %v3195_v56, %v3165_v51 }
0x13bb   : > { %v3176_v54 = vadd.f32 %v8034_v27, %v3175_v58  ;;  %v3221_v49 = vadd.f32 %v3213_v53, %v3205_v57 }
0x13bc   : > { %v3177_v61 = vpop.f32.mrf.mxu1  ;;  %v8036_v62 = vpop.f32.mrf.mxu0 }
0x13bd   : > { %v8037_v2 = vadd.f32 %v8036_v62, %v8035_v59  ;;  %v3198_v59 = vld [vmem:[%s9165_s20 + $0xd0] sm:$0xff]  ;;  %v3229_v27 = vmax.f32 %v3221_v49, 0.0 }
0x13be   : > { %v3180_v63 = vpop.f32.mrf.mxu1  ;;  %v8038_v0 = vpop.f32.mrf.mxu0  ;;  %v3214_v58 = vmul.f32 %v3198_v59, %v3176_v54  ;;  %v8746_v49 = vld [vmem:[%s11346_s6 + $0x4] ss:$16 sps:$4 sm:$0xff]  }
0x13bf   : > { %v3181_v10 = vadd.f32 %v8037_v2, %v3180_v63  ;;  %3652 = vmatprep.mubr.bf16.mxu0 %v8746_v49  ;;  %v8780_v49 = vld [vmem:[%s11346_s6 + $0xc4] ss:$16 sps:$4 sm:$0xff]  }
0x13c0   : > { %v3182_v4 = vpop.f32.mrf.mxu1  ;;  %v8039_v6 = vpop.f32.mrf.mxu0 }
0x13c1   : > { %v8040_v11 = vadd.f32 %v8039_v6, %v8038_v0  ;;  %v3215_v33 = vmul.f32 %v3199_v15, %v3181_v10  ;;  %v3208_v4 = vld [vmem:[%s9170_s27 + $0xe0] sm:$0xff]  ;;  %v3210_v6 = vld [vmem:[%s9170_s27 + $0xf0] sm:$0xff] }
0x13c2   : > { %v3183_v7 = vpop.f32.mrf.mxu1  ;;  %v8041_v9 = vpop.f32.mrf.mxu0  ;;  %v3196_v10 = vld [vmem:[%s9165_s20 + $0xc0] sm:$0xff] }
0x13c3   : > { %v3184_v34 = vadd.f32 %v8040_v11, %v3183_v7  ;;  %v3223_v61 = vadd.f32 %v3215_v33, %v3207_v37  ;;  %v3212_v26 = vmul.f32 %v3196_v10, %v3168_v47  ;;  %v3204_v33 = vld [vmem:[%s9170_s27 + $0xc0] sm:$0xff] }
0x13c4   : > { %v3185_v13 = vpop.f32.mrf.mxu1  ;;  %v8042_v16 = vpop.f32.mrf.mxu0 }
0x13c5   : > { %v8043_v18 = vadd.f32 %v8042_v16, %v8041_v9  ;;  %v3216_v62 = vmul.f32 %v3200_v39, %v3184_v34  ;;  %v3203_v9 = vld [vmem:[%s9170_s27 + $0xb8] sm:$0xff]  ;;  %v3231_v11 = vmax.f32 %v3223_v61, 0.0 }
0x13c6   : > { %v3188_v20 = vpop.f32.mrf.mxu1  ;;  %v8044_v31 = vpop.f32.mrf.mxu0  ;;  %v3219_v23 = vadd.f32 %v3211_v46, %v3203_v9 }
0x13c7   : > { %v3189_v35 = vadd.f32 %v8043_v18, %v3188_v20  ;;  %v3224_v13 = vadd.f32 %v3216_v62, %v3208_v4  ;;  %v3206_v18 = vld [vmem:[%s9170_s27 + $0xd0] sm:$0xff] }
0x13c8   : > { %v3190_v36 = vpop.f32.mrf.mxu1  ;;  %v8045_v43 = vpop.f32.mrf.mxu0  ;;  %v3227_v34 = vmax.f32 %v3219_v23, 0.0 }
0x13c9   : > { %v3217_v48 = vmul.f32 %v3201_v28, %v3189_v35  ;;  %v8046_v44 = vadd.f32 %v8045_v43, %v8044_v31  ;;  %v3222_v28 = vadd.f32 %v3214_v58, %v3206_v18  ;;  %v7908_v31 = vpack.c.bf16 %v3231_v11, %v3231_v11  ;;  %v8749_v58 = vld [vmem:[%s11346_s6 + $0xc] ss:$16 sps:$4 sm:$0xff]  }
0x13ca   : > { %v3191_v45 = vpop.f32.mrf.mxu1  ;;  %v3232_v32 = vmax.f32 %v3224_v13, 0.0  ;;  %v3220_v35 = vadd.f32 %v3212_v26, %v3204_v33  ;;  %v7906_v36 = vpack.c.bf16 %v3229_v27, %v3229_v27  ;;  %7682 = vmatprep.mubr.msk.bf16.mxu1 %vm3052_vm8, %v8749_v58  ;;  %v8779_v58 = vld [vmem:[%s11346_s6 + $0xa8] ss:$16 sps:$4 sm:$0xff]  }
0x13cb   : > { %v3225_v63 = vadd.f32 %v3217_v48, %v3209_v40  ;;  %v3192_v0 = vadd.f32 %v8046_v44, %v3191_v45  ;;  %v3230_v37 = vmax.f32 %v3222_v28, 0.0  ;;  %v7904_v40 = vpack.c.bf16 %v3227_v34, %v3227_v34 }
0x13cc   : > { %v3193_v2 = vpop.f32.mrf.mxu1  ;;  %v7909_v39 = vpack.c.bf16 %v3232_v32, %v3232_v32  ;;  %v3228_v43 = vmax.f32 %v3220_v35, 0.0 }
0x13cd   : > { %v3233_v7 = vmax.f32 %v3225_v63, 0.0  ;;  %v3218_v8 = vmul.f32 %v3202_v55, %v3192_v0  ;;  %v7907_v48 = vpack.c.bf16 %v3230_v37, %v3230_v37 }
0x13ce   : > { %v7905_v44 = vpack.c.bf16 %v3228_v43, %v3228_v43 }
0x13cf   : > { %v7910_v15 = vpack.c.bf16 %v3233_v7, %v3233_v7  ;;  %v3226_v16 = vadd.f32 %v3218_v8, %v3210_v6 }
0x13d1   : > { %v3234_v20 = vmax.f32 %v3226_v16, 0.0  ;;  %3279 = vrot.lane.b32.xlu0 %v7910_v15, %s11306_s15 }
0x13d3   : > { %v7911_v50 = vpack.c.bf16 %v3234_v20, %v3234_v20 }
0x13d5   : > { %3281 = vrot.lane.b32.xlu1 %v7911_v50, %s11306_s15  ;;  %3275 = vrot.lane.b32.xlu0 %v7908_v31, %s11306_s15 }
0x13d9   : > { %3277 = vrot.lane.b32.xlu1 %v7909_v39, %s11306_s15  ;;  %3271 = vrot.lane.b32.xlu0 %v7906_v36, %s11306_s15 }
0x13dd   : > { %3273 = vrot.lane.b32.xlu1 %v7907_v48, %s11306_s15  ;;  %3267 = vrot.lane.b32.xlu0 %v7904_v40, %s11306_s15  ;;  %v8744_v48 = vld [vmem:[%s11346_s6] ss:$16 sps:$4 sm:$0xff]  }
0x13e1   : > { %3269 = vrot.lane.b32.xlu1 %v7905_v44, %s11306_s15  ;;  %v8750_v44 = vld [vmem:[%s11346_s6 + $0x24] ss:$16 sps:$4 sm:$0xff]  }
0x1443   : > { %v3280_v45 = vpop.permute.xlu0 %3279 }
0x1444   : > { %3298 = vst.msk [vmem:[#allocation2 + $0x30] sm:$0xf] %vm3291_vm9, %v3280_v45 }
0x1445   : > { %3306 = vst.msk [vmem:[#allocation2 + $0x30] sm:$0xf] %vm2847_vm3, %v11285_v29 }
0x1447   : > { %v3282_v51 = vpop.permute.xlu1 %3281  ;;  %v3276_v52 = vpop.permute.xlu0 %3275 }
0x1448   : > { %3299 = vst.msk [vmem:[#allocation2 + $0x38] sm:$0xf] %vm3291_vm9, %v3282_v51  ;;  %3296 = vst.msk [vmem:[#allocation2 + $0x20] sm:$0xf] %vm3291_vm9, %v3276_v52  ;;  %v8747_v51 = vld [vmem:[%s11346_s6 + $0x8] ss:$16 sps:$4 sm:$0xff]  }
0x1449   : > { %3307 = vst.msk [vmem:[#allocation2 + $0x38] sm:$0xf] %vm2847_vm3, %v11285_v29  ;;  %3304 = vst.msk [vmem:[#allocation2 + $0x20] sm:$0xf] %vm2847_vm3, %v11285_v29  ;;  %v8753_v52 = vld [vmem:[%s11346_s6 + $0x2c] ss:$16 sps:$4 sm:$0xff]  }
0x144b   : > { %v3278_v53 = vpop.permute.xlu1 %3277  ;;  %v3272_v54 = vpop.permute.xlu0 %3271 }
0x144c   : > { %3297 = vst.msk [vmem:[#allocation2 + $0x28] sm:$0xf] %vm3291_vm9, %v3278_v53  ;;  %3294 = vst.msk [vmem:[#allocation2 + $0x10] sm:$0xf] %vm3291_vm9, %v3272_v54  ;;  %v3314_v61 = vld [vmem:[#allocation2 + $0x30] sm:$0xf] }
0x144d   : > { %3305 = vst.msk [vmem:[#allocation2 + $0x28] sm:$0xf] %vm2847_vm3, %v11285_v29  ;;  %3302 = vst.msk [vmem:[#allocation2 + $0x10] sm:$0xf] %vm2847_vm3, %v11285_v29  ;;  %v8752_v53 = vld [vmem:[%s11346_s6 + $0x20] ss:$16 sps:$4 sm:$0xff]  }
0x144e   : > { %v8756_v54 = vld [vmem:[%s11346_s6 + $0x44] ss:$16 sps:$4 sm:$0xff]  }
0x144f   : > { %v3274_v55 = vpop.permute.xlu1 %3273  ;;  %v3268_v56 = vpop.permute.xlu0 %3267 }
0x1450   : > { %3295 = vst.msk [vmem:[#allocation2 + $0x18] sm:$0xf] %vm3291_vm9, %v3274_v55  ;;  %3292 = vst.msk [vmem:[#allocation2] sm:$0xf] %vm3291_vm9, %v3268_v56  ;;  %v3315_v62 = vld [vmem:[#allocation2 + $0x38] sm:$0xf] }
0x1451   : > { %3303 = vst.msk [vmem:[#allocation2 + $0x18] sm:$0xf] %vm2847_vm3, %v11285_v29  ;;  %3300 = vst.msk [vmem:[#allocation2] sm:$0xf] %vm2847_vm3, %v11285_v29  ;;  %v9901_v4 = vcombine.low %v3314_v61, %v3315_v62  ;;  %v3312_v6 = vld [vmem:[#allocation2 + $0x20] sm:$0xf] }
0x1452   : > { %v8755_v55 = vld [vmem:[%s11346_s6 + $0x28] ss:$16 sps:$4 sm:$0xff]   ;;  %v8759_v56 = vld [vmem:[%s11346_s6 + $0x4c] ss:$16 sps:$4 sm:$0xff]  }
0x1453   : > { %v3270_v57 = vpop.permute.xlu1 %3269  ;;  %v8761_v61 = vld [vmem:[%s11346_s6 + $0x48] ss:$16 sps:$4 sm:$0xff]   ;;  %v8765_v62 = vld [vmem:[%s11346_s6 + $0x6c] ss:$16 sps:$4 sm:$0xff]  }
0x1454   : > { %3293 = vst.msk [vmem:[#allocation2 + $0x8] sm:$0xf] %vm3291_vm9, %v3270_v57  ;;  %v3310_v59 = vld [vmem:[#allocation2 + $0x10] sm:$0xf]  ;;  %v3313_v7 = vld [vmem:[#allocation2 + $0x28] sm:$0xf] }
0x1455   : > { %3301 = vst.msk [vmem:[#allocation2 + $0x8] sm:$0xf] %vm2847_vm3, %v11285_v29  ;;  %v9909_v47 = vcombine.low %v3312_v6, %v3313_v7  ;;  %v8758_v57 = vld [vmem:[%s11346_s6 + $0x40] ss:$16 sps:$4 sm:$0xff]   ;;  %v8774_v7 = vld [vmem:[%s11346_s6 + $0xa4] ss:$16 sps:$4 sm:$0xff]  }
0x1456   : > { %v8770_v6 = vld [vmem:[%s11346_s6 + $0x80] ss:$16 sps:$4 sm:$0xff]   ;;  %vm3902_vm3 = vcmask 44032   ;;  %vm4007_vm9 = vcmask 52272  }
0x1457   : > { %3917 = vst.msk [vmem:[#allocation2 + $0x70] sm:$0xf] %vm3902_vm3, %v11285_v29  ;;  %3905 = vst.msk [vmem:[#allocation2 + $0x10] sm:$0xf] %vm3902_vm3, %v11285_v29 }
0x1458   : > { %v3311_v63 = vld [vmem:[#allocation2 + $0x18] sm:$0xf]  ;;  %v3308_v2 = vld [vmem:[#allocation2] sm:$0xf]  ;;  %3907 = vst.msk [vmem:[#allocation2 + $0x20] sm:$0xf] %vm3902_vm3, %v11285_v29 }
0x1459   : > { %v9897_v0 = vcombine.low %v3310_v59, %v3311_v63  ;;  %v8762_v59 = vld [vmem:[%s11346_s6 + $0x64] ss:$16 sps:$4 sm:$0xff]   ;;  %v8764_v63 = vld [vmem:[%s11346_s6 + $0x60] ss:$16 sps:$4 sm:$0xff]   ;;  %3903 = vst.msk [vmem:[#allocation2] sm:$0xf] %vm3902_vm3, %v11285_v29 }
0x145a   : > { %3906 = vst.msk [vmem:[#allocation2 + $0x18] sm:$0xf] %vm3902_vm3, %v11285_v29  ;;  %3908 = vst.msk [vmem:[#allocation2 + $0x28] sm:$0xf] %vm3902_vm3, %v11285_v29 }
0x145b   : > { %3390 = vrot.lane.b32.xlu0 %v9897_v0, %s11314_s23  ;;  %3909 = vst.msk [vmem:[#allocation2 + $0x30] sm:$0xf] %vm3902_vm3, %v11285_v29  ;;  %3910 = vst.msk [vmem:[#allocation2 + $0x38] sm:$0xf] %vm3902_vm3, %v11285_v29 }
0x145c   : > { %v3309_v8 = vld [vmem:[#allocation2 + $0x8] sm:$0xf]  ;;  %3911 = vst.msk [vmem:[#allocation2 + $0x40] sm:$0xf] %vm3902_vm3, %v11285_v29  ;;  %3912 = vst.msk [vmem:[#allocation2 + $0x48] sm:$0xf] %vm3902_vm3, %v11285_v29 }
0x145d   : > { %v9903_v46 = vcombine.low %v3308_v2, %v3309_v8  ;;  %v8767_v2 = vld [vmem:[%s11346_s6 + $0x68] ss:$16 sps:$4 sm:$0xff]   ;;  %3904 = vst.msk [vmem:[#allocation2 + $0x8] sm:$0xf] %vm3902_vm3, %v11285_v29  ;;  %3913 = vst.msk [vmem:[#allocation2 + $0x50] sm:$0xf] %vm3902_vm3, %v11285_v29 }
0x145e   : > { %v8773_v8 = vld [vmem:[%s11346_s6 + $0x88] ss:$16 sps:$4 sm:$0xff]   ;;  %3914 = vst.msk [vmem:[#allocation2 + $0x58] sm:$0xf] %vm3902_vm3, %v11285_v29  ;;  %3915 = vst.msk [vmem:[#allocation2 + $0x60] sm:$0xf] %vm3902_vm3, %v11285_v29 }
0x145f   : > { %3394 = vrot.lane.b32.xlu0 %v9901_v4, %s11314_s23  ;;  %3388 = vrot.lane.b32.xlu1 %v9903_v46, %s11314_s23  ;;  %3916 = vst.msk [vmem:[#allocation2 + $0x68] sm:$0xf] %vm3902_vm3, %v11285_v29  ;;  %3918 = vst.msk [vmem:[#allocation2 + $0x78] sm:$0xf] %vm3902_vm3, %v11285_v29 }
0x1463   : > { %3368 = vrot.lane.b32.xlu0 %v9909_v47, %s11312_s28  ;;  %3392 = vrot.lane.b32.xlu1 %v9909_v47, %s11314_s23 }
0x1467   : > { %3342 = vrot.lane.b32.xlu0 %v9897_v0, %s11321_s26  ;;  %3344 = vrot.lane.b32.xlu1 %v9909_v47, %s11321_s26 }
0x146b   : > { %3346 = vrot.lane.b32.xlu0 %v9901_v4, %s11321_s26  ;;  %3370 = vrot.lane.b32.xlu1 %v9901_v4, %s11312_s28 }
0x146f   : > { %3382 = vrot.lane.b32.xlu0 %v9901_v4, %s11310_s22  ;;  %3366 = vrot.lane.b32.xlu1 %v9897_v0, %s11312_s28 }
0x1473   : > { %3364 = vrot.lane.b32.xlu0 %v9903_v46, %s11312_s28  ;;  %3380 = vrot.lane.b32.xlu1 %v9909_v47, %s11310_s22 }
0x1477   : > { %3378 = vrot.lane.b32.xlu0 %v9897_v0, %s11310_s22  ;;  %3340 = vrot.lane.b32.xlu1 %v9903_v46, %s11321_s26 }
0x147b   : > { %3376 = vrot.lane.b32.xlu0 %v9903_v46, %s11310_s22  ;;  %3358 = vrot.lane.b32.xlu1 %v9901_v4, %s11318_s18 }
0x147f   : > { %3406 = vrot.lane.b32.xlu0 %v9901_v4, %s11316_s16  ;;  %3356 = vrot.lane.b32.xlu1 %v9909_v47, %s11318_s18 }
0x1483   : > { %3404 = vrot.lane.b32.xlu0 %v9909_v47, %s11316_s16  ;;  %3354 = vrot.lane.b32.xlu1 %v9897_v0, %s11318_s18 }
0x1487   : > { %3402 = vrot.lane.b32.xlu0 %v9897_v0, %s11316_s16  ;;  %3352 = vrot.lane.b32.xlu1 %v9903_v46, %s11318_s18 }
0x148b   : > { %3400 = vrot.lane.b32.xlu1 %v9903_v46, %s11316_s16 }
0x14cd   : > { %v3391_v9 = vpop.permute.xlu0 %3390 }
0x14d1   : > { %v3389_v10 = vpop.permute.xlu1 %3388  ;;  %v3395_v11 = vpop.permute.xlu0 %3394 }
0x14d2   : > { %3718 = vmatpush1.bf16.msra.mxu1 %v3395_v11  ;;  %v8786_v11 = vld [vmem:[%s11346_s6 + $0xe4] ss:$16 sps:$4 sm:$0xff]  }
0x14d3   : > { %3719 = vmatprep.subr.bf16.mxu1 %v11285_v29 }
0x14d5   : > { %v3393_v13 = vpop.permute.xlu1 %3392  ;;  %v3369_v15 = vpop.permute.xlu0 %3368 }
0x14d6   : > { %3720 = vmatpush1.bf16.msra.mxu1 %v3393_v13  ;;  %v8785_v13 = vld [vmem:[%s11346_s6 + $0xc8] ss:$16 sps:$4 sm:$0xff]  }
0x14d7   : > { %3721 = vmatprep.subr.bf16.mxu1 %v11285_v29 }
0x14d9   : > { %v3345_v16 = vpop.permute.xlu1 %3344  ;;  %v3343_v18 = vpop.permute.xlu0 %3342 }
0x14da   : > { %3722 = vmatpush1.bf16.msra.mxu1 %v3391_v9  ;;  %v8783_v9 = vld [vmem:[%s11346_s6 + $0xcc] ss:$16 sps:$4 sm:$0xff]  }
0x14db   : > { %3723 = vmatprep.subr.bf16.mxu1 %v11285_v29 }
0x14dd   : > { %v3371_v20 = vpop.permute.xlu1 %3370  ;;  %v3347_v23 = vpop.permute.xlu0 %3346 }
0x14de   : > { %8047 = vmatprep.subr.bf16.mxu0 %v3371_v20  ;;  %3724 = vmatpush1.bf16.msra.mxu1 %v3389_v10  ;;  %v8782_v10 = vld [vmem:[%s11346_s6 + $0xc0] ss:$16 sps:$4 sm:$0xff]  }
0x14df   : > { %8048 = vmatpush3.bf16.msra.mxu0 %v3347_v23  ;;  %3725 = vmatprep.subr.bf16.mxu1 %v11285_v29 }
0x14e0   : > { %8049 = vmatprep.subr.bf16.mxu0 %v3369_v15  ;;  %v8789_v15 = vld [vmem:[%s11346_s6 + $0xec] ss:$16 sps:$4 sm:$0xff]  }
0x14e1   : > { %v3367_v26 = vpop.permute.xlu1 %3366  ;;  %v3383_v27 = vpop.permute.xlu0 %3382 }
0x14e2   : > { %3726 = vmatpush1.bf16.msra.mxu1 %v3383_v27 }
0x14e3   : > { %8050 = vmatpush3.bf16.msra.mxu0 %v3345_v16  ;;  %3727 = vmatprep.subr.bf16.mxu1 %v11285_v29  ;;  %v8788_v16 = vld [vmem:[%s11346_s6 + $0xe0] ss:$16 sps:$4 sm:$0xff]  }
0x14e4   : > { %8051 = vmatprep.subr.bf16.mxu0 %v3367_v26 }
0x14e5   : > { %v3381_v28 = vpop.permute.xlu1 %3380  ;;  %v3365_v31 = vpop.permute.xlu0 %3364 }
0x14e6   : > { %3728 = vmatpush1.bf16.msra.mxu1 %v3381_v28 }
0x14e7   : > { %8052 = vmatpush3.bf16.msra.mxu0 %v3343_v18  ;;  %3729 = vmatprep.subr.bf16.mxu1 %v11285_v29  ;;  %v8791_v18 = vld [vmem:[%s11346_s6 + $0xe8] ss:$16 sps:$4 sm:$0xff]  }
0x14e8   : > { %8053 = vmatprep.subr.bf16.mxu0 %v3365_v31 }
0x14e9   : > { %v3341_v32 = vpop.permute.xlu1 %3340  ;;  %v3379_v50 = vpop.permute.xlu0 %3378 }
0x14ea   : > { %3730 = vmatpush1.bf16.msra.mxu1 %v3379_v50 }
0x14eb   : > { %8054 = vmatpush3.bf16.msra.mxu0 %v3341_v32  ;;  %3731 = vmatprep.subr.bf16.mxu1 %v11285_v29 }
0x14ed   : > { %v3359_v33 = vpop.permute.xlu1 %3358  ;;  %v3377_v34 = vpop.permute.xlu0 %3376 }
0x14ee   : > { %8055 = vmatprep.subr.bf16.mxu0 %v3359_v33  ;;  %3732 = vmatpush1.bf16.msra.mxu1 %v3377_v34 }
0x14ef   : > { %8056 = vmatpush3.bf16.msra.mxu0 %v9901_v4  ;;  %3741 = vmatprep.subr.bf16.mxu1 %v11285_v29  ;;  %v8771_v4 = vld [vmem:[%s11346_s6 + $0x8c] ss:$16 sps:$4 sm:$0xff]  }
0x14f1   : > { %v3357_v35 = vpop.permute.xlu1 %3356  ;;  %v3407_v36 = vpop.permute.xlu0 %3406 }
0x14f2   : > { %8057 = vmatprep.subr.bf16.mxu0 %v3357_v35  ;;  %3742 = vmatpush2.bf16.msra.mxu1 %v3407_v36 }
0x14f3   : > { %8058 = vmatpush3.bf16.msra.mxu0 %v9909_v47  ;;  %3743 = vmatprep.subr.bf16.mxu1 %v11285_v29  ;;  %v8776_v47 = vld [vmem:[%s11346_s6 + $0xa0] ss:$16 sps:$4 sm:$0xff]  }
0x14f5   : > { %v3355_v37 = vpop.permute.xlu1 %3354  ;;  %v3405_v39 = vpop.permute.xlu0 %3404 }
0x14f6   : > { %8059 = vmatprep.subr.bf16.mxu0 %v3355_v37  ;;  %3744 = vmatpush2.bf16.msra.mxu1 %v3405_v39 }
0x14f7   : > { %8060 = vmatpush3.bf16.msra.mxu0 %v9897_v0  ;;  %3745 = vmatprep.subr.bf16.mxu1 %v11285_v29  ;;  %v8768_v0 = vld [vmem:[%s11346_s6 + $0x84] ss:$16 sps:$4 sm:$0xff]  }
0x14f9   : > { %v3353_v40 = vpop.permute.xlu1 %3352  ;;  %v3403_v43 = vpop.permute.xlu0 %3402 }
0x14fa   : > { %8061 = vmatprep.subr.bf16.mxu0 %v3353_v40  ;;  %3746 = vmatpush2.bf16.msra.mxu1 %v3403_v43 }
0x14fb   : > { %8062 = vmatpush3.bf16.msra.mxu0 %v9903_v46  ;;  %3747 = vmatprep.subr.bf16.mxu1 %v11285_v29  ;;  %v8777_v46 = vld [vmem:[%s11346_s6 + $0xac] ss:$16 sps:$4 sm:$0xff]   ;;  %s11419_s6 = sld [smem:[#allocation21_spill]] }
0x14fd   : > { %v3401_v45 = vpop.permute.xlu1 %3400 }
0x14fe   : > { %3653 = vmatmul.mubr.bf16.vlgmr.msra.gmra.mxu0 %v8744_v48  ;;  %3748 = vmatpush2.bf16.msra.mxu1 %v3401_v45 }
0x14ff   : > { %3660 = vmatprep.mubr.bf16.mxu0 %v8750_v44 }
0x1501   : > { %3750 = vmatmul.mubr.bf16.vlgmr.msra.gmra.mxu1 %v8747_v51 }
0x1502   : > { %7683 = vmatprep.mubr.msk.bf16.mxu1 %vm3052_vm8, %v8753_v52 }
0x1506   : > { %3661 = vmatmul.mubr.bf16.gmra.mxu0 %v8752_v53 }
0x1507   : > { %3668 = vmatprep.mubr.bf16.mxu0 %v8756_v54 }
0x1509   : > { %3758 = vmatmul.mubr.bf16.gmra.mxu1 %v8755_v55 }
0x150a   : > { %7684 = vmatprep.mubr.msk.bf16.mxu1 %vm3052_vm8, %v8759_v56 }
0x150e   : > { %3669 = vmatmul.mubr.bf16.gmra.mxu0 %v8758_v57 }
0x150f   : > { %3676 = vmatprep.mubr.bf16.mxu0 %v8762_v59 }
0x1511   : > { %3766 = vmatmul.mubr.bf16.gmra.mxu1 %v8761_v61 }
0x1512   : > { %7685 = vmatprep.mubr.msk.bf16.mxu1 %vm3052_vm8, %v8765_v62 }
0x1516   : > { %3677 = vmatmul.mubr.bf16.gmra.mxu0 %v8764_v63 }
0x1517   : > { %3684 = vmatprep.mubr.bf16.mxu0 %v8768_v0 }
0x1519   : > { %3774 = vmatmul.mubr.bf16.gmra.mxu1 %v8767_v2 }
0x151a   : > { %7686 = vmatprep.mubr.msk.bf16.mxu1 %vm3052_vm8, %v8771_v4 }
0x151e   : > { %3685 = vmatmul.mubr.bf16.gmra.mxu0 %v8770_v6 }
0x151f   : > { %3692 = vmatprep.mubr.bf16.mxu0 %v8774_v7 }
0x1521   : > { %3782 = vmatmul.mubr.bf16.gmra.mxu1 %v8773_v8 }
0x1522   : > { %7687 = vmatprep.mubr.msk.bf16.mxu1 %vm3052_vm8, %v8777_v46 }
0x1526   : > { %3693 = vmatmul.mubr.bf16.gmra.mxu0 %v8776_v47 }
0x1527   : > { %3700 = vmatprep.mubr.bf16.mxu0 %v8780_v49 }
0x1529   : > { %3790 = vmatmul.mubr.bf16.gmra.mxu1 %v8779_v58 }
0x152a   : > { %7688 = vmatprep.mubr.msk.bf16.mxu1 %vm3052_vm8, %v8783_v9 }
0x152e   : > { %3701 = vmatmul.mubr.bf16.gmra.mxu0 %v8782_v10 }
0x152f   : > { %3708 = vmatprep.mubr.bf16.mxu0 %v8786_v11 }
0x1531   : > { %3798 = vmatmul.mubr.bf16.gmra.mxu1 %v8785_v13 }
0x1532   : > { %7689 = vmatprep.mubr.msk.bf16.mxu1 %vm3052_vm8, %v8789_v15 }
0x1536   : > { %3709 = vmatmul.mubr.bf16.gmra.mxu0 %v8788_v16 }
0x1539   : > { %3806 = vmatmul.mubr.bf16.gmra.mxu1 %v8791_v18 }
0x15be   : > { %v8063_v20 = vpop.f32.mrf.mxu0 }
0x15c0   : > { %v8064_v23 = vpop.f32.mrf.mxu0 }
0x15c1   : > { %v8065_v26 = vadd.f32 %v8064_v23, %v8063_v20  ;;  %v3751_v27 = vpop.f32.mrf.mxu1 }
0x15c2   : > { %v8066_v28 = vpop.f32.mrf.mxu0 }
0x15c3   : > { %v10040_v31 = vadd.f32 %v8065_v26, %v3751_v27  ;;  %v3753_v32 = vpop.f32.mrf.mxu1 }
0x15c4   : > { %v8067_v50 = vpop.f32.mrf.mxu0 }
0x15c5   : > { %v8068_v33 = vadd.f32 %v8067_v50, %v8066_v28  ;;  %v3754_v34 = vpop.f32.mrf.mxu1 }
0x15c6   : > { %v8069_v35 = vpop.f32.mrf.mxu0 }
0x15c7   : > { %v10042_v36 = vadd.f32 %v8068_v33, %v3754_v34  ;;  %v3756_v37 = vpop.f32.mrf.mxu1 }
0x15c8   : > { %v8070_v39 = vpop.f32.mrf.mxu0 }
0x15c9   : > { %v8071_v40 = vadd.f32 %v8070_v39, %v8069_v35  ;;  %v3759_v43 = vpop.f32.mrf.mxu1 }
0x15ca   : > { %v8072_v48 = vpop.f32.mrf.mxu0 }
0x15cb   : > { %v10044_v44 = vadd.f32 %v8071_v40, %v3759_v43  ;;  %v3761_v45 = vpop.f32.mrf.mxu1 }
0x15cc   : > { %v8073_v51 = vpop.f32.mrf.mxu0 }
0x15cd   : > { %v8074_v52 = vadd.f32 %v8073_v51, %v8072_v48  ;;  %v3762_v53 = vpop.f32.mrf.mxu1 }
0x15ce   : > { %v10046_v54 = vpop.f32.mrf.mxu0 }
0x15cf   : > { %v10048_v55 = vadd.f32 %v8074_v52, %v3762_v53  ;;  %v3764_v56 = vpop.f32.mrf.mxu1 }
0x15d0   : > { %v10050_v57 = vpop.f32.mrf.mxu0 }
0x15d1   : > { %v10052_v59 = vpop.f32.mrf.mxu1 }
0x15d2   : > { %v10054_v61 = vpop.f32.mrf.mxu0 }
0x15d3   : > { %v3769_v62 = vpop.f32.mrf.mxu1 }
0x15d4   : > { %v10056_v63 = vpop.f32.mrf.mxu0 }
0x15d5   : > { %v10058_v0 = vpop.f32.mrf.mxu1 }
0x15d6   : > { %v8081_v2 = vpop.f32.mrf.mxu0 }
0x15d7   : > { %v3772_v4 = vpop.f32.mrf.mxu1 }
0x15d8   : > { %v8082_v6 = vpop.f32.mrf.mxu0 }
0x15d9   : > { %v10060_v7 = vpop.f32.mrf.mxu1 }
0x15da   : > { %v10062_v8 = vpop.f32.mrf.mxu0 }
0x15db   : > { %v3777_v46 = vpop.f32.mrf.mxu1 }
0x15dc   : > { %v10064_v47 = vpop.f32.mrf.mxu0  ;;  %v3826_v46 = vld [vmem:[%s9165_s20 + $0x158] sm:$0xff] }
0x15dd   : > { %v10066_v49 = vpop.f32.mrf.mxu1 }
0x15de   : > { %v8087_v58 = vpop.f32.mrf.mxu0 }
0x15df   : > { %v3780_v9 = vpop.f32.mrf.mxu1 }
0x15e0   : > { %v8088_v10 = vpop.f32.mrf.mxu0 }
0x15e1   : > { %v3783_v11 = vpop.f32.mrf.mxu1 }
0x15e2   : > { %v8090_v13 = vpop.f32.mrf.mxu0 }
0x15e3   : > { %v3785_v15 = vpop.f32.mrf.mxu1 }
0x15e4   : > { %v8091_v16 = vpop.f32.mrf.mxu0 }
0x15e5   : > { %v10068_v18 = vpop.f32.mrf.mxu1 }
0x15e6   : > { %v8093_v20 = vpop.f32.mrf.mxu0 }
0x15e7   : > { %v3788_v23 = vpop.f32.mrf.mxu1 }
0x15e8   : > { %v8094_v26 = vpop.f32.mrf.mxu0 }
0x15e9   : > { %v3791_v27 = vpop.f32.mrf.mxu1  ;;  %v8095_v52 = vadd.f32 %v8094_v26, %v8093_v20 }
0x15ea   : > { %v8096_v28 = vpop.f32.mrf.mxu0 }
0x15eb   : > { %v3793_v32 = vpop.f32.mrf.mxu1 }
0x15ec   : > { %v8097_v50 = vpop.f32.mrf.mxu0  ;;  %v8089_v32 = vadd.f32 %v8088_v10, %v8087_v58 }
0x15ed   : > { %v3794_v33 = vpop.f32.mrf.mxu1 }
0x15ee   : > { %v8099_v34 = vpop.f32.mrf.mxu0 }
0x15ef   : > { %v3796_v35 = vpop.f32.mrf.mxu1 }
0x15f0   : > { %v8100_v37 = vpop.f32.mrf.mxu0  ;;  %v3792_v35 = vadd.f32 %v8095_v52, %v3791_v27  ;;  %v3784_v27 = vadd.f32 %v8089_v32, %v3783_v11  ;;  %v3845_v11 = vld [vmem:[%s9170_s27 + $0x170] sm:$0xff] }
0x15f1   : > { %v3799_v39 = vpop.f32.mrf.mxu1  ;;  %v8101_v43 = vadd.f32 %v8100_v37, %v8099_v34  ;;  %v8098_v34 = vadd.f32 %v8097_v50, %v8096_v28  ;;  %v3828_v37 = vld [vmem:[%s9165_s20 + $0x168] sm:$0xff]  ;;  %v8092_v28 = vadd.f32 %v8091_v16, %v8090_v13  ;;  %v8086_v13 = vadd.f32 %v10064_v47, %v10062_v8 }
0x15f2   : > { %v8102_v40 = vpop.f32.mrf.mxu0  ;;  %v3856_v50 = vmul.f32 %v3824_v17, %v3792_v35  ;;  %v8080_v47 = vadd.f32 %v10056_v63, %v10054_v61 }
0x15f3   : > { %v3801_v48 = vpop.f32.mrf.mxu1  ;;  %v3800_v56 = vadd.f32 %v8101_v43, %v3799_v39  ;;  %v3827_v43 = vld [vmem:[%s9165_s20 + $0x160] sm:$0xff]  ;;  %v3795_v52 = vadd.f32 %v8098_v34, %v3794_v33  ;;  %v3787_v35 = vadd.f32 %v8092_v28, %v10068_v18  ;;  %v3836_v28 = vld [vmem:[%s9170_s27 + $0x128] sm:$0xff] }
0x15f4   : > { %v8103_v45 = vpop.f32.mrf.mxu0 }
0x15f5   : > { %v3802_v51 = vpop.f32.mrf.mxu1  ;;  %v8104_v62 = vadd.f32 %v8103_v45, %v8102_v40  ;;  %v3858_v29 = vmul.f32 %v3826_v46, %v3800_v56  ;;  %v3842_v40 = vld [vmem:[%s9170_s27 + $0x158] sm:$0xff]  ;;  %v3844_v45 = vld [vmem:[%s9170_s27 + $0x168] sm:$0xff]  ;;  %v3825_v46 = vld [vmem:[%s9165_s20 + $0x150] sm:$0xff] }
0x15f6   : > { %v8105_v53 = vpop.f32.mrf.mxu0  ;;  %v3822_v56 = vld [vmem:[%s9165_s20 + $0x138] sm:$0xff] }
0x15f7   : > { %v3804_v4 = vpop.f32.mrf.mxu1  ;;  %v3803_v20 = vadd.f32 %v8104_v62, %v3802_v51  ;;  %v3829_v51 = vld [vmem:[%s9165_s20 + $0x170] sm:$0xff]  ;;  %v3840_v62 = vld [vmem:[%s9170_s27 + $0x148] sm:$0xff]  ;;  %v3854_v32 = vmul.f32 %v3822_v56, %v3784_v27 }
0x15f8   : > { %v8106_v9 = vpop.f32.mrf.mxu0  ;;  %v3872_v34 = vadd.f32 %v3856_v50, %v3840_v62 }
0x15f9   : > { %v8107_v15 = vadd.f32 %v8106_v9, %v8105_v53  ;;  %v3807_v23 = vpop.f32.mrf.mxu1  ;;  %v8083_v53 = vadd.f32 %v8082_v6, %v8081_v2 }
0x15fa   : > { %v8108_v48 = vpop.f32.mrf.mxu0  ;;  %v3888_v27 = vmax.f32 %v3872_v34, 0.0 }
0x15fb   : > { %v3808_v26 = vadd.f32 %v8107_v15, %v3807_v23  ;;  %v3809_v39 = vpop.f32.mrf.mxu1  ;;  %v3874_v15 = vadd.f32 %v3858_v29, %v3842_v40  ;;  %v3859_v23 = vmul.f32 %v3827_v43, %v3803_v20  ;;  %v3776_v17 = vadd.f32 %v8083_v53, %v10060_v7  ;;  %v3820_v29 = vld [vmem:[%s9165_s20 + $0x128] sm:$0xff]  ;;  %v3823_v40 = vld [vmem:[%s9165_s20 + $0x140] sm:$0xff]  ;;  %v3818_v53 = vld [vmem:[%s9165_s20 + $0x118] sm:$0xff] }
0x15fc   : > { %v8109_v4 = vpop.f32.mrf.mxu0  ;;  %v3857_v20 = vmul.f32 %v3825_v46, %v3795_v52 }
0x15fd   : > { %v3860_v9 = vmul.f32 %v3828_v37, %v3808_v26  ;;  %v8110_v58 = vadd.f32 %v8109_v4, %v8108_v48  ;;  %v3810_v10 = vpop.f32.mrf.mxu1  ;;  %v8077_v37 = vadd.f32 %v10050_v57, %v10046_v54  ;;  %v3843_v48 = vld [vmem:[%s9170_s27 + $0x160] sm:$0xff]  ;;  %v3838_v26 = vld [vmem:[%s9170_s27 + $0x138] sm:$0xff]  ;;  %v3890_v54 = vmax.f32 %v3874_v15, 0.0 }
0x15fe   : > { %v3875_v57 = vadd.f32 %v3859_v23, %v3843_v48  ;;  %v3852_v4 = vmul.f32 %v3820_v29, %v3776_v17  ;;  %v3816_v23 = vld [vmem:[%s9165_s20 + $0x108] sm:$0xff]  ;;  %v3837_v17 = vld [vmem:[%s9170_s27 + $0x130] sm:$0xff]  ;;  %v3814_v29 = vld [vmem:[%s9165_s20 + $0xf8] sm:$0xff] }
0x15ff   : > { %v3876_v39 = vadd.f32 %v3860_v9, %v3844_v45  ;;  %v3811_v2 = vadd.f32 %v8110_v58, %v3810_v10  ;;  %v3812_v6 = vpop.f32.mrf.mxu1  ;;  %v3841_v45 = vld [vmem:[%s9170_s27 + $0x150] sm:$0xff]  ;;  %v3768_v8 = vadd.f32 %v8077_v37, %v10052_v59  ;;  %v3779_v9 = vadd.f32 %v8086_v13, %v10066_v49 }
0x1600   : > { %v3870_v58 = vadd.f32 %v3854_v32, %v3838_v26  ;;  %v3855_v10 = vmul.f32 %v3823_v40, %v3787_v35  ;;  %v3821_v59 = vld [vmem:[%s9165_s20 + $0x130] sm:$0xff]  ;;  %v3873_v50 = vadd.f32 %v3857_v20, %v3841_v45  ;;  %v7924_v52 = vpack.c.bf16 %v3890_v54, %v3890_v54  ;;  %v3832_v32 = vld [vmem:[%s9170_s27 + $0x108] sm:$0xff]  ;;  %v3835_v54 = vld [vmem:[%s9170_s27 + $0x120] sm:$0xff] }
0x1601   : > { %v3892_v16 = vmax.f32 %v3876_v39, 0.0  ;;  %v3861_v33 = vmul.f32 %v3829_v51, %v3811_v2  ;;  %v3891_v61 = vmax.f32 %v3875_v57, 0.0  ;;  %v3839_v51 = vld [vmem:[%s9170_s27 + $0x140] sm:$0xff]  ;;  %v3850_v56 = vmul.f32 %v3818_v53, %v3768_v8  ;;  %v3834_v39 = vld [vmem:[%s9170_s27 + $0x118] sm:$0xff]  ;;  %v3817_v35 = vld [vmem:[%s9165_s20 + $0x110] sm:$0xff] }
0x1602   : > { %v3771_v49 = vadd.f32 %v8080_v47, %v10058_v0  ;;  %v3868_v62 = vadd.f32 %v3852_v4, %v3836_v28  ;;  %v3853_v46 = vmul.f32 %v3821_v59, %v3779_v9  ;;  %v3886_v15 = vmax.f32 %v3870_v58, 0.0  ;;  %v3819_v2 = vld [vmem:[%s9165_s20 + $0x120] sm:$0xff]  ;;  %v3830_v45 = vld [vmem:[%s9170_s27 + $0xf8] sm:$0xff]  ;;  %v3833_v9 = vld [vmem:[%s9170_s27 + $0x110] sm:$0xff] }
0x1603   : > { %v7926_v43 = vpack.c.bf16 %v3892_v16, %v3892_v16  ;;  %v3877_v7 = vadd.f32 %v3861_v33, %v3845_v11  ;;  %v3871_v6 = vadd.f32 %v3855_v10, %v3839_v51  ;;  %v7922_v37 = vpack.c.bf16 %v3888_v27, %v3888_v27  ;;  %v3815_v8 = vld [vmem:[%s9165_s20 + $0x100] sm:$0xff] }
0x1604   : > { %v3889_v48 = vmax.f32 %v3873_v50, 0.0  ;;  %v7925_v11 = vpack.c.bf16 %v3891_v61, %v3891_v61  ;;  %v3848_v0 = vmul.f32 %v3816_v23, %v10044_v44  ;;  %v3866_v13 = vadd.f32 %v3850_v56, %v3834_v39  ;;  %v3831_v50 = vld [vmem:[%s9170_s27 + $0x100] sm:$0xff] }
0x1605   : > { %v3893_v18 = vmax.f32 %v3877_v7, 0.0  ;;  %3987 = vrot.lane.b32.xlu0 %v7926_v43, %s11308_s0  ;;  %v3851_v16 = vmul.f32 %v3819_v2, %v3771_v49  ;;  %v3884_v33 = vmax.f32 %v3868_v62, 0.0  ;;  %v3869_v34 = vadd.f32 %v3853_v46, %v3837_v17 }
0x1606   : > { %v7920_v20 = vpack.c.bf16 %v3886_v15, %v3886_v15  ;;  %v3887_v26 = vmax.f32 %v3871_v6, 0.0  ;;  %v7923_v40 = vpack.c.bf16 %v3889_v48, %v3889_v48  ;;  %v3846_v44 = vmul.f32 %v3814_v29, %v10040_v31 }
0x1607   : > { %v7927_v63 = vpack.c.bf16 %v3893_v18, %v3893_v18  ;;  %v3864_v57 = vadd.f32 %v3848_v0, %v3832_v32  ;;  %v3849_v43 = vmul.f32 %v3817_v35, %v10048_v55  ;;  %v3882_v7 = vmax.f32 %v3866_v13, 0.0 }
0x1608   : > { %v3867_v47 = vadd.f32 %v3851_v16, %v3835_v54  ;;  %v7918_v4 = vpack.c.bf16 %v3884_v33, %v3884_v33  ;;  %v3885_v18 = vmax.f32 %v3869_v34, 0.0  ;;  %v7921_v53 = vpack.c.bf16 %v3887_v26, %v3887_v26 }
0x1609   : > { %3989 = vrot.lane.b32.xlu1 %v7927_v63, %s11308_s0  ;;  %3983 = vrot.lane.b32.xlu0 %v7924_v52, %s11308_s0  ;;  %v3862_v58 = vadd.f32 %v3846_v44, %v3830_v45  ;;  %v3847_v10 = vmul.f32 %v3815_v8, %v10042_v36  ;;  %v3880_v31 = vmax.f32 %v3864_v57, 0.0  ;;  %v3865_v27 = vadd.f32 %v3849_v43, %v3833_v9  ;;  %v4691_v9 = vld [vmem:[%s9165_s20 + $0x1a8] sm:$0xff] }
0x160a   : > { %v7916_v28 = vpack.c.bf16 %v3882_v7, %v3882_v7  ;;  %v3883_v55 = vmax.f32 %v3867_v47, 0.0  ;;  %v7919_v59 = vpack.c.bf16 %v3885_v18, %v3885_v18  ;;  %v11370_v23 = vmov 0   ;;  %v8800_v18 = vld [vmem:[%s11371_s11 + $0x4] ss:$28 sps:$4 sm:$0xff]  }
0x160b   : > { %v3878_v52 = vmax.f32 %v3862_v58, 0.0  ;;  %v3863_v61 = vadd.f32 %v3847_v10, %v3831_v50  ;;  %v7914_v63 = vpack.c.bf16 %v3880_v31, %v3880_v31  ;;  %v3881_v51 = vmax.f32 %v3865_v27, 0.0  ;;  %4457 = vmatprep.mubr.bf16.mxu0 %v8800_v18  ;;  %v4699_v58 = vld [vmem:[%s9170_s27 + $0x1a8] sm:$0xff]  ;;  %v4692_v10 = vld [vmem:[%s9165_s20 + $0x1b0] sm:$0xff]  ;;  %v4689_v31 = vld [vmem:[%s9165_s20 + $0x198] sm:$0xff] }
0x160c   : > { %v7917_v56 = vpack.c.bf16 %v3883_v55, %v3883_v55  ;;  %v4700_v27 = vld [vmem:[%s9170_s27 + $0x1b0] sm:$0xff]  ;;  %v4690_v55 = vld [vmem:[%s9165_s20 + $0x1a0] sm:$0xff] }
0x160d   : > { %3985 = vrot.lane.b32.xlu1 %v7925_v11, %s11308_s0  ;;  %3979 = vrot.lane.b32.xlu0 %v7922_v37, %s11308_s0  ;;  %v7912_v36 = vpack.c.bf16 %v3878_v52, %v3878_v52  ;;  %v3879_v49 = vmax.f32 %v3863_v61, 0.0  ;;  %v7915_v62 = vpack.c.bf16 %v3881_v51, %v3881_v51  ;;  %v4698_v50 = vld [vmem:[%s9170_s27 + $0x1a0] sm:$0xff]  ;;  %v4695_v52 = vld [vmem:[%s9170_s27 + $0x188] sm:$0xff] }
0x160e   : > { %v4688_v61 = vld [vmem:[%s9165_s20 + $0x190] sm:$0xff]  ;;  %v4685_v51 = vld [vmem:[%s9165_s20 + $0x178] sm:$0xff] }
0x160f   : > { %v7913_v46 = vpack.c.bf16 %v3879_v49, %v3879_v49 }
0x1611   : > { %3981 = vrot.lane.b32.xlu1 %v7923_v40, %s11308_s0  ;;  %3975 = vrot.lane.b32.xlu0 %v7920_v20, %s11308_s0 }
0x1615   : > { %3977 = vrot.lane.b32.xlu1 %v7921_v53, %s11308_s0  ;;  %3971 = vrot.lane.b32.xlu0 %v7918_v4, %s11308_s0  ;;  %v8818_v53 = vld [vmem:[%s11371_s11 + $0x14] ss:$28 sps:$4 sm:$0xff]  }
0x1616   : > { %4587 = vmatprep.mubr.bf16.mxu1 %v8818_v53 }
0x1619   : > { %3973 = vrot.lane.b32.xlu1 %v7919_v59, %s11308_s0  ;;  %3967 = vrot.lane.b32.xlu0 %v7916_v28, %s11308_s0  ;;  %v4697_v28 = vld [vmem:[%s9170_s27 + $0x198] sm:$0xff]  ;;  %v4687_v59 = vld [vmem:[%s9165_s20 + $0x188] sm:$0xff] }
0x161d   : > { %3969 = vrot.lane.b32.xlu1 %v7917_v56, %s11308_s0  ;;  %3963 = vrot.lane.b32.xlu0 %v7914_v63, %s11308_s0  ;;  %v4696_v56 = vld [vmem:[%s9170_s27 + $0x190] sm:$0xff] }
0x1621   : > { %3965 = vrot.lane.b32.xlu1 %v7915_v62, %s11308_s0  ;;  %3959 = vrot.lane.b32.xlu0 %v7912_v36, %s11308_s0  ;;  %v4693_v62 = vld [vmem:[%s9170_s27 + $0x178] sm:$0xff] }
0x1625   : > { %3961 = vrot.lane.b32.xlu1 %v7913_v46, %s11308_s0  ;;  %v4686_v46 = vld [vmem:[%s9165_s20 + $0x180] sm:$0xff] }
0x1677   : > { %v3988_v15 = vpop.permute.xlu0 %3987 }
0x1678   : > { %4022 = vst.msk [vmem:[#allocation2 + $0x70] sm:$0xf] %vm4007_vm9, %v3988_v15 }
0x1679   : > { %4039 = vst.msk [vmem:[#allocation2 + $0x70] sm:$0xf] %vm4024_vm6, %v11370_v23 }
0x167b   : > { %v3990_v39 = vpop.permute.xlu1 %3989  ;;  %v3984_v2 = vpop.permute.xlu0 %3983 }
0x167c   : > { %4023 = vst.msk [vmem:[#allocation2 + $0x78] sm:$0xf] %vm4007_vm9, %v3990_v39  ;;  %4020 = vst.msk [vmem:[#allocation2 + $0x60] sm:$0xf] %vm4007_vm9, %v3984_v2  ;;  %v4694_v2 = vld [vmem:[%s9170_s27 + $0x180] sm:$0xff] }
0x167d   : > { %4040 = vst.msk [vmem:[#allocation2 + $0x78] sm:$0xf] %vm4024_vm6, %v11370_v23  ;;  %4037 = vst.msk [vmem:[#allocation2 + $0x60] sm:$0xf] %vm4024_vm6, %v11370_v23 }
0x167f   : > { %v3986_v6 = vpop.permute.xlu1 %3985  ;;  %v3980_v37 = vpop.permute.xlu0 %3979 }
0x1680   : > { %4021 = vst.msk [vmem:[#allocation2 + $0x68] sm:$0xf] %vm4007_vm9, %v3986_v6  ;;  %4018 = vst.msk [vmem:[#allocation2 + $0x50] sm:$0xf] %vm4007_vm9, %v3980_v37 }
0x1681   : > { %4038 = vst.msk [vmem:[#allocation2 + $0x68] sm:$0xf] %vm4024_vm6, %v11370_v23  ;;  %4035 = vst.msk [vmem:[#allocation2 + $0x50] sm:$0xf] %vm4024_vm6, %v11370_v23 }
0x1683   : > { %v3982_v48 = vpop.permute.xlu1 %3981  ;;  %v3976_v11 = vpop.permute.xlu0 %3975 }
0x1684   : > { %4019 = vst.msk [vmem:[#allocation2 + $0x58] sm:$0xf] %vm4007_vm9, %v3982_v48  ;;  %4016 = vst.msk [vmem:[#allocation2 + $0x40] sm:$0xf] %vm4007_vm9, %v3976_v11  ;;  %v10217_v8 = vld [vmem:[#allocation2 + $0x70] ss:$8 sps:$4 sm:$0xff]  }
0x1685   : > { %4036 = vst.msk [vmem:[#allocation2 + $0x58] sm:$0xf] %vm4024_vm6, %v11370_v23  ;;  %4033 = vst.msk [vmem:[#allocation2 + $0x40] sm:$0xf] %vm4024_vm6, %v11370_v23 }
0x1687   : > { %v3978_v17 = vpop.permute.xlu1 %3977  ;;  %v3972_v0 = vpop.permute.xlu0 %3971 }
0x1688   : > { %4017 = vst.msk [vmem:[#allocation2 + $0x48] sm:$0xf] %vm4007_vm9, %v3978_v17  ;;  %4014 = vst.msk [vmem:[#allocation2 + $0x30] sm:$0xf] %vm4007_vm9, %v3972_v0  ;;  %v10225_v4 = vld [vmem:[#allocation2 + $0x60] ss:$8 sps:$4 sm:$0xff]  }
0x1689   : > { %4034 = vst.msk [vmem:[#allocation2 + $0x48] sm:$0xf] %vm4024_vm6, %v11370_v23  ;;  %4031 = vst.msk [vmem:[#allocation2 + $0x30] sm:$0xf] %vm4024_vm6, %v11370_v23 }
0x168b   : > { %v3974_v13 = vpop.permute.xlu1 %3973  ;;  %v3968_v16 = vpop.permute.xlu0 %3967 }
0x168c   : > { %4015 = vst.msk [vmem:[#allocation2 + $0x38] sm:$0xf] %vm4007_vm9, %v3974_v13  ;;  %4012 = vst.msk [vmem:[#allocation2 + $0x20] sm:$0xf] %vm4007_vm9, %v3968_v16  ;;  %v10211_v45 = vld [vmem:[#allocation2 + $0x50] ss:$8 sps:$4 sm:$0xff]  }
0x168d   : > { %4032 = vst.msk [vmem:[#allocation2 + $0x38] sm:$0xf] %vm4024_vm6, %v11370_v23  ;;  %4029 = vst.msk [vmem:[#allocation2 + $0x20] sm:$0xf] %vm4024_vm6, %v11370_v23 }
0x168f   : > { %v3970_v33 = vpop.permute.xlu1 %3969  ;;  %v3964_v29 = vpop.permute.xlu0 %3963 }
0x1690   : > { %4013 = vst.msk [vmem:[#allocation2 + $0x28] sm:$0xf] %vm4007_vm9, %v3970_v33  ;;  %4010 = vst.msk [vmem:[#allocation2 + $0x10] sm:$0xf] %vm4007_vm9, %v3964_v29  ;;  %v10219_v47 = vld [vmem:[#allocation2 + $0x40] ss:$8 sps:$4 sm:$0xff]  }
0x1691   : > { %4030 = vst.msk [vmem:[#allocation2 + $0x28] sm:$0xf] %vm4024_vm6, %v11370_v23  ;;  %4027 = vst.msk [vmem:[#allocation2 + $0x10] sm:$0xf] %vm4024_vm6, %v11370_v23 }
0x1693   : > { %v3966_v32 = vpop.permute.xlu1 %3965  ;;  %v3960_v35 = vpop.permute.xlu0 %3959 }
0x1694   : > { %4011 = vst.msk [vmem:[#allocation2 + $0x18] sm:$0xf] %vm4007_vm9, %v3966_v32  ;;  %4008 = vst.msk [vmem:[#allocation2] sm:$0xf] %vm4007_vm9, %v3960_v35  ;;  %v10174_v34 = vld [vmem:[#allocation2 + $0x30] ss:$8 sps:$4 sm:$0xff]  }
0x1695   : > { %4028 = vst.msk [vmem:[#allocation2 + $0x18] sm:$0xf] %vm4024_vm6, %v11370_v23  ;;  %4025 = vst.msk [vmem:[#allocation2] sm:$0xf] %vm4024_vm6, %v11370_v23 }
0x1696   : > { %4815 = vst.msk [vmem:[#allocation2 + $0x30] sm:$0xf] %vm1220_vm12, %v11370_v23  ;;  %4816 = vst.msk [vmem:[#allocation2 + $0x38] sm:$0xf] %vm1220_vm12, %v11370_v23 }
0x1697   : > { %v3962_v20 = vpop.permute.xlu1 %3961 }
0x1698   : > { %v4043_v26 = vld [vmem:[#allocation2 + $0x10] sm:$0xf]  ;;  %4009 = vst.msk [vmem:[#allocation2 + $0x8] sm:$0xf] %vm4007_vm9, %v3962_v20  ;;  %v10185_v40 = vld [vmem:[#allocation2 + $0x20] ss:$8 sps:$4 sm:$0xff]  }
0x1699   : > { %4811 = vst.msk [vmem:[#allocation2 + $0x10] sm:$0xf] %vm1220_vm12, %v11370_v23  ;;  %4813 = vst.msk [vmem:[#allocation2 + $0x20] sm:$0xf] %vm1220_vm12, %v11370_v23  ;;  %vm5815_vm9 = vcmask 85040  }
0x169a   : > { %4026 = vst.msk [vmem:[#allocation2 + $0x8] sm:$0xf] %vm4024_vm6, %v11370_v23  ;;  %vm5678_vm6 = vcmask 15360  }
0x169b   : > { %4814 = vst.msk [vmem:[#allocation2 + $0x28] sm:$0xf] %vm1220_vm12, %v11370_v23 }
0x169c   : > { %v4044_v54 = vld [vmem:[#allocation2 + $0x18] sm:$0xf]  ;;  %v4041_v44 = vld [vmem:[#allocation2] sm:$0xf] }
0x169d   : > { %4812 = vst.msk [vmem:[#allocation2 + $0x18] sm:$0xf] %vm1220_vm12, %v11370_v23  ;;  %v10197_v57 = vcombine.low %v4043_v26, %v4044_v54  ;;  %4809 = vst.msk [vmem:[#allocation2] sm:$0xf] %vm1220_vm12, %v11370_v23 }
0x169f   : > { %4107 = vrot.lane.b32.xlu0 %v10197_v57, %s11321_s26 }
0x16a1   : > { %v4042_v43 = vld [vmem:[#allocation2 + $0x8] sm:$0xf] }
0x16a2   : > { %4810 = vst.msk [vmem:[#allocation2 + $0x8] sm:$0xf] %vm1220_vm12, %v11370_v23  ;;  %v10205_v7 = vcombine.low %v4041_v44, %v4042_v43  ;;  %v8798_v43 = vld [vmem:[%s11371_s11] ss:$28 sps:$4 sm:$0xff]  }
0x16a3   : > { %4111 = vrot.lane.b32.xlu0 %v10174_v34, %s11321_s26 }
0x16a4   : > { %4105 = vrot.lane.b32.xlu1 %v10205_v7, %s11321_s26 }
0x16a7   : > { %4115 = vrot.lane.b32.xlu0 %v10211_v45, %s11321_s26 }
0x16a8   : > { %4109 = vrot.lane.b32.xlu1 %v10185_v40, %s11321_s26 }
0x16ab   : > { %4119 = vrot.lane.b32.xlu0 %v10217_v8, %s11321_s26 }
0x16ac   : > { %4113 = vrot.lane.b32.xlu1 %v10219_v47, %s11321_s26 }
0x16af   : > { %4165 = vrot.lane.b32.xlu0 %v10225_v4, %s11312_s28 }
0x16b0   : > { %4117 = vrot.lane.b32.xlu1 %v10225_v4, %s11321_s26 }
0x16b3   : > { %4163 = vrot.lane.b32.xlu0 %v10211_v45, %s11312_s28 }
0x16b4   : > { %4141 = vrot.lane.b32.xlu1 %v10225_v4, %s11318_s18 }
0x16b7   : > { %4161 = vrot.lane.b32.xlu0 %v10219_v47, %s11312_s28 }
0x16b8   : > { %4139 = vrot.lane.b32.xlu1 %v10211_v45, %s11318_s18 }
0x16bb   : > { %4213 = vrot.lane.b32.xlu0 %v10225_v4, %s11314_s23 }
0x16bc   : > { %4137 = vrot.lane.b32.xlu1 %v10219_v47, %s11318_s18 }
0x16bf   : > { %4159 = vrot.lane.b32.xlu0 %v10174_v34, %s11312_s28 }
0x16c0   : > { %4189 = vrot.lane.b32.xlu1 %v10225_v4, %s11310_s22 }
0x16c3   : > { %4211 = vrot.lane.b32.xlu0 %v10211_v45, %s11314_s23 }
0x16c4   : > { %4135 = vrot.lane.b32.xlu1 %v10174_v34, %s11318_s18 }
0x16c7   : > { %4157 = vrot.lane.b32.xlu0 %v10185_v40, %s11312_s28 }
0x16c8   : > { %4187 = vrot.lane.b32.xlu1 %v10211_v45, %s11310_s22 }
0x16cb   : > { %4167 = vrot.lane.b32.xlu0 %v10217_v8, %s11312_s28 }
0x16cc   : > { %4143 = vrot.lane.b32.xlu1 %v10217_v8, %s11318_s18 }
0x16cf   : > { %4209 = vrot.lane.b32.xlu0 %v10219_v47, %s11314_s23 }
0x16d0   : > { %4133 = vrot.lane.b32.xlu1 %v10185_v40, %s11318_s18 }
0x16d3   : > { %4215 = vrot.lane.b32.xlu0 %v10217_v8, %s11314_s23 }
0x16d4   : > { %4185 = vrot.lane.b32.xlu1 %v10219_v47, %s11310_s22 }
0x16d7   : > { %4155 = vrot.lane.b32.xlu0 %v10197_v57, %s11312_s28 }
0x16d8   : > { %4191 = vrot.lane.b32.xlu1 %v10217_v8, %s11310_s22 }
0x16db   : > { %4207 = vrot.lane.b32.xlu0 %v10174_v34, %s11314_s23 }
0x16dc   : > { %4131 = vrot.lane.b32.xlu1 %v10197_v57, %s11318_s18 }
0x16df   : > { %4153 = vrot.lane.b32.xlu0 %v10205_v7, %s11312_s28 }
0x16e0   : > { %4183 = vrot.lane.b32.xlu1 %v10174_v34, %s11310_s22 }
0x16e3   : > { %4205 = vrot.lane.b32.xlu0 %v10185_v40, %s11314_s23 }
0x16e4   : > { %4129 = vrot.lane.b32.xlu1 %v10205_v7, %s11318_s18 }
0x16e7   : > { %4179 = vrot.lane.b32.xlu0 %v10197_v57, %s11310_s22 }
0x16e8   : > { %4181 = vrot.lane.b32.xlu1 %v10185_v40, %s11310_s22 }
0x16eb   : > { %4239 = vrot.lane.b32.xlu0 %v10217_v8, %s11316_s16 }
0x16ec   : > { %4203 = vrot.lane.b32.xlu1 %v10197_v57, %s11314_s23 }
0x16ef   : > { %4201 = vrot.lane.b32.xlu0 %v10205_v7, %s11314_s23 }
0x16f0   : > { %4237 = vrot.lane.b32.xlu1 %v10225_v4, %s11316_s16 }
0x16f3   : > { %4235 = vrot.lane.b32.xlu0 %v10211_v45, %s11316_s16 }
0x16f4   : > { %4177 = vrot.lane.b32.xlu1 %v10205_v7, %s11310_s22 }
0x16f7   : > { %4231 = vrot.lane.b32.xlu0 %v10174_v34, %s11316_s16 }
0x16f8   : > { %4233 = vrot.lane.b32.xlu1 %v10219_v47, %s11316_s16 }
0x16fb   : > { %4227 = vrot.lane.b32.xlu0 %v10197_v57, %s11316_s16 }
0x16fc   : > { %4229 = vrot.lane.b32.xlu1 %v10185_v40, %s11316_s16 }
0x16ff   : > { %4733 = vperm.xlu0 %8681, %v4691_v9  }
0x1700   : > { %4225 = vrot.lane.b32.xlu1 %v10205_v7, %s11316_s16 }
0x1703   : > { %4781 = vperm.xlu0 %8681, %v4699_v58   ;;  %v8806_v58 = vld [vmem:[%s11371_s11 + $0x70] ss:$28 sps:$4 sm:$0xff]  }
0x1704   : > { %4738 = vperm.xlu1 %8682, %v4692_v10   ;;  %v8807_v10 = vld [vmem:[%s11371_s11 + $0xac] ss:$28 sps:$4 sm:$0xff]  }
0x1707   : > { %4723 = vperm.xlu0 %8681, %v4689_v31  }
0x1708   : > { %4786 = vperm.xlu1 %8682, %v4700_v27  }
0x170b   : > { %4771 = vperm.xlu0 %8681, %v4697_v28  }
0x170c   : > { %4728 = vperm.xlu1 %8682, %v4690_v55  }
0x170f   : > { %4713 = vperm.xlu0 %8681, %v4687_v59   ;;  %v8809_v59 = vld [vmem:[%s11371_s11 + $0xa8] ss:$28 sps:$4 sm:$0xff]  }
0x1710   : > { %4776 = vperm.xlu1 %8682, %v4698_v50   ;;  %v8812_v50 = vld [vmem:[%s11371_s11 + $0xc] ss:$28 sps:$4 sm:$0xff]  }
0x1711   : > { %v4108_v63 = vpop.permute.xlu0 %4107 }
0x1713   : > { %4761 = vperm.xlu0 %8681, %v4695_v52  }
0x1714   : > { %4718 = vperm.xlu1 %8682, %v4688_v61  }
0x1715   : > { %v4112_v49 = vpop.permute.xlu0 %4111 }
0x1716   : > { %v4106_v36 = vpop.permute.xlu1 %4105 }
0x1717   : > { %4703 = vperm.xlu0 %8681, %v4685_v51  }
0x1718   : > { %4766 = vperm.xlu1 %8682, %v4696_v56   ;;  %v8810_v56 = vld [vmem:[%s11371_s11 + $0x8] ss:$28 sps:$4 sm:$0xff]  }
0x1719   : > { %v4116_v39 = vpop.permute.xlu0 %4115 }
0x171a   : > { %v4110_v15 = vpop.permute.xlu1 %4109 }
0x171b   : > { %4751 = vperm.xlu0 %8681, %v4693_v62  }
0x171c   : > { %4708 = vperm.xlu1 %8682, %v4686_v46  }
0x171d   : > { %v4120_v37 = vpop.permute.xlu0 %4119 }
0x171e   : > { %v4114_v6 = vpop.permute.xlu1 %4113  ;;  %8111 = vmatprep.subr.bf16.mxu0 %v4120_v37 }
0x171f   : > { %8112 = vmatpush3.bf16.msra.mxu0 %v10217_v8 }
0x1720   : > { %4756 = vperm.xlu1 %8682, %v4694_v2   ;;  %v8819_v2 = vld [vmem:[%s11371_s11 + $0x7c] ss:$28 sps:$4 sm:$0xff]  }
0x1721   : > { %v4166_v11 = vpop.permute.xlu0 %4165 }
0x1722   : > { %v4118_v48 = vpop.permute.xlu1 %4117 }
0x1723   : > { %8113 = vmatprep.subr.bf16.mxu0 %v4118_v48  ;;  %v8816_v48 = vld [vmem:[%s11371_s11 + $0x10] ss:$28 sps:$4 sm:$0xff]  }
0x1724   : > { %8114 = vmatpush3.bf16.msra.mxu0 %v10225_v4  ;;  %v8804_v4 = vld [vmem:[%s11371_s11 + $0x74] ss:$28 sps:$4 sm:$0xff]  }
0x1725   : > { %8115 = vmatprep.subr.bf16.mxu0 %v4116_v39  ;;  %v4164_v0 = vpop.permute.xlu0 %4163  ;;  %v8815_v39 = vld [vmem:[%s11371_s11 + $0x40] ss:$28 sps:$4 sm:$0xff]  }
0x1726   : > { %v4142_v17 = vpop.permute.xlu1 %4141 }
0x1728   : > { %8116 = vmatpush3.bf16.msra.mxu0 %v10211_v45  ;;  %v8801_v45 = vld [vmem:[%s11371_s11 + $0x3c] ss:$28 sps:$4 sm:$0xff]  }
0x1729   : > { %8117 = vmatprep.subr.bf16.mxu0 %v4114_v6  ;;  %v4162_v16 = vpop.permute.xlu0 %4161 }
0x172a   : > { %v4140_v13 = vpop.permute.xlu1 %4139 }
0x172c   : > { %8118 = vmatpush3.bf16.msra.mxu0 %v10219_v47 }
0x172d   : > { %8119 = vmatprep.subr.bf16.mxu0 %v4112_v49  ;;  %v4214_v29 = vpop.permute.xlu0 %4213 }
0x172e   : > { %v4138_v33 = vpop.permute.xlu1 %4137 }
0x1730   : > { %8120 = vmatpush3.bf16.msra.mxu0 %v10174_v34 }
0x1731   : > { %8121 = vmatprep.subr.bf16.mxu0 %v4110_v15  ;;  %v4160_v35 = vpop.permute.xlu0 %4159 }
0x1732   : > { %v4190_v32 = vpop.permute.xlu1 %4189 }
0x1734   : > { %8122 = vmatpush3.bf16.msra.mxu0 %v10185_v40 }
0x1735   : > { %8123 = vmatprep.subr.bf16.mxu0 %v4108_v63  ;;  %v4212_v26 = vpop.permute.xlu0 %4211 }
0x1736   : > { %v4136_v20 = vpop.permute.xlu1 %4135 }
0x1738   : > { %8124 = vmatpush3.bf16.msra.mxu0 %v10197_v57  ;;  %v8803_v57 = vld [vmem:[%s11371_s11 + $0x38] ss:$28 sps:$4 sm:$0xff]  }
0x1739   : > { %8125 = vmatprep.subr.bf16.mxu0 %v4106_v36  ;;  %v4158_v44 = vpop.permute.xlu0 %4157  ;;  %v8813_v36 = vld [vmem:[%s11371_s11 + $0x44] ss:$28 sps:$4 sm:$0xff]  }
0x173a   : > { %v4188_v54 = vpop.permute.xlu1 %4187 }
0x173c   : > { %8126 = vmatpush3.bf16.msra.mxu0 %v10205_v7 }
0x173d   : > { %v4168_v8 = vpop.permute.xlu0 %4167 }
0x173e   : > { %v4144_v34 = vpop.permute.xlu1 %4143  ;;  %8151 = vmatprep.subr.bf16.mxu0 %v4168_v8  ;;  %v8835_v8 = vld [vmem:[%s11371_s11 + $0xb8] ss:$28 sps:$4 sm:$0xff]  }
0x173f   : > { %4458 = vmatmul.mubr.bf16.vlgmr.msra.gmra.mxu0 %v8798_v43  ;;  %v8833_v43 = vld [vmem:[%s11371_s11 + $0xbc] ss:$28 sps:$4 sm:$0xff]  }
0x1740   : > { %8152 = vmatpush3.bf16.msra.mxu0 %v4144_v34  ;;  %4465 = vmatprep.mubr.bf16.mxu0 %v8801_v45  ;;  %v8832_v45 = vld [vmem:[%s11371_s11 + $0x50] ss:$28 sps:$4 sm:$0xff]   ;;  %v8836_v34 = vld [vmem:[%s11371_s11 + $0x88] ss:$28 sps:$4 sm:$0xff]  }
0x1741   : > { %8153 = vmatprep.subr.bf16.mxu0 %v4166_v11  ;;  %v4210_v47 = vpop.permute.xlu0 %4209  ;;  %v8822_v11 = vld [vmem:[%s11371_s11 + $0x4c] ss:$28 sps:$4 sm:$0xff]  }
0x1742   : > { %v4134_v40 = vpop.permute.xlu1 %4133 }
0x1744   : > { %8154 = vmatpush3.bf16.msra.mxu0 %v4142_v17 }
0x1745   : > { %8155 = vmatprep.subr.bf16.mxu0 %v4164_v0  ;;  %v4216_v53 = vpop.permute.xlu0 %4215 }
0x1746   : > { %v4186_v18 = vpop.permute.xlu1 %4185  ;;  %8191 = vmatprep.subr.bf16.mxu1 %v4216_v53 }
0x1747   : > { %4466 = vmatmul.mubr.bf16.gmra.mxu0 %v8803_v57 }
0x1748   : > { %8156 = vmatpush3.bf16.msra.mxu0 %v4140_v13  ;;  %4473 = vmatprep.mubr.bf16.mxu0 %v8804_v4  ;;  %v8821_v13 = vld [vmem:[%s11371_s11 + $0x78] ss:$28 sps:$4 sm:$0xff]  }
0x1749   : > { %8157 = vmatprep.subr.bf16.mxu0 %v4162_v16  ;;  %v4156_v9 = vpop.permute.xlu0 %4155  ;;  %v8825_v16 = vld [vmem:[%s11371_s11 + $0xb4] ss:$28 sps:$4 sm:$0xff]  }
0x174a   : > { %v4192_v7 = vpop.permute.xlu1 %4191 }
0x174b   : > { %8192 = vmatpush3.bf16.msra.mxu1 %v4192_v7 }
0x174c   : > { %8158 = vmatpush3.bf16.msra.mxu0 %v4138_v33  ;;  %8193 = vmatprep.subr.bf16.mxu1 %v4214_v29  ;;  %v8824_v33 = vld [vmem:[%s11371_s11 + $0x48] ss:$28 sps:$4 sm:$0xff]  }
0x174d   : > { %8159 = vmatprep.subr.bf16.mxu0 %v4160_v35  ;;  %v4208_v27 = vpop.permute.xlu0 %4207 }
0x174e   : > { %v4132_v31 = vpop.permute.xlu1 %4131 }
0x174f   : > { %4474 = vmatmul.mubr.bf16.gmra.mxu0 %v8806_v58  ;;  %8194 = vmatpush3.bf16.msra.mxu1 %v4190_v32  ;;  %v8828_v32 = vld [vmem:[%s11371_s11 + $0x84] ss:$28 sps:$4 sm:$0xff]  }
0x1750   : > { %8160 = vmatpush3.bf16.msra.mxu0 %v4136_v20  ;;  %8195 = vmatprep.subr.bf16.mxu1 %v4212_v26  ;;  %v8827_v20 = vld [vmem:[%s11371_s11 + $0xb0] ss:$28 sps:$4 sm:$0xff]   ;;  %v8831_v26 = vld [vmem:[%s11371_s11 + $0x18] ss:$28 sps:$4 sm:$0xff]  }
0x1751   : > { %8161 = vmatprep.subr.bf16.mxu0 %v4158_v44  ;;  %4481 = vmatprep.mubr.bf16.mxu0 %v8807_v10  ;;  %v4154_v55 = vpop.permute.xlu0 %4153 }
0x1752   : > { %v4184_v28 = vpop.permute.xlu1 %4183 }
0x1753   : > { %8196 = vmatpush3.bf16.msra.mxu1 %v4188_v54  ;;  %v8830_v54 = vld [vmem:[%s11371_s11 + $0x80] ss:$28 sps:$4 sm:$0xff]  }
0x1754   : > { %8162 = vmatpush3.bf16.msra.mxu0 %v4134_v40  ;;  %8197 = vmatprep.subr.bf16.mxu1 %v4210_v47  ;;  %v8837_v40 = vld [vmem:[%s11371_s11 + $0xc0] ss:$28 sps:$4 sm:$0xff]  }
0x1755   : > { %8163 = vmatprep.subr.bf16.mxu0 %v4156_v9  ;;  %v4206_v61 = vpop.permute.xlu0 %4205 }
0x1756   : > { %v4130_v52 = vpop.permute.xlu1 %4129 }
0x1757   : > { %4482 = vmatmul.mubr.bf16.gmra.mxu0 %v8809_v59  ;;  %8198 = vmatpush3.bf16.msra.mxu1 %v4186_v18 }
0x1758   : > { %8164 = vmatpush3.bf16.msra.mxu0 %v4132_v31  ;;  %8199 = vmatprep.subr.bf16.mxu1 %v4208_v27 }
0x1759   : > { %8165 = vmatprep.subr.bf16.mxu0 %v4154_v55  ;;  %4522 = vmatprep.mubr.bf16.mxu0 %v8812_v50  ;;  %v4180_v51 = vpop.permute.xlu0 %4179 }
0x175a   : > { %v4182_v63 = vpop.permute.xlu1 %4181 }
0x175b   : > { %8200 = vmatpush3.bf16.msra.mxu1 %v4184_v28 }
0x175c   : > { %8166 = vmatpush3.bf16.msra.mxu0 %v4130_v52  ;;  %8201 = vmatprep.subr.bf16.mxu1 %v4206_v61 }
0x175d   : > { %v4240_v62 = vpop.permute.xlu0 %4239 }
0x175e   : > { %v4204_v49 = vpop.permute.xlu1 %4203  ;;  %8504 = vmatprep.subr.bf16.mxu0 %v4240_v62 }
0x175f   : > { %4523 = vmatmul.mubr.bf16.vlgmr.msra.gmra.mxu0 %v8810_v56  ;;  %8202 = vmatpush3.bf16.msra.mxu1 %v4182_v63 }
0x1760   : > { %8203 = vmatprep.subr.bf16.mxu1 %v4204_v49  ;;  %8505 = vmatpush3.bf16.msra.mxu0 %v4240_v62 }
0x1761   : > { %4530 = vmatprep.mubr.bf16.mxu0 %v8813_v36  ;;  %v4202_v15 = vpop.permute.xlu0 %4201 }
0x1762   : > { %v4238_v46 = vpop.permute.xlu1 %4237 }
0x1763   : > { %8204 = vmatpush3.bf16.msra.mxu1 %v4180_v51  ;;  %8506 = vmatprep.subr.bf16.mxu0 %v4238_v46 }
0x1764   : > { %8205 = vmatprep.subr.bf16.mxu1 %v4202_v15  ;;  %8507 = vmatpush3.bf16.msra.mxu0 %v4238_v46 }
0x1765   : > { %v4236_v37 = vpop.permute.xlu0 %4235 }
0x1766   : > { %v4178_v6 = vpop.permute.xlu1 %4177  ;;  %8508 = vmatprep.subr.bf16.mxu0 %v4236_v37 }
0x1767   : > { %4531 = vmatmul.mubr.bf16.gmra.mxu0 %v8815_v39  ;;  %8206 = vmatpush3.bf16.msra.mxu1 %v4178_v6 }
0x1768   : > { %4538 = vmatprep.mubr.bf16.mxu0 %v8819_v2  ;;  %8509 = vmatpush3.bf16.msra.mxu0 %v4236_v37 }
0x1769   : > { %v4232_v0 = vpop.permute.xlu0 %4231 }
0x176a   : > { %v4234_v17 = vpop.permute.xlu1 %4233  ;;  %4588 = vmatmul.mubr.bf16.vlgmr.msra.gmra.mxu1 %v8816_v48 }
0x176b   : > { %8510 = vmatprep.subr.bf16.mxu0 %v4234_v17  ;;  %4595 = vmatprep.mubr.bf16.mxu1 %v8822_v11 }
0x176c   : > { %8511 = vmatpush3.bf16.msra.mxu0 %v4234_v17 }
0x176d   : > { %8512 = vmatprep.subr.bf16.mxu0 %v4232_v0  ;;  %v4228_v35 = vpop.permute.xlu0 %4227 }
0x176e   : > { %v4230_v29 = vpop.permute.xlu1 %4229 }
0x176f   : > { %4539 = vmatmul.mubr.bf16.gmra.mxu0 %v8821_v13 }
0x1770   : > { %4546 = vmatprep.mubr.bf16.mxu0 %v8825_v16  ;;  %8513 = vmatpush3.bf16.msra.mxu0 %v4232_v0 }
0x1771   : > { %8514 = vmatprep.subr.bf16.mxu0 %v4230_v29 }
0x1772   : > { %4596 = vmatmul.mubr.bf16.gmra.mxu1 %v8824_v33  ;;  %v4226_v44 = vpop.permute.xlu1 %4225 }
0x1773   : > { %4603 = vmatprep.mubr.bf16.mxu1 %v8828_v32 }
0x1774   : > { %8515 = vmatpush3.bf16.msra.mxu0 %v4230_v29 }
0x1775   : > { %8516 = vmatprep.subr.bf16.mxu0 %v4228_v35 }
0x1777   : > { %4547 = vmatmul.mubr.bf16.gmra.mxu0 %v8827_v20 }
0x1778   : > { %8520 = vmatprep.mubr.bf16.mxu0 %v8831_v26  ;;  %8517 = vmatpush3.bf16.msra.mxu0 %v4228_v35 }
0x1779   : > { %8518 = vmatprep.subr.bf16.mxu0 %v4226_v44 }
0x177a   : > { %4604 = vmatmul.mubr.bf16.gmra.mxu1 %v8830_v54  ;;  %v10380_v39 = vpop.permute.xlu0 %4733 }
0x177b   : > { %4611 = vmatprep.mubr.bf16.mxu1 %v8833_v43 }
0x177c   : > { %8519 = vmatpush3.bf16.msra.mxu0 %v4226_v44 }
0x177d   : > { %5270 = vmatprep.subr.bf16.mxu0 %v11370_v23 }
0x177e   : > { %v10386_v13 = vpop.permute.xlu0 %4781 }
0x177f   : > { %8521 = vmatmul.mubr.bf16.vlgmr.msra.gmra.mxu0 %v8832_v45  ;;  %v10382_v17 = vpop.permute.xlu1 %4738 }
0x1780   : > { %8524 = vmatprep.mubr.bf16.mxu0 %v8836_v34  ;;  %11372 = vst [vmem:[#allocation41_spill] sm:$0xff] %v10382_v17 }
0x1782   : > { %4612 = vmatmul.mubr.bf16.gmra.mxu1 %v8835_v8  ;;  %v10392_v54 = vpop.permute.xlu0 %4723 }
0x1783   : > { %v10390_v20 = vpop.permute.xlu1 %4786 }
0x1784   : > { %11373 = vst [vmem:[#allocation42_spill] sm:$0xff] %v10390_v20 }
0x1787   : > { %8525 = vmatmul.mubr.bf16.gmra.mxu0 %v8837_v40  ;;  %v10394_v40 = vpop.permute.xlu1 %4728 }
0x1788   : > { %11374 = vst [vmem:[#allocation43_spill] sm:$0xff] %v10394_v40 }
0x178b   : > { %v10398_v41 = vpop.permute.xlu1 %4776 }
0x178c   : > { %11376 = vst [vmem:[#allocation45_spill] sm:$0xff] %v10398_v41 }
0x17ff   : > { %v8127_v47 = vpop.f32.mrf.mxu0 }
0x1801   : > { %v8128_v57 = vpop.f32.mrf.mxu0 }
0x1802   : > { %v10362_v4 = vadd.f32 %v8128_v57, %v8127_v47  ;;  %v10396_v57 = vpop.permute.xlu0 %4771 }
0x1803   : > { %v8130_v18 = vpop.f32.mrf.mxu0  ;;  %11375 = vst [vmem:[#allocation44_spill] sm:$0xff] %v10396_v57  ;;  %v4719_v57 = vpop.permute.xlu1 %4718 }
0x1805   : > { %v8131_v53 = vpop.f32.mrf.mxu0 }
0x1806   : > { %v10364_v7 = vadd.f32 %v8131_v53, %v8130_v18  ;;  %v4714_v38 = vpop.permute.xlu0 %4713 }
0x1807   : > { %v8133_v9 = vpop.f32.mrf.mxu0 }
0x1809   : > { %v8134_v58 = vpop.f32.mrf.mxu0 }
0x180a   : > { %v8135_v10 = vadd.f32 %v8134_v58, %v8133_v9 }
0x180b   : > { %v8136_v31 = vpop.f32.mrf.mxu0 }
0x180d   : > { %v8137_v27 = vpop.f32.mrf.mxu0 }
0x180e   : > { %v10366_v28 = vadd.f32 %v8137_v27, %v8136_v31 }
0x180f   : > { %v8139_v55 = vpop.f32.mrf.mxu0 }
0x1811   : > { %v8140_v59 = vpop.f32.mrf.mxu0 }
0x1812   : > { %v8141_v25 = vadd.f32 %v8140_v59, %v8139_v55 }
0x1813   : > { %v10368_v50 = vpop.f32.mrf.mxu0 }
0x1815   : > { %v10370_v52 = vpop.f32.mrf.mxu0 }
0x1817   : > { %v8145_v61 = vpop.f32.mrf.mxu0 }
0x1819   : > { %v8146_v63 = vpop.f32.mrf.mxu0 }
0x181a   : > { %v8147_v22 = vadd.f32 %v8146_v63, %v8145_v61 }
0x181b   : > { %v10372_v51 = vpop.f32.mrf.mxu0 }
0x181d   : > { %v10374_v56 = vpop.f32.mrf.mxu0 }
0x181e   : > { %v8150_v55 = vadd.f32 %v10374_v56, %v10372_v51 }
0x181f   : > { %v8167_v36 = vpop.f32.mrf.mxu0 }
0x1821   : > { %v8168_v49 = vpop.f32.mrf.mxu0 }
0x1822   : > { %v8169_v12 = vadd.f32 %v8168_v49, %v8167_v36 }
0x1823   : > { %v10376_v62 = vpop.f32.mrf.mxu0 }
0x1825   : > { %v10378_v46 = vpop.f32.mrf.mxu0 }
0x1827   : > { %v8173_v15 = vpop.f32.mrf.mxu0 }
0x1829   : > { %v8174_v2 = vpop.f32.mrf.mxu0 }
0x182a   : > { %v8207_v6 = vpop.f32.mrf.mxu1  ;;  %v8175_v31 = vadd.f32 %v8174_v2, %v8173_v15 }
0x182b   : > { %v8176_v37 = vpop.f32.mrf.mxu0 }
0x182c   : > { %v8208_v48 = vpop.f32.mrf.mxu1  ;;  %v4533_v24 = vadd.f32 %v8175_v31, %v8135_v10  ;;  %v8144_v10 = vadd.f32 %v10370_v52, %v10368_v50 }
0x182d   : > { %v8177_v11 = vpop.f32.mrf.mxu0 }
0x182e   : > { %v10384_v0 = vpop.f32.mrf.mxu1  ;;  %v8178_v14 = vadd.f32 %v8177_v11, %v8176_v37 }
0x182f   : > { %v8179_v16 = vpop.f32.mrf.mxu0 }
0x1830   : > { %v10388_v33 = vpop.f32.mrf.mxu1 }
0x1831   : > { %v8180_v29 = vpop.f32.mrf.mxu0 }
0x1832   : > { %v8213_v32 = vpop.f32.mrf.mxu1  ;;  %v8181_v23 = vadd.f32 %v8180_v29, %v8179_v16 }
0x1833   : > { %v8182_v35 = vpop.f32.mrf.mxu0 }
0x1834   : > { %v8214_v26 = vpop.f32.mrf.mxu1 }
0x1835   : > { %v8183_v44 = vpop.f32.mrf.mxu0  ;;  %v8215_v42 = vadd.f32 %v8214_v26, %v8213_v32  ;;  %v4762_v32 = vpop.permute.xlu0 %4761  ;;  %v8209_v26 = vadd.f32 %v8208_v48, %v8207_v6  ;;  %v8212_v6 = vadd.f32 %v10388_v33, %v10384_v0 }
0x1836   : > { %v8216_v43 = vpop.f32.mrf.mxu1 }
0x1837   : > { %v8185_v45 = vpop.f32.mrf.mxu0  ;;  %v4598_v40 = vadd.f32 %v8215_v42, %v4533_v24  ;;  %v4525_v42 = vadd.f32 %v8169_v12, %v10362_v4 }
0x1838   : > { %v8217_v34 = vpop.f32.mrf.mxu1 }
0x1839   : > { %v8186_v8 = vpop.f32.mrf.mxu0  ;;  %v8218_v16 = vadd.f32 %v8217_v34, %v8216_v43  ;;  %v4590_v49 = vadd.f32 %v8209_v26, %v4525_v42 }
0x183a   : > { %v8219_v47 = vpop.f32.mrf.mxu1  ;;  %v8187_v5 = vadd.f32 %v8186_v8, %v8185_v45  ;;  %v4541_v45 = vadd.f32 %v8181_v23, %v8141_v25  ;;  %v8184_v8 = vadd.f32 %v8183_v44, %v8182_v35  ;;  %v8172_v25 = vadd.f32 %v10378_v46, %v10376_v62  ;;  %v11378_v44 = vld [vmem:[#allocation41_spill] sm:$0xff] }
0x183b   : > { %v8188_v18 = vpop.f32.mrf.mxu0 }
0x183c   : > { %v8220_v53 = vpop.f32.mrf.mxu1  ;;  %v4549_v15 = vadd.f32 %v8187_v5, %v8147_v22  ;;  %v4544_v52 = vadd.f32 %v8184_v8, %v8144_v10  ;;  %v4528_v48 = vadd.f32 %v8172_v25, %v10364_v7  ;;  %v11380_v7 = vld [vmem:[#allocation42_spill] sm:$0xff]  ;;  %v11383_v25 = vld [vmem:[#allocation35_spill] sm:$0xff] }
0x183d   : > { %v8189_v9 = vpop.f32.mrf.mxu0  ;;  %v8221_v1 = vadd.f32 %v8220_v53, %v8219_v47 }
0x183e   : > { %v8222_v58 = vpop.f32.mrf.mxu1  ;;  %v8190_v2 = vadd.f32 %v8189_v9, %v8188_v18  ;;  %v4593_v33 = vadd.f32 %v8212_v6, %v4528_v48 }
0x183f   : > { %v8522_v27 = vpop.f32.mrf.mxu0  ;;  %v4606_v24 = vadd.f32 %v8221_v1, %v4541_v45  ;;  %v4767_v1 = vpop.permute.xlu1 %4766 }
0x1840   : > { %v8223_v30 = vpop.f32.mrf.mxu1  ;;  %v4663_v59 = vadd.f32 %v8522_v27, %v4598_v40  ;;  %v4552_v23 = vadd.f32 %v8190_v2, %v8150_v55  ;;  %v11379_v40 = vld [vmem:[#allocation43_spill] sm:$0xff] }
0x1841   : > { %v4654_v60 = vpop.f32.mrf.mxu0  ;;  %v8224_v22 = vadd.f32 %v8223_v30, %v8222_v58  ;;  %v11381_v58 = vld [vmem:[#allocation45_spill] sm:$0xff] }
0x1842   : > { %v8225_v3 = vpop.f32.mrf.mxu1  ;;  %v4743_v37 = vmul.f32 %v4714_v38, %v4663_v59  ;;  %v4655_v4 = vadd.f32 %v4654_v60, %v4590_v49  ;;  %v11389_v49 = vld [vmem:[#allocation40_spill] sm:$0xff] }
0x1843   : > { %v8523_v19 = vpop.f32.mrf.mxu0  ;;  %v4609_v46 = vadd.f32 %v8224_v22, %v4544_v52  ;;  %v11388_v52 = vld [vmem:[#allocation38_spill] sm:$0xff] }
0x1844   : > { %v8226_v21 = vpop.f32.mrf.mxu1  ;;  %v4791_v34 = vadd.f32 %v4762_v32, %v4743_v37 }
0x1845   : > { %v8227_v20 = vadd.f32 %v8226_v21, %v8225_v3  ;;  %v4657_v17 = vpop.f32.mrf.mxu0  ;;  %v4536_v21 = vadd.f32 %v8178_v14, %v10366_v28 }
0x1846   : > { %v8228_v41 = vpop.f32.mrf.mxu1  ;;  %v4658_v47 = vadd.f32 %v4657_v17, %v4593_v33  ;;  %v4799_v2 = vmax.f32 %v4791_v34, 0.0 }
0x1847   : > { %v4614_v61 = vadd.f32 %v8227_v20, %v4549_v15  ;;  %v8526_v3 = vpop.f32.mrf.mxu0  ;;  %v4601_v51 = vadd.f32 %v8218_v16, %v4536_v21  ;;  %v11377_v20 = vld [vmem:[#allocation44_spill] sm:$0xff] }
0x1848   : > { %v8229_v5 = vpop.f32.mrf.mxu1  ;;  %v7930_v10 = vpack.c.bf16 %v4799_v2, %v4799_v2  ;;  %v5565_v2 = vld [vmem:[%s9170_s27 + $0x1d8] sm:$0xff] }
0x1849   : > { %v4679_v63 = vadd.f32 %v8526_v3, %v4614_v61  ;;  %v8230_v36 = vadd.f32 %v8229_v5, %v8228_v41  ;;  %v4670_v50 = vpop.f32.mrf.mxu0  ;;  %v4666_v28 = vadd.f32 %v8523_v19, %v4601_v51  ;;  %v4704_v41 = vpop.permute.xlu0 %4703 }
0x184a   : > { %v4671_v56 = vadd.f32 %v4670_v50, %v4606_v24  ;;  %v4741_v60 = vmul.f32 %v4704_v41, %v4655_v4  ;;  %v11382_v24 = vld [vmem:[#allocation33_spill] sm:$0xff]  ;;  %v11387_v50 = vld [vmem:[#allocation39_spill] sm:$0xff] }
0x184b   : > { %v4747_v12 = vmul.f32 %v10380_v39, %v4679_v63  ;;  %v4617_v14 = vadd.f32 %v8230_v36, %v4552_v23  ;;  %v8527_v30 = vpop.f32.mrf.mxu0  ;;  %v4744_v19 = vmul.f32 %v4719_v57, %v4666_v28  ;;  %v11384_v23 = vld [vmem:[#allocation34_spill] sm:$0xff]  ;;  %v11385_v63 = vld [vmem:[#allocation37_spill] sm:$0xff]  ;;  %v11386_v36 = vld [vmem:[#allocation36_spill] sm:$0xff] }
0x184c   : > { %v4745_v62 = vmul.f32 %v10392_v54, %v4671_v56  ;;  %v11390_v56 = vmov 0  }
0x184d   : > { %v4795_v11 = vadd.f32 %v10386_v13, %v4747_v12  ;;  %v4682_v29 = vadd.f32 %v8527_v30, %v4617_v14  ;;  %v4673_v35 = vpop.f32.mrf.mxu0  ;;  %v4709_v13 = vpop.permute.xlu1 %4708  ;;  %v4792_v45 = vadd.f32 %v4767_v1, %v4744_v19 }
0x184e   : > { %v4793_v0 = vadd.f32 %v11377_v20, %v4745_v62  ;;  %v4674_v38 = vadd.f32 %v4673_v35, %v4609_v46  ;;  %v4752_v27 = vpop.permute.xlu0 %4751  ;;  %v4742_v32 = vmul.f32 %v4709_v13, %v4658_v47  ;;  %v5554_v47 = vld [vmem:[%s9165_s20 + $0x1c0] sm:$0xff]  ;;  %v5557_v13 = vld [vmem:[%s9165_s20 + $0x1d8] sm:$0xff] }
0x184f   : > { %v4803_v39 = vmax.f32 %v4795_v11, 0.0  ;;  %v4748_v43 = vmul.f32 %v11378_v44, %v4682_v29  ;;  %v4789_v26 = vadd.f32 %v4752_v27, %v4741_v60  ;;  %v4800_v59 = vmax.f32 %v4792_v45, 0.0  ;;  %v5558_v27 = vld [vmem:[%s9165_s20 + $0x1e0] sm:$0xff] }
0x1850   : > { %v4746_v54 = vmul.f32 %v11379_v40, %v4674_v38  ;;  %v4801_v53 = vmax.f32 %v4793_v0, 0.0  ;;  %v5553_v40 = vld [vmem:[%s9165_s20 + $0x1b8] sm:$0xff] }
0x1851   : > { %v7934_v18 = vpack.c.bf16 %v4803_v39, %v4803_v39  ;;  %v4796_v9 = vadd.f32 %v11380_v7, %v4748_v43  ;;  %v4757_v17 = vpop.permute.xlu1 %4756  ;;  %v4797_v55 = vmax.f32 %v4789_v26, 0.0  ;;  %v7931_v42 = vpack.c.bf16 %v4800_v59, %v4800_v59  ;;  %v5563_v7 = vld [vmem:[%s9170_s27 + $0x1c8] sm:$0xff]  ;;  %v5560_v26 = vld [vmem:[%s9165_s20 + $0x1f0] sm:$0xff] }
0x1852   : > { %v4794_v31 = vadd.f32 %v11381_v58, %v4746_v54  ;;  %v7932_v8 = vpack.c.bf16 %v4801_v53, %v4801_v53  ;;  %v4790_v61 = vadd.f32 %v4757_v17, %v4742_v32  ;;  %v5555_v54 = vld [vmem:[%s9165_s20 + $0x1c8] sm:$0xff]  ;;  %v5556_v53 = vld [vmem:[%s9165_s20 + $0x1d0] sm:$0xff] }
0x1853   : > { %v4804_v15 = vmax.f32 %v4796_v9, 0.0  ;;  %4849 = vrot.lane.b32.xlu0 %v7934_v18, %s9000_s2  ;;  %v7928_v5 = vpack.c.bf16 %v4797_v55, %v4797_v55  ;;  %v5561_v18 = vld [vmem:[%s9170_s27 + $0x1b8] sm:$0xff]  ;;  %v5562_v9 = vld [vmem:[%s9170_s27 + $0x1c0] sm:$0xff]  ;;  %v5564_v58 = vld [vmem:[%s9170_s27 + $0x1d0] sm:$0xff] }
0x1854   : > { %v4802_v16 = vmax.f32 %v4794_v31, 0.0  ;;  %v4798_v21 = vmax.f32 %v4790_v61, 0.0  ;;  %v5559_v31 = vld [vmem:[%s9165_s20 + $0x1e8] sm:$0xff] }
0x1855   : > { %v7935_v57 = vpack.c.bf16 %v4804_v15, %v4804_v15 }
0x1856   : > { %v7933_v3 = vpack.c.bf16 %v4802_v16, %v4802_v16  ;;  %v7929_v22 = vpack.c.bf16 %v4798_v21, %v4798_v21 }
0x1857   : > { %4851 = vrot.lane.b32.xlu1 %v7935_v57, %s9000_s2  ;;  %4845 = vrot.lane.b32.xlu0 %v7932_v8, %s9000_s2  ;;  %v5567_v8 = vld [vmem:[%s9170_s27 + $0x1e8] sm:$0xff]  ;;  %v5566_v57 = vld [vmem:[%s9170_s27 + $0x1e0] sm:$0xff] }
0x185b   : > { %4847 = vrot.lane.b32.xlu1 %v7933_v3, %s9000_s2  ;;  %4841 = vrot.lane.b32.xlu0 %v7930_v10, %s9000_s2  ;;  %v5568_v10 = vld [vmem:[%s9170_s27 + $0x1f0] sm:$0xff] }
0x185f   : > { %4843 = vrot.lane.b32.xlu1 %v7931_v42, %s9000_s2  ;;  %4837 = vrot.lane.b32.xlu0 %v7928_v5, %s9000_s2 }
0x1863   : > { %4839 = vrot.lane.b32.xlu1 %v7929_v22, %s9000_s2  ;;  %2778 = vrot.lane.b32.xlu0 %v11382_v24, %s11306_s15  ;;  %s11391_s2 = sld [smem:[#allocation12_spill]] }
0x1867   : > { %2780 = vrot.lane.b32.xlu1 %v11383_v25, %s11306_s15  ;;  %2774 = vrot.lane.b32.xlu0 %v11384_v23, %s11306_s15 }
0x1869   : > { %v8848_v39 = vld [vmem:[%s11391_s2 + $0xc] ss:$16 sps:$4 sm:$0xff]   ;;  %v8851_v60 = vld [vmem:[%s11391_s2 + $0x4] ss:$16 sps:$4 sm:$0xff]  }
0x186a   : > { %7774 = vmatprep.mubr.msk.bf16.mxu0 %vm3052_vm8, %v8848_v39  ;;  %5237 = vmatprep.mubr.bf16.mxu1 %v8851_v60  ;;  %v8867_v39 = vld [vmem:[%s11391_s2 + $0x6c] ss:$16 sps:$4 sm:$0xff]  }
0x186b   : > { %2776 = vrot.lane.b32.xlu1 %v11385_v63, %s11306_s15  ;;  %2770 = vrot.lane.b32.xlu0 %v11386_v36, %s11306_s15 }
0x186f   : > { %2772 = vrot.lane.b32.xlu1 %v11387_v50, %s11306_s15  ;;  %2766 = vrot.lane.b32.xlu0 %v11388_v52, %s11306_s15 }
0x1873   : > { %2768 = vrot.lane.b32.xlu1 %v11389_v49, %s11306_s15  ;;  %s11393_s15 = sld [smem:[#allocation13_spill]] }
0x18c5   : > { %v4850_v51 = vpop.permute.xlu0 %4849 }
0x18c6   : > { %4867 = vst.msk [vmem:[#allocation2 + $0x30] sm:$0xf] %vm2431_vm2, %v4850_v51 }
0x18c7   : > { %4875 = vst.msk [vmem:[#allocation2 + $0x30] sm:$0xf] %vm2436_vm4, %v11390_v56 }
0x18c9   : > { %v4852_v6 = vpop.permute.xlu1 %4851  ;;  %v4846_v37 = vpop.permute.xlu0 %4845 }
0x18ca   : > { %4868 = vst.msk [vmem:[#allocation2 + $0x38] sm:$0xf] %vm2431_vm2, %v4852_v6  ;;  %4865 = vst.msk [vmem:[#allocation2 + $0x20] sm:$0xf] %vm2431_vm2, %v4846_v37 }
0x18cb   : > { %4876 = vst.msk [vmem:[#allocation2 + $0x38] sm:$0xf] %vm2436_vm4, %v11390_v56  ;;  %4873 = vst.msk [vmem:[#allocation2 + $0x20] sm:$0xf] %vm2436_vm4, %v11390_v56 }
0x18cd   : > { %v4848_v12 = vpop.permute.xlu1 %4847  ;;  %v4842_v14 = vpop.permute.xlu0 %4841 }
0x18ce   : > { %4866 = vst.msk [vmem:[#allocation2 + $0x28] sm:$0xf] %vm2431_vm2, %v4848_v12  ;;  %4863 = vst.msk [vmem:[#allocation2 + $0x10] sm:$0xf] %vm2431_vm2, %v4842_v14  ;;  %v8846_v14 = vld [vmem:[%s11391_s2 + $0x8] ss:$16 sps:$4 sm:$0xff]  }
0x18cf   : > { %4874 = vst.msk [vmem:[#allocation2 + $0x28] sm:$0xf] %vm2436_vm4, %v11390_v56  ;;  %4871 = vst.msk [vmem:[#allocation2 + $0x10] sm:$0xf] %vm2436_vm4, %v11390_v56 }
0x18d1   : > { %v4844_v30 = vpop.permute.xlu1 %4843  ;;  %v4838_v1 = vpop.permute.xlu0 %4837 }
0x18d2   : > { %4864 = vst.msk [vmem:[#allocation2 + $0x18] sm:$0xf] %vm2431_vm2, %v4844_v30  ;;  %4861 = vst.msk [vmem:[#allocation2] sm:$0xf] %vm2431_vm2, %v4838_v1  ;;  %v10460_v4 = vld [vmem:[#allocation2 + $0x30] ss:$8 sps:$4 sm:$0xff]  }
0x18d3   : > { %4872 = vst.msk [vmem:[#allocation2 + $0x18] sm:$0xf] %vm2436_vm4, %v11390_v56  ;;  %4869 = vst.msk [vmem:[#allocation2] sm:$0xf] %vm2436_vm4, %v11390_v56  ;;  %v8855_v30 = vld [vmem:[%s11391_s2 + $0x2c] ss:$16 sps:$4 sm:$0xff]  }
0x18d4   : > { %5769 = vst.msk [vmem:[#allocation2 + $0x30] sm:$0xf] %vm3902_vm3, %v11390_v56  ;;  %5770 = vst.msk [vmem:[#allocation2 + $0x38] sm:$0xf] %vm3902_vm3, %v11390_v56 }
0x18d5   : > { %v4840_v28 = vpop.permute.xlu1 %4839  ;;  %v2779_v62 = vpop.permute.xlu0 %2778 }
0x18d6   : > { %4862 = vst.msk [vmem:[#allocation2 + $0x8] sm:$0xf] %vm2431_vm2, %v4840_v28  ;;  %2796 = vst.msk [vmem:[#allocation6 + $0x18] sm:$0xf] %vm2431_vm2, %v2779_v62  ;;  %v10472_v46 = vld [vmem:[#allocation2 + $0x20] ss:$8 sps:$4 sm:$0xff]  }
0x18d7   : > { %4870 = vst.msk [vmem:[#allocation2 + $0x8] sm:$0xf] %vm2436_vm4, %v11390_v56  ;;  %2804 = vst.msk [vmem:[#allocation6 + $0x18] sm:$0xf] %vm2436_vm4, %v11390_v56 }
0x18d8   : > { %5767 = vst.msk [vmem:[#allocation2 + $0x20] sm:$0xf] %vm3902_vm3, %v11390_v56  ;;  %5768 = vst.msk [vmem:[#allocation2 + $0x28] sm:$0xf] %vm3902_vm3, %v11390_v56 }
0x18d9   : > { %v2781_v41 = vpop.permute.xlu1 %2780  ;;  %v2775_v48 = vpop.permute.xlu0 %2774 }
0x18da   : > { %2797 = vst.msk [vmem:[#allocation6 + $0x1c] sm:$0xf] %vm2431_vm2, %v2781_v41  ;;  %2794 = vst.msk [vmem:[#allocation6 + $0x10] sm:$0xf] %vm2431_vm2, %v2775_v48  ;;  %v10484_v11 = vld [vmem:[#allocation2 + $0x10] ss:$8 sps:$4 sm:$0xff]  }
0x18db   : > { %2805 = vst.msk [vmem:[#allocation6 + $0x1c] sm:$0xf] %vm2436_vm4, %v11390_v56  ;;  %2802 = vst.msk [vmem:[#allocation6 + $0x10] sm:$0xf] %vm2436_vm4, %v11390_v56  ;;  %4959 = vrot.lane.b32.xlu0 %v10484_v11, %s11314_s23  ;;  %v8857_v41 = vld [vmem:[%s11391_s2 + $0x28] ss:$16 sps:$4 sm:$0xff]  }
0x18dc   : > { %5765 = vst.msk [vmem:[#allocation2 + $0x10] sm:$0xf] %vm3902_vm3, %v11390_v56  ;;  %5766 = vst.msk [vmem:[#allocation2 + $0x18] sm:$0xf] %vm3902_vm3, %v11390_v56  ;;  %v8861_v48 = vld [vmem:[%s11391_s2 + $0x4c] ss:$16 sps:$4 sm:$0xff]  }
0x18dd   : > { %v2777_v29 = vpop.permute.xlu1 %2776  ;;  %v2771_v35 = vpop.permute.xlu0 %2770 }
0x18de   : > { %2795 = vst.msk [vmem:[#allocation6 + $0x14] sm:$0xf] %vm2431_vm2, %v2777_v29  ;;  %2792 = vst.msk [vmem:[#allocation6 + $0x8] sm:$0xf] %vm2431_vm2, %v2771_v35  ;;  %v10498_v20 = vld [vmem:[#allocation2] ss:$8 sps:$4 sm:$0xff]  }
0x18df   : > { %2803 = vst.msk [vmem:[#allocation6 + $0x14] sm:$0xf] %vm2436_vm4, %v11390_v56  ;;  %2800 = vst.msk [vmem:[#allocation6 + $0x8] sm:$0xf] %vm2436_vm4, %v11390_v56  ;;  %4963 = vrot.lane.b32.xlu0 %v10460_v4, %s11314_s23  ;;  %4957 = vrot.lane.b32.xlu1 %v10498_v20, %s11314_s23  ;;  %v8849_v35 = vld [vmem:[%s11391_s2] ss:$16 sps:$4 sm:$0xff]  }
0x18e0   : > { %5763 = vst.msk [vmem:[#allocation2] sm:$0xf] %vm3902_vm3, %v11390_v56  ;;  %5764 = vst.msk [vmem:[#allocation2 + $0x8] sm:$0xf] %vm3902_vm3, %v11390_v56 }
0x18e1   : > { %v2773_v0 = vpop.permute.xlu1 %2772  ;;  %v2767_v38 = vpop.permute.xlu0 %2766 }
0x18e2   : > { %2793 = vst.msk [vmem:[#allocation6 + $0xc] sm:$0xf] %vm2431_vm2, %v2773_v0  ;;  %2790 = vst.msk [vmem:[#allocation6] sm:$0xf] %vm2431_vm2, %v2767_v38  ;;  %v10559_v44 = vld [vmem:[#allocation6 + $0x18] sm:$0xff]  }
0x18e3   : > { %2801 = vst.msk [vmem:[#allocation6 + $0xc] sm:$0xf] %vm2436_vm4, %v11390_v56  ;;  %2798 = vst.msk [vmem:[#allocation6] sm:$0xf] %vm2436_vm4, %v11390_v56  ;;  %4947 = vrot.lane.b32.xlu0 %v10484_v11, %s11310_s22  ;;  %4961 = vrot.lane.b32.xlu1 %v10472_v46, %s11314_s23  ;;  %v8852_v0 = vld [vmem:[%s11391_s2 + $0x24] ss:$16 sps:$4 sm:$0xff]  }
0x18e5   : > { %v2769_v33 = vpop.permute.xlu1 %2768 }
0x18e6   : > { %2791 = vst.msk [vmem:[#allocation6 + $0x4] sm:$0xf] %vm2431_vm2, %v2769_v33  ;;  %v10565_v43 = vld [vmem:[#allocation6 + $0x10] sm:$0xff]   ;;  %v8863_v33 = vld [vmem:[%s11391_s2 + $0x48] ss:$16 sps:$4 sm:$0xff]   ;;  %vm11394_vm2 = vcmask 1040384  }
0x18e7   : > { %2799 = vst.msk [vmem:[#allocation6 + $0x4] sm:$0xf] %vm2436_vm4, %v11390_v56  ;;  %4951 = vrot.lane.b32.xlu0 %v10460_v4, %s11310_s22  ;;  %4939 = vrot.lane.b32.xlu1 %v10460_v4, %s11312_s28  ;;  %vm11395_vm4 = vmmov %vm11394_vm2 }
0x18ea   : > { %v10571_v34 = vld [vmem:[#allocation6 + $0x8] sm:$0xff]  }
0x18eb   : > { %4915 = vrot.lane.b32.xlu0 %v10460_v4, %s11321_s26  ;;  %4945 = vrot.lane.b32.xlu1 %v10498_v20, %s11310_s22 }
0x18ee   : > { %v10582_v19 = vld [vmem:[#allocation6] sm:$0xff]  }
0x18ef   : > { %4975 = vrot.lane.b32.xlu0 %v10460_v4, %s11316_s16  ;;  %4935 = vrot.lane.b32.xlu1 %v10484_v11, %s11312_s28 }
0x18f3   : > { %4911 = vrot.lane.b32.xlu0 %v10484_v11, %s11321_s26  ;;  %4949 = vrot.lane.b32.xlu1 %v10472_v46, %s11310_s22 }
0x18f7   : > { %4933 = vrot.lane.b32.xlu0 %v10498_v20, %s11312_s28  ;;  %4909 = vrot.lane.b32.xlu1 %v10498_v20, %s11321_s26 }
0x18fb   : > { %4937 = vrot.lane.b32.xlu0 %v10472_v46, %s11312_s28  ;;  %4927 = vrot.lane.b32.xlu1 %v10460_v4, %s11318_s18 }
0x18ff   : > { %4971 = vrot.lane.b32.xlu0 %v10484_v11, %s11316_s16  ;;  %4913 = vrot.lane.b32.xlu1 %v10472_v46, %s11321_s26 }
0x1903   : > { %4969 = vrot.lane.b32.xlu0 %v10498_v20, %s11316_s16  ;;  %4973 = vrot.lane.b32.xlu1 %v10472_v46, %s11316_s16 }
0x1907   : > { %4923 = vrot.lane.b32.xlu1 %v10484_v11, %s11318_s18  ;;  %5067 = vrot.lane.b32.xlu0 %v10559_v44, %s11314_s23 }
0x190b   : > { %4921 = vrot.lane.b32.xlu1 %v10498_v20, %s11318_s18  ;;  %5065 = vrot.lane.b32.xlu0 %v10565_v43, %s11314_s23 }
0x190f   : > { %4925 = vrot.lane.b32.xlu1 %v10472_v46, %s11318_s18  ;;  %5063 = vrot.lane.b32.xlu0 %v10571_v34, %s11314_s23 }
0x1913   : > { %5043 = vrot.lane.b32.xlu1 %v10559_v44, %s11312_s28  ;;  %5019 = vrot.lane.b32.xlu0 %v10559_v44, %s11321_s26 }
0x1917   : > { %5041 = vrot.lane.b32.xlu0 %v10565_v43, %s11312_s28  ;;  %5061 = vrot.lane.b32.xlu1 %v10582_v19, %s11314_s23 }
0x191b   : > { %5055 = vrot.lane.b32.xlu0 %v10559_v44, %s11310_s22  ;;  %5017 = vrot.lane.b32.xlu1 %v10565_v43, %s11321_s26 }
0x191f   : > { %5015 = vrot.lane.b32.xlu0 %v10571_v34, %s11321_s26  ;;  %5039 = vrot.lane.b32.xlu1 %v10571_v34, %s11312_s28 }
0x1923   : > { %5037 = vrot.lane.b32.xlu0 %v10582_v19, %s11312_s28  ;;  %5053 = vrot.lane.b32.xlu1 %v10565_v43, %s11310_s22 }
0x1927   : > { %5051 = vrot.lane.b32.xlu0 %v10571_v34, %s11310_s22  ;;  %5013 = vrot.lane.b32.xlu1 %v10582_v19, %s11321_s26 }
0x192b   : > { %5049 = vrot.lane.b32.xlu0 %v10582_v19, %s11310_s22  ;;  %5031 = vrot.lane.b32.xlu1 %v10559_v44, %s11318_s18 }
0x192f   : > { %5079 = vrot.lane.b32.xlu0 %v10559_v44, %s11316_s16  ;;  %5029 = vrot.lane.b32.xlu1 %v10565_v43, %s11318_s18 }
0x1933   : > { %5077 = vrot.lane.b32.xlu0 %v10565_v43, %s11316_s16  ;;  %5027 = vrot.lane.b32.xlu1 %v10571_v34, %s11318_s18 }
0x1937   : > { %5075 = vrot.lane.b32.xlu0 %v10571_v34, %s11316_s16  ;;  %5025 = vrot.lane.b32.xlu1 %v10582_v19, %s11318_s18 }
0x193b   : > { %5571 = vperm.xlu0 %8681, %v5553_v40   ;;  %5073 = vrot.lane.b32.xlu1 %v10582_v19, %s11316_s16  ;;  %v8854_v40 = vld [vmem:[%s11391_s2 + $0x20] ss:$16 sps:$4 sm:$0xff]  }
0x193f   : > { %5581 = vperm.xlu0 %8681, %v5555_v54   ;;  %5576 = vperm.xlu1 %8682, %v5554_v47   ;;  %v8858_v54 = vld [vmem:[%s11391_s2 + $0x44] ss:$16 sps:$4 sm:$0xff]  }
0x1943   : > { %5619 = vperm.xlu0 %8681, %v5561_v18   ;;  %5586 = vperm.xlu1 %8682, %v5556_v53   ;;  %v8869_v53 = vld [vmem:[%s11391_s2 + $0x68] ss:$16 sps:$4 sm:$0xff]  }
0x1947   : > { %5629 = vperm.xlu0 %8681, %v5563_v7   ;;  %5624 = vperm.xlu1 %8682, %v5562_v9   ;;  %v8875_v7 = vld [vmem:[%s11392_s1 + $0xc] ss:$16 sps:$4 sm:$0xff]  }
0x194b   : > { %5591 = vperm.xlu0 %8681, %v5557_v13   ;;  %5634 = vperm.xlu1 %8682, %v5564_v58   ;;  %v8860_v58 = vld [vmem:[%s11391_s2 + $0x40] ss:$16 sps:$4 sm:$0xff]  }
0x194d   : > { %v4960_v15 = vpop.permute.xlu0 %4959 }
0x194f   : > { %5601 = vperm.xlu0 %8681, %v5559_v31   ;;  %5596 = vperm.xlu1 %8682, %v5558_v27   ;;  %v8866_v31 = vld [vmem:[%s11391_s2 + $0x64] ss:$16 sps:$4 sm:$0xff]  }
0x1951   : > { %v4958_v45 = vpop.permute.xlu1 %4957  ;;  %v4964_v32 = vpop.permute.xlu0 %4963 }
0x1952   : > { %5271 = vmatpush1.bf16.msra.mxu0 %v4964_v32  ;;  %v8872_v32 = vld [vmem:[%s11392_s1 + $0x4] ss:$16 sps:$4 sm:$0xff]  }
0x1953   : > { %5639 = vperm.xlu0 %8681, %v5565_v2   ;;  %5606 = vperm.xlu1 %8682, %v5560_v26  }
0x1954   : > { %5272 = vmatprep.subr.bf16.mxu0 %v11390_v56 }
0x1955   : > { %v4962_v16 = vpop.permute.xlu1 %4961  ;;  %v4948_v17 = vpop.permute.xlu0 %4947 }
0x1956   : > { %5273 = vmatpush1.bf16.msra.mxu0 %v4962_v16  ;;  %v8870_v16 = vld [vmem:[%s11392_s1] ss:$16 sps:$4 sm:$0xff]  }
0x1957   : > { %5649 = vperm.xlu0 %8681, %v5567_v8   ;;  %5644 = vperm.xlu1 %8682, %v5566_v57  }
0x1958   : > { %5274 = vmatprep.subr.bf16.mxu0 %v11390_v56 }
0x1959   : > { %v4940_v55 = vpop.permute.xlu1 %4939  ;;  %v4952_v59 = vpop.permute.xlu0 %4951 }
0x195a   : > { %5275 = vmatpush1.bf16.msra.mxu0 %v4960_v15  ;;  %8243 = vmatprep.subr.bf16.mxu1 %v4940_v55  ;;  %v8879_v55 = vld [vmem:[%s11392_s1 + $0x2c] ss:$16 sps:$4 sm:$0xff]  }
0x195b   : > { %5654 = vperm.xlu1 %8682, %v5568_v10   ;;  %5276 = vmatprep.subr.bf16.mxu0 %v11390_v56  ;;  %v8873_v10 = vld [vmem:[%s11392_s1 + $0x8] ss:$16 sps:$4 sm:$0xff]  }
0x195d   : > { %v4946_v61 = vpop.permute.xlu1 %4945  ;;  %v4916_v3 = vpop.permute.xlu0 %4915 }
0x195e   : > { %5277 = vmatpush1.bf16.msra.mxu0 %v4958_v45  ;;  %8244 = vmatpush3.bf16.msra.mxu1 %v4916_v3  ;;  %v8864_v45 = vld [vmem:[%s11391_s2 + $0x60] ss:$16 sps:$4 sm:$0xff]   ;;  %v8885_v3 = vld [vmem:[%s11392_s1 + $0x4c] ss:$16 sps:$4 sm:$0xff]   ;;  %s11410_s2 = sld [smem:[#allocation17_spill]] }
0x195f   : > { %5278 = vmatprep.subr.bf16.mxu0 %v11390_v56 }
0x1961   : > { %v4936_v5 = vpop.permute.xlu1 %4935  ;;  %v4976_v42 = vpop.permute.xlu0 %4975 }
0x1962   : > { %5279 = vmatpush1.bf16.msra.mxu0 %v4952_v59  ;;  %v8884_v59 = vld [vmem:[%s11392_s1 + $0x44] ss:$16 sps:$4 sm:$0xff]  }
0x1963   : > { %5280 = vmatprep.subr.bf16.mxu0 %v11390_v56 }
0x1965   : > { %v4950_v21 = vpop.permute.xlu1 %4949  ;;  %v4912_v22 = vpop.permute.xlu0 %4911 }
0x1966   : > { %5281 = vmatpush1.bf16.msra.mxu0 %v4950_v21  ;;  %v8887_v21 = vld [vmem:[%s11392_s1 + $0x48] ss:$16 sps:$4 sm:$0xff]  }
0x1967   : > { %5282 = vmatprep.subr.bf16.mxu0 %v11390_v56 }
0x1969   : > { %v4910_v24 = vpop.permute.xlu1 %4909  ;;  %v4934_v25 = vpop.permute.xlu0 %4933 }
0x196a   : > { %5283 = vmatpush1.bf16.msra.mxu0 %v4948_v17  ;;  %v8878_v17 = vld [vmem:[%s11392_s1 + $0x24] ss:$16 sps:$4 sm:$0xff]  }
0x196b   : > { %5284 = vmatprep.subr.bf16.mxu0 %v11390_v56 }
0x196d   : > { %v4928_v23 = vpop.permute.xlu1 %4927  ;;  %v4938_v63 = vpop.permute.xlu0 %4937 }
0x196e   : > { %5285 = vmatpush1.bf16.msra.mxu0 %v4946_v61  ;;  %8245 = vmatprep.subr.bf16.mxu1 %v4938_v63  ;;  %v8881_v61 = vld [vmem:[%s11392_s1 + $0x28] ss:$16 sps:$4 sm:$0xff]  }
0x196f   : > { %5294 = vmatprep.subr.bf16.mxu0 %v11390_v56 }
0x1971   : > { %v4914_v36 = vpop.permute.xlu1 %4913  ;;  %v4972_v50 = vpop.permute.xlu0 %4971 }
0x1972   : > { %8246 = vmatpush3.bf16.msra.mxu1 %v4914_v36  ;;  %5295 = vmatpush2.bf16.msra.mxu0 %v4976_v42  ;;  %v8890_v42 = vld [vmem:[%s11392_s1 + $0x64] ss:$16 sps:$4 sm:$0xff]  }
0x1973   : > { %8247 = vmatprep.subr.bf16.mxu1 %v4936_v5  ;;  %5296 = vmatprep.subr.bf16.mxu0 %v11390_v56  ;;  %v8882_v5 = vld [vmem:[%s11392_s1 + $0x40] ss:$16 sps:$4 sm:$0xff]  }
0x1975   : > { %v4974_v52 = vpop.permute.xlu1 %4973  ;;  %v4970_v49 = vpop.permute.xlu0 %4969 }
0x1976   : > { %8248 = vmatpush3.bf16.msra.mxu1 %v4912_v22  ;;  %5297 = vmatpush2.bf16.msra.mxu0 %v4974_v52  ;;  %v8891_v22 = vld [vmem:[%s11392_s1 + $0x6c] ss:$16 sps:$4 sm:$0xff]  }
0x1977   : > { %8249 = vmatprep.subr.bf16.mxu1 %v4934_v25  ;;  %5298 = vmatprep.subr.bf16.mxu0 %v11390_v56  ;;  %v8893_v25 = vld [vmem:[%s11392_s1 + $0x68] ss:$16 sps:$4 sm:$0xff]  }
0x1979   : > { %v4924_v51 = vpop.permute.xlu1 %4923  ;;  %v5068_v6 = vpop.permute.xlu0 %5067 }
0x197a   : > { %8250 = vmatpush3.bf16.msra.mxu1 %v4910_v24  ;;  %5299 = vmatpush2.bf16.msra.mxu0 %v4972_v50  ;;  %v8888_v24 = vld [vmem:[%s11392_s1 + $0x60] ss:$16 sps:$4 sm:$0xff]  }
0x197b   : > { %8251 = vmatprep.subr.bf16.mxu1 %v4928_v23  ;;  %5300 = vmatprep.subr.bf16.mxu0 %v11390_v56  ;;  %v5677_v23 = vld [vmem:[%s11393_s15] sm:$0x1]  ;;  %s11396_s15 = sld [smem:[#allocation14_spill]] }
0x197c   : > { %v5692_v63 = vsel %vm11395_vm4, %v5677_v23, 0  ;;  %vm7025_vm4 = vcmask 68632  }
0x197d   : > { %v4922_v37 = vpop.permute.xlu1 %4921  ;;  %v5066_v12 = vpop.permute.xlu0 %5065 }
0x197e   : > { %8252 = vmatpush3.bf16.msra.mxu1 %v10460_v4  ;;  %5301 = vmatpush2.bf16.msra.mxu0 %v4970_v49 }
0x197f   : > { %5488 = vmatprep.subr.bf16.mxu0 %v11390_v56 }
0x1981   : > { %v4926_v1 = vpop.permute.xlu1 %4925  ;;  %v5064_v28 = vpop.permute.xlu0 %5063  ;;  %5303 = vmatmul.mubr.bf16.vlgmr.msra.gmra.mxu0 %v8846_v14 }
0x1982   : > { %8253 = vmatprep.subr.bf16.mxu1 %v4926_v1  ;;  %5489 = vmatpush1.bf16.msra.mxu0 %v5068_v6 }
0x1983   : > { %8254 = vmatpush3.bf16.msra.mxu1 %v10472_v46  ;;  %5490 = vmatprep.subr.bf16.mxu0 %v11390_v56 }
0x1984   : > { %8255 = vmatprep.subr.bf16.mxu1 %v4924_v51  ;;  %7775 = vmatprep.mubr.msk.bf16.mxu0 %vm3052_vm8, %v8855_v30 }
0x1985   : > { %v5044_v62 = vpop.permute.xlu1 %5043  ;;  %v5020_v4 = vpop.permute.xlu0 %5019 }
0x1986   : > { %5491 = vmatpush1.bf16.msra.mxu0 %v5066_v12 }
0x1987   : > { %8256 = vmatpush3.bf16.msra.mxu1 %v10484_v11  ;;  %5492 = vmatprep.subr.bf16.mxu0 %v11390_v56 }
0x1988   : > { %8257 = vmatprep.subr.bf16.mxu1 %v4922_v37 }
0x1989   : > { %v5062_v29 = vpop.permute.xlu1 %5061  ;;  %v5042_v46 = vpop.permute.xlu0 %5041  ;;  %5311 = vmatmul.mubr.bf16.gmra.mxu0 %v8857_v41 }
0x198a   : > { %5493 = vmatpush1.bf16.msra.mxu0 %v5064_v28  ;;  %7776 = vmatprep.mubr.msk.bf16.mxu0 %vm3052_vm8, %v8861_v48 }
0x198b   : > { %8258 = vmatpush3.bf16.msra.mxu1 %v10498_v20  ;;  %5494 = vmatprep.subr.bf16.mxu0 %v11390_v56 }
0x198c   : > { %8283 = vmatprep.subr.bf16.mxu1 %v5044_v62 }
0x198d   : > { %v5018_v38 = vpop.permute.xlu1 %5017  ;;  %v5056_v11 = vpop.permute.xlu0 %5055 }
0x198e   : > { %5238 = vmatmul.mubr.bf16.vlgmr.msra.gmra.mxu1 %v8849_v35  ;;  %5495 = vmatpush1.bf16.msra.mxu0 %v5062_v29 }
0x198f   : > { %8284 = vmatpush3.bf16.msra.mxu1 %v5020_v4  ;;  %5496 = vmatprep.subr.bf16.mxu0 %v11390_v56 }
0x1990   : > { %8285 = vmatprep.subr.bf16.mxu1 %v5042_v46  ;;  %5245 = vmatprep.mubr.bf16.mxu1 %v8852_v0 }
0x1991   : > { %v5040_v20 = vpop.permute.xlu1 %5039  ;;  %v5016_v60 = vpop.permute.xlu0 %5015  ;;  %5319 = vmatmul.mubr.bf16.gmra.mxu0 %v8863_v33 }
0x1992   : > { %5497 = vmatpush1.bf16.msra.mxu0 %v5056_v11  ;;  %7777 = vmatprep.mubr.msk.bf16.mxu0 %vm3052_vm8, %v8867_v39 }
0x1993   : > { %8286 = vmatpush3.bf16.msra.mxu1 %v5018_v38  ;;  %5498 = vmatprep.subr.bf16.mxu0 %v11390_v56 }
0x1994   : > { %8287 = vmatprep.subr.bf16.mxu1 %v5040_v20 }
0x1995   : > { %v5054_v47 = vpop.permute.xlu1 %5053  ;;  %v5038_v18 = vpop.permute.xlu0 %5037 }
0x1996   : > { %5246 = vmatmul.mubr.bf16.gmra.mxu1 %v8854_v40  ;;  %5499 = vmatpush1.bf16.msra.mxu0 %v5054_v47 }
0x1997   : > { %8288 = vmatpush3.bf16.msra.mxu1 %v5016_v60  ;;  %5500 = vmatprep.subr.bf16.mxu0 %v11390_v56 }
0x1998   : > { %8289 = vmatprep.subr.bf16.mxu1 %v5038_v18  ;;  %5253 = vmatprep.mubr.bf16.mxu1 %v8858_v54 }
0x1999   : > { %v5014_v9 = vpop.permute.xlu1 %5013  ;;  %v5052_v13 = vpop.permute.xlu0 %5051  ;;  %5327 = vmatmul.mubr.bf16.gmra.mxu0 %v8869_v53 }
0x199a   : > { %5501 = vmatpush1.bf16.msra.mxu0 %v5052_v13  ;;  %7794 = vmatprep.mubr.msk.bf16.mxu0 %vm3052_vm8, %v8875_v7 }
0x199b   : > { %8290 = vmatpush3.bf16.msra.mxu1 %v5014_v9  ;;  %5502 = vmatprep.subr.bf16.mxu0 %v11390_v56 }
0x199d   : > { %v5032_v27 = vpop.permute.xlu1 %5031  ;;  %v5050_v15 = vpop.permute.xlu0 %5049 }
0x199e   : > { %5254 = vmatmul.mubr.bf16.gmra.mxu1 %v8860_v58  ;;  %8291 = vmatprep.subr.bf16.mxu1 %v5032_v27 }
0x199f   : > { %8292 = vmatpush3.bf16.msra.mxu1 %v10559_v44  ;;  %5503 = vmatpush1.bf16.msra.mxu0 %v5050_v15 }
0x19a0   : > { %5512 = vmatprep.subr.bf16.mxu0 %v11390_v56  ;;  %5261 = vmatprep.mubr.bf16.mxu1 %v8866_v31 }
0x19a1   : > { %v5030_v2 = vpop.permute.xlu1 %5029  ;;  %v5080_v26 = vpop.permute.xlu0 %5079 }
0x19a2   : > { %8293 = vmatprep.subr.bf16.mxu1 %v5030_v2 }
0x19a3   : > { %8294 = vmatpush3.bf16.msra.mxu1 %v10565_v43  ;;  %5513 = vmatpush2.bf16.msra.mxu0 %v5080_v26 }
0x19a4   : > { %5514 = vmatprep.subr.bf16.mxu0 %v11390_v56 }
0x19a5   : > { %v5028_v8 = vpop.permute.xlu1 %5027  ;;  %v5078_v57 = vpop.permute.xlu0 %5077 }
0x19a6   : > { %5262 = vmatmul.mubr.bf16.gmra.mxu1 %v8864_v45  ;;  %8295 = vmatprep.subr.bf16.mxu1 %v5028_v8 }
0x19a7   : > { %8296 = vmatpush3.bf16.msra.mxu1 %v10571_v34  ;;  %5515 = vmatpush2.bf16.msra.mxu0 %v5078_v57 }
0x19a8   : > { %5516 = vmatprep.subr.bf16.mxu0 %v11390_v56  ;;  %5455 = vmatprep.mubr.bf16.mxu1 %v8872_v32 }
0x19a9   : > { %v5026_v44 = vpop.permute.xlu1 %5025  ;;  %v5076_v43 = vpop.permute.xlu0 %5075 }
0x19aa   : > { %8297 = vmatprep.subr.bf16.mxu1 %v5026_v44 }
0x19ab   : > { %8298 = vmatpush3.bf16.msra.mxu1 %v10582_v19  ;;  %5517 = vmatpush2.bf16.msra.mxu0 %v5076_v43  ;;  %v8876_v19 = vld [vmem:[%s11392_s1 + $0x20] ss:$16 sps:$4 sm:$0xff]   ;;  %s11407_s1 = sld [smem:[#allocation16_spill]] }
0x19ac   : > { %5518 = vmatprep.subr.bf16.mxu0 %v11390_v56  ;;  %8619 = vmatprep.subr.msk.bf16.mxu1 %vm11394_vm2, %v5677_v23  ;;  %vm5824_vm2 = vcmask 134232  }
0x19ad   : > { %v5074_v34 = vpop.permute.xlu1 %5073 }
0x19ae   : > { %5456 = vmatmul.mubr.bf16.vlgmr.msra.gmra.mxu1 %v8870_v16 }
0x19af   : > { %5519 = vmatpush2.bf16.msra.mxu0 %v5074_v34  ;;  %5463 = vmatprep.mubr.bf16.mxu1 %v8878_v17 }
0x19b0   : > { %6038 = vmatprep.subr.bf16.mxu0 %v11390_v56  ;;  %8529 = vmatpush3.bf16.msra.mxu1 %v5692_v63 }
0x19b2   : > { %5521 = vmatmul.mubr.bf16.vlgmr.msra.gmra.mxu0 %v8873_v10 }
0x19b3   : > { %7795 = vmatprep.mubr.msk.bf16.mxu0 %vm3052_vm8, %v8879_v55 }
0x19b6   : > { %5464 = vmatmul.mubr.bf16.gmra.mxu1 %v8876_v19  ;;  %v5572_v47 = vpop.permute.xlu0 %5571 }
0x19b7   : > { %5471 = vmatprep.mubr.bf16.mxu1 %v8884_v59 }
0x19ba   : > { %5529 = vmatmul.mubr.bf16.gmra.mxu0 %v8881_v61  ;;  %v5577_v53 = vpop.permute.xlu1 %5576  ;;  %v5582_v13 = vpop.permute.xlu0 %5581 }
0x19bb   : > { %7796 = vmatprep.mubr.msk.bf16.mxu0 %vm3052_vm8, %v8885_v3 }
0x19be   : > { %5472 = vmatmul.mubr.bf16.gmra.mxu1 %v8882_v5  ;;  %v5587_v31 = vpop.permute.xlu1 %5586  ;;  %v5620_v26 = vpop.permute.xlu0 %5619 }
0x19bf   : > { %5479 = vmatprep.mubr.bf16.mxu1 %v8890_v42 }
0x19c2   : > { %5537 = vmatmul.mubr.bf16.gmra.mxu0 %v8887_v21  ;;  %v5625_v43 = vpop.permute.xlu1 %5624  ;;  %v5630_v5 = vpop.permute.xlu0 %5629 }
0x19c3   : > { %7797 = vmatprep.mubr.msk.bf16.mxu0 %vm3052_vm8, %v8891_v22 }
0x19c6   : > { %5480 = vmatmul.mubr.bf16.gmra.mxu1 %v8888_v24 }
0x19ca   : > { %5545 = vmatmul.mubr.bf16.gmra.mxu0 %v8893_v25  ;;  %v5635_v25 = vpop.permute.xlu1 %5634 }
0x1a41   : > { %v5304_v36 = vpop.f32.mrf.mxu0 }
0x1a43   : > { %v5306_v50 = vpop.f32.mrf.mxu0 }
0x1a45   : > { %v5307_v52 = vpop.f32.mrf.mxu0 }
0x1a47   : > { %v5309_v49 = vpop.f32.mrf.mxu0 }
0x1a49   : > { %v5312_v51 = vpop.f32.mrf.mxu0 }
0x1a4b   : > { %v5314_v6 = vpop.f32.mrf.mxu0 }
0x1a4d   : > { %v10710_v37 = vpop.f32.mrf.mxu0 }
0x1a4e   : > { %v8259_v12 = vpop.f32.mrf.mxu1 }
0x1a4f   : > { %v5317_v14 = vpop.f32.mrf.mxu0 }
0x1a50   : > { %v8260_v30 = vpop.f32.mrf.mxu1 }
0x1a51   : > { %v10712_v1 = vpop.f32.mrf.mxu0  ;;  %v8261_v27 = vadd.f32 %v8260_v30, %v8259_v12 }
0x1a52   : > { %v8262_v28 = vpop.f32.mrf.mxu1 }
0x1a53   : > { %v5322_v62 = vpop.f32.mrf.mxu0  ;;  %v5305_v32 = vadd.f32 %v8261_v27, %v5304_v36 }
0x1a54   : > { %v8263_v4 = vpop.f32.mrf.mxu1 }
0x1a55   : > { %v10714_v41 = vpop.f32.mrf.mxu0  ;;  %v8264_v45 = vadd.f32 %v8263_v4, %v8262_v28  ;;  %v5592_v4 = vpop.permute.xlu0 %5591 }
0x1a56   : > { %v8265_v48 = vpop.f32.mrf.mxu1 }
0x1a57   : > { %v5325_v29 = vpop.f32.mrf.mxu0  ;;  %v5308_v55 = vadd.f32 %v8264_v45, %v5307_v52 }
0x1a58   : > { %v8266_v46 = vpop.f32.mrf.mxu1 }
0x1a59   : > { %v10716_v35 = vpop.f32.mrf.mxu0  ;;  %v8267_v10 = vadd.f32 %v8266_v46, %v8265_v48 }
0x1a5a   : > { %v8268_v0 = vpop.f32.mrf.mxu1 }
0x1a5b   : > { %v5330_v38 = vpop.f32.mrf.mxu0  ;;  %v5313_v63 = vadd.f32 %v8267_v10, %v5312_v51 }
0x1a5c   : > { %v8269_v11 = vpop.f32.mrf.mxu1 }
0x1a5d   : > { %v10718_v33 = vpop.f32.mrf.mxu0  ;;  %v8270_v23 = vadd.f32 %v8269_v11, %v8268_v0  ;;  %v5597_v0 = vpop.permute.xlu1 %5596 }
0x1a5e   : > { %v8271_v39 = vpop.f32.mrf.mxu1 }
0x1a5f   : > { %v5333_v20 = vpop.f32.mrf.mxu0  ;;  %v5316_v48 = vadd.f32 %v8270_v23, %v10710_v37 }
0x1a60   : > { %v8272_v60 = vpop.f32.mrf.mxu1 }
0x1a61   : > { %v8273_v52 = vadd.f32 %v8272_v60, %v8271_v39 }
0x1a62   : > { %v10720_v40 = vpop.f32.mrf.mxu1 }
0x1a64   : > { %v8275_v54 = vpop.f32.mrf.mxu1 }
0x1a65   : > { %v8276_v39 = vadd.f32 %v8275_v54, %v10720_v40 }
0x1a66   : > { %v10722_v18 = vpop.f32.mrf.mxu1 }
0x1a67   : > { %v5324_v10 = vadd.f32 %v8276_v39, %v10714_v41 }
0x1a68   : > { %v10724_v7 = vpop.f32.mrf.mxu1 }
0x1a6a   : > { %v10726_v9 = vpop.f32.mrf.mxu1 }
0x1a6c   : > { %v10728_v58 = vpop.f32.mrf.mxu1 }
0x1a6e   : > { %v8299_v15 = vpop.f32.mrf.mxu1 }
0x1a70   : > { %v8300_v2 = vpop.f32.mrf.mxu1 }
0x1a71   : > { %v8301_v8 = vadd.f32 %v8300_v2, %v8299_v15  ;;  %v5321_v2 = vadd.f32 %v8273_v52, %v10712_v1 }
0x1a72   : > { %v8302_v57 = vpop.f32.mrf.mxu1  ;;  %v5522_v44 = vpop.f32.mrf.mxu0 }
0x1a73   : > { %v5458_v16 = vadd.f32 %v8301_v8, %v5305_v32 }
0x1a74   : > { %v8303_v17 = vpop.f32.mrf.mxu1  ;;  %v5524_v34 = vpop.f32.mrf.mxu0 }
0x1a75   : > { %v8304_v19 = vadd.f32 %v8303_v17, %v8302_v57  ;;  %v5523_v59 = vadd.f32 %v5522_v44, %v5458_v16  ;;  %v5602_v57 = vpop.permute.xlu0 %5601  ;;  %v5607_v34 = vpop.permute.xlu1 %5606 }
0x1a76   : > { %v8305_v61 = vpop.f32.mrf.mxu1  ;;  %v5525_v3 = vpop.f32.mrf.mxu0 }
0x1a77   : > { %v5609_v42 = vmul.f32 %v5572_v47, %v5523_v59  ;;  %v5461_v21 = vadd.f32 %v8304_v19, %v5308_v55 }
0x1a78   : > { %v8306_v22 = vpop.f32.mrf.mxu1  ;;  %v5527_v24 = vpop.f32.mrf.mxu0 }
0x1a79   : > { %v8307_v36 = vadd.f32 %v8306_v22, %v8305_v61  ;;  %v5526_v50 = vadd.f32 %v5525_v3, %v5461_v21  ;;  %v5657_v12 = vadd.f32 %v5620_v26, %v5609_v42  ;;  %v5640_v24 = vpop.permute.xlu0 %5639 }
0x1a7a   : > { %v8308_v49 = vpop.f32.mrf.mxu1  ;;  %v5530_v6 = vpop.f32.mrf.mxu0 }
0x1a7b   : > { %v5610_v14 = vmul.f32 %v5577_v53, %v5526_v50  ;;  %v5466_v30 = vadd.f32 %v8307_v36, %v5313_v63  ;;  %v5665_v51 = vmax.f32 %v5657_v12, 0.0  ;;  %v5645_v36 = vpop.permute.xlu1 %5644 }
0x1a7c   : > { %v8309_v28 = vpop.f32.mrf.mxu1  ;;  %v5532_v62 = vpop.f32.mrf.mxu0 }
0x1a7d   : > { %v5658_v29 = vadd.f32 %v5625_v43, %v5610_v14  ;;  %v8310_v46 = vadd.f32 %v8309_v28, %v8308_v49  ;;  %v5531_v38 = vadd.f32 %v5530_v6, %v5466_v30 }
0x1a7e   : > { %v8311_v20 = vpop.f32.mrf.mxu1  ;;  %v5533_v47 = vpop.f32.mrf.mxu0 }
0x1a7f   : > { %v5666_v11 = vmax.f32 %v5658_v29, 0.0  ;;  %v5611_v27 = vmul.f32 %v5582_v13, %v5531_v38  ;;  %v5469_v15 = vadd.f32 %v8310_v46, %v5316_v48  ;;  %v8279_v13 = vadd.f32 %v10724_v7, %v10722_v18 }
0x1a80   : > { %v8312_v53 = vpop.f32.mrf.mxu1  ;;  %v5535_v26 = vpop.f32.mrf.mxu0  ;;  %v8282_v18 = vadd.f32 %v10728_v58, %v10726_v9 }
0x1a81   : > { %v5673_v60 = vpack.c.bf16 %v5666_v11, %v5665_v51  ;;  %v8313_v45 = vadd.f32 %v8312_v53, %v8311_v20  ;;  %v5534_v37 = vadd.f32 %v5533_v47, %v5469_v15  ;;  %v5659_v44 = vadd.f32 %v5630_v5, %v5611_v27  ;;  %v5650_v20 = vpop.permute.xlu0 %5649  ;;  %v5655_v51 = vpop.permute.xlu1 %5654 }
0x1a82   : > { %v8314_v32 = vpop.f32.mrf.mxu1  ;;  %v5538_v8 = vpop.f32.mrf.mxu0  ;;  %v5329_v42 = vadd.f32 %v8279_v13, %v10716_v35  ;;  %v5332_v35 = vadd.f32 %v8282_v18, %v10718_v33  ;;  %v6089_v18 = vld [vmem:[%s9165_s20 + $0x208] sm:$0xff] }
0x1a83   : > { %v5612_v43 = vmul.f32 %v5587_v31, %v5534_v37  ;;  %8530 = vmatprep.mubr.msk.bf16.mxu1 %vm5678_vm6, %v5673_v60  ;;  %v5474_v16 = vadd.f32 %v8313_v45, %v5321_v2  ;;  %v5667_v61 = vmax.f32 %v5659_v44, 0.0 }
0x1a84   : > { %v8315_v1 = vpop.f32.mrf.mxu1  ;;  %v5540_v17 = vpop.f32.mrf.mxu0 }
0x1a85   : > { %v5660_v40 = vadd.f32 %v5635_v25, %v5612_v43  ;;  %v8316_v54 = vadd.f32 %v8315_v1, %v8314_v32  ;;  %v5539_v55 = vadd.f32 %v5538_v8, %v5474_v16 }
0x1a86   : > { %v8317_v19 = vpop.f32.mrf.mxu1  ;;  %v5541_v59 = vpop.f32.mrf.mxu0 }
0x1a87   : > { %v5668_v3 = vmax.f32 %v5660_v40, 0.0  ;;  %v5613_v5 = vmul.f32 %v5592_v4, %v5539_v55  ;;  %v5477_v31 = vadd.f32 %v8316_v54, %v5324_v10 }
0x1a88   : > { %v8318_v21 = vpop.f32.mrf.mxu1  ;;  %v5543_v22 = vpop.f32.mrf.mxu0 }
0x1a89   : > { %v5674_v7 = vpack.c.bf16 %v5668_v3, %v5667_v61  ;;  %v8319_v23 = vadd.f32 %v8318_v21, %v8317_v19  ;;  %v5542_v41 = vadd.f32 %v5541_v59, %v5477_v31  ;;  %v5661_v50 = vadd.f32 %v5640_v24, %v5613_v5  ;;  %v8900_v21 = vld [vmem:[%s11396_s15 + $0x4] ss:$16 sps:$4 sm:$0xff]   ;;  %v8903_v22 = vld [vmem:[%s11396_s15 + $0xc] ss:$16 sps:$4 sm:$0xff]  }
0x1a8a   : > { %v8320_v25 = vpop.f32.mrf.mxu1  ;;  %v5546_v63 = vpop.f32.mrf.mxu0  ;;  %7822 = vmatprep.mubr.msk.bf16.mxu0 %vm3052_vm8, %v8903_v22  ;;  %v6090_v24 = vld [vmem:[%s9165_s20 + $0x210] sm:$0xff] }
0x1a8b   : > { %v5614_v49 = vmul.f32 %v5597_v0, %v5542_v41  ;;  %8531 = vmatmul.mubr.msk.bf16.vlgmr.msra.gmra.mxu1 %vm5678_vm6, %v5674_v7  ;;  %v5482_v6 = vadd.f32 %v8319_v23, %v5329_v42  ;;  %v5669_v9 = vmax.f32 %v5661_v50, 0.0  ;;  %v6094_v7 = vld [vmem:[%s9170_s27 + $0x210] sm:$0xff]  ;;  %v6093_v23 = vld [vmem:[%s9170_s27 + $0x208] sm:$0xff]  ;;  %v6088_v41 = vld [vmem:[%s9165_s20 + $0x200] sm:$0xff] }
0x1a8c   : > { %v8321_v12 = vpop.f32.mrf.mxu1  ;;  %v5548_v14 = vpop.f32.mrf.mxu0  ;;  %v11398_v50 = vld [vmem:[#allocation31_spill] sm:$0xff] }
0x1a8d   : > { %v5662_v30 = vadd.f32 %v5645_v36, %v5614_v49  ;;  %v8322_v52 = vadd.f32 %v8321_v12, %v8320_v25  ;;  %v5547_v28 = vadd.f32 %v5546_v63, %v5482_v6  ;;  %v6087_v25 = vld [vmem:[%s9165_s20 + $0x1f8] sm:$0xff]  ;;  %v6092_v63 = vld [vmem:[%s9170_s27 + $0x200] sm:$0xff]  ;;  %v11400_v6 = vld [vmem:[#allocation32_spill] sm:$0xff] }
0x1a8e   : > { %v5549_v62 = vpop.f32.mrf.mxu0  ;;  %v6091_v36 = vld [vmem:[%s9170_s27 + $0x1f8] sm:$0xff]  ;;  %v11401_v12 = vld [vmem:[#allocation30_spill] sm:$0xff] }
0x1a8f   : > { %v5670_v58 = vmax.f32 %v5662_v30, 0.0  ;;  %v5615_v4 = vmul.f32 %v5602_v57, %v5547_v28  ;;  %v5485_v48 = vadd.f32 %v8322_v52, %v5332_v35  ;;  %v11399_v49 = vld [vmem:[#allocation29_spill] sm:$0xff] }
0x1a90   : > { %v5551_v29 = vpop.f32.mrf.mxu0 }
0x1a91   : > { %v5675_v46 = vpack.c.bf16 %v5670_v58, %v5669_v9  ;;  %v5550_v38 = vadd.f32 %v5549_v62, %v5485_v48  ;;  %v5663_v47 = vadd.f32 %v5650_v20, %v5615_v4 }
0x1a93   : > { %v5616_v0 = vmul.f32 %v5607_v34, %v5550_v38  ;;  %8534 = vmatprep.mubr.msk.bf16.mxu1 %vm5678_vm6, %v5675_v46  ;;  %v5671_v27 = vmax.f32 %v5663_v47, 0.0 }
0x1a95   : > { %v5664_v11 = vadd.f32 %v5655_v51, %v5616_v0 }
0x1a97   : > { %v5672_v33 = vmax.f32 %v5664_v11, 0.0 }
0x1a99   : > { %v5676_v15 = vpack.c.bf16 %v5672_v33, %v5671_v27 }
0x1a9b   : > { %8535 = vmatmul.mubr.msk.bf16.gmra.mxu1 %vm5678_vm6, %v5676_v15 }
0x1a9c   : > { %6021 = vmatprep.mubr.bf16.mxu1 %v8900_v21 }
0x1b4b   : > { %v8532_v2 = vpop.f32.mrf.mxu1 }
0x1b4c   : > { %v7938_v43 = vpack.c.bf16 %v8532_v2, %v8532_v2 }
0x1b4d   : > { %v5728_v53 = vpop.f32.mrf.mxu1 }
0x1b4e   : > { %v7936_v13 = vpack.c.bf16 %v5728_v53, %v5728_v53  ;;  %v8898_v53 = vld [vmem:[%s11396_s15] ss:$16 sps:$4 sm:$0xff]  }
0x1b4f   : > { %v8533_v26 = vpop.f32.mrf.mxu1 }
0x1b50   : > { %v7939_v1 = vpack.c.bf16 %v8533_v26, %v8533_v26  ;;  %v8906_v26 = vld [vmem:[%s11396_s15 + $0x24] ss:$16 sps:$4 sm:$0xff]  }
0x1b51   : > { %v5731_v39 = vpop.f32.mrf.mxu1 }
0x1b52   : > { %v7937_v17 = vpack.c.bf16 %v5731_v39, %v5731_v39 }
0x1b5b   : > { %v8536_v60 = vpop.f32.mrf.mxu1 }
0x1b5c   : > { %v7942_v45 = vpack.c.bf16 %v8536_v60, %v8536_v60 }
0x1b5d   : > { %v5744_v37 = vpop.f32.mrf.mxu1 }
0x1b5e   : > { %5803 = vrot.lane.b32.xlu0 %v7942_v45, %s11308_s0  ;;  %v7940_v8 = vpack.c.bf16 %v5744_v37, %v5744_v37  ;;  %v8901_v45 = vld [vmem:[%s11396_s15 + $0x8] ss:$16 sps:$4 sm:$0xff]   ;;  %v8904_v37 = vld [vmem:[%s11396_s15 + $0x20] ss:$16 sps:$4 sm:$0xff]  }
0x1b5f   : > { %v8537_v32 = vpop.f32.mrf.mxu1 }
0x1b60   : > { %v7943_v57 = vpack.c.bf16 %v8537_v32, %v8537_v32  ;;  %v8907_v32 = vld [vmem:[%s11396_s15 + $0x2c] ss:$16 sps:$4 sm:$0xff]  }
0x1b61   : > { %v5747_v44 = vpop.f32.mrf.mxu1 }
0x1b62   : > { %5799 = vrot.lane.b32.xlu0 %v7940_v8, %s11308_s0  ;;  %5805 = vrot.lane.b32.xlu1 %v7943_v57, %s11308_s0  ;;  %v7941_v16 = vpack.c.bf16 %v5747_v44, %v5747_v44  ;;  %v8909_v57 = vld [vmem:[%s11396_s15 + $0x28] ss:$16 sps:$4 sm:$0xff]  }
0x1b66   : > { %5795 = vrot.lane.b32.xlu0 %v7938_v43, %s11308_s0  ;;  %5801 = vrot.lane.b32.xlu1 %v7941_v16, %s11308_s0 }
0x1b6a   : > { %5791 = vrot.lane.b32.xlu0 %v7936_v13, %s11308_s0  ;;  %5797 = vrot.lane.b32.xlu1 %v7939_v1, %s11308_s0 }
0x1b6e   : > { %5793 = vrot.lane.b32.xlu1 %v7937_v17, %s11308_s0  ;;  %s11397_s0 = smov 3  }
0x1bd0   : > { %v5804_v34 = vpop.permute.xlu0 %5803 }
0x1bd1   : > { %5822 = vst.msk [vmem:[#allocation2 + $0x30] sm:$0xf] %vm5815_vm9, %v5804_v34 }
0x1bd2   : > { %5831 = vst.msk [vmem:[#allocation2 + $0x30] sm:$0xf] %vm5824_vm2, %v11390_v56 }
0x1bd4   : > { %v5800_v10 = vpop.permute.xlu0 %5799  ;;  %v5806_v40 = vpop.permute.xlu1 %5805 }
0x1bd5   : > { %5820 = vst.msk [vmem:[#allocation2 + $0x20] sm:$0xf] %vm5815_vm9, %v5800_v10  ;;  %5823 = vst.msk [vmem:[#allocation2 + $0x38] sm:$0xf] %vm5815_vm9, %v5806_v40 }
0x1bd6   : > { %5829 = vst.msk [vmem:[#allocation2 + $0x20] sm:$0xf] %vm5824_vm2, %v11390_v56  ;;  %5832 = vst.msk [vmem:[#allocation2 + $0x38] sm:$0xf] %vm5824_vm2, %v11390_v56 }
0x1bd8   : > { %v5796_v54 = vpop.permute.xlu0 %5795  ;;  %v5802_v55 = vpop.permute.xlu1 %5801 }
0x1bd9   : > { %5818 = vst.msk [vmem:[#allocation2 + $0x10] sm:$0xf] %vm5815_vm9, %v5796_v54  ;;  %5821 = vst.msk [vmem:[#allocation2 + $0x28] sm:$0xf] %vm5815_vm9, %v5802_v55 }
0x1bda   : > { %5827 = vst.msk [vmem:[#allocation2 + $0x10] sm:$0xf] %vm5824_vm2, %v11390_v56  ;;  %5830 = vst.msk [vmem:[#allocation2 + $0x28] sm:$0xf] %vm5824_vm2, %v11390_v56 }
0x1bdc   : > { %v5792_v19 = vpop.permute.xlu0 %5791  ;;  %v5798_v59 = vpop.permute.xlu1 %5797 }
0x1bdd   : > { %5816 = vst.msk [vmem:[#allocation2] sm:$0xf] %vm5815_vm9, %v5792_v19  ;;  %5819 = vst.msk [vmem:[#allocation2 + $0x18] sm:$0xf] %vm5815_vm9, %v5798_v59  ;;  %v10769_v61 = vld [vmem:[#allocation2 + $0x30] ss:$8 sps:$4 sm:$0xff]  }
0x1bde   : > { %5825 = vst.msk [vmem:[#allocation2] sm:$0xf] %vm5824_vm2, %v11390_v56  ;;  %5828 = vst.msk [vmem:[#allocation2 + $0x18] sm:$0xf] %vm5824_vm2, %v11390_v56  ;;  %5895 = vrot.lane.b32.xlu1 %v10769_v61, %s11312_s28 }
0x1be0   : > { %v5794_v3 = vpop.permute.xlu1 %5793 }
0x1be1   : > { %5817 = vst.msk [vmem:[#allocation2 + $0x8] sm:$0xf] %vm5815_vm9, %v5794_v3  ;;  %v10778_v5 = vld [vmem:[#allocation2 + $0x20] ss:$8 sps:$4 sm:$0xff]   ;;  %vm11421_vm9 = vcmask 48128  }
0x1be2   : > { %5826 = vst.msk [vmem:[#allocation2 + $0x8] sm:$0xf] %vm5824_vm2, %v11390_v56  ;;  %5917 = vrot.lane.b32.xlu1 %v10778_v5, %s11314_s23  ;;  %vm11422_vm2 = vmmov %vm11421_vm9 }
0x1be5   : > { %v10784_v31 = vld [vmem:[#allocation2 + $0x10] ss:$8 sps:$4 sm:$0xff]  }
0x1be6   : > { %6151 = vst.msk [vmem:[#allocation2 + $0x10] sm:$0xf] %vm1220_vm12, %v11390_v56  ;;  %6152 = vst.msk [vmem:[#allocation2 + $0x18] sm:$0xf] %vm1220_vm12, %v11390_v56  ;;  %5915 = vrot.lane.b32.xlu0 %v10784_v31, %s11314_s23 }
0x1be9   : > { %v10792_v42 = vld [vmem:[#allocation2] ss:$8 sps:$4 sm:$0xff]  }
0x1bea   : > { %6149 = vst.msk [vmem:[#allocation2] sm:$0xf] %vm1220_vm12, %v11390_v56  ;;  %6150 = vst.msk [vmem:[#allocation2 + $0x8] sm:$0xf] %vm1220_vm12, %v11390_v56  ;;  %5919 = vrot.lane.b32.xlu0 %v10769_v61, %s11314_s23  ;;  %5913 = vrot.lane.b32.xlu1 %v10792_v42, %s11314_s23 }
0x1bee   : > { %5871 = vrot.lane.b32.xlu0 %v10769_v61, %s11321_s26  ;;  %5891 = vrot.lane.b32.xlu1 %v10784_v31, %s11312_s28 }
0x1bf2   : > { %5907 = vrot.lane.b32.xlu0 %v10769_v61, %s11310_s22  ;;  %5869 = vrot.lane.b32.xlu1 %v10778_v5, %s11321_s26 }
0x1bf6   : > { %5893 = vrot.lane.b32.xlu0 %v10778_v5, %s11312_s28  ;;  %5905 = vrot.lane.b32.xlu1 %v10778_v5, %s11310_s22 }
0x1bfa   : > { %5867 = vrot.lane.b32.xlu0 %v10784_v31, %s11321_s26  ;;  %5865 = vrot.lane.b32.xlu1 %v10792_v42, %s11321_s26 }
0x1bfe   : > { %5889 = vrot.lane.b32.xlu0 %v10792_v42, %s11312_s28  ;;  %5883 = vrot.lane.b32.xlu1 %v10769_v61, %s11318_s18 }
0x1c02   : > { %5903 = vrot.lane.b32.xlu0 %v10784_v31, %s11310_s22  ;;  %5881 = vrot.lane.b32.xlu1 %v10778_v5, %s11318_s18 }
0x1c06   : > { %5901 = vrot.lane.b32.xlu0 %v10792_v42, %s11310_s22  ;;  %5879 = vrot.lane.b32.xlu1 %v10784_v31, %s11318_s18  ;;  %s11402_s22 = smov 2  }
0x1c0a   : > { %5931 = vrot.lane.b32.xlu0 %v10769_v61, %s11316_s16  ;;  %5877 = vrot.lane.b32.xlu1 %v10792_v42, %s11318_s18 }
0x1c0e   : > { %5929 = vrot.lane.b32.xlu0 %v10778_v5, %s11316_s16  ;;  %5925 = vrot.lane.b32.xlu1 %v10792_v42, %s11316_s16 }
0x1c12   : > { %5927 = vrot.lane.b32.xlu0 %v10784_v31, %s11316_s16  ;;  %6112 = vperm.xlu1 %8682, %v6090_v24  }
0x1c16   : > { %6107 = vperm.xlu0 %8681, %v6089_v18   ;;  %6136 = vperm.xlu1 %8682, %v6094_v7  }
0x1c1a   : > { %6131 = vperm.xlu0 %8681, %v6093_v23   ;;  %6102 = vperm.xlu1 %8682, %v6088_v41  }
0x1c1e   : > { %6097 = vperm.xlu0 %8681, %v6087_v25   ;;  %6126 = vperm.xlu1 %8682, %v6092_v63  }
0x1c22   : > { %6121 = vperm.xlu0 %8681, %v6091_v36   ;;  %2110 = vrot.lane.b32.xlu1 %v11398_v50, %s11397_s0 }
0x1c26   : > { %2108 = vrot.lane.b32.xlu0 %v11399_v49, %s11397_s0  ;;  %2106 = vrot.lane.b32.xlu1 %v11400_v6, %s11397_s0 }
0x1c2a   : > { %2104 = vrot.lane.b32.xlu0 %v11401_v12, %s11397_s0 }
0x1c50   : > { %v5896_v14 = vpop.permute.xlu1 %5895 }
0x1c51   : > { %8328 = vmatprep.subr.bf16.mxu1 %v5896_v14 }
0x1c54   : > { %v5918_v35 = vpop.permute.xlu1 %5917 }
0x1c58   : > { %v5916_v30 = vpop.permute.xlu0 %5915 }
0x1c5c   : > { %v5920_v52 = vpop.permute.xlu0 %5919  ;;  %v5914_v28 = vpop.permute.xlu1 %5913 }
0x1c5d   : > { %6039 = vmatpush1.bf16.msra.mxu0 %v5920_v52 }
0x1c5e   : > { %6040 = vmatprep.subr.bf16.mxu0 %v11390_v56 }
0x1c60   : > { %v5872_v62 = vpop.permute.xlu0 %5871  ;;  %v5892_v9 = vpop.permute.xlu1 %5891 }
0x1c61   : > { %6041 = vmatpush1.bf16.msra.mxu0 %v5918_v35  ;;  %8329 = vmatpush3.bf16.msra.mxu1 %v5872_v62 }
0x1c62   : > { %6042 = vmatprep.subr.bf16.mxu0 %v11390_v56 }
0x1c64   : > { %v5908_v58 = vpop.permute.xlu0 %5907  ;;  %v5870_v4 = vpop.permute.xlu1 %5869 }
0x1c65   : > { %6043 = vmatpush1.bf16.msra.mxu0 %v5916_v30 }
0x1c66   : > { %6044 = vmatprep.subr.bf16.mxu0 %v11390_v56 }
0x1c68   : > { %v5894_v48 = vpop.permute.xlu0 %5893  ;;  %v5906_v29 = vpop.permute.xlu1 %5905 }
0x1c69   : > { %6045 = vmatpush1.bf16.msra.mxu0 %v5914_v28  ;;  %8330 = vmatprep.subr.bf16.mxu1 %v5894_v48 }
0x1c6a   : > { %6046 = vmatprep.subr.bf16.mxu0 %v11390_v56  ;;  %8331 = vmatpush3.bf16.msra.mxu1 %v5870_v4 }
0x1c6b   : > { %8332 = vmatprep.subr.bf16.mxu1 %v5892_v9 }
0x1c6c   : > { %v5868_v46 = vpop.permute.xlu0 %5867  ;;  %v5866_v38 = vpop.permute.xlu1 %5865 }
0x1c6d   : > { %6047 = vmatpush1.bf16.msra.mxu0 %v5908_v58 }
0x1c6e   : > { %6048 = vmatprep.subr.bf16.mxu0 %v11390_v56  ;;  %8333 = vmatpush3.bf16.msra.mxu1 %v5868_v46 }
0x1c70   : > { %v5890_v20 = vpop.permute.xlu0 %5889  ;;  %v5884_v47 = vpop.permute.xlu1 %5883 }
0x1c71   : > { %6049 = vmatpush1.bf16.msra.mxu0 %v5906_v29  ;;  %8334 = vmatprep.subr.bf16.mxu1 %v5890_v20 }
0x1c72   : > { %6050 = vmatprep.subr.bf16.mxu0 %v11390_v56  ;;  %8335 = vmatpush3.bf16.msra.mxu1 %v5866_v38 }
0x1c73   : > { %8336 = vmatprep.subr.bf16.mxu1 %v5884_v47 }
0x1c74   : > { %v5904_v0 = vpop.permute.xlu0 %5903  ;;  %v5882_v51 = vpop.permute.xlu1 %5881 }
0x1c75   : > { %6051 = vmatpush1.bf16.msra.mxu0 %v5904_v0 }
0x1c76   : > { %6052 = vmatprep.subr.bf16.mxu0 %v11390_v56  ;;  %8337 = vmatpush3.bf16.msra.mxu1 %v10769_v61 }
0x1c77   : > { %8338 = vmatprep.subr.bf16.mxu1 %v5882_v51 }
0x1c78   : > { %v5902_v11 = vpop.permute.xlu0 %5901  ;;  %v5880_v27 = vpop.permute.xlu1 %5879 }
0x1c79   : > { %6053 = vmatpush1.bf16.msra.mxu0 %v5902_v11 }
0x1c7a   : > { %6062 = vmatprep.subr.bf16.mxu0 %v11390_v56  ;;  %8339 = vmatpush3.bf16.msra.mxu1 %v10778_v5 }
0x1c7b   : > { %8340 = vmatprep.subr.bf16.mxu1 %v5880_v27 }
0x1c7c   : > { %v5932_v33 = vpop.permute.xlu0 %5931  ;;  %v5878_v15 = vpop.permute.xlu1 %5877 }
0x1c7d   : > { %6063 = vmatpush2.bf16.msra.mxu0 %v5932_v33 }
0x1c7e   : > { %6064 = vmatprep.subr.bf16.mxu0 %v11390_v56  ;;  %8341 = vmatpush3.bf16.msra.mxu1 %v10784_v31 }
0x1c7f   : > { %8342 = vmatprep.subr.bf16.mxu1 %v5878_v15 }
0x1c80   : > { %v5930_v2 = vpop.permute.xlu0 %5929  ;;  %v5926_v60 = vpop.permute.xlu1 %5925 }
0x1c81   : > { %6065 = vmatpush2.bf16.msra.mxu0 %v5930_v2  ;;  %v6442_v2 = vld [vmem:[%s9165_s20 + $0x220] sm:$0xff] }
0x1c82   : > { %6066 = vmatprep.subr.bf16.mxu0 %v11390_v56  ;;  %8343 = vmatpush3.bf16.msra.mxu1 %v10792_v42 }
0x1c83   : > { %6319 = vmatprep.subr.bf16.mxu1 %v11390_v56 }
0x1c84   : > { %v5928_v39 = vpop.permute.xlu0 %5927 }
0x1c85   : > { %6067 = vmatpush2.bf16.msra.mxu0 %v5928_v39  ;;  %6022 = vmatmul.mubr.bf16.vlgmr.msra.gmra.mxu1 %v8898_v53  ;;  %v6444_v53 = vld [vmem:[%s9165_s20 + $0x230] sm:$0xff] }
0x1c86   : > { %6068 = vmatprep.subr.bf16.mxu0 %v11390_v56  ;;  %6029 = vmatprep.mubr.bf16.mxu1 %v8906_v26  ;;  %v6446_v26 = vld [vmem:[%s9170_s27 + $0x220] sm:$0xff]  ;;  %v6448_v39 = vld [vmem:[%s9170_s27 + $0x230] sm:$0xff] }
0x1c89   : > { %6069 = vmatpush2.bf16.msra.mxu0 %v5926_v60 }
0x1c8a   : > { %6392 = vmatprep.subr.bf16.mxu0 %v11390_v56 }
0x1c8c   : > { %6071 = vmatmul.mubr.bf16.vlgmr.msra.gmra.mxu0 %v8901_v45 }
0x1c8d   : > { %v6113_v8 = vpop.permute.xlu1 %6112  ;;  %6030 = vmatmul.mubr.bf16.gmra.mxu1 %v8904_v37  ;;  %7823 = vmatprep.mubr.msk.bf16.mxu0 %vm3052_vm8, %v8907_v32  ;;  %vm6596_vm8 = vcmask 331032  }
0x1c91   : > { %v6108_v44 = vpop.permute.xlu0 %6107  ;;  %v6137_v43 = vpop.permute.xlu1 %6136 }
0x1c94   : > { %6079 = vmatmul.mubr.bf16.gmra.mxu0 %v8909_v57 }
0x1c95   : > { %v6132_v16 = vpop.permute.xlu0 %6131  ;;  %v6103_v13 = vpop.permute.xlu1 %6102 }
0x1c99   : > { %v6098_v1 = vpop.permute.xlu0 %6097  ;;  %v6127_v17 = vpop.permute.xlu1 %6126 }
0x1c9d   : > { %v6122_v34 = vpop.permute.xlu0 %6121  ;;  %v2111_v10 = vpop.permute.xlu1 %2110 }
0x1c9e   : > { %2119 = vst.msk [vmem:[#allocation5 + $0xc] sm:$0xf] %vm1927_vm10, %v2111_v10 }
0x1c9f   : > { %2123 = vst.msk [vmem:[#allocation5 + $0xc] sm:$0xf] %vm1930_vm13, %v11390_v56 }
0x1ca1   : > { %v2109_v40 = vpop.permute.xlu0 %2108  ;;  %v2107_v54 = vpop.permute.xlu1 %2106 }
0x1ca2   : > { %2118 = vst.msk [vmem:[#allocation5 + $0x8] sm:$0xf] %vm1927_vm10, %v2109_v40  ;;  %2117 = vst.msk [vmem:[#allocation5 + $0x4] sm:$0xf] %vm1927_vm10, %v2107_v54 }
0x1ca3   : > { %2122 = vst.msk [vmem:[#allocation5 + $0x8] sm:$0xf] %vm1930_vm13, %v11390_v56  ;;  %2121 = vst.msk [vmem:[#allocation5 + $0x4] sm:$0xf] %vm1930_vm13, %v11390_v56 }
0x1ca5   : > { %v2105_v55 = vpop.permute.xlu0 %2104 }
0x1ca6   : > { %2116 = vst.msk [vmem:[#allocation5] sm:$0xf] %vm1927_vm10, %v2105_v55 }
0x1ca7   : > { %2120 = vst.msk [vmem:[#allocation5] sm:$0xf] %vm1930_vm13, %v11390_v56 }
0x1caa   : > { %v10899_v33 = vld [vmem:[#allocation5 + $0x8] sm:$0xff]  }
0x1cae   : > { %v10903_v15 = vld [vmem:[#allocation5] sm:$0xff]  }
0x1d45   : > { %v8344_v19 = vpop.f32.mrf.mxu1 }
0x1d47   : > { %v8345_v59 = vpop.f32.mrf.mxu1 }
0x1d48   : > { %v8346_v21 = vadd.f32 %v8345_v59, %v8344_v19  ;;  %v8916_v19 = vld [vmem:[%s11407_s1 + $0x4] ss:$8 sps:$4 sm:$0xff]  }
0x1d49   : > { %v8347_v61 = vpop.f32.mrf.mxu1  ;;  %7836 = vmatprep.mubr.msk.bf16.mxu1 %vm2225_vm5, %v8916_v19 }
0x1d4b   : > { %v8348_v3 = vpop.f32.mrf.mxu1 }
0x1d4c   : > { %v6072_v5 = vpop.f32.mrf.mxu0  ;;  %v8349_v41 = vadd.f32 %v8348_v3, %v8347_v61  ;;  %v6441_v61 = vld [vmem:[%s9165_s20 + $0x218] sm:$0xff] }
0x1d4d   : > { %v8350_v31 = vpop.f32.mrf.mxu1  ;;  %v6073_v18 = vadd.f32 %v8346_v21, %v6072_v5  ;;  %v6443_v5 = vld [vmem:[%s9165_s20 + $0x228] sm:$0xff]  ;;  %v11409_v21 = vmov 0.0  }
0x1d4e   : > { %v6074_v42 = vpop.f32.mrf.mxu0 }
0x1d4f   : > { %v8351_v22 = vpop.f32.mrf.mxu1  ;;  %v6115_v50 = vmul.f32 %v6098_v1, %v6073_v18 }
0x1d50   : > { %v6075_v24 = vpop.f32.mrf.mxu0  ;;  %v8352_v25 = vadd.f32 %v8351_v22, %v8350_v31  ;;  %v6445_v22 = vld [vmem:[%s9170_s27 + $0x218] sm:$0xff] }
0x1d51   : > { %v8353_v7 = vpop.f32.mrf.mxu1  ;;  %v6076_v49 = vadd.f32 %v8349_v41, %v6075_v24  ;;  %v6139_v52 = vadd.f32 %v6122_v34, %v6115_v50  ;;  %v6447_v24 = vld [vmem:[%s9170_s27 + $0x228] sm:$0xff] }
0x1d52   : > { %v6077_v23 = vpop.f32.mrf.mxu0 }
0x1d53   : > { %v8354_v36 = vpop.f32.mrf.mxu1  ;;  %v6116_v28 = vmul.f32 %v6103_v13, %v6076_v49  ;;  %v6143_v29 = vmax.f32 %v6139_v52, 0.0  ;;  %v8920_v52 = vld [vmem:[%s11407_s1 + $0x14] ss:$8 sps:$4 sm:$0xff]  }
0x1d54   : > { %v6080_v63 = vpop.f32.mrf.mxu0  ;;  %v8355_v35 = vadd.f32 %v8354_v36, %v8353_v7 }
0x1d55   : > { %v6081_v6 = vadd.f32 %v8352_v25, %v6080_v63  ;;  %v6140_v46 = vadd.f32 %v6127_v17, %v6116_v28  ;;  %v7944_v0 = vpack.c.bf16 %v6143_v29, %v6143_v29  ;;  %v8924_v28 = vld [vmem:[%s11407_s1 + $0x10] ss:$8 sps:$4 sm:$0xff]   ;;  %v6503_v29 = vld [vmem:[%s11410_s2] sm:$0xf]  ;;  %s11411_s2 = smov 6  }
0x1d56   : > { %v6082_v12 = vpop.f32.mrf.mxu0 }
0x1d57   : > { %v6117_v14 = vmul.f32 %v6108_v44, %v6081_v6  ;;  %v6144_v51 = vmax.f32 %v6140_v46, 0.0 }
0x1d58   : > { %v6083_v30 = vpop.f32.mrf.mxu0 }
0x1d59   : > { %v6141_v62 = vadd.f32 %v6132_v16, %v6117_v14  ;;  %v6084_v9 = vadd.f32 %v8355_v35, %v6083_v30  ;;  %v7945_v27 = vpack.c.bf16 %v6144_v51, %v6144_v51  ;;  %v8914_v30 = vld [vmem:[%s11407_s1] ss:$8 sps:$4 sm:$0xff]   ;;  %s11412_s1 = smov 126  }
0x1d5a   : > { %v6085_v58 = vpop.f32.mrf.mxu0 }
0x1d5b   : > { %v6145_v4 = vmax.f32 %v6141_v62, 0.0  ;;  %v6118_v48 = vmul.f32 %v6113_v8, %v6084_v9 }
0x1d5d   : > { %v7946_v38 = vpack.c.bf16 %v6145_v4, %v6145_v4  ;;  %v6142_v20 = vadd.f32 %v6137_v43, %v6118_v48 }
0x1d5f   : > { %v6146_v47 = vmax.f32 %v6142_v20, 0.0  ;;  %6167 = vrot.lane.b32.xlu0 %v7946_v38, %s11402_s22  ;;  %v6512_v38 = vsel %vm1273_vm0, %v6503_v29, 0 }
0x1d61   : > { %v7947_v11 = vpack.c.bf16 %v6146_v47, %v6146_v47 }
0x1d63   : > { %6163 = vrot.lane.b32.xlu0 %v7944_v0, %s11402_s22  ;;  %6169 = vrot.lane.b32.xlu1 %v7947_v11, %s11402_s22 }
0x1d67   : > { %6165 = vrot.lane.b32.xlu1 %v7945_v27, %s11402_s22 }
0x1d6b   : > { %6265 = vrot.lane.b32.xlu1 %v10899_v33, %s11312_s28 }
0x1d6f   : > { %6263 = vrot.lane.b32.xlu1 %v10903_v15, %s11312_s28  ;;  %s11403_s28 = smov 124  }
0x1d73   : > { %6259 = vrot.lane.b32.xlu1 %v10899_v33, %s11318_s18 }
0x1d77   : > { %6257 = vrot.lane.b32.xlu1 %v10903_v15, %s11318_s18 }
0x1d7b   : > { %6253 = vrot.lane.b32.xlu1 %v10899_v33, %s11321_s26 }
0x1d7f   : > { %6251 = vrot.lane.b32.xlu1 %v10903_v15, %s11321_s26 }
0x1d83   : > { %6283 = vrot.lane.b32.xlu1 %v10899_v33, %s11316_s16 }
0x1d87   : > { %6281 = vrot.lane.b32.xlu1 %v10903_v15, %s11316_s16  ;;  %s11405_s16 = sld [smem:[#allocation15_spill]] }
0x1d8b   : > { %6277 = vrot.lane.b32.xlu1 %v10899_v33, %s11314_s23 }
0x1d8d   : > { %v8919_v54 = vld [vmem:[%s11405_s16 + $0x4] ss:$8 sps:$4 sm:$0xff]   ;;  %v8917_v31 = vld [vmem:[%s11405_s16] ss:$8 sps:$4 sm:$0xff]   ;;  %v8922_v42 = vld [vmem:[%s11405_s16 + $0x14] ss:$8 sps:$4 sm:$0xff]  }
0x1d8e   : > { %7842 = vmatprep.mubr.msk.bf16.mxu0 %vm2225_vm5, %v8919_v54  ;;  %v8925_v18 = vld [vmem:[%s11405_s16 + $0x10] ss:$8 sps:$4 sm:$0xff]  }
0x1d8f   : > { %6275 = vrot.lane.b32.xlu1 %v10903_v15, %s11314_s23  ;;  %s11404_s23 = smov 125  }
0x1d93   : > { %6271 = vrot.lane.b32.xlu1 %v10899_v33, %s11403_s28 }
0x1d97   : > { %6269 = vrot.lane.b32.xlu1 %v10903_v15, %s11403_s28 }
0x1d9b   : > { %6456 = vperm.xlu1 %8682, %v6442_v2  }
0x1d9f   : > { %6466 = vperm.xlu1 %8682, %v6444_v53  }
0x1da3   : > { %6480 = vperm.xlu1 %8682, %v6446_v26  }
0x1da7   : > { %6490 = vperm.xlu1 %8682, %v6448_v39  }
0x1dd1   : > { %v6168_v60 = vpop.permute.xlu0 %6167 }
0x1dd2   : > { %6177 = vst.msk [vmem:[#allocation2 + $0x10] sm:$0xf] %vm1927_vm10, %v6168_v60 }
0x1dd3   : > { %6181 = vst.msk [vmem:[#allocation2 + $0x10] sm:$0xf] %vm1930_vm13, %v11390_v56 }
0x1dd5   : > { %v6164_v45 = vpop.permute.xlu0 %6163  ;;  %v6170_v37 = vpop.permute.xlu1 %6169 }
0x1dd6   : > { %6175 = vst.msk [vmem:[#allocation2] sm:$0xf] %vm1927_vm10, %v6164_v45  ;;  %6178 = vst.msk [vmem:[#allocation2 + $0x18] sm:$0xf] %vm1927_vm10, %v6170_v37 }
0x1dd7   : > { %6179 = vst.msk [vmem:[#allocation2] sm:$0xf] %vm1930_vm13, %v11390_v56  ;;  %6182 = vst.msk [vmem:[#allocation2 + $0x18] sm:$0xf] %vm1930_vm13, %v11390_v56 }
0x1dd9   : > { %v6166_v32 = vpop.permute.xlu1 %6165 }
0x1dda   : > { %6176 = vst.msk [vmem:[#allocation2 + $0x8] sm:$0xf] %vm1927_vm10, %v6166_v32  ;;  %vm6591_vm10 = vcmask 281648  }
0x1ddb   : > { %6180 = vst.msk [vmem:[#allocation2 + $0x8] sm:$0xf] %vm1930_vm13, %v11390_v56  ;;  %vm6504_vm13 = vcmask 64512  }
0x1ddd   : > { %v6266_v8 = vpop.permute.xlu1 %6265 }
0x1dde   : > { %v10943_v57 = vld [vmem:[#allocation2 + $0x10] ss:$8 sps:$4 sm:$0xff]   ;;  %6393 = vmatpush1.bf16.msra.mxu0 %v6266_v8 }
0x1ddf   : > { %6567 = vst.msk [vmem:[#allocation2 + $0x10] sm:$0xf] %vm3902_vm3, %v11390_v56  ;;  %6568 = vst.msk [vmem:[#allocation2 + $0x18] sm:$0xf] %vm3902_vm3, %v11390_v56  ;;  %6394 = vmatprep.subr.bf16.mxu0 %v11390_v56  ;;  %6213 = vrot.lane.b32.xlu0 %v10943_v57, %s11404_s23 }
0x1de1   : > { %v6264_v44 = vpop.permute.xlu1 %6263 }
0x1de2   : > { %v10952_v43 = vld [vmem:[#allocation2] ss:$8 sps:$4 sm:$0xff]   ;;  %6395 = vmatpush1.bf16.msra.mxu0 %v6264_v44 }
0x1de3   : > { %6565 = vst.msk [vmem:[#allocation2] sm:$0xf] %vm3902_vm3, %v11390_v56  ;;  %6566 = vst.msk [vmem:[#allocation2 + $0x8] sm:$0xf] %vm3902_vm3, %v11390_v56  ;;  %6396 = vmatprep.subr.bf16.mxu0 %v11390_v56  ;;  %6211 = vrot.lane.b32.xlu0 %v10952_v43, %s11404_s23 }
0x1de5   : > { %v6260_v16 = vpop.permute.xlu1 %6259 }
0x1de6   : > { %6397 = vmatpush1.bf16.msra.mxu0 %v6260_v16 }
0x1de7   : > { %6398 = vmatprep.subr.bf16.mxu0 %v11390_v56  ;;  %6207 = vrot.lane.b32.xlu0 %v10943_v57, %s11318_s18 }
0x1de9   : > { %v6258_v13 = vpop.permute.xlu1 %6257 }
0x1dea   : > { %6399 = vmatpush1.bf16.msra.mxu0 %v6258_v13 }
0x1deb   : > { %6400 = vmatprep.subr.bf16.mxu0 %v11390_v56  ;;  %6205 = vrot.lane.b32.xlu0 %v10952_v43, %s11318_s18  ;;  %s11406_s18 = smov 122  }
0x1ded   : > { %v6254_v1 = vpop.permute.xlu1 %6253 }
0x1dee   : > { %6401 = vmatpush1.bf16.msra.mxu0 %v6254_v1 }
0x1def   : > { %6402 = vmatprep.subr.bf16.mxu0 %v11390_v56  ;;  %6201 = vrot.lane.b32.xlu0 %v10943_v57, %s11321_s26 }
0x1df1   : > { %v6252_v17 = vpop.permute.xlu1 %6251 }
0x1df2   : > { %6403 = vmatpush1.bf16.msra.mxu0 %v6252_v17 }
0x1df3   : > { %6404 = vmatprep.subr.bf16.mxu0 %v11390_v56  ;;  %6199 = vrot.lane.b32.xlu0 %v10952_v43, %s11321_s26  ;;  %s11408_s26 = smov 123  }
0x1df5   : > { %v6284_v34 = vpop.permute.xlu1 %6283 }
0x1df6   : > { %6405 = vmatpush1.bf16.msra.mxu0 %v10899_v33 }
0x1df7   : > { %6406 = vmatprep.subr.bf16.mxu0 %v11390_v56  ;;  %6231 = vrot.lane.b32.xlu0 %v10943_v57, %s11406_s18 }
0x1df9   : > { %v6282_v10 = vpop.permute.xlu1 %6281 }
0x1dfa   : > { %6407 = vmatpush1.bf16.msra.mxu0 %v10903_v15 }
0x1dfb   : > { %6412 = vmatprep.subr.bf16.mxu0 %v11390_v56  ;;  %6229 = vrot.lane.b32.xlu0 %v10952_v43, %s11406_s18 }
0x1dfd   : > { %v6278_v40 = vpop.permute.xlu1 %6277 }
0x1dfe   : > { %6413 = vmatpush2.bf16.msra.mxu0 %v6284_v34 }
0x1dff   : > { %6414 = vmatprep.subr.bf16.mxu0 %v11390_v56  ;;  %6225 = vrot.lane.b32.xlu0 %v10943_v57, %s11408_s26 }
0x1e01   : > { %v6276_v55 = vpop.permute.xlu1 %6275 }
0x1e02   : > { %6415 = vmatpush2.bf16.msra.mxu0 %v6282_v10 }
0x1e03   : > { %6416 = vmatprep.subr.bf16.mxu0 %v11390_v56  ;;  %6223 = vrot.lane.b32.xlu0 %v10952_v43, %s11408_s26 }
0x1e05   : > { %v6272_v59 = vpop.permute.xlu1 %6271 }
0x1e06   : > { %6417 = vmatpush2.bf16.msra.mxu0 %v6278_v40 }
0x1e07   : > { %6418 = vmatprep.subr.bf16.mxu0 %v11390_v56  ;;  %6219 = vrot.lane.b32.xlu0 %v10943_v57, %s11403_s28 }
0x1e09   : > { %v6270_v3 = vpop.permute.xlu1 %6269 }
0x1e0a   : > { %6419 = vmatpush2.bf16.msra.mxu0 %v6276_v55 }
0x1e0b   : > { %6420 = vmatprep.subr.bf16.mxu0 %v11390_v56  ;;  %6217 = vrot.lane.b32.xlu0 %v10952_v43, %s11403_s28 }
0x1e0e   : > { %6421 = vmatpush2.bf16.msra.mxu0 %v6272_v59 }
0x1e0f   : > { %6422 = vmatprep.subr.bf16.mxu0 %v11390_v56  ;;  %6451 = vperm.xlu0 %8681, %v6441_v61  }
0x1e12   : > { %6423 = vmatpush2.bf16.msra.mxu0 %v6270_v3 }
0x1e13   : > { %8544 = vmatprep.subr.bf16.mxu0 %v11409_v21  ;;  %6461 = vperm.xlu0 %8681, %v6443_v5  }
0x1e15   : > { %6425 = vmatmul.mubr.bf16.vlgmr.msra.gmra.mxu0 %v8917_v31 }
0x1e16   : > { %7843 = vmatprep.mubr.msk.bf16.mxu0 %vm2225_vm5, %v8922_v42  ;;  %v6457_v51 = vpop.permute.xlu1 %6456 }
0x1e17   : > { %6475 = vperm.xlu0 %8681, %v6445_v22  }
0x1e1a   : > { %v6467_v15 = vpop.permute.xlu1 %6466 }
0x1e1b   : > { %6485 = vperm.xlu0 %8681, %v6447_v24  }
0x1e1d   : > { %6433 = vmatmul.mubr.bf16.gmra.mxu0 %v8925_v18 }
0x1e1e   : > { %8558 = vmatprep.mubr.msk.bf16.mxu0 %vm8998_vm15, %v11409_v21  ;;  %v6481_v8 = vpop.permute.xlu1 %6480 }
0x1e22   : > { %v6491_v61 = vpop.permute.xlu1 %6490 }
0x1e51   : > { %v6214_v7 = vpop.permute.xlu0 %6213 }
0x1e52   : > { %6320 = vmatpush1.bf16.msra.mxu1 %v6214_v7 }
0x1e53   : > { %6321 = vmatprep.subr.bf16.mxu1 %v11390_v56 }
0x1e55   : > { %v6212_v23 = vpop.permute.xlu0 %6211 }
0x1e56   : > { %6322 = vmatpush1.bf16.msra.mxu1 %v6212_v23 }
0x1e57   : > { %6323 = vmatprep.subr.bf16.mxu1 %v11390_v56 }
0x1e59   : > { %v6208_v41 = vpop.permute.xlu0 %6207 }
0x1e5a   : > { %6324 = vmatpush1.bf16.msra.mxu1 %v6208_v41 }
0x1e5b   : > { %6325 = vmatprep.subr.bf16.mxu1 %v11390_v56 }
0x1e5d   : > { %v6206_v25 = vpop.permute.xlu0 %6205 }
0x1e5e   : > { %6326 = vmatpush1.bf16.msra.mxu1 %v6206_v25 }
0x1e5f   : > { %6327 = vmatprep.subr.bf16.mxu1 %v11390_v56 }
0x1e61   : > { %v6202_v63 = vpop.permute.xlu0 %6201 }
0x1e62   : > { %6328 = vmatpush1.bf16.msra.mxu1 %v6202_v63 }
0x1e63   : > { %6329 = vmatprep.subr.bf16.mxu1 %v11390_v56 }
0x1e65   : > { %v6200_v36 = vpop.permute.xlu0 %6199 }
0x1e66   : > { %6330 = vmatpush1.bf16.msra.mxu1 %v6200_v36 }
0x1e67   : > { %6331 = vmatprep.subr.bf16.mxu1 %v11390_v56 }
0x1e69   : > { %v6232_v50 = vpop.permute.xlu0 %6231 }
0x1e6a   : > { %6332 = vmatpush1.bf16.msra.mxu1 %v10943_v57 }
0x1e6b   : > { %6333 = vmatprep.subr.bf16.mxu1 %v11390_v56 }
0x1e6d   : > { %v6230_v49 = vpop.permute.xlu0 %6229 }
0x1e6e   : > { %6334 = vmatpush1.bf16.msra.mxu1 %v10952_v43 }
0x1e6f   : > { %6339 = vmatprep.subr.bf16.mxu1 %v11390_v56 }
0x1e71   : > { %v6226_v6 = vpop.permute.xlu0 %6225 }
0x1e72   : > { %6340 = vmatpush2.bf16.msra.mxu1 %v6232_v50 }
0x1e73   : > { %6341 = vmatprep.subr.bf16.mxu1 %v11390_v56 }
0x1e75   : > { %v6224_v12 = vpop.permute.xlu0 %6223 }
0x1e76   : > { %6342 = vmatpush2.bf16.msra.mxu1 %v6230_v49 }
0x1e77   : > { %6343 = vmatprep.subr.bf16.mxu1 %v11390_v56 }
0x1e79   : > { %v6220_v14 = vpop.permute.xlu0 %6219 }
0x1e7a   : > { %6344 = vmatpush2.bf16.msra.mxu1 %v6226_v6 }
0x1e7b   : > { %6345 = vmatprep.subr.bf16.mxu1 %v11390_v56 }
0x1e7d   : > { %v6218_v35 = vpop.permute.xlu0 %6217 }
0x1e7e   : > { %6346 = vmatpush2.bf16.msra.mxu1 %v6224_v12 }
0x1e7f   : > { %6347 = vmatprep.subr.bf16.mxu1 %v11390_v56 }
0x1e82   : > { %6348 = vmatpush2.bf16.msra.mxu1 %v6220_v14 }
0x1e83   : > { %6349 = vmatprep.subr.bf16.mxu1 %v11390_v56 }
0x1e86   : > { %6350 = vmatpush2.bf16.msra.mxu1 %v6218_v35  ;;  %v6708_v35 = vld [vmem:[%s9165_s20 + $0x238] sm:$0xff] }
0x1e87   : > { %8620 = vmatprep.subr.msk.bf16.mxu1 %vm1273_vm0, %v6503_v29 }
0x1e89   : > { %6352 = vmatmul.mubr.bf16.vlgmr.msra.gmra.mxu1 %v8914_v30  ;;  %v6710_v30 = vld [vmem:[%s9170_s27 + $0x238] sm:$0xff] }
0x1e8a   : > { %7837 = vmatprep.mubr.msk.bf16.mxu1 %vm2225_vm5, %v8920_v52  ;;  %8539 = vmatpush3.bf16.msra.mxu1 %v6512_v38  ;;  %v6452_v0 = vpop.permute.xlu0 %6451  ;;  %v6709_v52 = vld [vmem:[%s9165_s20 + $0x240] sm:$0xff] }
0x1e8b   : > { %6667 = vmatprep.subr.bf16.mxu1 %v11390_v56 }
0x1e8e   : > { %v6462_v11 = vpop.permute.xlu0 %6461 }
0x1e91   : > { %6360 = vmatmul.mubr.bf16.gmra.mxu1 %v8924_v28  ;;  %v6711_v28 = vld [vmem:[%s9170_s27 + $0x240] sm:$0xff] }
0x1e92   : > { %v6476_v60 = vpop.permute.xlu0 %6475 }
0x1e96   : > { %v6486_v54 = vpop.permute.xlu0 %6485 }
0x1ed5   : > { %v6426_v62 = vpop.f32.mrf.mxu0 }
0x1ed7   : > { %v6428_v9 = vpop.f32.mrf.mxu0 }
0x1ed9   : > { %v6429_v58 = vpop.f32.mrf.mxu0 }
0x1edb   : > { %v6431_v4 = vpop.f32.mrf.mxu0 }
0x1edd   : > { %v6434_v48 = vpop.f32.mrf.mxu0 }
0x1edf   : > { %v6436_v46 = vpop.f32.mrf.mxu0 }
0x1ee1   : > { %v6437_v20 = vpop.f32.mrf.mxu0 }
0x1ee3   : > { %v6439_v47 = vpop.f32.mrf.mxu0 }
0x1f49   : > { %v6353_v27 = vpop.f32.mrf.mxu1 }
0x1f4a   : > { %v6427_v33 = vadd.f32 %v6426_v62, %v6353_v27  ;;  %v8930_v62 = vld [vmem:[%s11414_s5 + $0x4] ss:$8 sps:$4 sm:$0xff]   ;;  %v8928_v27 = vld [vmem:[%s11414_s5] ss:$8 sps:$4 sm:$0xff]   ;;  %s11418_s5 = sld [smem:[#allocation19_spill]] }
0x1f4b   : > { %v6355_v2 = vpop.f32.mrf.mxu1 }
0x1f4c   : > { %v6469_v53 = vmul.f32 %v6452_v0, %v6427_v33 }
0x1f4d   : > { %v6356_v26 = vpop.f32.mrf.mxu1 }
0x1f4e   : > { %v6430_v39 = vadd.f32 %v6429_v58, %v6356_v26  ;;  %v6493_v37 = vadd.f32 %v6476_v60, %v6469_v53 }
0x1f4f   : > { %v6358_v45 = vpop.f32.mrf.mxu1 }
0x1f50   : > { %v6470_v32 = vmul.f32 %v6457_v51, %v6430_v39  ;;  %v6497_v13 = vmax.f32 %v6493_v37, 0.0 }
0x1f51   : > { %v6361_v57 = vpop.f32.mrf.mxu1 }
0x1f52   : > { %v6494_v44 = vadd.f32 %v6481_v8, %v6470_v32  ;;  %v6435_v43 = vadd.f32 %v6434_v48, %v6361_v57 }
0x1f53   : > { %v6363_v16 = vpop.f32.mrf.mxu1 }
0x1f54   : > { %v6498_v1 = vmax.f32 %v6494_v44, 0.0  ;;  %v6471_v17 = vmul.f32 %v6462_v11, %v6435_v43 }
0x1f55   : > { %v6364_v34 = vpop.f32.mrf.mxu1 }
0x1f56   : > { %v6501_v10 = vpack.c.bf16 %v6498_v1, %v6497_v13  ;;  %v6438_v40 = vadd.f32 %v6437_v20, %v6364_v34  ;;  %v6495_v19 = vadd.f32 %v6486_v54, %v6471_v17  ;;  %v11415_v1 = vld [vmem:[#allocation27_spill] sm:$0xff]  ;;  %v11416_v17 = vld [vmem:[#allocation28_spill] sm:$0xff] }
0x1f57   : > { %v6366_v55 = vpop.f32.mrf.mxu1 }
0x1f58   : > { %v6472_v59 = vmul.f32 %v6467_v15, %v6438_v40  ;;  %8540 = vmatprep.mubr.msk.bf16.mxu1 %vm6504_vm13, %v6501_v10  ;;  %v6499_v5 = vmax.f32 %v6495_v19, 0.0 }
0x1f5a   : > { %v6496_v3 = vadd.f32 %v6491_v61, %v6472_v59  ;;  %v6911_v59 = vld [vmem:[%s9165_s20 + $0x250] sm:$0xff]  ;;  %v6910_v61 = vld [vmem:[%s9165_s20 + $0x248] sm:$0xff] }
0x1f5c   : > { %v6500_v31 = vmax.f32 %v6496_v3, 0.0  ;;  %v6913_v3 = vld [vmem:[%s9170_s27 + $0x250] sm:$0xff] }
0x1f5e   : > { %v6502_v42 = vpack.c.bf16 %v6500_v31, %v6499_v5  ;;  %v6912_v5 = vld [vmem:[%s9170_s27 + $0x248] sm:$0xff] }
0x1f60   : > { %8541 = vmatmul.mubr.msk.bf16.vlgmr.msra.gmra.mxu1 %vm6504_vm13, %v6502_v42 }
0x1f61   : > { %7854 = vmatprep.mubr.msk.bf16.mxu1 %vm2225_vm5, %v8930_v62  ;;  %vm11420_vm5 = vcmask 23556  }
0x2020   : > { %v8542_v22 = vpop.f32.mrf.mxu1 }
0x2021   : > { %v7950_v24 = vpack.c.bf16 %v8542_v22, %v8542_v22 }
0x2022   : > { %v6548_v18 = vpop.f32.mrf.mxu1 }
0x2023   : > { %6583 = vrot.lane.b32.xlu0 %v7950_v24, %s11411_s2  ;;  %v7948_v23 = vpack.c.bf16 %v6548_v18, %v6548_v18 }
0x2024   : > { %v8543_v7 = vpop.f32.mrf.mxu1 }
0x2025   : > { %v7951_v41 = vpack.c.bf16 %v8543_v7, %v8543_v7 }
0x2026   : > { %v6551_v25 = vpop.f32.mrf.mxu1 }
0x2027   : > { %6579 = vrot.lane.b32.xlu0 %v7948_v23, %s11411_s2  ;;  %6585 = vrot.lane.b32.xlu1 %v7951_v41, %s11411_s2  ;;  %v7949_v63 = vpack.c.bf16 %v6551_v25, %v6551_v25 }
0x202b   : > { %6581 = vrot.lane.b32.xlu1 %v7949_v63, %s11411_s2 }
0x2095   : > { %v6584_v36 = vpop.permute.xlu0 %6583 }
0x2096   : > { %6594 = vst.msk [vmem:[#allocation2 + $0x10] sm:$0xf] %vm6591_vm10, %v6584_v36 }
0x2097   : > { %6599 = vst.msk [vmem:[#allocation2 + $0x10] sm:$0xf] %vm6596_vm8, %v11390_v56 }
0x2099   : > { %v6580_v50 = vpop.permute.xlu0 %6579  ;;  %v6586_v49 = vpop.permute.xlu1 %6585 }
0x209a   : > { %6592 = vst.msk [vmem:[#allocation2] sm:$0xf] %vm6591_vm10, %v6580_v50  ;;  %6595 = vst.msk [vmem:[#allocation2 + $0x18] sm:$0xf] %vm6591_vm10, %v6586_v49 }
0x209b   : > { %6600 = vst.msk [vmem:[#allocation2 + $0x18] sm:$0xf] %vm6596_vm8, %v11390_v56  ;;  %6597 = vst.msk [vmem:[#allocation2] sm:$0xf] %vm6596_vm8, %v11390_v56 }
0x209d   : > { %v6582_v6 = vpop.permute.xlu1 %6581 }
0x209e   : > { %6593 = vst.msk [vmem:[#allocation2 + $0x8] sm:$0xf] %vm6591_vm10, %v6582_v6  ;;  %v8934_v6 = vld [vmem:[%s11418_s5] sm:$0xff]   ;;  %vm11424_vm10 = vcmask 1006592   ;;  %s11426_s5 = sld [smem:[#allocation22_spill]] }
0x209f   : > { %6598 = vst.msk [vmem:[#allocation2 + $0x8] sm:$0xf] %vm6596_vm8, %v11390_v56  ;;  %vm11425_vm8 = vcmask 1014784  }
0x20a2   : > { %v8926_v12 = vld [vmem:[#allocation2 + $0x10] ss:$8 sps:$4 sm:$0xff]  }
0x20a3   : > { %6631 = vrot.lane.b32.xlu0 %v8926_v12, %s11404_s23 }
0x20a6   : > { %v8927_v14 = vld [vmem:[#allocation2] ss:$8 sps:$4 sm:$0xff]  }
0x20a7   : > { %6739 = vst.msk [vmem:[#allocation2] sm:$0xf] %vm1220_vm12, %v11390_v56  ;;  %6740 = vst.msk [vmem:[#allocation2 + $0x8] sm:$0xf] %vm1220_vm12, %v11390_v56  ;;  %6625 = vrot.lane.b32.xlu0 %v8926_v12, %s11412_s1  ;;  %6629 = vrot.lane.b32.xlu1 %v8927_v14, %s11404_s23 }
0x20ab   : > { %6619 = vrot.lane.b32.xlu0 %v8926_v12, %s11413_s3  ;;  %6623 = vrot.lane.b32.xlu1 %v8927_v14, %s11412_s1 }
0x20af   : > { %6649 = vrot.lane.b32.xlu0 %v8926_v12, %s11406_s18  ;;  %6617 = vrot.lane.b32.xlu1 %v8927_v14, %s11413_s3 }
0x20b3   : > { %6643 = vrot.lane.b32.xlu0 %v8926_v12, %s11408_s26  ;;  %6647 = vrot.lane.b32.xlu1 %v8927_v14, %s11406_s18 }
0x20b7   : > { %6637 = vrot.lane.b32.xlu0 %v8926_v12, %s11403_s28  ;;  %6641 = vrot.lane.b32.xlu1 %v8927_v14, %s11408_s26 }
0x20bb   : > { %6714 = vperm.xlu0 %8681, %v6708_v35   ;;  %6635 = vrot.lane.b32.xlu1 %v8927_v14, %s11403_s28 }
0x20bf   : > { %6726 = vperm.xlu0 %8681, %v6710_v30   ;;  %6719 = vperm.xlu1 %8682, %v6709_v52  }
0x20c3   : > { %6731 = vperm.xlu1 %8682, %v6711_v28  }
0x2115   : > { %v6632_v9 = vpop.permute.xlu0 %6631 }
0x2116   : > { %6668 = vmatpush1.bf16.msra.mxu1 %v6632_v9 }
0x2117   : > { %6669 = vmatprep.subr.bf16.mxu1 %v11390_v56 }
0x2119   : > { %v6630_v58 = vpop.permute.xlu1 %6629  ;;  %v6626_v4 = vpop.permute.xlu0 %6625 }
0x211a   : > { %6670 = vmatpush1.bf16.msra.mxu1 %v6630_v58 }
0x211b   : > { %6671 = vmatprep.subr.bf16.mxu1 %v11390_v56 }
0x211d   : > { %v6624_v48 = vpop.permute.xlu1 %6623  ;;  %v6620_v29 = vpop.permute.xlu0 %6619 }
0x211e   : > { %6672 = vmatpush1.bf16.msra.mxu1 %v6626_v4 }
0x211f   : > { %6673 = vmatprep.subr.bf16.mxu1 %v11390_v56 }
0x2121   : > { %v6618_v46 = vpop.permute.xlu1 %6617  ;;  %v6650_v38 = vpop.permute.xlu0 %6649 }
0x2122   : > { %6674 = vmatpush1.bf16.msra.mxu1 %v6624_v48 }
0x2123   : > { %6675 = vmatprep.subr.bf16.mxu1 %v11390_v56 }
0x2125   : > { %v6648_v20 = vpop.permute.xlu1 %6647  ;;  %v6644_v47 = vpop.permute.xlu0 %6643 }
0x2126   : > { %6676 = vmatpush1.bf16.msra.mxu1 %v6620_v29 }
0x2127   : > { %6677 = vmatprep.subr.bf16.mxu1 %v11390_v56 }
0x2129   : > { %v6642_v0 = vpop.permute.xlu1 %6641  ;;  %v6638_v51 = vpop.permute.xlu0 %6637 }
0x212a   : > { %6678 = vmatpush1.bf16.msra.mxu1 %v6618_v46 }
0x212b   : > { %6679 = vmatprep.subr.bf16.mxu1 %v11390_v56 }
0x212d   : > { %v6636_v11 = vpop.permute.xlu1 %6635 }
0x212e   : > { %6680 = vmatpush1.bf16.msra.mxu1 %v8926_v12  ;;  %v8935_v12 = vld [vmem:[%s11419_s6 + $0x8] sm:$0xff]  }
0x212f   : > { %6681 = vmatprep.subr.bf16.mxu1 %v11390_v56 }
0x2132   : > { %6682 = vmatpush1.bf16.msra.mxu1 %v8927_v14  ;;  %v8936_v14 = vld [vmem:[%s11419_s6] sm:$0xff]  }
0x2133   : > { %6687 = vmatprep.subr.bf16.mxu1 %v11390_v56 }
0x2136   : > { %6688 = vmatpush2.bf16.msra.mxu1 %v6650_v38  ;;  %v6715_v33 = vpop.permute.xlu0 %6714 }
0x2137   : > { %6689 = vmatprep.subr.bf16.mxu1 %v11390_v56 }
0x213a   : > { %6690 = vmatpush2.bf16.msra.mxu1 %v6648_v20  ;;  %v6720_v15 = vpop.permute.xlu1 %6719  ;;  %v6727_v26 = vpop.permute.xlu0 %6726 }
0x213b   : > { %6691 = vmatprep.subr.bf16.mxu1 %v11390_v56 }
0x213e   : > { %6692 = vmatpush2.bf16.msra.mxu1 %v6644_v47  ;;  %v6732_v8 = vpop.permute.xlu1 %6731 }
0x213f   : > { %6693 = vmatprep.subr.bf16.mxu1 %v11390_v56 }
0x2142   : > { %6694 = vmatpush2.bf16.msra.mxu1 %v6642_v0 }
0x2143   : > { %6695 = vmatprep.subr.bf16.mxu1 %v11390_v56 }
0x2146   : > { %6696 = vmatpush2.bf16.msra.mxu1 %v6638_v51 }
0x2147   : > { %6697 = vmatprep.subr.bf16.mxu1 %v11390_v56 }
0x214a   : > { %6698 = vmatpush2.bf16.msra.mxu1 %v6636_v11 }
0x214b   : > { %8580 = vmatprep.subr.bf16.mxu1 %v11409_v21 }
0x214d   : > { %6700 = vmatmul.mubr.bf16.vlgmr.msra.gmra.mxu1 %v8928_v27 }
0x214e   : > { %8584 = vmatprep.mubr.msk.bf16.mxu1 %vm8998_vm15, %v11409_v21  ;;  %8581 = vmatpush3.bf16.msra.mxu1 %v8935_v12 }
0x214f   : > { %8582 = vmatprep.subr.bf16.mxu1 %v11409_v21 }
0x2152   : > { %8583 = vmatpush3.bf16.msra.mxu1 %v8936_v14 }
0x2153   : > { %8588 = vmatprep.subr.bf16.mxu1 %v11409_v21 }
0x220d   : > { %v6701_v2 = vpop.f32.mrf.mxu1 }
0x220e   : > { %v6722_v53 = vmul.f32 %v6715_v33, %v6701_v2 }
0x220f   : > { %v6703_v39 = vpop.f32.mrf.mxu1 }
0x2210   : > { %v6734_v60 = vadd.f32 %v6727_v26, %v6722_v53 }
0x2211   : > { %v6704_v45 = vpop.f32.mrf.mxu1 }
0x2212   : > { %v6736_v37 = vmax.f32 %v6734_v60, 0.0  ;;  %v6723_v32 = vmul.f32 %v6720_v15, %v6704_v45 }
0x2213   : > { %v6706_v57 = vpop.f32.mrf.mxu1 }
0x2214   : > { %v7952_v44 = vpack.c.bf16 %v6736_v37, %v6736_v37  ;;  %v6735_v43 = vadd.f32 %v6732_v8, %v6723_v32 }
0x2216   : > { %v6737_v16 = vmax.f32 %v6735_v43, 0.0  ;;  %6746 = vrot.lane.b32.xlu0 %v7952_v44, %s11402_s22 }
0x2218   : > { %v7953_v13 = vpack.c.bf16 %v6737_v16, %v6737_v16 }
0x221a   : > { %1712 = vrot.lane.b32.xlu0 %v11415_v1, %s11397_s0  ;;  %6748 = vrot.lane.b32.xlu1 %v7953_v13, %s11402_s22 }
0x221e   : > { %1714 = vrot.lane.b32.xlu1 %v11416_v17, %s11397_s0  ;;  %s11417_s0 = sld [smem:[#allocation20_spill]] }
0x2224   : > { %v8933_v23 = vld [vmem:[%s11417_s0] sm:$0xff]  }
0x2288   : > { %v6747_v34 = vpop.permute.xlu0 %6746 }
0x2289   : > { %6752 = vst.msk [vmem:[#allocation2] sm:$0xf] %vm1588_vm14, %v6747_v34 }
0x228a   : > { %6754 = vst.msk [vmem:[#allocation2] sm:$0xf] %vm1590_vm7, %v11390_v56 }
0x228c   : > { %v1713_v10 = vpop.permute.xlu0 %1712  ;;  %v6749_v40 = vpop.permute.xlu1 %6748 }
0x228d   : > { %1718 = vst.msk [vmem:[#allocation4] sm:$0xf] %vm1588_vm14, %v1713_v10  ;;  %6753 = vst.msk [vmem:[#allocation2 + $0x8] sm:$0xf] %vm1588_vm14, %v6749_v40  ;;  %v7128_v10 = vld [vmem:[%s9170_s27 + $0x258] sm:$0xff] }
0x228e   : > { %1720 = vst.msk [vmem:[#allocation4] sm:$0xf] %vm1590_vm7, %v11390_v56  ;;  %6755 = vst.msk [vmem:[#allocation2 + $0x8] sm:$0xf] %vm1590_vm7, %v11390_v56  ;;  %v7127_v40 = vld [vmem:[%s9165_s20 + $0x258] sm:$0xff] }
0x2290   : > { %v1715_v54 = vpop.permute.xlu1 %1714 }
0x2291   : > { %1719 = vst.msk [vmem:[#allocation4 + $0x4] sm:$0xf] %vm1588_vm14, %v1715_v54  ;;  %vm6957_vm14 = vcmask 261120   ;;  %v7211_v54 = vld [vmem:[#allocation3] sm:$0xff] }
0x2292   : > { %1721 = vst.msk [vmem:[#allocation4 + $0x4] sm:$0xf] %vm1590_vm7, %v11390_v56  ;;  %vm7021_vm7 = vcmask 1043504  }
0x2295   : > { %v8931_v55 = vld [vmem:[#allocation2] ss:$8 sps:$4 sm:$0xff]  }
0x2296   : > { %7003 = vst.msk [vmem:[#allocation2] sm:$0xf] %vm3902_vm3, %v11390_v56  ;;  %7004 = vst.msk [vmem:[#allocation2 + $0x8] sm:$0xf] %vm3902_vm3, %v11390_v56  ;;  %6776 = vrot.lane.b32.xlu1 %v8931_v55, %s11408_s26  ;;  %6779 = vrot.lane.b32.xlu0 %v8931_v55, %s11406_s18 }
0x2297   : > { %vm7022_vm3 = vmor %vm11420_vm5, %vm7021_vm7  ;;  %vm11428_vm7 = vcmask 1031168   ;;  %vm11429_vm5 = vcmask 1039360  }
0x2299   : > { %v8932_v19 = vld [vmem:[#allocation4] sm:$0xff]  }
0x229a   : > { %6770 = vrot.lane.b32.xlu1 %v8931_v55, %s11404_s23  ;;  %6773 = vrot.lane.b32.xlu0 %v8931_v55, %s11403_s28 }
0x229e   : > { %6764 = vrot.lane.b32.xlu1 %v8931_v55, %s11413_s3  ;;  %6767 = vrot.lane.b32.xlu0 %v8931_v55, %s11412_s1 }
0x22a2   : > { %6802 = vrot.lane.b32.xlu1 %v8932_v19, %s11408_s26  ;;  %6805 = vrot.lane.b32.xlu0 %v8932_v19, %s11406_s18 }
0x22a6   : > { %6796 = vrot.lane.b32.xlu1 %v8932_v19, %s11404_s23  ;;  %6799 = vrot.lane.b32.xlu0 %v8932_v19, %s11403_s28 }
0x22aa   : > { %6790 = vrot.lane.b32.xlu1 %v8932_v19, %s11413_s3  ;;  %6793 = vrot.lane.b32.xlu0 %v8932_v19, %s11412_s1 }
0x22ae   : > { %6921 = vperm.xlu1 %8682, %v6911_v59   ;;  %6916 = vperm.xlu0 %8681, %v6910_v61  }
0x22b2   : > { %6933 = vperm.xlu1 %8682, %v6913_v3   ;;  %6928 = vperm.xlu0 %8681, %v6912_v5  }
0x2308   : > { %v6780_v31 = vpop.permute.xlu0 %6779  ;;  %v6777_v42 = vpop.permute.xlu1 %6776 }
0x2309   : > { %8545 = vmatpush3.bf16.msra.mxu0 %v6780_v31 }
0x230a   : > { %8546 = vmatprep.subr.bf16.mxu0 %v11409_v21 }
0x230c   : > { %v6774_v22 = vpop.permute.xlu0 %6773  ;;  %v6771_v24 = vpop.permute.xlu1 %6770 }
0x230d   : > { %8547 = vmatpush3.bf16.msra.mxu0 %v6777_v42 }
0x230e   : > { %8548 = vmatprep.subr.bf16.mxu0 %v11409_v21 }
0x2310   : > { %v6768_v18 = vpop.permute.xlu0 %6767  ;;  %v6765_v7 = vpop.permute.xlu1 %6764 }
0x2311   : > { %8549 = vmatpush3.bf16.msra.mxu0 %v6774_v22 }
0x2312   : > { %8550 = vmatprep.subr.bf16.mxu0 %v11409_v21 }
0x2314   : > { %v6806_v41 = vpop.permute.xlu0 %6805  ;;  %v6803_v25 = vpop.permute.xlu1 %6802 }
0x2315   : > { %8551 = vmatpush3.bf16.msra.mxu0 %v6771_v24 }
0x2316   : > { %8552 = vmatprep.subr.bf16.mxu0 %v11409_v21 }
0x2318   : > { %v6800_v63 = vpop.permute.xlu0 %6799  ;;  %v6797_v36 = vpop.permute.xlu1 %6796 }
0x2319   : > { %8553 = vmatpush3.bf16.msra.mxu0 %v6768_v18 }
0x231a   : > { %8554 = vmatprep.subr.bf16.mxu0 %v11409_v21 }
0x231c   : > { %v6794_v50 = vpop.permute.xlu0 %6793  ;;  %v6791_v49 = vpop.permute.xlu1 %6790 }
0x231d   : > { %8555 = vmatpush3.bf16.msra.mxu0 %v6765_v7 }
0x231e   : > { %8556 = vmatprep.subr.bf16.mxu0 %v11409_v21 }
0x2321   : > { %8557 = vmatpush3.bf16.msra.mxu0 %v8931_v55  ;;  %v11168_v55 = vcombine.low %v7211_v54, %v7211_v54 }
0x2322   : > { %8562 = vmatprep.subr.bf16.mxu0 %v11409_v21 }
0x2324   : > { %8559 = vmatmul.mubr.msk.bf16.vlgmr.msra.gmra.mxu0 %vm1770_vm1, %v8933_v23 }
0x2325   : > { %8563 = vmatpush3.bf16.msra.mxu0 %v6806_v41  ;;  %8576 = vmatprep.mubr.msk.bf16.mxu0 %vm8998_vm15, %v11409_v21 }
0x2326   : > { %8564 = vmatprep.subr.bf16.mxu0 %v11409_v21 }
0x2329   : > { %8565 = vmatpush3.bf16.msra.mxu0 %v6803_v25  ;;  %v6917_v62 = vpop.permute.xlu0 %6916  ;;  %v6922_v4 = vpop.permute.xlu1 %6921 }
0x232a   : > { %8566 = vmatprep.subr.bf16.mxu0 %v11409_v21 }
0x232d   : > { %8567 = vmatpush3.bf16.msra.mxu0 %v6800_v63  ;;  %v6929_v20 = vpop.permute.xlu0 %6928  ;;  %v6934_v11 = vpop.permute.xlu1 %6933 }
0x232e   : > { %8568 = vmatprep.subr.bf16.mxu0 %v11409_v21 }
0x2331   : > { %8569 = vmatpush3.bf16.msra.mxu0 %v6797_v36 }
0x2332   : > { %8570 = vmatprep.subr.bf16.mxu0 %v11409_v21 }
0x2335   : > { %8571 = vmatpush3.bf16.msra.mxu0 %v6794_v50 }
0x2336   : > { %8572 = vmatprep.subr.bf16.mxu0 %v11409_v21 }
0x2339   : > { %8573 = vmatpush3.bf16.msra.mxu0 %v6791_v49 }
0x233a   : > { %8574 = vmatprep.subr.bf16.mxu0 %v11409_v21 }
0x233d   : > { %8575 = vmatpush3.bf16.msra.mxu0 %v8932_v19 }
0x2340   : > { %8577 = vmatmul.mubr.msk.bf16.vlgmr.msra.gmra.mxu0 %vm1770_vm1, %v8934_v6  ;;  %v7082_v6 = vld [vmem:[%s11426_s5] sm:$0xf] }
0x2341   : > { %7118 = vmatprep.mubr.bf16.mxu0 %v11390_v56 }
0x23e4   : > { %v6854_v35 = vpop.f32.mrf.mxu0 }
0x23e6   : > { %v8560_v30 = vpop.f32.mrf.mxu0 }
0x23e8   : > { %v6857_v52 = vpop.f32.mrf.mxu0 }
0x23ea   : > { %v8561_v28 = vpop.f32.mrf.mxu0 }
0x2400   : > { %v6903_v9 = vpop.f32.mrf.mxu0 }
0x2401   : > { %v6904_v58 = vadd.f32 %v6903_v9, %v6854_v35 }
0x2402   : > { %v8578_v48 = vpop.f32.mrf.mxu0 }
0x2403   : > { %v6924_v29 = vmul.f32 %v6917_v62, %v6904_v58 }
0x2404   : > { %v6906_v46 = vpop.f32.mrf.mxu0 }
0x2405   : > { %v6907_v38 = vadd.f32 %v6906_v46, %v6857_v52  ;;  %v6936_v0 = vadd.f32 %v6929_v20, %v6924_v29 }
0x2406   : > { %v8579_v47 = vpop.f32.mrf.mxu0 }
0x2407   : > { %v6925_v51 = vmul.f32 %v6922_v4, %v6907_v38  ;;  %v6938_v33 = vmax.f32 %v6936_v0, 0.0  ;;  %v7875_v38 = vcombine.high %v7211_v54, %v7211_v54 }
0x2409   : > { %v6937_v27 = vadd.f32 %v6934_v11, %v6925_v51 }
0x240b   : > { %v6939_v15 = vmax.f32 %v6937_v27, 0.0 }
0x240d   : > { %v6940_v2 = vpack.c.bf16 %v6939_v15, %v6938_v33  ;;  %v7353_v15 = vld [vmem:[%s9165_s20 + $0x260] sm:$0xff] }
0x240f   : > { %8585 = vmatmul.mubr.msk.bf16.vlgmr.msra.gmra.mxu1 %vm6957_vm14, %v6940_v2  ;;  %vm11427_vm14 = vcmask 1022976   ;;  %v7370_v2 = vld [vmem:[%s9160_s12] sm:$0x7] }
0x2410   : > { %8596 = vmatprep.mubr.msk.bf16.mxu1 %vm8998_vm15, %v11409_v21 }
0x24cf   : > { %v6995_v53 = vpop.f32.mrf.mxu1 }
0x24d0   : > { %v7954_v26 = vpack.c.bf16 %v6995_v53, %v6995_v53 }
0x24d1   : > { %v8586_v39 = vpop.f32.mrf.mxu1 }
0x24d2   : > { %7010 = vrot.lane.b32.xlu0 %v7954_v26, %s11411_s2 }
0x24d3   : > { %v6998_v60 = vpop.f32.mrf.mxu1 }
0x24d4   : > { %v7955_v45 = vpack.c.bf16 %v6998_v60, %v6998_v60 }
0x24d5   : > { %v8587_v37 = vpop.f32.mrf.mxu1 }
0x24d6   : > { %7012 = vrot.lane.b32.xlu1 %v7955_v45, %s11411_s2 }
0x2544   : > { %v7011_v32 = vpop.permute.xlu0 %7010 }
0x2545   : > { %v7014_v8 = vrot.slane %v7011_v32, 4 }
0x2547   : > { %v7017_v57 = vsel %vm11421_vm9, %v7014_v8, %v7011_v32  ;;  %vm11437_vm9 = vmmov %vm11427_vm14 }
0x2548   : > { %7023 = vst.msk [vmem:[#allocation2] sm:$0xff] %vm7022_vm3, %v7017_v57  ;;  %v7013_v44 = vpop.permute.xlu1 %7012 }
0x2549   : > { %v7015_v43 = vrot.slane %v7013_v44, 4  ;;  %7026 = vst.msk [vmem:[#allocation2 + $0x4] sm:$0xf] %vm7025_vm4, %v11390_v56 }
0x254b   : > { %v7018_v16 = vsel %vm11422_vm2, %v7015_v43, %v7013_v44  ;;  %vm11438_vm2 = vmmov %vm11429_vm5 }
0x254c   : > { %7024 = vst.msk [vmem:[#allocation2 + $0x8] sm:$0xff] %vm7022_vm3, %v7018_v16  ;;  %vm11434_vm3 = vmmov %vm11424_vm10 }
0x254d   : > { %7027 = vst.msk [vmem:[#allocation2 + $0xc] sm:$0xf] %vm7025_vm4, %v11390_v56  ;;  %vm11436_vm4 = vmmov %vm11428_vm7 }
0x2550   : > { %v7028_v13 = vld [vmem:[#allocation2] sm:$0xff] }
0x2551   : > { %7147 = vst.msk [vmem:[#allocation2] sm:$0xf] %vm1220_vm12, %v11390_v56  ;;  %vm11423_vm12 = vcmask 998400  }
0x2554   : > { %v7029_v1 = vld [vmem:[#allocation2 + $0x8] sm:$0xff] }
0x2555   : > { %v8937_v17 = vld [vmem:[#allocation2 + $0x4] ss:$8 sps:$4 sm:$0xff]   ;;  %v7868_v34 = vcombine.low %v7028_v13, %v7029_v1 }
0x2556   : > { %7077 = vrot.lane.b32.xlu1 %v8937_v17, %s11406_s18 }
0x2557   : > { %7075 = vrot.lane.b32.xlu0 %v7868_v34, %s11406_s18 }
0x255a   : > { %7070 = vrot.lane.b32.xlu1 %v8937_v17, %s11408_s26 }
0x255b   : > { %7068 = vrot.lane.b32.xlu0 %v7868_v34, %s11408_s26 }
0x255e   : > { %7063 = vrot.lane.b32.xlu1 %v8937_v17, %s11403_s28 }
0x255f   : > { %7061 = vrot.lane.b32.xlu0 %v7868_v34, %s11403_s28 }
0x2562   : > { %7056 = vrot.lane.b32.xlu1 %v8937_v17, %s11404_s23 }
0x2563   : > { %7054 = vrot.lane.b32.xlu0 %v7868_v34, %s11404_s23 }
0x2566   : > { %7049 = vrot.lane.b32.xlu1 %v8937_v17, %s11412_s1 }
0x2567   : > { %7047 = vrot.lane.b32.xlu0 %v7868_v34, %s11412_s1 }
0x256a   : > { %7042 = vrot.lane.b32.xlu1 %v8937_v17, %s11413_s3 }
0x256b   : > { %7040 = vrot.lane.b32.xlu0 %v7868_v34, %s11413_s3 }
0x256e   : > { %7138 = vperm.xlu1 %8682, %v7128_v10  }
0x256f   : > { %7131 = vperm.xlu0 %8681, %v7127_v40  }
0x2572   : > { %7242 = vrot.lane.b32.xlu1 %v11168_v55, %s11406_s18 }
0x2576   : > { %7232 = vrot.lane.b32.xlu1 %v11168_v55, %s11403_s28 }
0x25c8   : > { %v7078_v19 = vpop.permute.xlu1 %7077 }
0x25c9   : > { %v7076_v59 = vpop.permute.xlu0 %7075  ;;  %7088 = vmatprep.subr.bf16.mxu0 %v7078_v19 }
0x25ca   : > { %v7079_v61 = vsel %vm11423_vm12, %v7076_v59, %v7078_v19 }
0x25cb   : > { %7089 = vmatpush1.bf16.msra.mxu0 %v7079_v61 }
0x25cc   : > { %v7071_v3 = vpop.permute.xlu1 %7070 }
0x25cd   : > { %v7069_v5 = vpop.permute.xlu0 %7068  ;;  %7090 = vmatprep.subr.bf16.mxu0 %v7071_v3 }
0x25ce   : > { %v7072_v31 = vsel %vm11424_vm10, %v7069_v5, %v7071_v3  ;;  %vm11440_vm10 = vcmask 457728  }
0x25cf   : > { %7091 = vmatpush1.bf16.msra.mxu0 %v7072_v31 }
0x25d0   : > { %v7064_v42 = vpop.permute.xlu1 %7063 }
0x25d1   : > { %v7062_v22 = vpop.permute.xlu0 %7061  ;;  %7092 = vmatprep.subr.bf16.mxu0 %v7064_v42 }
0x25d2   : > { %v7065_v24 = vsel %vm11425_vm8, %v7062_v22, %v7064_v42 }
0x25d3   : > { %7093 = vmatpush1.bf16.msra.mxu0 %v7065_v24 }
0x25d4   : > { %v7057_v18 = vpop.permute.xlu1 %7056 }
0x25d5   : > { %v7055_v7 = vpop.permute.xlu0 %7054  ;;  %7094 = vmatprep.subr.bf16.mxu0 %v7057_v18 }
0x25d6   : > { %v7058_v23 = vsel %vm11427_vm14, %v7055_v7, %v7057_v18 }
0x25d7   : > { %7095 = vmatpush1.bf16.msra.mxu0 %v7058_v23 }
0x25d8   : > { %v7050_v41 = vpop.permute.xlu1 %7049 }
0x25d9   : > { %v7048_v25 = vpop.permute.xlu0 %7047  ;;  %7096 = vmatprep.subr.bf16.mxu0 %v7050_v41 }
0x25da   : > { %v7051_v63 = vsel %vm11428_vm7, %v7048_v25, %v7050_v41  ;;  %vm11444_vm7 = vmmov %vm11436_vm4 }
0x25db   : > { %7097 = vmatpush1.bf16.msra.mxu0 %v7051_v63 }
0x25dc   : > { %v7043_v36 = vpop.permute.xlu1 %7042 }
0x25dd   : > { %v7041_v50 = vpop.permute.xlu0 %7040  ;;  %7098 = vmatprep.subr.bf16.mxu0 %v7043_v36 }
0x25de   : > { %v7044_v49 = vsel %vm11429_vm5, %v7041_v50, %v7043_v36  ;;  %vm11445_vm5 = vmmov %vm11437_vm9 }
0x25df   : > { %7099 = vmatpush1.bf16.msra.mxu0 %v7044_v49 }
0x25e0   : > { %7100 = vmatprep.subr.bf16.mxu0 %v8937_v17 }
0x25e3   : > { %7101 = vmatpush1.bf16.msra.mxu0 %v7868_v34 }
0x25e4   : > { %8612 = vmatprep.subr.bf16.mxu0 %v11409_v21 }
0x25e6   : > { %7870 = vmatmul.mubr.msk.bf16.vlgmr.msra.gmra.mxu0 %vm1770_vm1, %v7082_v6  ;;  %vm11431_vm1 = vcmask 44056  }
0x25e7   : > { %8614 = vmatprep.mubr.msk.bf16.mxu0 %vm8998_vm15, %v11409_v21 }
0x25e9   : > { %v7139_v30 = vpop.permute.xlu1 %7138 }
0x25ea   : > { %v7132_v12 = vpop.permute.xlu0 %7131 }
0x25ed   : > { %v7243_v53 = vpop.permute.xlu1 %7242 }
0x25f1   : > { %v7233_v39 = vpop.permute.xlu1 %7232 }
0x26a6   : > { %v7120_v14 = vpop.f32.mrf.mxu0 }
0x26a7   : > { %v7134_v35 = vmul.f32 %v7132_v12, %v7120_v14 }
0x26a8   : > { %v7122_v52 = vpop.f32.mrf.mxu0 }
0x26a9   : > { %v7141_v28 = vadd.f32 %v7139_v30, %v7134_v35  ;;  %v7135_v62 = vmul.f32 %v7132_v12, %v7122_v52 }
0x26aa   : > { %v7124_v9 = vpop.f32.mrf.mxu0 }
0x26ab   : > { %v7142_v58 = vadd.f32 %v7139_v30, %v7135_v62  ;;  %v7143_v48 = vmax.f32 %v7141_v28, 0.0  ;;  %v7210_v62 = vld [vmem:[#allocation3] sm:$0xf] }
0x26ac   : > { %v7125_v4 = vpop.f32.mrf.mxu0 }
0x26ad   : > { %v7144_v29 = vmax.f32 %v7142_v58, 0.0 }
0x26af   : > { %v7956_v46 = vpack.c.bf16 %v7144_v29, %v7143_v48 }
0x26b1   : > { %7153 = vrot.lane.b32.xlu0 %v7956_v46, %s11402_s22  ;;  %s11448_s22 = sld [smem:[#allocation25_spill]] }
0x26b5   : > { %7244 = vrot.lane.b32.xlu0 %v7875_v38, %s11406_s18 }
0x26b9   : > { %7234 = vrot.lane.b32.xlu0 %v7875_v38, %s11403_s28 }
0x2723   : > { %v7154_v20 = vpop.permute.xlu0 %7153 }
0x2724   : > { %v7155_v47 = vrot.slane %v7154_v20, 4 }
0x2726   : > { %v7157_v0 = vsel %vm5678_vm6, %v7155_v47, %v7154_v20  ;;  %vm11433_vm6 = vmmov %vm11425_vm8 }
0x2727   : > { %7159 = vst.msk [vmem:[#allocation2] sm:$0xff] %vm9303_vm11, %v7157_v0  ;;  %v7245_v26 = vpop.permute.xlu0 %7244  ;;  %vm11432_vm11 = vmmov %vm11423_vm12 }
0x2728   : > { %7160 = vst.msk [vmem:[#allocation2 + $0x4] sm:$0xf] %vm11431_vm1, %v11390_v56  ;;  %v7354_v56 = vld [vmem:[%s9170_s27 + $0x260] sm:$0xff]  ;;  %vm11439_vm12 = vmmov %vm11432_vm11 }
0x2729   : > { %v7246_v22 = vsel %vm11439_vm12, %v7243_v53, %v7245_v26  ;;  %vm11441_vm8 = vmmov %vm11434_vm3  ;;  %v7369_v53 = vld [vmem:[%s11448_s22] sm:$0x3] }
0x272a   : > { %v7311_v23 = vsel %vm1273_vm0, %v7246_v22, 0  ;;  %vm11442_vm14 = vmmov %vm11433_vm6 }
0x272b   : > { %v7235_v60 = vpop.permute.xlu0 %7234  ;;  %vm11447_vm1 = vmmov %vm11440_vm10 }
0x272c   : > { %v7236_v36 = vsel %vm11442_vm14, %v7233_v39, %v7235_v60 }
0x272e   : > { %v7161_v31 = vld [vmem:[#allocation2] sm:$0xf] }
0x272f   : > { %v7162_v11 = vld [vmem:[#allocation2] sm:$0xff] }
0x2730   : > { %v7873_v27 = vcombine.high %v7162_v11, %v7162_v11  ;;  %v7872_v33 = vcombine.low %v7162_v11, %v7162_v11 }
0x2732   : > { %7195 = vrot.lane.b32.xlu0 %v7873_v27, %s11406_s18  ;;  %7193 = vrot.lane.b32.xlu1 %v7872_v33, %s11406_s18  ;;  %s11443_s18 = sld [smem:[#allocation23_spill]] }
0x2736   : > { %7185 = vrot.lane.b32.xlu0 %v7873_v27, %s11403_s28  ;;  %7183 = vrot.lane.b32.xlu1 %v7872_v33, %s11403_s28 }
0x2738   : > { %v7259_v58 = vld [vmem:[%s11443_s18] sm:$0xf] }
0x273a   : > { %7190 = vrot.lane.b32.xlu0 %v7873_v27, %s11408_s26  ;;  %7188 = vrot.lane.b32.xlu1 %v7872_v33, %s11408_s26 }
0x273e   : > { %7175 = vrot.lane.b32.xlu0 %v7873_v27, %s11412_s1  ;;  %7173 = vrot.lane.b32.xlu1 %v7872_v33, %s11412_s1 }
0x2742   : > { %7180 = vrot.lane.b32.xlu0 %v7873_v27, %s11404_s23  ;;  %7178 = vrot.lane.b32.xlu1 %v7872_v33, %s11404_s23 }
0x2746   : > { %7170 = vrot.lane.b32.xlu0 %v7873_v27, %s11413_s3  ;;  %7168 = vrot.lane.b32.xlu1 %v7872_v33, %s11413_s3 }
0x274a   : > { %7239 = vrot.lane.b32.xlu0 %v7875_v38, %s11408_s26  ;;  %7237 = vrot.lane.b32.xlu1 %v11168_v55, %s11408_s26 }
0x274e   : > { %7224 = vrot.lane.b32.xlu0 %v7875_v38, %s11412_s1  ;;  %7222 = vrot.lane.b32.xlu1 %v11168_v55, %s11412_s1 }
0x2752   : > { %7229 = vrot.lane.b32.xlu0 %v7875_v38, %s11404_s23  ;;  %7227 = vrot.lane.b32.xlu1 %v11168_v55, %s11404_s23  ;;  %s7534_s23 = sshll.u32 %s11452_s10, 2 }
0x2753   : > { %s1009_s26 = scalar_lea.vmem %s9175_s4, %s7534_s23 }
0x2756   : > { %7219 = vrot.lane.b32.xlu0 %v7875_v38, %s11413_s3  ;;  %7217 = vrot.lane.b32.xlu1 %v11168_v55, %s11413_s3  ;;  %s11435_s3 = sld [smem:[#allocation24_spill]] }
0x275a   : > { %7363 = vperm.xlu0 %8681, %v7354_v56   ;;  %7357 = vperm.xlu1 %8682, %v7353_v15  }
0x275c   : > { %v7260_v24 = vld [vmem:[%s11435_s3] sm:$0xf] }
0x275e   : > { %7373 = vperm.xlu1 %8682, %v7370_v2  }
0x27a4   : > { %v7194_v45 = vpop.permute.xlu1 %7193  ;;  %v7196_v37 = vpop.permute.xlu0 %7195 }
0x27a5   : > { %v7197_v32 = vsel %vm11432_vm11, %v7194_v45, %v7196_v37  ;;  %vm11449_vm11 = vcmask 1042432  }
0x27a6   : > { %v7265_v8 = vsel %vm1273_vm0, %v7197_v32, 0 }
0x27a7   : > { %8589 = vmatpush3.bf16.msra.mxu1 %v7265_v8 }
0x27a8   : > { %v7184_v57 = vpop.permute.xlu1 %7183  ;;  %v7186_v44 = vpop.permute.xlu0 %7185  ;;  %8590 = vmatprep.subr.bf16.mxu1 %v11409_v21 }
0x27a9   : > { %v7187_v13 = vsel %vm11433_vm6, %v7184_v57, %v7186_v44 }
0x27ac   : > { %v7189_v43 = vpop.permute.xlu1 %7188  ;;  %v7191_v16 = vpop.permute.xlu0 %7190 }
0x27ad   : > { %v7192_v1 = vsel %vm11434_vm3, %v7189_v43, %v7191_v16 }
0x27ae   : > { %v7208_v17 = vsel %vm1273_vm0, %v7187_v13, %v7192_v1 }
0x27af   : > { %8591 = vmatpush3.bf16.msra.mxu1 %v7208_v17 }
0x27b0   : > { %v7174_v34 = vpop.permute.xlu1 %7173  ;;  %v7176_v10 = vpop.permute.xlu0 %7175  ;;  %8592 = vmatprep.subr.bf16.mxu1 %v11409_v21 }
0x27b1   : > { %v7177_v55 = vsel %vm11436_vm4, %v7174_v34, %v7176_v10 }
0x27b4   : > { %v7179_v40 = vpop.permute.xlu1 %7178  ;;  %v7181_v54 = vpop.permute.xlu0 %7180 }
0x27b5   : > { %v7182_v19 = vsel %vm11437_vm9, %v7179_v40, %v7181_v54 }
0x27b6   : > { %v7204_v59 = vsel %vm1273_vm0, %v7177_v55, %v7182_v19 }
0x27b7   : > { %8593 = vmatpush3.bf16.msra.mxu1 %v7204_v59 }
0x27b8   : > { %v7169_v61 = vpop.permute.xlu1 %7168  ;;  %v7171_v3 = vpop.permute.xlu0 %7170  ;;  %8594 = vmatprep.subr.bf16.mxu1 %v11409_v21 }
0x27b9   : > { %v7172_v5 = vsel %vm11438_vm2, %v7169_v61, %v7171_v3 }
0x27ba   : > { %v7200_v42 = vsel %vm1273_vm0, %v7161_v31, %v7172_v5 }
0x27bb   : > { %8595 = vmatpush3.bf16.msra.mxu1 %v7200_v42 }
0x27bc   : > { %v7238_v18 = vpop.permute.xlu1 %7237  ;;  %v7240_v7 = vpop.permute.xlu0 %7239  ;;  %8600 = vmatprep.subr.bf16.mxu1 %v11409_v21 }
0x27bd   : > { %v7241_v41 = vsel %vm11441_vm8, %v7238_v18, %v7240_v7 }
0x27be   : > { %8597 = vmatmul.mubr.msk.bf16.vlgmr.msra.gmra.mxu1 %vm11440_vm10, %v7260_v24  ;;  %v7257_v50 = vsel %vm1273_vm0, %v7236_v36, %v7241_v41 }
0x27bf   : > { %8601 = vmatpush3.bf16.msra.mxu1 %v7311_v23  ;;  %8608 = vmatprep.mubr.msk.bf16.mxu1 %vm8998_vm15, %v11409_v21  ;;  %vm11446_vm15 = vmmov %vm11438_vm2 }
0x27c0   : > { %v7223_v25 = vpop.permute.xlu1 %7222  ;;  %v7225_v63 = vpop.permute.xlu0 %7224  ;;  %8602 = vmatprep.subr.bf16.mxu1 %v11409_v21 }
0x27c1   : > { %v7226_v12 = vsel %vm11444_vm7, %v7223_v25, %v7225_v63 }
0x27c3   : > { %8603 = vmatpush3.bf16.msra.mxu1 %v7257_v50 }
0x27c4   : > { %v7228_v49 = vpop.permute.xlu1 %7227  ;;  %v7230_v6 = vpop.permute.xlu0 %7229  ;;  %8604 = vmatprep.subr.bf16.mxu1 %v11409_v21 }
0x27c5   : > { %v7231_v14 = vsel %vm11445_vm5, %v7228_v49, %v7230_v6 }
0x27c6   : > { %v7253_v35 = vsel %vm1273_vm0, %v7226_v12, %v7231_v14 }
0x27c7   : > { %8605 = vmatpush3.bf16.msra.mxu1 %v7253_v35 }
0x27c8   : > { %v7218_v30 = vpop.permute.xlu1 %7217  ;;  %v7220_v52 = vpop.permute.xlu0 %7219  ;;  %8606 = vmatprep.subr.bf16.mxu1 %v11409_v21 }
0x27c9   : > { %v7221_v28 = vsel %vm11446_vm15, %v7218_v30, %v7220_v52 }
0x27ca   : > { %v7249_v9 = vsel %vm1273_vm0, %v7210_v62, %v7221_v28 }
0x27cb   : > { %8607 = vmatpush3.bf16.msra.mxu1 %v7249_v9 }
0x27ce   : > { %8609 = vmatmul.mubr.msk.bf16.vlgmr.msra.gmra.mxu1 %vm11447_vm1, %v7259_v58 }
0x27d5   : > { %v7358_v47 = vpop.permute.xlu1 %7357  ;;  %v7364_v21 = vpop.permute.xlu0 %7363 }
0x27d9   : > { %v7374_v26 = vpop.permute.xlu1 %7373 }
0x287e   : > { %v7301_v4 = vpop.f32.mrf.mxu1 }
0x2880   : > { %v8598_v48 = vpop.f32.mrf.mxu1 }
0x2882   : > { %v7304_v29 = vpop.f32.mrf.mxu1 }
0x2884   : > { %v8599_v46 = vpop.f32.mrf.mxu1 }
0x288e   : > { %v7347_v38 = vpop.f32.mrf.mxu1 }
0x288f   : > { %v7348_v20 = vadd.f32 %v7347_v38, %v7301_v4 }
0x2890   : > { %v8610_v0 = vpop.f32.mrf.mxu1 }
0x2891   : > { %v7360_v51 = vmul.f32 %v7358_v47, %v7348_v20 }
0x2892   : > { %v7350_v11 = vpop.f32.mrf.mxu1 }
0x2893   : > { %v7366_v27 = vadd.f32 %v7364_v21, %v7360_v51 }
0x2894   : > { %v8611_v33 = vpop.f32.mrf.mxu1 }
0x2895   : > { %v7367_v56 = vmax.f32 %v7366_v27, 0.0 }
0x2897   : > { %v7368_v15 = vpack.c.bf16 %v7367_v56, %v7367_v56 }
0x2899   : > { %v7380_v2 = vsel %vm1273_vm0, %v7368_v15, 0  ;;  %vm11450_vm0 = vmmov %vm11449_vm11 }
0x289a   : > { %8613 = vmatpush3.bf16.msra.mxu0 %v7380_v2 }
0x289d   : > { %8615 = vmatmul.mubr.msk.bf16.vlgmr.msra.gmra.mxu0 %vm6504_vm13, %v7369_v53 }
0x295d   : > { %v7416_v39 = vpop.f32.mrf.mxu0 }
0x295e   : > { %v7417_v60 = vadd.f32 %v7416_v39, %v7374_v26 }
0x295f   : > { %v8616_v45 = vpop.f32.mrf.mxu0 }
0x2960   : > { %v7422_v37 = vsel %vm11449_vm11, %v7417_v60, -inf }
0x2961   : > { %v7423_v32 = vrot.slane %v7422_v37, 4  ;;  %v7419_v8 = vpop.f32.mrf.mxu0 }
0x2963   : > { %v7424_v57 = vmax.f32 %v7422_v37, %v7423_v32  ;;  %v8617_v44 = vpop.f32.mrf.mxu0 }
0x2965   : > { %v7425_v43 = vrot.slane %v7424_v57, 2 }
0x2967   : > { %v7426_v16 = vmax.f32 %v7424_v57, %v7425_v43 }
0x2969   : > { %v7427_v13 = vrot.slane %v7426_v16, 1 }
0x296b   : > { %v7428_v1 = vmax.f32 %v7426_v16, %v7427_v13 }
0x296d   : > { %v7429_v17 = vsub.f32 %v7417_v60, %v7428_v1 }
0x296f   : > { %v7430_v34 = vmul.f32 1.442695, %v7429_v17 }
0x2971   : > { %8943 = vpow2.f32 %v7430_v34 }
0x297e   : > { %v8944_v10 = vpop.eup %8943 }
0x297f   : > { %v7432_v40 = vsel %vm11450_vm0, %v8944_v10, 0.0 }
0x2980   : > { %v7433_v54 = vrot.slane %v7432_v40, 4 }
0x2982   : > { %v7434_v55 = vadd.f32 %v7433_v54, %v7432_v40 }
0x2984   : > { %v7435_v19 = vrot.slane %v7434_v55, 2 }
0x2986   : > { %v7436_v59 = vadd.f32 %v7435_v19, %v7434_v55 }
0x2988   : > { %v7437_v61 = vrot.slane %v7436_v59, 1 }
0x298a   : > { %v7438_v3 = vadd.f32 %v7437_v61, %v7436_v59 }
0x298c   : > { %8945 = vrcp.f32 %v7438_v3 }
0x2999   : > { %v8946_v5 = vpop.eup %8945 }
0x299a   : > { %v7440_v31 = vmul.f32 %v8946_v5, %v8944_v10 }
0x299c   : > { %7441 = vst [vmem:[%s1009_s26] sm:$0x7] %v7440_v31 }
0x299d PF: > { %s77_s7 = sadd.s32 1, %s8953_s7  }
0x299e   : > { %p74_p4 = scmp.ge.s32.totalorder %s77_s7, 4  }
0x29a0   :  { %76 = sbr.rel (!%p74_p4) target bundleno = 61 (0x3d), region = 215 }

</bundles_post_ra>
